<compile_context>
chip_gen: v7x
topology: tpu7x:2x2x1
jax: 0.10.0
libtpu: 0.0.40
codegen_flags: <defaults>
</compile_context>

<pallas_src>
import math

import jax
import jax.numpy as jnp
from jax.experimental import pallas as pl
from jax.experimental.pallas import tpu as pltpu

# Real module config: (K, Cin, Cout) for conv1..conv6 (all kernels are (1, K)).
CONV_CFG = [
    (7, 1, 16),
    (5, 16, 24),
    (5, 24, 24),
    (4, 24, 64),
    (3, 64, 64),
    (3, 64, 64),
]
# Lane-padded config (zero channels only -> numerically identical): Cout of
# conv2/conv3 and Cin of conv3/conv4 padded 24 -> 32.
PAD_CFG = [
    (7, 1, 16),
    (5, 16, 32),
    (5, 32, 32),
    (4, 32, 64),
    (3, 64, 64),
    (3, 64, 64),
]
C_MAX = 64          # widest Cout -> lane width of the packed slabs
W_SHRINK = 23       # (7-1)+(5-1)+1+(5-1)+1+(4-1)+(3-1)+(3-1)
H_SHRINK = 2        # two (2,1) stride-1 max pools


def _round8(v):
    return (v + 7) & ~7


# Row offset of each layer's (K*Cin_pad, Cout_pad) block inside the packed
# weight slab; starts rounded to 8 so every in-kernel weight slice is
# sublane-aligned.
W_OFFSETS = []
_off = 0
for (_k, _ci, _co) in PAD_CFG:
    W_OFFSETS.append(_off)
    _off = _round8(_off + _k * _ci)
W_ROWS_TOTAL = _off


def pack_params(params):
    """Pack per-layer (K,Cin,Cout) weights and (1,Cout) biases into 2 slabs."""
    wslab = jnp.zeros((W_ROWS_TOTAL, C_MAX), jnp.float32)
    bslab = jnp.zeros((8, C_MAX), jnp.float32)   # rows padded to one sublane group
    for i, ((K, ci, co), (_kp, cip, _cop), (w, b)) in enumerate(
            zip(CONV_CFG, PAD_CFG, params)):
        blk = jnp.zeros((K, cip, C_MAX), jnp.float32)
        blk = blk.at[:, :ci, :co].set(w.astype(jnp.float32))
        wslab = wslab.at[W_OFFSETS[i]:W_OFFSETS[i] + K * cip, :].set(
            blk.reshape(K * cip, C_MAX))
        bslab = bslab.at[i, :co].set(b.reshape(co).astype(jnp.float32))
    return wslab, bslab


def _make_kernel(rb, use_roll=True):
    """Kernel for one batch group: rb = nb*H rows per width position (rb%8==0)."""

    def conv_relu(x, w_ref, b_ref, layer, w_cur):
        k_sz, cin, cout = PAD_CFG[layer]
        off = W_OFFSETS[layer]
        w_out = w_cur - k_sz + 1
        m = w_out * rb
        b = b_ref[layer:layer + 1, 0:cout]                       # (1, cout)
        if cin == 1:
            # conv1: outer-product MACs on the VPU; the lane-broadcast of x to
            # 16 lanes is hoisted out of the tap loop (done exactly once).
            w = w_ref[off:off + k_sz, 0:cout]                    # (K, cout)
            xb = jnp.broadcast_to(x, (x.shape[0], cout))         # (rows, cout)
            acc = xb[0:m, :] * w[0:1, :]
            for k in range(1, k_sz):
                acc = acc + xb[k * rb:k * rb + m, :] * w[k:k + 1, :]
        else:
            # im2col: K shifted, 8-aligned row blocks side by side on lanes
            # (32/64-aligned lane offsets thanks to the channel padding) ->
            # one MXU matmul per layer, f32 operands + f32 accumulation.
            cols = jnp.concatenate(
                [x[k * rb:k * rb + m, :] for k in range(k_sz)], axis=1)
            w = w_ref[off:off + k_sz * cin, 0:cout]              # (K*cin, cout)
            acc = jnp.dot(cols, w, preferred_element_type=jnp.float32)
        return jnp.maximum(acc + b, 0.0), w_out

    def pool_w(x, w_cur):
        # MaxPool2d (1,2) stride 1: max of neighbouring width positions
        # (both operands are 8-aligned sublane slices).
        m = (w_cur - 1) * rb
        return jnp.maximum(x[0:m, :], x[rb:rb + m, :]), w_cur - 1

    def pool_h(x):
        # MaxPool2d (2,1) stride 1: max of neighbouring rows.  Rows that mix
        # adjacent samples (or the wraparound row) become junk and are dropped
        # by the wrapper, so shape / 8-row alignment are preserved.
        rows = x.shape[0]
        if use_roll:
            # roll by rows-1 == roll by -1: row i picks up row i+1 (XLU slot).
            shifted = pltpu.roll(x, rows - 1, 0)
        else:
            shifted = jnp.concatenate([x[1:, :], x[0:1, :]], axis=0)
        return jnp.maximum(x, shifted)

    def kernel(x_ref, w_ref, b_ref, o_ref):
        w_cur = x_ref.shape[0] // rb
        x = x_ref[...]                                       # (W*rb, 1)
        x, w_cur = conv_relu(x, w_ref, b_ref, 0, w_cur)      # conv1 + relu
        x, w_cur = conv_relu(x, w_ref, b_ref, 1, w_cur)      # conv2 + relu
        x, w_cur = pool_w(x, w_cur)                          # maxPool1 (1,2)
        x, w_cur = conv_relu(x, w_ref, b_ref, 2, w_cur)      # conv3 + relu
        x, w_cur = pool_w(x, w_cur)                          # maxPool2 (1,2)
        x, w_cur = conv_relu(x, w_ref, b_ref, 3, w_cur)      # conv4 + relu
        x = pool_h(x)                                        # maxPool3 (2,1)
        # Junk h-rows still flow through conv5/conv6 (compacting them would
        # break the 8-row alignment at H=4); accepted per the review.
        x, w_cur = conv_relu(x, w_ref, b_ref, 4, w_cur)      # conv5 + relu
        x = pool_h(x)                                        # maxPool4 (2,1)
        x, w_cur = conv_relu(x, w_ref, b_ref, 5, w_cur)      # conv6 + relu
        o_ref[...] = x.astype(o_ref.dtype)                   # one dense store

    return kernel


def _pick_group_size(N, H):
    """Smallest nb with nb*H % 8 == 0 that divides N (layout hard requirement)."""
    nb = 8 // math.gcd(8, H)
    if N % nb != 0:
        nb = N
    if (nb * H) % 8 != 0:
        raise ValueError("N*H must be a multiple of 8 for the 8-row sublane "
                         "slab layout (got N=%d, H=%d)" % (N, H))
    return nb


def horizontal_forward(x_nchw, params, use_roll=True):
    """x_nchw: (N, 1, H, W) float32 (NCHW). Returns (N, 64, H-2, W-23)."""
    N, C, H, W = x_nchw.shape
    assert C == 1
    assert W > W_SHRINK and H > H_SHRINK

    nb = _pick_group_size(N, H)          # samples per grid block
    rb = nb * H                          # rows per width position per block
    assert rb % 8 == 0, "rows per block must be a multiple of 8 (sublane groups)"
    G = N // nb                          # grid size (batch groups)
    h_out = H - H_SHRINK
    w_out = W - W_SHRINK

    # (N,1,H,W) -> (G, W, nb, H) -> (G*W*rb, 1): batch groups outermost, then
    # width on 8-row sublane groups; channels live on lanes inside the kernel.
    x = x_nchw[:, 0, :, :].astype(jnp.float32)
    x = x.reshape(G, nb, H, W).transpose(0, 3, 1, 2).reshape(G * W * rb, 1)

    wslab, bslab = pack_params(params)

    out2d = pl.pallas_call(
        _make_kernel(rb, use_roll),
        grid=(G,),
        in_specs=[
            pl.BlockSpec((W * rb, 1), lambda g: (g, 0)),          # per-group input
            pl.BlockSpec(wslab.shape, lambda g: (0, 0)),          # resident weights
            pl.BlockSpec(bslab.shape, lambda g: (0, 0)),          # resident biases
        ],
        out_specs=pl.BlockSpec((w_out * rb, C_MAX), lambda g: (g, 0)),
        out_shape=jax.ShapeDtypeStruct((G * w_out * rb, C_MAX), jnp.float32),
        compiler_params=pltpu.CompilerParams(
            dimension_semantics=("parallel",),        # megacore-shard batch groups
            vmem_limit_bytes=32 * 1024 * 1024,        # explicit budget, v7x-safe
        ),
    )(x, wslab, bslab)

    # (G*w_out*rb, 64) -> (G, w_out, nb, H, 64); rows with h >= h_out are junk
    # from the in-kernel (2,1) pools and are dropped here (layout plumbing).
    out = out2d.reshape(G, w_out, nb, H, C_MAX)[:, :, :, :h_out, :]
    out = out.transpose(0, 2, 4, 3, 1).reshape(N, C_MAX, h_out, w_out)
    return out


def init_params(key):
    """Deterministic synthetic weights: (K, Cin, Cout) + (1, Cout) per block."""
    params = []
    for (K, Cin, Cout) in CONV_CFG:
        key, kw, kb = jax.random.split(key, 3)
        scale = (K * Cin) ** -0.5
        w = jax.random.normal(kw, (K, Cin, Cout), jnp.float32) * scale
        b = jax.random.normal(kb, (1, Cout), jnp.float32) * 0.01
        params.append((w, b))
    return params


def ref_forward(x_nchw, params):
    """Pure-JAX reference (lax.conv / reduce_window) for correctness check."""
    x = x_nchw.astype(jnp.float32)

    def conv_relu(x, w, b):
        y = jax.lax.conv_general_dilated(
            x, w[None], window_strides=(1, 1), padding='VALID',
            dimension_numbers=('NCHW', 'HWIO', 'NCHW'))
        return jnp.maximum(y + b.reshape(1, -1, 1, 1), 0.0)

    def maxpool(x, kh, kw):
        return jax.lax.reduce_window(x, -jnp.inf, jax.lax.max,
                                     (1, 1, kh, kw), (1, 1, 1, 1), 'VALID')

    x = conv_relu(x, *params[0])
    x = conv_relu(x, *params[1])
    x = maxpool(x, 1, 2)
    x = conv_relu(x, *params[2])
    x = maxpool(x, 1, 2)
    x = conv_relu(x, *params[3])
    x = maxpool(x, 2, 1)
    x = conv_relu(x, *params[4])
    x = maxpool(x, 2, 1)
    x = conv_relu(x, *params[5])
    return x


if __name__ == "__main__":
    key = jax.random.PRNGKey(0)
    key, kx = jax.random.split(key)
    # NCHW like the PyTorch module: batch=4 (-> 2 grid blocks of 2 samples),
    # in_channels=1, H=4, W=32.
    x = jax.random.normal(kx, (4, 1, 4, 32), jnp.float32)
    params = init_params(key)

    ref = jax.block_until_ready(ref_forward(x, params))

    out = None
    try:
        cand = jax.block_until_ready(horizontal_forward(x, params, use_roll=True))
        if bool(jnp.allclose(cand, ref, atol=1e-4, rtol=1e-4)):
            out = cand
    except Exception:
        out = None
    if out is None:
        # Fallback: if this backend rejects (or differs on) sublane pltpu.roll,
        # use the proven concat-based row shift for the height pools.
        out = jax.block_until_ready(horizontal_forward(x, params, use_roll=False))

    assert out.shape == ref.shape == (4, 64, 2, 9), (out.shape, ref.shape)
    err = float(jnp.max(jnp.abs(out - ref)))
    assert jnp.allclose(out, ref, atol=1e-4, rtol=1e-4), err

    print("KERNEL_OK")
</pallas_src>

<mosaic_0001>
module attributes {stable_mosaic.version = 11 : i64} {
  func.func @kernel(%arg0: i32, %arg1: memref<256x1xf32, #tpu.memory_space<vmem>>, %arg2: memref<760x64xf32, #tpu.memory_space<vmem>>, %arg3: memref<8x64xf32, #tpu.memory_space<vmem>>, %arg4: memref<72x64xf32, #tpu.memory_space<vmem>>) attributes {dimension_semantics = [#tpu.dimension_semantics<parallel>], iteration_bounds = array<i64: 2>, scalar_prefetch = 0 : i64, scratch_operands = 0 : i64, tpu.core_type = #tpu.core_type<tc>, window_params = [{transform_indices = @transform_0, window_bounds = array<i64: 256, 1>}, {pipeline_mode = #tpu.pipeline_mode<synchronous>, transform_indices = @transform_1, window_bounds = array<i64: 760, 64>}, {pipeline_mode = #tpu.pipeline_mode<synchronous>, transform_indices = @transform_2, window_bounds = array<i64: 8, 64>}, {transform_indices = @transform_3, window_bounds = array<i64: 72, 64>}]} {
    %c0 = arith.constant 0 : index
    %c0_0 = arith.constant 0 : index
    %0 = vector.load %arg1[%c0, %c0_0] : memref<256x1xf32, #tpu.memory_space<vmem>>, vector<256x1xf32>
    %c0_1 = arith.constant 0 : index
    %c0_2 = arith.constant 0 : index
    %1 = vector.load %arg3[%c0_1, %c0_2] : memref<8x64xf32, #tpu.memory_space<vmem>>, vector<1x16xf32>
    %c0_3 = arith.constant 0 : index
    %c0_4 = arith.constant 0 : index
    %2 = vector.load %arg2[%c0_3, %c0_4] : memref<760x64xf32, #tpu.memory_space<vmem>>, vector<7x16xf32>
    %3 = vector.shape_cast %0 : vector<256x1xf32> to vector<256x1xf32>
    %4 = vector.broadcast %3 : vector<256x1xf32> to vector<256x16xf32>
    %5 = vector.extract_strided_slice %4 {offsets = [0, 0], sizes = [208, 16], strides = [1, 1]} : vector<256x16xf32> to vector<208x16xf32>
    %6 = vector.extract_strided_slice %2 {offsets = [0, 0], sizes = [1, 16], strides = [1, 1]} : vector<7x16xf32> to vector<1x16xf32>
    %7 = vector.broadcast %6 : vector<1x16xf32> to vector<208x16xf32>
    %8 = arith.mulf %5, %7 : vector<208x16xf32>
    %9 = vector.extract_strided_slice %4 {offsets = [8, 0], sizes = [208, 16], strides = [1, 1]} : vector<256x16xf32> to vector<208x16xf32>
    %10 = vector.extract_strided_slice %2 {offsets = [1, 0], sizes = [1, 16], strides = [1, 1]} : vector<7x16xf32> to vector<1x16xf32>
    %11 = vector.broadcast %10 : vector<1x16xf32> to vector<208x16xf32>
    %12 = arith.mulf %9, %11 : vector<208x16xf32>
    %13 = arith.addf %8, %12 : vector<208x16xf32>
    %14 = vector.extract_strided_slice %4 {offsets = [16, 0], sizes = [208, 16], strides = [1, 1]} : vector<256x16xf32> to vector<208x16xf32>
    %15 = vector.extract_strided_slice %2 {offsets = [2, 0], sizes = [1, 16], strides = [1, 1]} : vector<7x16xf32> to vector<1x16xf32>
    %16 = vector.broadcast %15 : vector<1x16xf32> to vector<208x16xf32>
    %17 = arith.mulf %14, %16 : vector<208x16xf32>
    %18 = arith.addf %13, %17 : vector<208x16xf32>
    %19 = vector.extract_strided_slice %4 {offsets = [24, 0], sizes = [208, 16], strides = [1, 1]} : vector<256x16xf32> to vector<208x16xf32>
    %20 = vector.extract_strided_slice %2 {offsets = [3, 0], sizes = [1, 16], strides = [1, 1]} : vector<7x16xf32> to vector<1x16xf32>
    %21 = vector.broadcast %20 : vector<1x16xf32> to vector<208x16xf32>
    %22 = arith.mulf %19, %21 : vector<208x16xf32>
    %23 = arith.addf %18, %22 : vector<208x16xf32>
    %24 = vector.extract_strided_slice %4 {offsets = [32, 0], sizes = [208, 16], strides = [1, 1]} : vector<256x16xf32> to vector<208x16xf32>
    %25 = vector.extract_strided_slice %2 {offsets = [4, 0], sizes = [1, 16], strides = [1, 1]} : vector<7x16xf32> to vector<1x16xf32>
    %26 = vector.broadcast %25 : vector<1x16xf32> to vector<208x16xf32>
    %27 = arith.mulf %24, %26 : vector<208x16xf32>
    %28 = arith.addf %23, %27 : vector<208x16xf32>
    %29 = vector.extract_strided_slice %4 {offsets = [40, 0], sizes = [208, 16], strides = [1, 1]} : vector<256x16xf32> to vector<208x16xf32>
    %30 = vector.extract_strided_slice %2 {offsets = [5, 0], sizes = [1, 16], strides = [1, 1]} : vector<7x16xf32> to vector<1x16xf32>
    %31 = vector.broadcast %30 : vector<1x16xf32> to vector<208x16xf32>
    %32 = arith.mulf %29, %31 : vector<208x16xf32>
    %33 = arith.addf %28, %32 : vector<208x16xf32>
    %34 = vector.extract_strided_slice %4 {offsets = [48, 0], sizes = [208, 16], strides = [1, 1]} : vector<256x16xf32> to vector<208x16xf32>
    %35 = vector.extract_strided_slice %2 {offsets = [6, 0], sizes = [1, 16], strides = [1, 1]} : vector<7x16xf32> to vector<1x16xf32>
    %36 = vector.broadcast %35 : vector<1x16xf32> to vector<208x16xf32>
    %37 = arith.mulf %34, %36 : vector<208x16xf32>
    %38 = arith.addf %33, %37 : vector<208x16xf32>
    %39 = vector.broadcast %1 : vector<1x16xf32> to vector<208x16xf32>
    %40 = arith.addf %38, %39 : vector<208x16xf32>
    %cst = arith.constant 0.000000e+00 : f32
    %41 = vector.broadcast %cst : f32 to vector<208x16xf32>
    %42 = arith.maximumf %40, %41 : vector<208x16xf32>
    %c1 = arith.constant 1 : index
    %c0_5 = arith.constant 0 : index
    %43 = vector.load %arg3[%c1, %c0_5] : memref<8x64xf32, #tpu.memory_space<vmem>>, vector<1x32xf32>
    %44 = vector.extract_strided_slice %42 {offsets = [0, 0], sizes = [176, 16], strides = [1, 1]} : vector<208x16xf32> to vector<176x16xf32>
    %45 = vector.extract_strided_slice %42 {offsets = [8, 0], sizes = [176, 16], strides = [1, 1]} : vector<208x16xf32> to vector<176x16xf32>
    %46 = vector.extract_strided_slice %42 {offsets = [16, 0], sizes = [176, 16], strides = [1, 1]} : vector<208x16xf32> to vector<176x16xf32>
    %47 = vector.extract_strided_slice %42 {offsets = [24, 0], sizes = [176, 16], strides = [1, 1]} : vector<208x16xf32> to vector<176x16xf32>
    %48 = vector.extract_strided_slice %42 {offsets = [32, 0], sizes = [176, 16], strides = [1, 1]} : vector<208x16xf32> to vector<176x16xf32>
    %49 = tpu.concatenate %44, %45, %46, %47, %48 in 1 : vector<176x16xf32>, vector<176x16xf32>, vector<176x16xf32>, vector<176x16xf32>, vector<176x16xf32> -> vector<176x80xf32>
    %c8 = arith.constant 8 : index
    %c0_6 = arith.constant 0 : index
    %50 = vector.load %arg2[%c8, %c0_6] : memref<760x64xf32, #tpu.memory_space<vmem>>, vector<80x32xf32>
    %cst_7 = arith.constant dense<0.000000e+00> : vector<176x32xf32>
    %51 = tpu.matmul %49, %50, %cst_7 {dimension_numbers = #tpu.dot_dimension_numbers<[1], [0], [0], [1], [0, 0, 1, 1], [], []>} : vector<176x80xf32>, vector<80x32xf32>, vector<176x32xf32> -> vector<176x32xf32>
    %52 = vector.broadcast %43 : vector<1x32xf32> to vector<176x32xf32>
    %53 = arith.addf %51, %52 : vector<176x32xf32>
    %cst_8 = arith.constant 0.000000e+00 : f32
    %54 = vector.broadcast %cst_8 : f32 to vector<176x32xf32>
    %55 = arith.maximumf %53, %54 : vector<176x32xf32>
    %56 = vector.extract_strided_slice %55 {offsets = [0, 0], sizes = [168, 32], strides = [1, 1]} : vector<176x32xf32> to vector<168x32xf32>
    %57 = vector.extract_strided_slice %55 {offsets = [8, 0], sizes = [168, 32], strides = [1, 1]} : vector<176x32xf32> to vector<168x32xf32>
    %58 = arith.maximumf %56, %57 : vector<168x32xf32>
    %c2 = arith.constant 2 : index
    %c0_9 = arith.constant 0 : index
    %59 = vector.load %arg3[%c2, %c0_9] : memref<8x64xf32, #tpu.memory_space<vmem>>, vector<1x32xf32>
    %60 = vector.extract_strided_slice %58 {offsets = [0, 0], sizes = [136, 32], strides = [1, 1]} : vector<168x32xf32> to vector<136x32xf32>
    %61 = vector.extract_strided_slice %58 {offsets = [8, 0], sizes = [136, 32], strides = [1, 1]} : vector<168x32xf32> to vector<136x32xf32>
    %62 = vector.extract_strided_slice %58 {offsets = [16, 0], sizes = [136, 32], strides = [1, 1]} : vector<168x32xf32> to vector<136x32xf32>
    %63 = vector.extract_strided_slice %58 {offsets = [24, 0], sizes = [136, 32], strides = [1, 1]} : vector<168x32xf32> to vector<136x32xf32>
    %64 = vector.extract_strided_slice %58 {offsets = [32, 0], sizes = [136, 32], strides = [1, 1]} : vector<168x32xf32> to vector<136x32xf32>
    %65 = tpu.concatenate %60, %61, %62, %63, %64 in 1 : vector<136x32xf32>, vector<136x32xf32>, vector<136x32xf32>, vector<136x32xf32>, vector<136x32xf32> -> vector<136x160xf32>
    %c88 = arith.constant 88 : index
    %c0_10 = arith.constant 0 : index
    %66 = vector.load %arg2[%c88, %c0_10] : memref<760x64xf32, #tpu.memory_space<vmem>>, vector<160x32xf32>
    %cst_11 = arith.constant dense<0.000000e+00> : vector<136x32xf32>
    %67 = tpu.matmul %65, %66, %cst_11 {dimension_numbers = #tpu.dot_dimension_numbers<[1], [0], [0], [1], [0, 0, 1, 1], [], []>} : vector<136x160xf32>, vector<160x32xf32>, vector<136x32xf32> -> vector<136x32xf32>
    %68 = vector.broadcast %59 : vector<1x32xf32> to vector<136x32xf32>
    %69 = arith.addf %67, %68 : vector<136x32xf32>
    %cst_12 = arith.constant 0.000000e+00 : f32
    %70 = vector.broadcast %cst_12 : f32 to vector<136x32xf32>
    %71 = arith.maximumf %69, %70 : vector<136x32xf32>
    %72 = vector.extract_strided_slice %71 {offsets = [0, 0], sizes = [128, 32], strides = [1, 1]} : vector<136x32xf32> to vector<128x32xf32>
    %73 = vector.extract_strided_slice %71 {offsets = [8, 0], sizes = [128, 32], strides = [1, 1]} : vector<136x32xf32> to vector<128x32xf32>
    %74 = arith.maximumf %72, %73 : vector<128x32xf32>
    %c3 = arith.constant 3 : index
    %c0_13 = arith.constant 0 : index
    %75 = vector.load %arg3[%c3, %c0_13] : memref<8x64xf32, #tpu.memory_space<vmem>>, vector<1x64xf32>
    %76 = vector.extract_strided_slice %74 {offsets = [0, 0], sizes = [104, 32], strides = [1, 1]} : vector<128x32xf32> to vector<104x32xf32>
    %77 = vector.extract_strided_slice %74 {offsets = [8, 0], sizes = [104, 32], strides = [1, 1]} : vector<128x32xf32> to vector<104x32xf32>
    %78 = vector.extract_strided_slice %74 {offsets = [16, 0], sizes = [104, 32], strides = [1, 1]} : vector<128x32xf32> to vector<104x32xf32>
    %79 = vector.extract_strided_slice %74 {offsets = [24, 0], sizes = [104, 32], strides = [1, 1]} : vector<128x32xf32> to vector<104x32xf32>
    %80 = tpu.concatenate %76, %77, %78, %79 in 1 : vector<104x32xf32>, vector<104x32xf32>, vector<104x32xf32>, vector<104x32xf32> -> vector<104x128xf32>
    %c248 = arith.constant 248 : index
    %c0_14 = arith.constant 0 : index
    %81 = vector.load %arg2[%c248, %c0_14] : memref<760x64xf32, #tpu.memory_space<vmem>>, vector<128x64xf32>
    %cst_15 = arith.constant dense<0.000000e+00> : vector<104x64xf32>
    %82 = tpu.matmul %80, %81, %cst_15 {dimension_numbers = #tpu.dot_dimension_numbers<[1], [0], [0], [1], [0, 0, 1, 1], [], []>} : vector<104x128xf32>, vector<128x64xf32>, vector<104x64xf32> -> vector<104x64xf32>
    %83 = vector.broadcast %75 : vector<1x64xf32> to vector<104x64xf32>
    %84 = arith.addf %82, %83 : vector<104x64xf32>
    %cst_16 = arith.constant 0.000000e+00 : f32
    %85 = vector.broadcast %cst_16 : f32 to vector<104x64xf32>
    %86 = arith.maximumf %84, %85 : vector<104x64xf32>
    %c103_i32 = arith.constant 103 : i32
    %87 = tpu.dynamic_rotate %86 by %c103_i32 dim 0 : vector<104x64xf32>, i32 -> vector<104x64xf32>
    %88 = arith.maximumf %86, %87 : vector<104x64xf32>
    %c4 = arith.constant 4 : index
    %c0_17 = arith.constant 0 : index
    %89 = vector.load %arg3[%c4, %c0_17] : memref<8x64xf32, #tpu.memory_space<vmem>>, vector<1x64xf32>
    %90 = vector.extract_strided_slice %88 {offsets = [0, 0], sizes = [88, 64], strides = [1, 1]} : vector<104x64xf32> to vector<88x64xf32>
    %91 = vector.extract_strided_slice %88 {offsets = [8, 0], sizes = [88, 64], strides = [1, 1]} : vector<104x64xf32> to vector<88x64xf32>
    %92 = vector.extract_strided_slice %88 {offsets = [16, 0], sizes = [88, 64], strides = [1, 1]} : vector<104x64xf32> to vector<88x64xf32>
    %93 = tpu.concatenate %90, %91, %92 in 1 : vector<88x64xf32>, vector<88x64xf32>, vector<88x64xf32> -> vector<88x192xf32>
    %c376 = arith.constant 376 : index
    %c0_18 = arith.constant 0 : index
    %94 = vector.load %arg2[%c376, %c0_18] : memref<760x64xf32, #tpu.memory_space<vmem>>, vector<192x64xf32>
    %cst_19 = arith.constant dense<0.000000e+00> : vector<88x64xf32>
    %95 = tpu.matmul %93, %94, %cst_19 {dimension_numbers = #tpu.dot_dimension_numbers<[1], [0], [0], [1], [0, 0, 1, 1], [], []>} : vector<88x192xf32>, vector<192x64xf32>, vector<88x64xf32> -> vector<88x64xf32>
    %96 = vector.broadcast %89 : vector<1x64xf32> to vector<88x64xf32>
    %97 = arith.addf %95, %96 : vector<88x64xf32>
    %cst_20 = arith.constant 0.000000e+00 : f32
    %98 = vector.broadcast %cst_20 : f32 to vector<88x64xf32>
    %99 = arith.maximumf %97, %98 : vector<88x64xf32>
    %c87_i32 = arith.constant 87 : i32
    %100 = tpu.dynamic_rotate %99 by %c87_i32 dim 0 : vector<88x64xf32>, i32 -> vector<88x64xf32>
    %101 = arith.maximumf %99, %100 : vector<88x64xf32>
    %c5 = arith.constant 5 : index
    %c0_21 = arith.constant 0 : index
    %102 = vector.load %arg3[%c5, %c0_21] : memref<8x64xf32, #tpu.memory_space<vmem>>, vector<1x64xf32>
    %103 = vector.extract_strided_slice %101 {offsets = [0, 0], sizes = [72, 64], strides = [1, 1]} : vector<88x64xf32> to vector<72x64xf32>
    %104 = vector.extract_strided_slice %101 {offsets = [8, 0], sizes = [72, 64], strides = [1, 1]} : vector<88x64xf32> to vector<72x64xf32>
    %105 = vector.extract_strided_slice %101 {offsets = [16, 0], sizes = [72, 64], strides = [1, 1]} : vector<88x64xf32> to vector<72x64xf32>
    %106 = tpu.concatenate %103, %104, %105 in 1 : vector<72x64xf32>, vector<72x64xf32>, vector<72x64xf32> -> vector<72x192xf32>
    %c568 = arith.constant 568 : index
    %c0_22 = arith.constant 0 : index
    %107 = vector.load %arg2[%c568, %c0_22] : memref<760x64xf32, #tpu.memory_space<vmem>>, vector<192x64xf32>
    %cst_23 = arith.constant dense<0.000000e+00> : vector<72x64xf32>
    %108 = tpu.matmul %106, %107, %cst_23 {dimension_numbers = #tpu.dot_dimension_numbers<[1], [0], [0], [1], [0, 0, 1, 1], [], []>} : vector<72x192xf32>, vector<192x64xf32>, vector<72x64xf32> -> vector<72x64xf32>
    %109 = vector.broadcast %102 : vector<1x64xf32> to vector<72x64xf32>
    %110 = arith.addf %108, %109 : vector<72x64xf32>
    %cst_24 = arith.constant 0.000000e+00 : f32
    %111 = vector.broadcast %cst_24 : f32 to vector<72x64xf32>
    %112 = arith.maximumf %110, %111 : vector<72x64xf32>
    %c0_25 = arith.constant 0 : index
    %c0_26 = arith.constant 0 : index
    %113 = vector.load %arg4[%c0_25, %c0_26] : memref<72x64xf32, #tpu.memory_space<vmem>>, vector<72x64xf32>
    tpu.vector_store %arg4[%c0_25, %c0_26], %112 {strides = array<i32>} : memref<72x64xf32, #tpu.memory_space<vmem>>, vector<72x64xf32>,
    return
  }
  func.func @transform_0(%arg0: i32) -> (i32, i32) {
    %c0_i32 = arith.constant 0 : i32
    %c0_i32_0 = arith.constant 0 : i32
    return %arg0, %c0_i32 : i32, i32
  }
  func.func @transform_1(%arg0: i32) -> (i32, i32) {
    %c0_i32 = arith.constant 0 : i32
    %c0_i32_0 = arith.constant 0 : i32
    %c0_i32_1 = arith.constant 0 : i32
    return %c0_i32, %c0_i32_0 : i32, i32
  }
  func.func @transform_2(%arg0: i32) -> (i32, i32) {
    %c0_i32 = arith.constant 0 : i32
    %c0_i32_0 = arith.constant 0 : i32
    %c0_i32_1 = arith.constant 0 : i32
    return %c0_i32, %c0_i32_0 : i32, i32
  }
  func.func @transform_3(%arg0: i32) -> (i32, i32) {
    %c0_i32 = arith.constant 0 : i32
    %c0_i32_0 = arith.constant 0 : i32
    return %arg0, %c0_i32 : i32, i32
  }
}

module attributes {stable_mosaic.version = 11 : i64} {
  func.func @kernel(%arg0: i32, %arg1: memref<256x1xf32, #tpu.memory_space<vmem>>, %arg2: memref<760x64xf32, #tpu.memory_space<vmem>>, %arg3: memref<8x64xf32, #tpu.memory_space<vmem>>, %arg4: memref<72x64xf32, #tpu.memory_space<vmem>>) attributes {dimension_semantics = [#tpu.dimension_semantics<parallel>], iteration_bounds = array<i64: 2>, scalar_prefetch = 0 : i64, scratch_operands = 0 : i64, tpu.core_type = #tpu.core_type<tc>, window_params = [{transform_indices = @transform_0, window_bounds = array<i64: 256, 1>}, {pipeline_mode = #tpu.pipeline_mode<synchronous>, transform_indices = @transform_1, window_bounds = array<i64: 760, 64>}, {pipeline_mode = #tpu.pipeline_mode<synchronous>, transform_indices = @transform_2, window_bounds = array<i64: 8, 64>}, {transform_indices = @transform_3, window_bounds = array<i64: 72, 64>}]} {
    %c0 = arith.constant 0 : index
    %c0_0 = arith.constant 0 : index
    %0 = vector.load %arg1[%c0, %c0_0] : memref<256x1xf32, #tpu.memory_space<vmem>>, vector<256x1xf32>
    %c0_1 = arith.constant 0 : index
    %c0_2 = arith.constant 0 : index
    %1 = vector.load %arg3[%c0_1, %c0_2] : memref<8x64xf32, #tpu.memory_space<vmem>>, vector<1x16xf32>
    %c0_3 = arith.constant 0 : index
    %c0_4 = arith.constant 0 : index
    %2 = vector.load %arg2[%c0_3, %c0_4] : memref<760x64xf32, #tpu.memory_space<vmem>>, vector<7x16xf32>
    %3 = vector.shape_cast %0 : vector<256x1xf32> to vector<256x1xf32>
    %4 = vector.broadcast %3 : vector<256x1xf32> to vector<256x16xf32>
    %5 = vector.extract_strided_slice %4 {offsets = [0, 0], sizes = [208, 16], strides = [1, 1]} : vector<256x16xf32> to vector<208x16xf32>
    %6 = vector.extract_strided_slice %2 {offsets = [0, 0], sizes = [1, 16], strides = [1, 1]} : vector<7x16xf32> to vector<1x16xf32>
    %7 = vector.broadcast %6 : vector<1x16xf32> to vector<208x16xf32>
    %8 = arith.mulf %5, %7 : vector<208x16xf32>
    %9 = vector.extract_strided_slice %4 {offsets = [8, 0], sizes = [208, 16], strides = [1, 1]} : vector<256x16xf32> to vector<208x16xf32>
    %10 = vector.extract_strided_slice %2 {offsets = [1, 0], sizes = [1, 16], strides = [1, 1]} : vector<7x16xf32> to vector<1x16xf32>
    %11 = vector.broadcast %10 : vector<1x16xf32> to vector<208x16xf32>
    %12 = arith.mulf %9, %11 : vector<208x16xf32>
    %13 = arith.addf %8, %12 : vector<208x16xf32>
    %14 = vector.extract_strided_slice %4 {offsets = [16, 0], sizes = [208, 16], strides = [1, 1]} : vector<256x16xf32> to vector<208x16xf32>
    %15 = vector.extract_strided_slice %2 {offsets = [2, 0], sizes = [1, 16], strides = [1, 1]} : vector<7x16xf32> to vector<1x16xf32>
    %16 = vector.broadcast %15 : vector<1x16xf32> to vector<208x16xf32>
    %17 = arith.mulf %14, %16 : vector<208x16xf32>
    %18 = arith.addf %13, %17 : vector<208x16xf32>
    %19 = vector.extract_strided_slice %4 {offsets = [24, 0], sizes = [208, 16], strides = [1, 1]} : vector<256x16xf32> to vector<208x16xf32>
    %20 = vector.extract_strided_slice %2 {offsets = [3, 0], sizes = [1, 16], strides = [1, 1]} : vector<7x16xf32> to vector<1x16xf32>
    %21 = vector.broadcast %20 : vector<1x16xf32> to vector<208x16xf32>
    %22 = arith.mulf %19, %21 : vector<208x16xf32>
    %23 = arith.addf %18, %22 : vector<208x16xf32>
    %24 = vector.extract_strided_slice %4 {offsets = [32, 0], sizes = [208, 16], strides = [1, 1]} : vector<256x16xf32> to vector<208x16xf32>
    %25 = vector.extract_strided_slice %2 {offsets = [4, 0], sizes = [1, 16], strides = [1, 1]} : vector<7x16xf32> to vector<1x16xf32>
    %26 = vector.broadcast %25 : vector<1x16xf32> to vector<208x16xf32>
    %27 = arith.mulf %24, %26 : vector<208x16xf32>
    %28 = arith.addf %23, %27 : vector<208x16xf32>
    %29 = vector.extract_strided_slice %4 {offsets = [40, 0], sizes = [208, 16], strides = [1, 1]} : vector<256x16xf32> to vector<208x16xf32>
    %30 = vector.extract_strided_slice %2 {offsets = [5, 0], sizes = [1, 16], strides = [1, 1]} : vector<7x16xf32> to vector<1x16xf32>
    %31 = vector.broadcast %30 : vector<1x16xf32> to vector<208x16xf32>
    %32 = arith.mulf %29, %31 : vector<208x16xf32>
    %33 = arith.addf %28, %32 : vector<208x16xf32>
    %34 = vector.extract_strided_slice %4 {offsets = [48, 0], sizes = [208, 16], strides = [1, 1]} : vector<256x16xf32> to vector<208x16xf32>
    %35 = vector.extract_strided_slice %2 {offsets = [6, 0], sizes = [1, 16], strides = [1, 1]} : vector<7x16xf32> to vector<1x16xf32>
    %36 = vector.broadcast %35 : vector<1x16xf32> to vector<208x16xf32>
    %37 = arith.mulf %34, %36 : vector<208x16xf32>
    %38 = arith.addf %33, %37 : vector<208x16xf32>
    %39 = vector.broadcast %1 : vector<1x16xf32> to vector<208x16xf32>
    %40 = arith.addf %38, %39 : vector<208x16xf32>
    %cst = arith.constant 0.000000e+00 : f32
    %41 = vector.broadcast %cst : f32 to vector<208x16xf32>
    %42 = arith.maximumf %40, %41 : vector<208x16xf32>
    %c1 = arith.constant 1 : index
    %c0_5 = arith.constant 0 : index
    %43 = vector.load %arg3[%c1, %c0_5] : memref<8x64xf32, #tpu.memory_space<vmem>>, vector<1x32xf32>
    %44 = vector.extract_strided_slice %42 {offsets = [0, 0], sizes = [176, 16], strides = [1, 1]} : vector<208x16xf32> to vector<176x16xf32>
    %45 = vector.extract_strided_slice %42 {offsets = [8, 0], sizes = [176, 16], strides = [1, 1]} : vector<208x16xf32> to vector<176x16xf32>
    %46 = vector.extract_strided_slice %42 {offsets = [16, 0], sizes = [176, 16], strides = [1, 1]} : vector<208x16xf32> to vector<176x16xf32>
    %47 = vector.extract_strided_slice %42 {offsets = [24, 0], sizes = [176, 16], strides = [1, 1]} : vector<208x16xf32> to vector<176x16xf32>
    %48 = vector.extract_strided_slice %42 {offsets = [32, 0], sizes = [176, 16], strides = [1, 1]} : vector<208x16xf32> to vector<176x16xf32>
    %49 = tpu.concatenate %44, %45, %46, %47, %48 in 1 : vector<176x16xf32>, vector<176x16xf32>, vector<176x16xf32>, vector<176x16xf32>, vector<176x16xf32> -> vector<176x80xf32>
    %c8 = arith.constant 8 : index
    %c0_6 = arith.constant 0 : index
    %50 = vector.load %arg2[%c8, %c0_6] : memref<760x64xf32, #tpu.memory_space<vmem>>, vector<80x32xf32>
    %cst_7 = arith.constant dense<0.000000e+00> : vector<176x32xf32>
    %51 = tpu.matmul %49, %50, %cst_7 {dimension_numbers = #tpu.dot_dimension_numbers<[1], [0], [0], [1], [0, 0, 1, 1], [], []>} : vector<176x80xf32>, vector<80x32xf32>, vector<176x32xf32> -> vector<176x32xf32>
    %52 = vector.broadcast %43 : vector<1x32xf32> to vector<176x32xf32>
    %53 = arith.addf %51, %52 : vector<176x32xf32>
    %cst_8 = arith.constant 0.000000e+00 : f32
    %54 = vector.broadcast %cst_8 : f32 to vector<176x32xf32>
    %55 = arith.maximumf %53, %54 : vector<176x32xf32>
    %56 = vector.extract_strided_slice %55 {offsets = [0, 0], sizes = [168, 32], strides = [1, 1]} : vector<176x32xf32> to vector<168x32xf32>
    %57 = vector.extract_strided_slice %55 {offsets = [8, 0], sizes = [168, 32], strides = [1, 1]} : vector<176x32xf32> to vector<168x32xf32>
    %58 = arith.maximumf %56, %57 : vector<168x32xf32>
    %c2 = arith.constant 2 : index
    %c0_9 = arith.constant 0 : index
    %59 = vector.load %arg3[%c2, %c0_9] : memref<8x64xf32, #tpu.memory_space<vmem>>, vector<1x32xf32>
    %60 = vector.extract_strided_slice %58 {offsets = [0, 0], sizes = [136, 32], strides = [1, 1]} : vector<168x32xf32> to vector<136x32xf32>
    %61 = vector.extract_strided_slice %58 {offsets = [8, 0], sizes = [136, 32], strides = [1, 1]} : vector<168x32xf32> to vector<136x32xf32>
    %62 = vector.extract_strided_slice %58 {offsets = [16, 0], sizes = [136, 32], strides = [1, 1]} : vector<168x32xf32> to vector<136x32xf32>
    %63 = vector.extract_strided_slice %58 {offsets = [24, 0], sizes = [136, 32], strides = [1, 1]} : vector<168x32xf32> to vector<136x32xf32>
    %64 = vector.extract_strided_slice %58 {offsets = [32, 0], sizes = [136, 32], strides = [1, 1]} : vector<168x32xf32> to vector<136x32xf32>
    %65 = tpu.concatenate %60, %61, %62, %63, %64 in 1 : vector<136x32xf32>, vector<136x32xf32>, vector<136x32xf32>, vector<136x32xf32>, vector<136x32xf32> -> vector<136x160xf32>
    %c88 = arith.constant 88 : index
    %c0_10 = arith.constant 0 : index
    %66 = vector.load %arg2[%c88, %c0_10] : memref<760x64xf32, #tpu.memory_space<vmem>>, vector<160x32xf32>
    %cst_11 = arith.constant dense<0.000000e+00> : vector<136x32xf32>
    %67 = tpu.matmul %65, %66, %cst_11 {dimension_numbers = #tpu.dot_dimension_numbers<[1], [0], [0], [1], [0, 0, 1, 1], [], []>} : vector<136x160xf32>, vector<160x32xf32>, vector<136x32xf32> -> vector<136x32xf32>
    %68 = vector.broadcast %59 : vector<1x32xf32> to vector<136x32xf32>
    %69 = arith.addf %67, %68 : vector<136x32xf32>
    %cst_12 = arith.constant 0.000000e+00 : f32
    %70 = vector.broadcast %cst_12 : f32 to vector<136x32xf32>
    %71 = arith.maximumf %69, %70 : vector<136x32xf32>
    %72 = vector.extract_strided_slice %71 {offsets = [0, 0], sizes = [128, 32], strides = [1, 1]} : vector<136x32xf32> to vector<128x32xf32>
    %73 = vector.extract_strided_slice %71 {offsets = [8, 0], sizes = [128, 32], strides = [1, 1]} : vector<136x32xf32> to vector<128x32xf32>
    %74 = arith.maximumf %72, %73 : vector<128x32xf32>
    %c3 = arith.constant 3 : index
    %c0_13 = arith.constant 0 : index
    %75 = vector.load %arg3[%c3, %c0_13] : memref<8x64xf32, #tpu.memory_space<vmem>>, vector<1x64xf32>
    %76 = vector.extract_strided_slice %74 {offsets = [0, 0], sizes = [104, 32], strides = [1, 1]} : vector<128x32xf32> to vector<104x32xf32>
    %77 = vector.extract_strided_slice %74 {offsets = [8, 0], sizes = [104, 32], strides = [1, 1]} : vector<128x32xf32> to vector<104x32xf32>
    %78 = vector.extract_strided_slice %74 {offsets = [16, 0], sizes = [104, 32], strides = [1, 1]} : vector<128x32xf32> to vector<104x32xf32>
    %79 = vector.extract_strided_slice %74 {offsets = [24, 0], sizes = [104, 32], strides = [1, 1]} : vector<128x32xf32> to vector<104x32xf32>
    %80 = tpu.concatenate %76, %77, %78, %79 in 1 : vector<104x32xf32>, vector<104x32xf32>, vector<104x32xf32>, vector<104x32xf32> -> vector<104x128xf32>
    %c248 = arith.constant 248 : index
    %c0_14 = arith.constant 0 : index
    %81 = vector.load %arg2[%c248, %c0_14] : memref<760x64xf32, #tpu.memory_space<vmem>>, vector<128x64xf32>
    %cst_15 = arith.constant dense<0.000000e+00> : vector<104x64xf32>
    %82 = tpu.matmul %80, %81, %cst_15 {dimension_numbers = #tpu.dot_dimension_numbers<[1], [0], [0], [1], [0, 0, 1, 1], [], []>} : vector<104x128xf32>, vector<128x64xf32>, vector<104x64xf32> -> vector<104x64xf32>
    %83 = vector.broadcast %75 : vector<1x64xf32> to vector<104x64xf32>
    %84 = arith.addf %82, %83 : vector<104x64xf32>
    %cst_16 = arith.constant 0.000000e+00 : f32
    %85 = vector.broadcast %cst_16 : f32 to vector<104x64xf32>
    %86 = arith.maximumf %84, %85 : vector<104x64xf32>
    %87 = vector.extract_strided_slice %86 {offsets = [1, 0], sizes = [103, 64], strides = [1, 1]} : vector<104x64xf32> to vector<103x64xf32>
    %88 = vector.extract_strided_slice %86 {offsets = [0, 0], sizes = [1, 64], strides = [1, 1]} : vector<104x64xf32> to vector<1x64xf32>
    %89 = tpu.concatenate %87, %88 in 0 : vector<103x64xf32>, vector<1x64xf32> -> vector<104x64xf32>
    %90 = arith.maximumf %86, %89 : vector<104x64xf32>
    %c4 = arith.constant 4 : index
    %c0_17 = arith.constant 0 : index
    %91 = vector.load %arg3[%c4, %c0_17] : memref<8x64xf32, #tpu.memory_space<vmem>>, vector<1x64xf32>
    %92 = vector.extract_strided_slice %90 {offsets = [0, 0], sizes = [88, 64], strides = [1, 1]} : vector<104x64xf32> to vector<88x64xf32>
    %93 = vector.extract_strided_slice %90 {offsets = [8, 0], sizes = [88, 64], strides = [1, 1]} : vector<104x64xf32> to vector<88x64xf32>
    %94 = vector.extract_strided_slice %90 {offsets = [16, 0], sizes = [88, 64], strides = [1, 1]} : vector<104x64xf32> to vector<88x64xf32>
    %95 = tpu.concatenate %92, %93, %94 in 1 : vector<88x64xf32>, vector<88x64xf32>, vector<88x64xf32> -> vector<88x192xf32>
    %c376 = arith.constant 376 : index
    %c0_18 = arith.constant 0 : index
    %96 = vector.load %arg2[%c376, %c0_18] : memref<760x64xf32, #tpu.memory_space<vmem>>, vector<192x64xf32>
    %cst_19 = arith.constant dense<0.000000e+00> : vector<88x64xf32>
    %97 = tpu.matmul %95, %96, %cst_19 {dimension_numbers = #tpu.dot_dimension_numbers<[1], [0], [0], [1], [0, 0, 1, 1], [], []>} : vector<88x192xf32>, vector<192x64xf32>, vector<88x64xf32> -> vector<88x64xf32>
    %98 = vector.broadcast %91 : vector<1x64xf32> to vector<88x64xf32>
    %99 = arith.addf %97, %98 : vector<88x64xf32>
    %cst_20 = arith.constant 0.000000e+00 : f32
    %100 = vector.broadcast %cst_20 : f32 to vector<88x64xf32>
    %101 = arith.maximumf %99, %100 : vector<88x64xf32>
    %102 = vector.extract_strided_slice %101 {offsets = [1, 0], sizes = [87, 64], strides = [1, 1]} : vector<88x64xf32> to vector<87x64xf32>
    %103 = vector.extract_strided_slice %101 {offsets = [0, 0], sizes = [1, 64], strides = [1, 1]} : vector<88x64xf32> to vector<1x64xf32>
    %104 = tpu.concatenate %102, %103 in 0 : vector<87x64xf32>, vector<1x64xf32> -> vector<88x64xf32>
    %105 = arith.maximumf %101, %104 : vector<88x64xf32>
    %c5 = arith.constant 5 : index
    %c0_21 = arith.constant 0 : index
    %106 = vector.load %arg3[%c5, %c0_21] : memref<8x64xf32, #tpu.memory_space<vmem>>, vector<1x64xf32>
    %107 = vector.extract_strided_slice %105 {offsets = [0, 0], sizes = [72, 64], strides = [1, 1]} : vector<88x64xf32> to vector<72x64xf32>
    %108 = vector.extract_strided_slice %105 {offsets = [8, 0], sizes = [72, 64], strides = [1, 1]} : vector<88x64xf32> to vector<72x64xf32>
    %109 = vector.extract_strided_slice %105 {offsets = [16, 0], sizes = [72, 64], strides = [1, 1]} : vector<88x64xf32> to vector<72x64xf32>
    %110 = tpu.concatenate %107, %108, %109 in 1 : vector<72x64xf32>, vector<72x64xf32>, vector<72x64xf32> -> vector<72x192xf32>
    %c568 = arith.constant 568 : index
    %c0_22 = arith.constant 0 : index
    %111 = vector.load %arg2[%c568, %c0_22] : memref<760x64xf32, #tpu.memory_space<vmem>>, vector<192x64xf32>
    %cst_23 = arith.constant dense<0.000000e+00> : vector<72x64xf32>
    %112 = tpu.matmul %110, %111, %cst_23 {dimension_numbers = #tpu.dot_dimension_numbers<[1], [0], [0], [1], [0, 0, 1, 1], [], []>} : vector<72x192xf32>, vector<192x64xf32>, vector<72x64xf32> -> vector<72x64xf32>
    %113 = vector.broadcast %106 : vector<1x64xf32> to vector<72x64xf32>
    %114 = arith.addf %112, %113 : vector<72x64xf32>
    %cst_24 = arith.constant 0.000000e+00 : f32
    %115 = vector.broadcast %cst_24 : f32 to vector<72x64xf32>
    %116 = arith.maximumf %114, %115 : vector<72x64xf32>
    %c0_25 = arith.constant 0 : index
    %c0_26 = arith.constant 0 : index
    %117 = vector.load %arg4[%c0_25, %c0_26] : memref<72x64xf32, #tpu.memory_space<vmem>>, vector<72x64xf32>
    tpu.vector_store %arg4[%c0_25, %c0_26], %116 {strides = array<i32>} : memref<72x64xf32, #tpu.memory_space<vmem>>, vector<72x64xf32>,
    return
  }
  func.func @transform_0(%arg0: i32) -> (i32, i32) {
    %c0_i32 = arith.constant 0 : i32
    %c0_i32_0 = arith.constant 0 : i32
    return %arg0, %c0_i32 : i32, i32
  }
  func.func @transform_1(%arg0: i32) -> (i32, i32) {
    %c0_i32 = arith.constant 0 : i32
    %c0_i32_0 = arith.constant 0 : i32
    %c0_i32_1 = arith.constant 0 : i32
    return %c0_i32, %c0_i32_0 : i32, i32
  }
  func.func @transform_2(%arg0: i32) -> (i32, i32) {
    %c0_i32 = arith.constant 0 : i32
    %c0_i32_0 = arith.constant 0 : i32
    %c0_i32_1 = arith.constant 0 : i32
    return %c0_i32, %c0_i32_0 : i32, i32
  }
  func.func @transform_3(%arg0: i32) -> (i32, i32) {
    %c0_i32 = arith.constant 0 : i32
    %c0_i32_0 = arith.constant 0 : i32
    return %arg0, %c0_i32 : i32, i32
  }
}

</mosaic_0001>

<bundles_post_ra>
// kernel: tpu_custom_call.1
= control target key start
LH: loop header
LB: loop body
LE: loop exit
PB: predicated region body
PF: predicated region fallthrough
CT: control target
= control target key end

     0   :  { %s3526_s12 = smov 0   ;;  %s5459_s0 = inlined_call_operand.vmem [shape: f32[512,1], index: 0, kind: input, shape index: {}]   ;;  %s5460_s1 = inlined_call_operand.vmem [shape: f32[760,64], index: 1, kind: input, shape index: {}]   ;;  %s5461_s2 = inlined_call_operand.vmem [shape: f32[8,64], index: 2, kind: input, shape index: {}]   ;;  %s5462_s3 = inlined_call_operand.vmem [shape: f32[144,64], index: 3, kind: output, shape index: {}]  }
   0x1 LB: > { %s2863_s13 = sadd.s32 4294967295, %s3495_s12   ;;  %p2867_p0 = scmp.ge.s32.totalorder %s3495_s12, 1  ;;  %s3495_s12 = sphi %s3526_s12, %s13_s12  }
   0x2   : > { %p138_p1 = scmp.lt.s32.totalorder %s3495_s12, 3 }
   0x4   : > { %p139_p2 = pnand %p2867_p0, %p138_p1 }
   0x6   : > { %142 = sbr.rel (%p139_p2) target bundleno = 2031 (0x7ef), region = 32 }
   0xd   : > { %s2868_s14 = sshll.u32 %s2863_s13, 5  ;;  %v3497_v0 = vmov 0   ;;  %v338_v33 = vlaneseq  ;;  %v207_v37 = vld [vmem:[%s5460_s1] sm:$0x7f]  ;;  %s3498_s23 = smov 16   ;;  %vm1080_vm0 = vcmask 130048  }
   0xe   : > { %3287 = vset.pattern.permute.xlu1 %v3497_v0  ;;  %3286 = vset.pattern.permute.xlu0 %v3497_v0  ;;  %p163_p3 = scmp.lt.s32.totalorder %s2868_s14, 63  ;;  %s3499_s24 = smov 32   ;;  %vm1103_vm1 = vcmask 261120   ;;  %vm1126_vm2 = vcmask 392192   ;;  %vm1149_vm3 = vcmask 523264   ;;  %vm1186_vm4 = vcmask 654336  }
   0xf   : > { %v3573_v34 = vshrl.u32 %v338_v33, 7  ;;  %s3500_s25 = smov 48   ;;  %s3501_s26 = smov 64   ;;  %vm1678_vm5 = vcmask 785408   ;;  %vm3504_vm6 = vmmov 0  }
  0x10   : > { %s5518_s14 = smov (!%p163_p3, %s2868_s14), 63  ;;  %s3503_s20 = smov 96  }
  0x11   : > { %s2869_s15 = sshll.u32 %s5518_s14, 3  ;;  %5482 = vst [vmem:[#allocation2_spill] sm:$0xff] %v3573_v34  ;;  %v340_v35 = vsub.s32 0, %v3573_v34  ;;  %v375_v36 = vsub.s32 1, %v3573_v34  ;;  %v436_v38 = vsub.s32 2, %v3573_v34  ;;  %v497_v43 = vsub.s32 3, %v3573_v34 }
  0x12   : > { %s3539_s18 = scalar_lea.vmem %s5459_s0, %s2869_s15  ;;  %v558_v52 = vsub.s32 4, %v3573_v34  ;;  %v619_v58 = vsub.s32 5, %v3573_v34 }
  0x13   : > { %v177_v1 = vld [vmem:[%s3539_s18 + $0x18] sm:$0xff]  ;;  %v175_v2 = vld [vmem:[%s3539_s18 + $0x8] sm:$0xff]  ;;  %v178_v3 = vld [vmem:[%s3539_s18 + $0x20] sm:$0xff]  ;;  %v3585_v41 = vrot.slane %v207_v37, %v340_v35  ;;  %v3587_v42 = vrot.slane %v207_v37, %v375_v36  ;;  %v3590_v44 = vrot.slane %v207_v37, %v436_v38  ;;  %v3598_v48 = vrot.slane %v207_v37, %v497_v43 }
  0x14   : > { %225 = vperm.xlu1 %3287, %v177_v1   ;;  %215 = vperm.xlu0 %3286, %v175_v2   ;;  %v176_v4 = vld [vmem:[%s3539_s18 + $0x10] sm:$0xff]  ;;  %v179_v6 = vld [vmem:[%s3539_s18 + $0x28] sm:$0xff]  ;;  %v182_v7 = vld [vmem:[%s3539_s18 + $0x40] sm:$0xff]  ;;  %v3618_v62 = vrot.slane %v207_v37, %v558_v52 }
  0x15   : > { %v180_v5 = vld [vmem:[%s3539_s18 + $0x30] sm:$0xff]  ;;  %v181_v8 = vld [vmem:[%s3539_s18 + $0x38] sm:$0xff]  ;;  %v183_v10 = vld [vmem:[%s3539_s18 + $0x48] sm:$0xff]  ;;  %5483 = vst [vmem:[#allocation3_spill] sm:$0xff] %v3585_v41 }
  0x16   : > { %v184_v9 = vld [vmem:[%s3539_s18 + $0x50] sm:$0xff]  ;;  %v186_v11 = vld [vmem:[%s3539_s18 + $0x60] sm:$0xff]  ;;  %v185_v12 = vld [vmem:[%s3539_s18 + $0x58] sm:$0xff]  ;;  %5484 = vst [vmem:[#allocation4_spill] sm:$0xff] %v3587_v42 }
  0x17   : > { %v188_v13 = vld [vmem:[%s3539_s18 + $0x70] sm:$0xff]  ;;  %v187_v14 = vld [vmem:[%s3539_s18 + $0x68] sm:$0xff]  ;;  %v190_v15 = vld [vmem:[%s3539_s18 + $0x80] sm:$0xff] }
  0x18   : > { %230 = vperm.xlu1 %3287, %v178_v3   ;;  %220 = vperm.xlu0 %3286, %v176_v4   ;;  %v189_v16 = vld [vmem:[%s3539_s18 + $0x78] sm:$0xff]  ;;  %v192_v17 = vld [vmem:[%s3539_s18 + $0x90] sm:$0xff]  ;;  %v191_v18 = vld [vmem:[%s3539_s18 + $0x88] sm:$0xff] }
  0x19   : > { %v194_v19 = vld [vmem:[%s3539_s18 + $0xa0] sm:$0xff]  ;;  %v193_v20 = vld [vmem:[%s3539_s18 + $0x98] sm:$0xff]  ;;  %v196_v21 = vld [vmem:[%s3539_s18 + $0xb0] sm:$0xff] }
  0x1a   : > { %v195_v22 = vld [vmem:[%s3539_s18 + $0xa8] sm:$0xff]  ;;  %v197_v23 = vld [vmem:[%s3539_s18 + $0xb8] sm:$0xff]  ;;  %v174_v24 = vld [vmem:[%s3539_s18] sm:$0xff] }
  0x1b   : > { %v198_v25 = vld [vmem:[%s3539_s18 + $0xc0] sm:$0xff]  ;;  %v199_v26 = vld [vmem:[%s3539_s18 + $0xc8] sm:$0xff]  ;;  %v200_v27 = vld [vmem:[%s3539_s18 + $0xd0] sm:$0xff] }
  0x1c   : > { %240 = vperm.xlu1 %3287, %v180_v5   ;;  %235 = vperm.xlu0 %3286, %v179_v6   ;;  %v201_v28 = vld [vmem:[%s3539_s18 + $0xd8] sm:$0xff]  ;;  %v202_v29 = vld [vmem:[%s3539_s18 + $0xe0] sm:$0xff]  ;;  %v203_v30 = vld [vmem:[%s3539_s18 + $0xe8] sm:$0xff]  ;;  %v3628_v5 = vrot.slane %v207_v37, %v619_v58 }
  0x1d   : > { %v205_v31 = vld [vmem:[%s3539_s18 + $0xf8] sm:$0xff]  ;;  %v204_v32 = vld [vmem:[%s3539_s18 + $0xf0] sm:$0xff] }
  0x20   : > { %250 = vperm.xlu1 %3287, %v182_v7   ;;  %245 = vperm.xlu0 %3286, %v181_v8   ;;  %v680_v7 = vsub.s32 6, %v3573_v34 }
  0x24   : > { %260 = vperm.xlu1 %3287, %v184_v9   ;;  %255 = vperm.xlu0 %3286, %v183_v10  }
  0x28   : > { %270 = vperm.xlu1 %3287, %v186_v11   ;;  %265 = vperm.xlu0 %3286, %v185_v12  }
  0x2c   : > { %280 = vperm.xlu1 %3287, %v188_v13   ;;  %275 = vperm.xlu0 %3286, %v187_v14  }
  0x30   : > { %290 = vperm.xlu1 %3287, %v190_v15   ;;  %285 = vperm.xlu0 %3286, %v189_v16  }
  0x34   : > { %300 = vperm.xlu1 %3287, %v192_v17   ;;  %295 = vperm.xlu0 %3286, %v191_v18   ;;  %v3647_v18 = vrot.slane %v207_v37, %v680_v7 }
  0x38   : > { %310 = vperm.xlu1 %3287, %v194_v19   ;;  %305 = vperm.xlu0 %3286, %v193_v20  }
  0x3c   : > { %320 = vperm.xlu1 %3287, %v196_v21   ;;  %315 = vperm.xlu0 %3286, %v195_v22  }
  0x40   : > { %325 = vperm.xlu0 %3286, %v197_v23   ;;  %210 = vperm.xlu1 %3287, %v174_v24  }
  0x44   : > { %330 = vperm.xlu0 %3286, %v198_v25   ;;  %335 = vperm.xlu1 %3287, %v199_v26  }
  0x48   : > { %370 = vperm.xlu0 %3286, %v200_v27   ;;  %431 = vperm.xlu1 %3287, %v201_v28  }
  0x4c   : > { %492 = vperm.xlu0 %3286, %v202_v29   ;;  %553 = vperm.xlu1 %3287, %v203_v30   ;;  %v3670_v30 = vld [vmem:[%s5461_s2] ss:$0 sm:$0xff] }
  0x50   : > { %675 = vperm.xlu0 %3286, %v205_v31   ;;  %614 = vperm.xlu1 %3287, %v204_v32  }
  0x93   : > { %v3581_v39 = vpop.permute.xlu1 %225  ;;  %v3583_v40 = vpop.permute.xlu0 %215 }
  0x94   : > { %v379_v45 = vmul.f32 %v3587_v42, %v3581_v39  ;;  %v343_v49 = vmul.f32 %v3585_v41, %v3583_v40  ;;  %v439_v53 = vmul.f32 %v3590_v44, %v3581_v39  ;;  %v345_v11 = vmul.f32 %v3585_v41, %v3581_v39 }
  0x97   : > { %v3594_v46 = vpop.permute.xlu1 %230  ;;  %v3596_v47 = vpop.permute.xlu0 %220 }
  0x98   : > { %v344_v50 = vmul.f32 %v3585_v41, %v3596_v47  ;;  %v378_v51 = vmul.f32 %v3587_v42, %v3596_v47  ;;  %v500_v59 = vmul.f32 %v3598_v48, %v3594_v46  ;;  %v440_v60 = vmul.f32 %v3590_v44, %v3594_v46 }
  0x99   : > { %v380_v12 = vmul.f32 %v3587_v42, %v3594_v46  ;;  %v346_v23 = vmul.f32 %v3585_v41, %v3594_v46 }
  0x9a   : > { %v404_v54 = vadd.f32 %v378_v51, %v343_v49  ;;  %v405_v55 = vadd.f32 %v379_v45, %v344_v50  ;;  %v3682_v49 = vmul.f32 %v3598_v48, %v3581_v39 }
  0x9b   : > { %v3609_v56 = vpop.permute.xlu1 %240  ;;  %v3611_v57 = vpop.permute.xlu0 %235  ;;  %v406_v24 = vadd.f32 %v380_v12, %v345_v11 }
  0x9c   : > { %5485 = vst [vmem:[#allocation5_spill] sm:$0xff] %v3609_v56  ;;  %5486 = vst [vmem:[#allocation6_spill] sm:$0xff] %v3611_v57  ;;  %v465_v61 = vadd.f32 %v439_v53, %v404_v54  ;;  %v466_v63 = vadd.f32 %v440_v60, %v405_v55  ;;  %v501_v3 = vmul.f32 %v3598_v48, %v3611_v57 }
  0x9d   : > { %v561_v4 = vmul.f32 %v3618_v62, %v3611_v57  ;;  %v622_v13 = vmul.f32 %v3628_v5, %v3609_v56  ;;  %v562_v14 = vmul.f32 %v3618_v62, %v3609_v56  ;;  %v381_v15 = vmul.f32 %v3587_v42, %v3611_v57 }
  0x9e   : > { %v526_v0 = vadd.f32 %v500_v59, %v465_v61  ;;  %v527_v10 = vadd.f32 %v501_v3, %v466_v63  ;;  %v441_v16 = vmul.f32 %v3590_v44, %v3611_v57  ;;  %v442_v52 = vmul.f32 %v3590_v44, %v3609_v56 }
  0x9f   : > { %v3620_v1 = vpop.permute.xlu1 %250  ;;  %v3622_v2 = vpop.permute.xlu0 %245  ;;  %v407_v31 = vadd.f32 %v381_v15, %v346_v23  ;;  %v502_v55 = vmul.f32 %v3598_v48, %v3609_v56  ;;  %v347_v15 = vmul.f32 %v3585_v41, %v3611_v57 }
  0xa0   : > { %v587_v6 = vadd.f32 %v561_v4, %v526_v0  ;;  %v588_v21 = vadd.f32 %v562_v14, %v527_v10  ;;  %v623_v22 = vmul.f32 %v3628_v5, %v3622_v2  ;;  %v683_v26 = vmul.f32 %v3647_v18, %v3622_v2 }
  0xa1   : > { %v467_v32 = vadd.f32 %v441_v16, %v406_v24  ;;  %v684_v38 = vmul.f32 %v3647_v18, %v3620_v1  ;;  %v468_v61 = vadd.f32 %v442_v52, %v407_v31  ;;  %v503_v63 = vmul.f32 %v3598_v48, %v3622_v2 }
  0xa2   : > { %v648_v17 = vadd.f32 %v622_v13, %v587_v6  ;;  %v649_v37 = vadd.f32 %v623_v22, %v588_v21  ;;  %v563_v12 = vmul.f32 %v3618_v62, %v3622_v2  ;;  %v3720_v13 = vmul.f32 %v3587_v42, %v3583_v40 }
  0xa3   : > { %v3631_v8 = vpop.permute.xlu1 %260  ;;  %v3633_v9 = vpop.permute.xlu0 %255  ;;  %v528_v3 = vadd.f32 %v502_v55, %v467_v32  ;;  %v382_v14 = vmul.f32 %v3587_v42, %v3609_v56  ;;  %v624_v21 = vmul.f32 %v3628_v5, %v3620_v1  ;;  %v443_v31 = vmul.f32 %v3590_v44, %v3622_v2 }
  0xa4   : > { %v352_v27 = vmul.f32 %v3585_v41, %v3631_v8  ;;  %v709_v33 = vadd.f32 %v683_v26, %v648_v17  ;;  %v710_v54 = vadd.f32 %v684_v38, %v649_v37  ;;  %v685_v22 = vmul.f32 %v3647_v18, %v3633_v9 }
  0xa5   : > { %v589_v17 = vadd.f32 %v563_v12, %v528_v3  ;;  %v3762_v52 = vmul.f32 %v3590_v44, %v3596_v47  ;;  %v3766_v55 = vmul.f32 %v3618_v62, %v3594_v46  ;;  %v348_v12 = vmul.f32 %v3585_v41, %v3609_v56 }
  0xa6   : > { %v3685_v50 = vadd.f32 %v3670_v30, %v709_v33  ;;  %v740_v0 = vadd.f32 %v3670_v30, %v710_v54  ;;  %v529_v33 = vadd.f32 %v503_v63, %v468_v61  ;;  %v351_v56 = vmul.f32 %v3585_v41, %v3633_v9 }
  0xa7   : > { %v3649_v19 = vpop.permute.xlu1 %270  ;;  %v3651_v20 = vpop.permute.xlu0 %265  ;;  %v650_v32 = vadd.f32 %v624_v21, %v589_v17 }
  0xa8   : > { %v388_v25 = vmul.f32 %v3587_v42, %v3649_v19  ;;  %v353_v28 = vmul.f32 %v3585_v41, %v3651_v20  ;;  %v387_v29 = vmul.f32 %v3587_v42, %v3651_v20  ;;  %5487 = vst [vmem:[#allocation7_spill] sm:$0xff] %v3685_v50  ;;  %v354_v53 = vmul.f32 %v3585_v41, %v3649_v19 }
  0xa9   : > { %v5463_v58 = vmax.f32 %v3685_v50, 0.0  ;;  %v3726_v16 = vmax.f32 %v740_v0, 0.0  ;;  %v566_v50 = vmul.f32 %v3618_v62, %v3631_v8 }
  0xaa   : > { %v3672_v35 = vadd.f32 %v387_v29, %v352_v27  ;;  %v414_v36 = vadd.f32 %v388_v25, %v353_v28  ;;  %v564_v29 = vmul.f32 %v3618_v62, %v3620_v1 }
  0xab   : > { %v3676_v43 = vpop.permute.xlu1 %280  ;;  %v3678_v45 = vpop.permute.xlu0 %275  ;;  %813 = vrot.lane.b32.xlu0 %v5463_v58, %s3498_s23  ;;  %5488 = vst [vmem:[#allocation8_spill] sm:$0xff] %v3726_v16  ;;  %880 = vrot.lane.b32.xlu1 %v3726_v16, %s3499_s24 }
  0xac   : > { %v390_v51 = vmul.f32 %v3587_v42, %v3676_v43  ;;  %v355_v39 = vmul.f32 %v3585_v41, %v3678_v45  ;;  %v389_v59 = vmul.f32 %v3587_v42, %v3678_v45  ;;  %v449_v60 = vmul.f32 %v3590_v44, %v3678_v45 }
  0xad   : > { %v356_v40 = vmul.f32 %v3585_v41, %v3676_v43  ;;  %v590_v54 = vadd.f32 %v564_v29, %v529_v33  ;;  %v565_v33 = vmul.f32 %v3618_v62, %v3633_v9 }
  0xae   : > { %v3712_v7 = vadd.f32 %v389_v59, %v354_v53  ;;  %v416_v10 = vadd.f32 %v390_v51, %v355_v39  ;;  %v3714_v11 = vadd.f32 %v449_v60, %v414_v36  ;;  %v625_v51 = vmul.f32 %v3628_v5, %v3633_v9 }
  0xaf   : > { %v3705_v4 = vpop.permute.xlu1 %290  ;;  %v3707_v6 = vpop.permute.xlu0 %285  ;;  %815 = vrot.lane.b32.xlu0 %v3726_v16, %s3498_s23  ;;  %v711_v53 = vadd.f32 %v685_v22, %v650_v32  ;;  %v408_v39 = vadd.f32 %v382_v14, %v347_v15  ;;  %v686_v60 = vmul.f32 %v3647_v18, %v3631_v8  ;;  %v3787_v14 = vmul.f32 %v3585_v41, %v3620_v1 }
  0xb0   : > { %v392_v23 = vmul.f32 %v3587_v42, %v3705_v4  ;;  %v357_v24 = vmul.f32 %v3585_v41, %v3707_v6  ;;  %v391_v25 = vmul.f32 %v3587_v42, %v3707_v6  ;;  %v451_v26 = vmul.f32 %v3590_v44, %v3707_v6 }
  0xb1   : > { %v358_v59 = vmul.f32 %v3585_v41, %v3705_v4  ;;  %v741_v0 = vadd.f32 %v3670_v30, %v711_v53  ;;  %v651_v3 = vadd.f32 %v625_v51, %v590_v54  ;;  %v469_v15 = vadd.f32 %v443_v31, %v408_v39 }
  0xb2   : > { %v3754_v36 = vadd.f32 %v391_v25, %v356_v40  ;;  %v418_v37 = vadd.f32 %v392_v23, %v357_v24  ;;  %v3756_v38 = vadd.f32 %v451_v26, %v416_v10  ;;  %v384_v24 = vmul.f32 %v3587_v42, %v3620_v1 }
  0xb3   : > { %v3744_v27 = vpop.permute.xlu1 %300  ;;  %v3746_v28 = vpop.permute.xlu0 %295  ;;  %v3791_v21 = vmax.f32 %v741_v0, 0.0  ;;  %v712_v22 = vadd.f32 %v686_v60, %v651_v3  ;;  %v504_v25 = vmul.f32 %v3598_v48, %v3620_v1  ;;  %v383_v53 = vmul.f32 %v3587_v42, %v3622_v2 }
  0xb4   : > { %v394_v61 = vmul.f32 %v3587_v42, %v3744_v27  ;;  %v359_v46 = vmul.f32 %v3585_v41, %v3746_v28  ;;  %v393_v10 = vmul.f32 %v3587_v42, %v3746_v28  ;;  %v453_v17 = vmul.f32 %v3590_v44, %v3746_v28 }
  0xb5   : > { %5489 = vst [vmem:[#allocation9_spill] sm:$0xff] %v3791_v21  ;;  %947 = vrot.lane.b32.xlu1 %v3791_v21, %s3500_s25  ;;  %882 = vrot.lane.b32.xlu0 %v3791_v21, %s3499_s24  ;;  %v360_v54 = vmul.f32 %v3585_v41, %v3744_v27  ;;  %v349_v60 = vmul.f32 %v3585_v41, %v3622_v2 }
  0xb6   : > { %v3793_v23 = vadd.f32 %v393_v10, %v358_v59  ;;  %v420_v40 = vadd.f32 %v394_v61, %v359_v46  ;;  %v3799_v26 = vadd.f32 %v453_v17, %v418_v37  ;;  %v742_v37 = vadd.f32 %v3670_v30, %v712_v22 }
  0xb7   : > { %v3774_v63 = vpop.permute.xlu1 %310  ;;  %v3776_v47 = vpop.permute.xlu0 %305  ;;  %v530_v3 = vadd.f32 %v504_v25, %v469_v15  ;;  %v444_v46 = vmul.f32 %v3590_v44, %v3620_v1  ;;  %v626_v22 = vmul.f32 %v3628_v5, %v3631_v8  ;;  %v687_v1 = vmul.f32 %v3647_v18, %v3651_v20 }
  0xb8   : > { %v396_v29 = vmul.f32 %v3587_v42, %v3774_v63  ;;  %v361_v51 = vmul.f32 %v3585_v41, %v3776_v47  ;;  %v395_v39 = vmul.f32 %v3587_v42, %v3776_v47  ;;  %v455_v59 = vmul.f32 %v3590_v44, %v3776_v47 }
  0xb9   : > { %v3826_v61 = vmax.f32 %v742_v37, 0.0  ;;  %v591_v2 = vadd.f32 %v565_v33, %v530_v3  ;;  %v409_v25 = vadd.f32 %v383_v53, %v348_v12  ;;  %v386_v33 = vmul.f32 %v3587_v42, %v3631_v8 }
  0xba   : > { %v422_v0 = vadd.f32 %v396_v29, %v361_v51  ;;  %v3830_v10 = vadd.f32 %v395_v39, %v360_v54  ;;  %v3832_v17 = vadd.f32 %v455_v59, %v420_v40  ;;  %v362_v29 = vmul.f32 %v3585_v41, %v3774_v63 }
  0xbb   : > { %v3803_v31 = vpop.permute.xlu1 %320  ;;  %v3805_v32 = vpop.permute.xlu0 %315  ;;  %5490 = vst [vmem:[#allocation10_spill] sm:$0xff] %v3826_v61  ;;  %949 = vrot.lane.b32.xlu1 %v3826_v61, %s3500_s25  ;;  %1014 = vrot.lane.b32.xlu0 %v3826_v61, %s3501_s26  ;;  %v410_v54 = vadd.f32 %v384_v24, %v349_v60  ;;  %v652_v39 = vadd.f32 %v626_v22, %v591_v2 }
  0xbc   : > { %v398_v15 = vmul.f32 %v3587_v42, %v3803_v31  ;;  %v363_v37 = vmul.f32 %v3585_v41, %v3805_v32  ;;  %v397_v51 = vmul.f32 %v3587_v42, %v3805_v32  ;;  %v457_v59 = vmul.f32 %v3590_v44, %v3805_v32 }
  0xbd   : > { %v505_v12 = vmul.f32 %v3598_v48, %v3633_v9  ;;  %v385_v24 = vmul.f32 %v3587_v42, %v3633_v9  ;;  %v445_v60 = vmul.f32 %v3590_v44, %v3633_v9  ;;  %v713_v22 = vadd.f32 %v687_v1, %v652_v39 }
  0xbe   : > { %v3858_v53 = vadd.f32 %v397_v51, %v362_v29  ;;  %v424_v3 = vadd.f32 %v398_v15, %v363_v37  ;;  %v3870_v2 = vadd.f32 %v457_v59, %v422_v0  ;;  %v3874_v15 = vmul.f32 %v3590_v44, %v3631_v8 }
  0xbf   : > { %v3836_v58 = vpop.permute.xlu0 %325  ;;  %v211_v40 = vpop.permute.xlu1 %210  ;;  %817 = vrot.lane.b32.xlu1 %v3791_v21, %s3498_s23  ;;  %v506_v29 = vmul.f32 %v3598_v48, %v3631_v8  ;;  %v470_v51 = vadd.f32 %v444_v46, %v409_v25  ;;  %v743_v1 = vadd.f32 %v3670_v30, %v713_v22  ;;  %v411_v25 = vadd.f32 %v385_v24, %v3787_v14 }
  0xc0   : > { %5491 = vst [vmem:[#allocation11_spill] sm:$0xff] %v3858_v53  ;;  %v459_v34 = vmul.f32 %v3590_v44, %v3836_v58  ;;  %5493 = vst [vmem:[#allocation13_spill] sm:$0xff] %v3870_v2  ;;  %v342_v37 = vmul.f32 %v3585_v41, %v211_v40  ;;  %v627_v40 = vmul.f32 %v3628_v5, %v3651_v20 }
  0xc1   : > { %v531_v21 = vadd.f32 %v505_v12, %v470_v51  ;;  %v471_v8 = vadd.f32 %v445_v60, %v410_v54  ;;  %v447_v9 = vmul.f32 %v3590_v44, %v3651_v20  ;;  %v3894_v57 = vmax.f32 %v743_v1, 0.0 }
  0xc2   : > { %v403_v59 = vadd.f32 %v3720_v13, %v342_v37  ;;  %v485_v46 = vadd.f32 %v459_v34, %v424_v3  ;;  %v412_v37 = vadd.f32 %v386_v33, %v351_v56  ;;  %v3903_v34 = vmul.f32 %v3590_v44, %v3649_v19 }
  0xc3   : > { %v3862_v16 = vpop.permute.xlu0 %330  ;;  %v3886_v39 = vpop.permute.xlu1 %335  ;;  %819 = vrot.lane.b32.xlu1 %v3826_v61, %s3498_s23  ;;  %v592_v53 = vadd.f32 %v566_v50, %v531_v21  ;;  %v508_v14 = vmul.f32 %v3598_v48, %v3649_v19  ;;  %v567_v54 = vmul.f32 %v3618_v62, %v3651_v20  ;;  %1016 = vrot.lane.b32.xlu0 %v3894_v57, %s3501_s26 }
  0xc4   : > { %5492 = vst [vmem:[#allocation12_spill] sm:$0xff] %v3862_v16  ;;  %v520_v0 = vmul.f32 %v3598_v48, %v3862_v16  ;;  %5494 = vst [vmem:[#allocation14_spill] sm:$0xff] %v3886_v39  ;;  %v464_v22 = vadd.f32 %v3762_v52, %v403_v59  ;;  %v581_v12 = vmul.f32 %v3618_v62, %v3886_v39 }
  0xc5   : > { %v653_v21 = vadd.f32 %v627_v40, %v592_v53  ;;  %v688_v56 = vmul.f32 %v3647_v18, %v3649_v19  ;;  %v568_v3 = vmul.f32 %v3618_v62, %v3649_v19  ;;  %v473_v24 = vadd.f32 %v447_v9, %v412_v37 }
  0xc6   : > { %v546_v13 = vadd.f32 %v520_v0, %v485_v46  ;;  %v525_v50 = vadd.f32 %v3682_v49, %v464_v22  ;;  %v507_v60 = vmul.f32 %v3598_v48, %v3651_v20  ;;  %v532_v1 = vadd.f32 %v506_v29, %v471_v8 }
  0xc7   : > { %v3911_v52 = vpop.permute.xlu0 %370  ;;  %886 = vrot.lane.b32.xlu1 %v3894_v57, %s3499_s24  ;;  %v3924_v51 = vpop.permute.xlu1 %431  ;;  %v3928_v49 = vmul.f32 %v3598_v48, %v3676_v43  ;;  %v3932_v53 = vmul.f32 %v3618_v62, %v3676_v43  ;;  %v714_v59 = vadd.f32 %v688_v56, %v653_v21  ;;  %v509_v20 = vmul.f32 %v3598_v48, %v3678_v45 }
  0xc8   : > { %5495 = vst [vmem:[#allocation15_spill] sm:$0xff] %v3911_v52  ;;  %v3916_v33 = vadd.f32 %v581_v12, %v546_v13  ;;  %5497 = vst [vmem:[#allocation17_spill] sm:$0xff] %v3924_v51  ;;  %v3935_v0 = vadd.f32 %v3766_v55, %v525_v50  ;;  %884 = vrot.lane.b32.xlu0 %v3826_v61, %s3499_s24  ;;  %v593_v40 = vadd.f32 %v567_v54, %v532_v1 }
  0xc9   : > { %v628_v29 = vmul.f32 %v3628_v5, %v3649_v19  ;;  %v689_v46 = vmul.f32 %v3647_v18, %v3678_v45  ;;  %v569_v8 = vmul.f32 %v3618_v62, %v3678_v45  ;;  %v744_v55 = vadd.f32 %v3670_v30, %v714_v59 }
  0xca   : > { %5496 = vst [vmem:[#allocation16_spill] sm:$0xff] %v3916_v33  ;;  %5498 = vst [vmem:[#allocation18_spill] sm:$0xff] %v3935_v0  ;;  %v365_v9 = vmul.f32 %v3585_v41, %v3836_v58  ;;  %v400_v22 = vmul.f32 %v3587_v42, %v3862_v16  ;;  %v522_v13 = vmul.f32 %v3598_v48, %v3911_v52 }
  0xcb   : > { %v463_v19 = vmul.f32 %v3590_v44, %v3924_v51  ;;  %v523_v12 = vmul.f32 %v3598_v48, %v3924_v51  ;;  %v654_v37 = vadd.f32 %v628_v29, %v593_v40  ;;  %v3958_v54 = vpop.permute.xlu0 %492  ;;  %v3960_v50 = vmax.f32 %v744_v55, 0.0  ;;  %v3968_v61 = vpop.permute.xlu1 %553 }
  0xcc   : > { %v426_v21 = vadd.f32 %v400_v22, %v365_v9  ;;  %v461_v56 = vmul.f32 %v3590_v44, %v3886_v39  ;;  %v366_v1 = vmul.f32 %v3585_v41, %v3862_v16  ;;  %951 = vrot.lane.b32.xlu0 %v3894_v57, %s3500_s25  ;;  %v367_v40 = vmul.f32 %v3585_v41, %v3886_v39 }
  0xcd   : > { %v715_v59 = vadd.f32 %v689_v46, %v654_v37  ;;  %v401_v29 = vmul.f32 %v3587_v42, %v3886_v39  ;;  %v402_v55 = vmul.f32 %v3587_v42, %v3911_v52  ;;  %953 = vrot.lane.b32.xlu1 %v3960_v50, %s3500_s25  ;;  %v583_v9 = vmul.f32 %v3618_v62, %v3924_v51 }
  0xce   : > { %v524_v46 = vmul.f32 %v3598_v48, %v3958_v54  ;;  %v487_v22 = vadd.f32 %v461_v56, %v426_v21  ;;  %v462_v37 = vmul.f32 %v3590_v44, %v3911_v52  ;;  %v472_v16 = vadd.f32 %v3874_v15, %v411_v25 }
  0xcf   : > { %v745_v33 = vadd.f32 %v3670_v30, %v715_v59  ;;  %v427_v0 = vadd.f32 %v401_v29, %v366_v1  ;;  %v428_v39 = vadd.f32 %v402_v55, %v367_v40  ;;  %v584_v41 = vmul.f32 %v3618_v62, %v3958_v54 }
  0xd0   : > { %v548_v2 = vadd.f32 %v522_v13, %v487_v22  ;;  %v585_v51 = vmul.f32 %v3618_v62, %v3968_v61  ;;  %v534_v42 = vadd.f32 %v508_v14, %v473_v24  ;;  %1018 = vrot.lane.b32.xlu0 %v3960_v50, %s3501_s26  ;;  %v533_v52 = vadd.f32 %v507_v60, %v472_v16 }
  0xd1   : > { %v488_v21 = vadd.f32 %v462_v37, %v427_v0  ;;  %v489_v56 = vadd.f32 %v463_v19, %v428_v39  ;;  %v629_v1 = vmul.f32 %v3628_v5, %v3678_v45  ;;  %821 = vrot.lane.b32.xlu1 %v3894_v57, %s3498_s23  ;;  %v3996_v15 = vmax.f32 %v745_v33, 0.0 }
  0xd2   : > { %v3998_v25 = vadd.f32 %v583_v9, %v548_v2  ;;  %v595_v13 = vadd.f32 %v569_v8, %v534_v42  ;;  %v630_v14 = vmul.f32 %v3628_v5, %v3676_v43  ;;  %v594_v40 = vadd.f32 %v568_v3, %v533_v52 }
  0xd3   : > { %v549_v24 = vadd.f32 %v523_v12, %v488_v21  ;;  %v550_v59 = vadd.f32 %v524_v46, %v489_v56  ;;  %v474_v16 = vadd.f32 %v3903_v34, %v3672_v35  ;;  %v571_v45 = vmul.f32 %v3618_v62, %v3707_v6 }
  0xd4   : > { %v690_v39 = vmul.f32 %v3647_v18, %v3676_v43  ;;  %v656_v33 = vadd.f32 %v630_v14, %v595_v13  ;;  %v691_v2 = vmul.f32 %v3647_v18, %v3707_v6  ;;  %1020 = vrot.lane.b32.xlu0 %v3996_v15, %s3501_s26  ;;  %v655_v52 = vadd.f32 %v629_v1, %v594_v40 }
  0xd5   : > { %v4012_v42 = vadd.f32 %v584_v41, %v549_v24  ;;  %v4014_v60 = vadd.f32 %v585_v51, %v550_v59  ;;  %v535_v3 = vadd.f32 %v509_v20, %v474_v16  ;;  %v450_v35 = vmul.f32 %v3590_v44, %v3676_v43  ;;  %823 = vrot.lane.b32.xlu1 %v3960_v50, %s3498_s23 }
  0xd6   : > { %v511_v34 = vmul.f32 %v3598_v48, %v3707_v6  ;;  %v536_v0 = vadd.f32 %v3928_v49, %v3714_v11  ;;  %v716_v8 = vadd.f32 %v690_v39, %v655_v52  ;;  %v717_v19 = vadd.f32 %v691_v2, %v656_v33 }
  0xd7   : > { %v596_v41 = vadd.f32 %v3932_v53, %v535_v3  ;;  %v476_v12 = vadd.f32 %v450_v35, %v3712_v7  ;;  %v512_v20 = vmul.f32 %v3598_v48, %v3705_v4  ;;  %v572_v29 = vmul.f32 %v3618_v62, %v3705_v4  ;;  %v1172_v35 = vld [vmem:[%s5460_s1 + $0x8] sm:$0xff] }
  0xd8   : > { %v597_v51 = vadd.f32 %v571_v45, %v536_v0  ;;  %888 = vrot.lane.b32.xlu0 %v3960_v50, %s3499_s24  ;;  %v746_v43 = vadd.f32 %v3670_v30, %v716_v8  ;;  %v573_v11 = vmul.f32 %v3618_v62, %v3746_v28  ;;  %v452_v7 = vmul.f32 %v3590_v44, %v3705_v4 }
  0xd9   : > { %890 = vrot.lane.b32.xlu1 %v3996_v15, %s3499_s24  ;;  %v537_v49 = vadd.f32 %v511_v34, %v476_v12  ;;  %v513_v53 = vmul.f32 %v3598_v48, %v3746_v28  ;;  %v631_v55 = vmul.f32 %v3628_v5, %v3707_v6  ;;  %v747_v46 = vadd.f32 %v3670_v30, %v717_v19  ;;  %v1173_v34 = vld [vmem:[%s5460_s1 + $0x10] sm:$0xff]  ;;  %v1175_v12 = vld [vmem:[%s5460_s1 + $0x20] sm:$0xff] }
  0xda   : > { %v4043_v9 = vmax.f32 %v746_v43, 0.0  ;;  %v538_v37 = vadd.f32 %v512_v20, %v3756_v38  ;;  %v514_v21 = vmul.f32 %v3598_v48, %v3744_v27  ;;  %v575_v56 = vmul.f32 %v3618_v62, %v3776_v47 }
  0xdb   : > { %v4046_v22 = vadd.f32 %v572_v29, %v537_v49  ;;  %v478_v1 = vadd.f32 %v452_v7, %v3754_v36  ;;  %v454_v6 = vmul.f32 %v3590_v44, %v3744_v27  ;;  %v574_v38 = vmul.f32 %v3618_v62, %v3744_v27  ;;  %v1177_v29 = vld [vmem:[%s5460_s1 + $0x30] sm:$0xff] }
  0xdc   : > { %955 = vrot.lane.b32.xlu0 %v3996_v15, %s3500_s25  ;;  %v4060_v13 = vadd.f32 %v573_v11, %v538_v37  ;;  %v515_v14 = vmul.f32 %v3598_v48, %v3776_v47  ;;  %v540_v59 = vadd.f32 %v514_v21, %v3799_v26  ;;  %v516_v36 = vmul.f32 %v3598_v48, %v3774_v63 }
  0xdd   : > { %957 = vrot.lane.b32.xlu1 %v4043_v9, %s3500_s25  ;;  %v539_v24 = vadd.f32 %v513_v53, %v478_v1  ;;  %v577_v40 = vmul.f32 %v3618_v62, %v3805_v32  ;;  %v4071_v16 = vmax.f32 %v747_v46, 0.0  ;;  %v657_v45 = vadd.f32 %v631_v55, %v596_v41 }
  0xde   : > { %v4077_v33 = vadd.f32 %v575_v56, %v540_v59  ;;  %v480_v2 = vadd.f32 %v454_v6, %v3793_v23  ;;  %v692_v26 = vmul.f32 %v3647_v18, %v3705_v4  ;;  %v632_v52 = vmul.f32 %v3628_v5, %v3705_v4  ;;  %v1178_v6 = vld [vmem:[%s5460_s1 + $0x38] sm:$0xff] }
  0xdf   : > { %v4075_v39 = vadd.f32 %v574_v38, %v539_v24  ;;  %v542_v3 = vadd.f32 %v516_v36, %v3832_v17  ;;  %v576_v23 = vmul.f32 %v3618_v62, %v3774_v63  ;;  %v693_v19 = vmul.f32 %v3647_v18, %v3746_v28  ;;  %v1174_v17 = vld [vmem:[%s5460_s1 + $0x18] sm:$0xff]  ;;  %v1179_v38 = vld [vmem:[%s5460_s1 + $0x40] sm:$0xff]  ;;  %v5499_v24 = vld [vmem:[#allocation4_spill] sm:$0xff] }
  0xe0   : > { %1022 = vrot.lane.b32.xlu0 %v4043_v9, %s3501_s26  ;;  %v541_v0 = vadd.f32 %v515_v14, %v480_v2  ;;  %v718_v8 = vadd.f32 %v692_v26, %v657_v45  ;;  %v658_v41 = vadd.f32 %v632_v52, %v597_v51  ;;  %v3123_v20 = vpack.c.bf16 %v1173_v34, %v1172_v35  ;;  %v1176_v51 = vld [vmem:[%s5460_s1 + $0x28] sm:$0xff]  ;;  %v5500_v36 = vld [vmem:[#allocation13_spill] sm:$0xff] }
  0xe1   : > { %1024 = vrot.lane.b32.xlu1 %v4071_v16, %s3501_s26  ;;  %v4097_v4 = vadd.f32 %v577_v40, %v542_v3  ;;  %v456_v11 = vmul.f32 %v3590_v44, %v3774_v63  ;;  %v517_v49 = vmul.f32 %v3598_v48, %v3805_v32  ;;  %v3127_v7 = vpack.c.bf16 %v1175_v12, %v1174_v17  ;;  %v1181_v17 = vld [vmem:[%s5460_s1 + $0x50] sm:$0xff]  ;;  %v5503_v12 = vld [vmem:[#allocation11_spill] sm:$0xff] }
  0xe2   : > { %v4107_v43 = vadd.f32 %v576_v23, %v541_v0  ;;  %3124 = vmatprep.subr.bf16.mxu0 %v3123_v20  ;;  %v518_v53 = vmul.f32 %v3598_v48, %v3803_v31  ;;  %v748_v55 = vadd.f32 %v3670_v30, %v718_v8  ;;  %v719_v46 = vadd.f32 %v693_v19, %v658_v41  ;;  %v5501_v23 = vld [vmem:[#allocation3_spill] sm:$0xff]  ;;  %v5502_v8 = vld [vmem:[#allocation12_spill] sm:$0xff] }
  0xe3   : > { %3126 = vmatpush3.bf16.msra.mxu0 %v3123_v20  ;;  %v579_v37 = vmul.f32 %v3618_v62, %v3836_v58  ;;  %v3131_v21 = vpack.c.bf16 %v1177_v29, %v1176_v51  ;;  %v482_v56 = vadd.f32 %v456_v11, %v3830_v10  ;;  %v458_v1 = vmul.f32 %v3590_v44, %v3803_v31 }
  0xe4   : > { %825 = vrot.lane.b32.xlu0 %v3996_v15, %s3498_s23  ;;  %3128 = vmatprep.subr.bf16.mxu0 %v3127_v7  ;;  %v578_v14 = vmul.f32 %v3618_v62, %v3803_v31  ;;  %v399_v10 = vmul.f32 %v5499_v24, %v3836_v58  ;;  %v544_v40 = vadd.f32 %v518_v53, %v5500_v36  ;;  %v4146_v2 = vmax.f32 %v748_v55, 0.0 }
  0xe5   : > { %827 = vrot.lane.b32.xlu1 %v4043_v9, %s3498_s23  ;;  %v543_v59 = vadd.f32 %v517_v49, %v482_v56  ;;  %v519_v45 = vmul.f32 %v3598_v48, %v3836_v58  ;;  %v749_v26 = vadd.f32 %v3670_v30, %v719_v46  ;;  %v633_v52 = vmul.f32 %v3628_v5, %v3746_v28  ;;  %v1180_v28 = vld [vmem:[%s5460_s1 + $0x48] sm:$0xff] }
  0xe6   : > { %v3135_v35 = vpack.c.bf16 %v1179_v38, %v1178_v6  ;;  %v4155_v34 = vadd.f32 %v579_v37, %v544_v40  ;;  %v364_v0 = vmul.f32 %v5501_v23, %v3803_v31  ;;  %v460_v41 = vmul.f32 %v3590_v44, %v5502_v8  ;;  %v5504_v49 = vld [vmem:[#allocation15_spill] sm:$0xff] }
  0xe7   : > { %3130 = vmatpush3.bf16.msra.mxu0 %v3127_v7  ;;  %v4153_v3 = vadd.f32 %v578_v14, %v543_v59  ;;  %v580_v19 = vmul.f32 %v3618_v62, %v5502_v8  ;;  %v484_v20 = vadd.f32 %v458_v1, %v5503_v12  ;;  %v4172_v51 = vmax.f32 %v749_v26, 0.0 }
  0xe8   : > { %892 = vrot.lane.b32.xlu0 %v4043_v9, %s3499_s24  ;;  %3132 = vmatprep.subr.bf16.mxu0 %v3131_v21  ;;  %v659_v44 = vadd.f32 %v633_v52, %v4046_v22  ;;  %v425_v11 = vadd.f32 %v399_v10, %v364_v0  ;;  %v582_v7 = vmul.f32 %v3618_v62, %v5504_v49 }
  0xe9   : > { %894 = vrot.lane.b32.xlu1 %v4071_v16, %s3499_s24  ;;  %v545_v29 = vadd.f32 %v519_v45, %v484_v20  ;;  %v694_v53 = vmul.f32 %v3647_v18, %v3744_v27  ;;  %v3139_v55 = vpack.c.bf16 %v1181_v17, %v1180_v28  ;;  %v634_v22 = vmul.f32 %v3628_v5, %v3744_v27 }
  0xea   : > { %v486_v37 = vadd.f32 %v460_v41, %v425_v11  ;;  %v695_v6 = vmul.f32 %v3647_v18, %v3776_v47  ;;  %v635_v10 = vmul.f32 %v3628_v5, %v3776_v47  ;;  %v696_v40 = vmul.f32 %v3647_v18, %v3774_v63 }
  0xeb   : > { %3134 = vmatpush3.bf16.msra.mxu0 %v3131_v21  ;;  %v4185_v46 = vadd.f32 %v580_v19, %v545_v29  ;;  %v5505_v21 = vld [vmem:[#allocation14_spill] sm:$0xff]  ;;  %v720_v56 = vadd.f32 %v694_v53, %v659_v44  ;;  %v660_v1 = vadd.f32 %v634_v22, %v4060_v13  ;;  %v636_v47 = vmul.f32 %v3628_v5, %v3774_v63  ;;  %v4263_v44 = vpop.permute.xlu0 %675 }
  0xec   : > { %959 = vrot.lane.b32.xlu0 %v4071_v16, %s3500_s25  ;;  %3136 = vmatprep.subr.bf16.mxu0 %v3135_v35  ;;  %v521_v62 = vmul.f32 %v3598_v48, %v5505_v21  ;;  %v661_v36 = vadd.f32 %v635_v10, %v4075_v39  ;;  %v697_v52 = vmul.f32 %v3647_v18, %v3805_v32  ;;  %v5507_v29 = vld [vmem:[#allocation18_spill] sm:$0xff] }
  0xed   : > { %961 = vrot.lane.b32.xlu1 %v4146_v2, %s3500_s25  ;;  %v750_v14 = vadd.f32 %v3670_v30, %v720_v56  ;;  %v721_v48 = vadd.f32 %v695_v6, %v660_v1  ;;  %v662_v26 = vadd.f32 %v636_v47, %v4077_v33  ;;  %v637_v23 = vmul.f32 %v3628_v5, %v3805_v32  ;;  %v4283_v56 = vpop.permute.xlu1 %614 }
  0xee   : > { %v547_v38 = vadd.f32 %v521_v62, %v486_v37  ;;  %v722_v45 = vadd.f32 %v696_v40, %v661_v36  ;;  %v698_v19 = vmul.f32 %v3647_v18, %v3803_v31  ;;  %v638_v32 = vmul.f32 %v3628_v5, %v3803_v31  ;;  %v5506_v31 = vld [vmem:[#allocation6_spill] sm:$0xff] }
  0xef   : > { %3138 = vmatpush3.bf16.msra.mxu0 %v3135_v35  ;;  %v4203_v13 = vmax.f32 %v750_v14, 0.0  ;;  %v751_v24 = vadd.f32 %v3670_v30, %v721_v48  ;;  %v723_v35 = vadd.f32 %v697_v52, %v662_v26  ;;  %v663_v41 = vadd.f32 %v637_v23, %v4107_v43 }
  0xf0   : > { %1026 = vrot.lane.b32.xlu0 %v4146_v2, %s3501_s26  ;;  %3140 = vmatprep.subr.bf16.mxu0 %v3139_v55  ;;  %v4196_v27 = vadd.f32 %v582_v7, %v547_v38  ;;  %v752_v39 = vadd.f32 %v3670_v30, %v722_v45  ;;  %v664_v17 = vadd.f32 %v638_v32, %v4097_v4 }
  0xf1   : > { %1028 = vrot.lane.b32.xlu1 %v4172_v51, %s3501_s26  ;;  %v4212_v59 = vmax.f32 %v751_v24, 0.0  ;;  %v753_v33 = vadd.f32 %v3670_v30, %v723_v35  ;;  %v724_v28 = vadd.f32 %v698_v19, %v663_v41  ;;  %v699_v12 = vmul.f32 %v3647_v18, %v3836_v58 }
  0xf2   : > { %v4235_v63 = vmax.f32 %v752_v39, 0.0  ;;  %v621_v4 = vmul.f32 %v3628_v5, %v5506_v31  ;;  %v639_v62 = vmul.f32 %v3628_v5, %v3836_v58  ;;  %v700_v38 = vmul.f32 %v3647_v18, %v5502_v8 }
  0xf3   : > { %3142 = vmatpush3.bf16.msra.mxu0 %v3139_v55  ;;  %v4244_v0 = vmax.f32 %v753_v33, 0.0  ;;  %v754_v43 = vadd.f32 %v3670_v30, %v724_v28  ;;  %v725_v20 = vadd.f32 %v699_v12, %v664_v17  ;;  %v5508_v55 = vld [vmem:[#allocation5_spill] sm:$0xff]  ;;  %v640_v14 = vmul.f32 %v3628_v5, %v5502_v8 }
  0xf4   : > { %829 = vrot.lane.b32.xlu0 %v4071_v16, %s3498_s23  ;;  %v647_v11 = vadd.f32 %v621_v4, %v5507_v29  ;;  %v682_v22 = vmul.f32 %v3647_v18, %v5508_v55  ;;  %v665_v48 = vadd.f32 %v639_v62, %v4153_v3  ;;  %v701_v8 = vmul.f32 %v3647_v18, %v5505_v21 }
  0xf5   : > { %831 = vrot.lane.b32.xlu1 %v4146_v2, %s3498_s23  ;;  %v4272_v7 = vmax.f32 %v754_v43, 0.0  ;;  %v755_v53 = vadd.f32 %v3670_v30, %v725_v20  ;;  %v666_v40 = vadd.f32 %v640_v14, %v4155_v34  ;;  %v641_v28 = vmul.f32 %v3628_v5, %v5505_v21  ;;  %v5509_v21 = vld [vmem:[#allocation7_spill] sm:$0xff] }
  0xf6   : > { %v708_v1 = vadd.f32 %v682_v22, %v647_v11  ;;  %v726_v36 = vadd.f32 %v700_v38, %v665_v48  ;;  %v642_v17 = vmul.f32 %v3628_v5, %v5504_v49  ;;  %v702_v12 = vmul.f32 %v3647_v18, %v5504_v49  ;;  %v5511_v11 = vld [vmem:[#allocation16_spill] sm:$0xff]  ;;  %v5512_v22 = vld [vmem:[#allocation17_spill] sm:$0xff] }
  0xf7   : > { %v4285_v6 = vmax.f32 %v755_v53, 0.0  ;;  %v727_v45 = vadd.f32 %v701_v8, %v666_v40  ;;  %v667_v20 = vadd.f32 %v641_v28, %v4185_v46  ;;  %v5510_v4 = vmax.f32 %v5509_v21, 0.0  ;;  %v5514_v28 = vld [vmem:[#allocation9_spill] sm:$0xff] }
  0xf8   : > { %896 = vrot.lane.b32.xlu0 %v4146_v2, %s3499_s24  ;;  %v738_v58 = vadd.f32 %v3670_v30, %v708_v1  ;;  %v756_v3 = vadd.f32 %v3670_v30, %v726_v36  ;;  %v668_v53 = vadd.f32 %v642_v17, %v5511_v11  ;;  %v643_v40 = vmul.f32 %v3628_v5, %v5512_v22 }
  0xf9   : > { %898 = vrot.lane.b32.xlu1 %v4172_v51, %s3499_s24  ;;  %v757_v33 = vadd.f32 %v3670_v30, %v727_v45  ;;  %v728_v49 = vadd.f32 %v702_v12, %v667_v20  ;;  %v705_v12 = vmul.f32 %v3647_v18, %v3968_v61 }
  0xfa   : > { %v764_v47 = vmax.f32 %v738_v58, 0.0  ;;  %v4311_v35 = vmax.f32 %v756_v3, 0.0  ;;  %v704_v3 = vmul.f32 %v3647_v18, %v3958_v54 }
  0xfb   : > { %v4327_v43 = vmax.f32 %v757_v33, 0.0  ;;  %v758_v48 = vadd.f32 %v3670_v30, %v728_v49 }
  0xfc   : > { %963 = vrot.lane.b32.xlu0 %v4172_v51, %s3500_s25 }
  0xfd   : > { %965 = vrot.lane.b32.xlu1 %v4203_v13, %s3500_s25 }
 0x100   : > { %1030 = vrot.lane.b32.xlu0 %v4203_v13, %s3501_s26 }
 0x101   : > { %1032 = vrot.lane.b32.xlu1 %v4212_v59, %s3501_s26 }
 0x104   : > { %833 = vrot.lane.b32.xlu0 %v4172_v51, %s3498_s23 }
 0x105   : > { %835 = vrot.lane.b32.xlu1 %v4203_v13, %s3498_s23 }
 0x108   : > { %900 = vrot.lane.b32.xlu0 %v4203_v13, %s3499_s24 }
 0x109   : > { %902 = vrot.lane.b32.xlu1 %v4212_v59, %s3499_s24 }
 0x10c   : > { %967 = vrot.lane.b32.xlu0 %v4212_v59, %s3500_s25 }
 0x10d   : > { %969 = vrot.lane.b32.xlu1 %v4235_v63, %s3500_s25 }
 0x110   : > { %1034 = vrot.lane.b32.xlu0 %v4235_v63, %s3501_s26 }
 0x111   : > { %1036 = vrot.lane.b32.xlu1 %v4244_v0, %s3501_s26 }
 0x114   : > { %837 = vrot.lane.b32.xlu0 %v4212_v59, %s3498_s23 }
 0x115   : > { %839 = vrot.lane.b32.xlu1 %v4235_v63, %s3498_s23 }
 0x118   : > { %904 = vrot.lane.b32.xlu0 %v4235_v63, %s3499_s24 }
 0x119   : > { %906 = vrot.lane.b32.xlu1 %v4244_v0, %s3499_s24 }
 0x11c   : > { %971 = vrot.lane.b32.xlu0 %v4244_v0, %s3500_s25 }
 0x11d   : > { %v814_v37 = vpop.permute.xlu0 %813  ;;  %973 = vrot.lane.b32.xlu1 %v4272_v7, %s3500_s25  ;;  %v881_v24 = vpop.permute.xlu1 %880 }
 0x11e   : > { %v1081_v26 = vsel %vm1080_vm0, %v764_v47, %v814_v37  ;;  %v703_v37 = vmul.f32 %v3647_v18, %v5512_v22  ;;  %v644_v47 = vmul.f32 %v3628_v5, %v3958_v54 }
 0x11f   : > { %v1104_v39 = vsel %vm1103_vm1, %v1081_v26, %v881_v24 }
 0x120   : > { %1038 = vrot.lane.b32.xlu0 %v4272_v7, %s3501_s26  ;;  %v729_v38 = vadd.f32 %v703_v37, %v668_v53  ;;  %v670_v54 = vadd.f32 %v644_v47, %v3998_v25 }
 0x121   : > { %1040 = vrot.lane.b32.xlu1 %v4285_v6, %s3501_s26  ;;  %v816_v10 = vpop.permute.xlu0 %815 }
 0x122   : > { %v1082_v29 = vsel %vm1080_vm0, %v5510_v4, %v816_v10  ;;  %v4353_v10 = vmax.f32 %v758_v48, 0.0  ;;  %v759_v36 = vadd.f32 %v3670_v30, %v729_v38  ;;  %v731_v21 = vadd.f32 %v705_v12, %v670_v54 }
 0x123   : > { %v706_v38 = vmul.f32 %v3647_v18, %v4283_v56 }
 0x124   : > { %841 = vrot.lane.b32.xlu0 %v4244_v0, %s3498_s23  ;;  %v4366_v26 = vmax.f32 %v759_v36, 0.0 }
 0x125   : > { %843 = vrot.lane.b32.xlu1 %v4272_v7, %s3498_s23 }
 0x127   : > { %v948_v34 = vpop.permute.xlu1 %947  ;;  %v883_v52 = vpop.permute.xlu0 %882 }
 0x128   : > { %908 = vrot.lane.b32.xlu0 %v4272_v7, %s3499_s24  ;;  %v1127_v23 = vsel %vm1126_vm2, %v1104_v39, %v948_v34  ;;  %v1105_v55 = vsel %vm1103_vm1, %v1082_v29, %v883_v52  ;;  %v669_v34 = vadd.f32 %v643_v40, %v4196_v27  ;;  %v5513_v52 = vld [vmem:[#allocation8_spill] sm:$0xff] }
 0x129   : > { %910 = vrot.lane.b32.xlu1 %v4285_v6, %s3499_s24 }
 0x12a   : > { %v730_v27 = vadd.f32 %v704_v3, %v669_v34 }
 0x12c   : > { %975 = vrot.lane.b32.xlu0 %v4285_v6, %s3500_s25  ;;  %v760_v11 = vadd.f32 %v3670_v30, %v730_v27  ;;  %v645_v30 = vmul.f32 %v3628_v5, %v3968_v61 }
 0x12d   : > { %v950_v41 = vpop.permute.xlu1 %949  ;;  %v1015_v19 = vpop.permute.xlu0 %1014  ;;  %977 = vrot.lane.b32.xlu1 %v4311_v35, %s3500_s25 }
 0x12e   : > { %v1150_v32 = vsel %vm1149_vm3, %v1127_v23, %v1015_v19  ;;  %v1128_v62 = vsel %vm1126_vm2, %v1105_v55, %v950_v41  ;;  %v786_v49 = vmax.f32 %v760_v11, 0.0 }
 0x12f   : > { %3019 = vmatprep.mubr.msk.f32.mxu0 %vm1186_vm4, %v1150_v32 }
 0x130   : > { %1042 = vrot.lane.b32.xlu0 %v4311_v35, %s3501_s26 }
 0x131   : > { %v818_v31 = vpop.permute.xlu1 %817  ;;  %1044 = vrot.lane.b32.xlu1 %v4327_v43, %s3501_s26 }
 0x132   : > { %v1083_v39 = vsel %vm1080_vm0, %v5513_v52, %v818_v31 }
 0x134   : > { %845 = vrot.lane.b32.xlu0 %v4285_v6, %s3498_s23 }
 0x135   : > { %v820_v46 = vpop.permute.xlu1 %819  ;;  %847 = vrot.lane.b32.xlu1 %v4311_v35, %s3498_s23  ;;  %v1017_v1 = vpop.permute.xlu0 %1016 }
 0x136   : > { %v1151_v14 = vsel %vm1149_vm3, %v1128_v62, %v1017_v1  ;;  %v1084_v17 = vsel %vm1080_vm0, %v5514_v28, %v820_v46  ;;  %v3488_v46 = vld [vmem:[%s5461_s2] ss:$0 sm:$0xff]  ;;  %v671_v62 = vadd.f32 %v645_v30, %v4012_v42  ;;  %v646_v1 = vmul.f32 %v3628_v5, %v4283_v56 }
 0x137   : > { %3020 = vmatmul.mubr.msk.f32.vlgmr.msra.gmra.mrb[0].mxu0 %vm1186_vm4, %v1151_v14  ;;  %v761_v22 = vadd.f32 %v3488_v46, %v731_v21 }
 0x138   : > { %912 = vrot.lane.b32.xlu0 %v4311_v35, %s3499_s24  ;;  %v672_v56 = vadd.f32 %v646_v1, %v4014_v60 }
 0x139   : > { %914 = vrot.lane.b32.xlu1 %v4327_v43, %s3499_s24  ;;  %v887_v58 = vpop.permute.xlu1 %886  ;;  %v787_v48 = vmax.f32 %v761_v22, 0.0 }
 0x13a   : > { %v885_v24 = vpop.permute.xlu0 %884  ;;  %v1107_v20 = vsel %vm1103_vm1, %v1084_v17, %v887_v58  ;;  %v5515_v58 = vld [vmem:[#allocation10_spill] sm:$0xff] }
 0x13b   : > { %v1106_v33 = vsel %vm1103_vm1, %v1083_v39, %v885_v24 }
 0x13c   : > { %979 = vrot.lane.b32.xlu0 %v4327_v43, %s3500_s25 }
 0x13d   : > { %981 = vrot.lane.b32.xlu1 %v4353_v10, %s3500_s25 }
 0x13e   : > { %v952_v8 = vpop.permute.xlu0 %951 }
 0x13f   : > { %v954_v45 = vpop.permute.xlu1 %953  ;;  %v1129_v23 = vsel %vm1126_vm2, %v1106_v33, %v952_v8  ;;  %v732_v8 = vadd.f32 %v706_v38, %v671_v62 }
 0x140   : > { %1046 = vrot.lane.b32.xlu0 %v4353_v10, %s3501_s26  ;;  %v1130_v25 = vsel %vm1126_vm2, %v1107_v20, %v954_v45 }
 0x141   : > { %1048 = vrot.lane.b32.xlu1 %v4366_v26, %s3501_s26  ;;  %v762_v39 = vadd.f32 %v3488_v46, %v732_v8 }
 0x142   : > { %v1019_v41 = vpop.permute.xlu0 %1018 }
 0x143   : > { %v1152_v19 = vsel %vm1149_vm3, %v1129_v23, %v1019_v41  ;;  %v822_v32 = vpop.permute.xlu1 %821  ;;  %v788_v54 = vmax.f32 %v762_v39, 0.0 }
 0x144   : > { %849 = vrot.lane.b32.xlu0 %v4327_v43, %s3498_s23  ;;  %3022 = vmatprep.mubr.msk.f32.mxu0 %vm1186_vm4, %v1152_v19  ;;  %v1085_v24 = vsel %vm1080_vm0, %v5515_v58, %v822_v32 }
 0x145   : > { %851 = vrot.lane.b32.xlu1 %v4353_v10, %s3498_s23 }
 0x146   : > { %v1021_v31 = vpop.permute.xlu0 %1020 }
 0x147   : > { %v1153_v4 = vsel %vm1149_vm3, %v1130_v25, %v1021_v31  ;;  %v824_v29 = vpop.permute.xlu1 %823 }
 0x148   : > { %916 = vrot.lane.b32.xlu0 %v4353_v10, %s3499_s24  ;;  %3023 = vmatmul.mubr.msk.f32.gmra.mrb[2].mxu0 %vm1186_vm4, %v1153_v4  ;;  %v1086_v61 = vsel %vm1080_vm0, %v3894_v57, %v824_v29  ;;  %v707_v57 = vmul.f32 %v3647_v18, %v4263_v44 }
 0x149   : > { %918 = vrot.lane.b32.xlu1 %v4366_v26, %s3499_s24 }
 0x14a   : > { %v889_v53 = vpop.permute.xlu0 %888  ;;  %v733_v52 = vadd.f32 %v707_v57, %v672_v56 }
 0x14b   : > { %v891_v55 = vpop.permute.xlu1 %890  ;;  %v1108_v36 = vsel %vm1103_vm1, %v1085_v24, %v889_v53 }
 0x14c   : > { %983 = vrot.lane.b32.xlu0 %v4366_v26, %s3500_s25  ;;  %v1109_v42 = vsel %vm1103_vm1, %v1086_v61, %v891_v55  ;;  %v763_v19 = vadd.f32 %v3488_v46, %v733_v52 }
 0x14d   : > { %985 = vrot.lane.b32.xlu1 %v786_v49, %s3500_s25 }
 0x14e   : > { %v956_v37 = vpop.permute.xlu0 %955  ;;  %v789_v32 = vmax.f32 %v763_v19, 0.0 }
 0x14f   : > { %v958_v14 = vpop.permute.xlu1 %957  ;;  %v1131_v5 = vsel %vm1126_vm2, %v1108_v36, %v956_v37 }
 0x150   : > { %1050 = vrot.lane.b32.xlu0 %v786_v49, %s3501_s26  ;;  %v1132_v47 = vsel %vm1126_vm2, %v1109_v42, %v958_v14 }
 0x151   : > { %1052 = vrot.lane.b32.xlu1 %v787_v48, %s3501_s26 }
 0x152   : > { %v1023_v40 = vpop.permute.xlu0 %1022 }
 0x153   : > { %v1154_v3 = vsel %vm1149_vm3, %v1131_v5, %v1023_v40  ;;  %v1025_v45 = vpop.permute.xlu1 %1024 }
 0x154   : > { %v1155_v34 = vsel %vm1149_vm3, %v1132_v47, %v1025_v45  ;;  %853 = vrot.lane.b32.xlu0 %v4366_v26, %s3498_s23  ;;  %3025 = vmatprep.mubr.msk.f32.mxu0 %vm1186_vm4, %v1154_v3 }
 0x155   : > { %855 = vrot.lane.b32.xlu1 %v786_v49, %s3498_s23  ;;  %3026 = vmatmul.mubr.msk.f32.gmra.mrb[4].mxu0 %vm1186_vm4, %v1155_v34 }
 0x156   : > { %v826_v60 = vpop.permute.xlu0 %825 }
 0x157   : > { %v828_v33 = vpop.permute.xlu1 %827  ;;  %v1087_v27 = vsel %vm1080_vm0, %v3960_v50, %v826_v60 }
 0x158   : > { %920 = vrot.lane.b32.xlu0 %v786_v49, %s3499_s24  ;;  %v1088_v28 = vsel %vm1080_vm0, %v3996_v15, %v828_v33 }
 0x159   : > { %922 = vrot.lane.b32.xlu1 %v787_v48, %s3499_s24 }
 0x15a   : > { %v893_v23 = vpop.permute.xlu0 %892 }
 0x15b   : > { %v895_v41 = vpop.permute.xlu1 %894  ;;  %v1110_v17 = vsel %vm1103_vm1, %v1087_v27, %v893_v23 }
 0x15c   : > { %987 = vrot.lane.b32.xlu0 %v787_v48, %s3500_s25  ;;  %v1111_v12 = vsel %vm1103_vm1, %v1088_v28, %v895_v41 }
 0x15d   : > { %989 = vrot.lane.b32.xlu1 %v788_v54, %s3500_s25 }
 0x15e   : > { %v960_v18 = vpop.permute.xlu0 %959 }
 0x15f   : > { %v962_v44 = vpop.permute.xlu1 %961  ;;  %v1133_v20 = vsel %vm1126_vm2, %v1110_v17, %v960_v18 }
 0x160   : > { %1054 = vrot.lane.b32.xlu0 %v788_v54, %s3501_s26  ;;  %v1134_v31 = vsel %vm1126_vm2, %v1111_v12, %v962_v44 }
 0x161   : > { %1056 = vrot.lane.b32.xlu1 %v789_v32, %s3501_s26 }
 0x162   : > { %v1027_v25 = vpop.permute.xlu0 %1026 }
 0x163   : > { %v1156_v21 = vsel %vm1149_vm3, %v1133_v20, %v1027_v25  ;;  %v1029_v4 = vpop.permute.xlu1 %1028 }
 0x164   : > { %v1157_v50 = vsel %vm1149_vm3, %v1134_v31, %v1029_v4  ;;  %3028 = vmatprep.mubr.msk.f32.mxu0 %vm1186_vm4, %v1156_v21 }
 0x165   : > { %3029 = vmatmul.mubr.msk.f32.gmra.mrb[6].mxu0 %vm1186_vm4, %v1157_v50 }
 0x166   : > { %v830_v15 = vpop.permute.xlu0 %829 }
 0x167   : > { %v832_v29 = vpop.permute.xlu1 %831  ;;  %v1089_v46 = vsel %vm1080_vm0, %v4043_v9, %v830_v15 }
 0x168   : > { %v1090_v22 = vsel %vm1080_vm0, %v4071_v16, %v832_v29 }
 0x16a   : > { %v897_v11 = vpop.permute.xlu0 %896 }
 0x16b   : > { %v899_v53 = vpop.permute.xlu1 %898  ;;  %v1112_v30 = vsel %vm1103_vm1, %v1089_v46, %v897_v11 }
 0x16c   : > { %v1113_v37 = vsel %vm1103_vm1, %v1090_v22, %v899_v53 }
 0x16e   : > { %v964_v55 = vpop.permute.xlu0 %963 }
 0x16f   : > { %v966_v49 = vpop.permute.xlu1 %965  ;;  %v1135_v62 = vsel %vm1126_vm2, %v1112_v30, %v964_v55 }
 0x170   : > { %v1136_v38 = vsel %vm1126_vm2, %v1113_v37, %v966_v49 }
 0x172   : > { %v1031_v1 = vpop.permute.xlu0 %1030 }
 0x173   : > { %v1158_v14 = vsel %vm1149_vm3, %v1135_v62, %v1031_v1  ;;  %v1033_v48 = vpop.permute.xlu1 %1032 }
 0x174   : > { %v1159_v58 = vsel %vm1149_vm3, %v1136_v38, %v1033_v48  ;;  %3031 = vmatprep.mubr.msk.f32.mxu0 %vm1186_vm4, %v1158_v14 }
 0x175   : > { %3032 = vmatmul.mubr.msk.f32.gmra.mrb[8].mxu0 %vm1186_vm4, %v1159_v58 }
 0x176   : > { %v834_v9 = vpop.permute.xlu0 %833 }
 0x177   : > { %v836_v16 = vpop.permute.xlu1 %835  ;;  %v1091_v5 = vsel %vm1080_vm0, %v4146_v2, %v834_v9 }
 0x178   : > { %v1092_v40 = vsel %vm1080_vm0, %v4172_v51, %v836_v16 }
 0x17a   : > { %v901_v24 = vpop.permute.xlu0 %900 }
 0x17b   : > { %v903_v61 = vpop.permute.xlu1 %902  ;;  %v1114_v56 = vsel %vm1103_vm1, %v1091_v5, %v901_v24 }
 0x17c   : > { %v1115_v8 = vsel %vm1103_vm1, %v1092_v40, %v903_v61 }
 0x17e   : > { %v968_v36 = vpop.permute.xlu0 %967 }
 0x17f   : > { %v970_v42 = vpop.permute.xlu1 %969  ;;  %v1137_v47 = vsel %vm1126_vm2, %v1114_v56, %v968_v36 }
 0x180   : > { %v1138_v45 = vsel %vm1126_vm2, %v1115_v8, %v970_v42 }
 0x182   : > { %v1035_v3 = vpop.permute.xlu0 %1034 }
 0x183   : > { %v1160_v34 = vsel %vm1149_vm3, %v1137_v47, %v1035_v3  ;;  %v1037_v57 = vpop.permute.xlu1 %1036 }
 0x184   : > { %v1161_v60 = vsel %vm1149_vm3, %v1138_v45, %v1037_v57  ;;  %3034 = vmatprep.mubr.msk.f32.mxu0 %vm1186_vm4, %v1160_v34 }
 0x185   : > { %3035 = vmatmul.mubr.msk.f32.gmra.mrb[10].mxu0 %vm1186_vm4, %v1161_v60 }
 0x186   : > { %v838_v2 = vpop.permute.xlu0 %837 }
 0x187   : > { %v840_v51 = vpop.permute.xlu1 %839  ;;  %v1093_v41 = vsel %vm1080_vm0, %v4203_v13, %v838_v2 }
 0x188   : > { %v1094_v54 = vsel %vm1080_vm0, %v4212_v59, %v840_v51 }
 0x18a   : > { %v905_v52 = vpop.permute.xlu0 %904 }
 0x18b   : > { %v907_v39 = vpop.permute.xlu1 %906  ;;  %v1116_v19 = vsel %vm1103_vm1, %v1093_v41, %v905_v52 }
 0x18c   : > { %v1117_v18 = vsel %vm1103_vm1, %v1094_v54, %v907_v39 }
 0x18e   : > { %v972_v33 = vpop.permute.xlu0 %971 }
 0x18f   : > { %v974_v23 = vpop.permute.xlu1 %973  ;;  %v1139_v44 = vsel %vm1126_vm2, %v1116_v19, %v972_v33 }
 0x190   : > { %v1140_v27 = vsel %vm1126_vm2, %v1117_v18, %v974_v23 }
 0x192   : > { %v1039_v32 = vpop.permute.xlu0 %1038 }
 0x193   : > { %v1162_v28 = vsel %vm1149_vm3, %v1139_v44, %v1039_v32  ;;  %v1041_v17 = vpop.permute.xlu1 %1040 }
 0x194   : > { %v1163_v12 = vsel %vm1149_vm3, %v1140_v27, %v1041_v17  ;;  %3037 = vmatprep.mubr.msk.f32.mxu0 %vm1186_vm4, %v1162_v28 }
 0x195   : > { %3038 = vmatmul.mubr.msk.f32.gmra.mrb[12].mxu0 %vm1186_vm4, %v1163_v12 }
 0x196   : > { %v842_v13 = vpop.permute.xlu0 %841 }
 0x197   : > { %v844_v59 = vpop.permute.xlu1 %843  ;;  %v1095_v4 = vsel %vm1080_vm0, %v4235_v63, %v842_v13 }
 0x198   : > { %v1096_v50 = vsel %vm1080_vm0, %v4244_v0, %v844_v59 }
 0x19a   : > { %v909_v20 = vpop.permute.xlu0 %908 }
 0x19b   : > { %v911_v25 = vpop.permute.xlu1 %910  ;;  %v1118_v15 = vsel %vm1103_vm1, %v1095_v4, %v909_v20  ;;  %v3502_v20 = vmov 0.0|0.0  }
 0x19c   : > { %v1119_v29 = vsel %vm1103_vm1, %v1096_v50, %v911_v25  ;;  %3143 = vmatprep.subr.bf16.mxu1 %v3502_v20  ;;  %3173 = vmatprep.subr.bf16.mxu0 %v3502_v20  ;;  %v4551_v50 = vld [vmem:[%s5461_s2 + $0x1] ss:$0 sm:$0xff] }
 0x19e   : > { %v976_v31 = vpop.permute.xlu0 %975 }
 0x19f   : > { %v978_v21 = vpop.permute.xlu1 %977  ;;  %v1141_v11 = vsel %vm1126_vm2, %v1118_v15, %v976_v31  ;;  %v1698_v31 = vld [vmem:[%s5460_s1 + $0x68] sm:$0xff] }
 0x1a0   : > { %v1142_v55 = vsel %vm1126_vm2, %v1119_v29, %v978_v21  ;;  %v1699_v21 = vld [vmem:[%s5460_s1 + $0x70] sm:$0xff] }
 0x1a1   : > { %v3147_v4 = vpack.c.bf16 %v1699_v21, %v1698_v31 }
 0x1a2   : > { %v1043_v53 = vpop.permute.xlu0 %1042 }
 0x1a3   : > { %v1164_v49 = vsel %vm1149_vm3, %v1141_v11, %v1043_v53  ;;  %v1045_v46 = vpop.permute.xlu1 %1044 }
 0x1a4   : > { %v1165_v22 = vsel %vm1149_vm3, %v1142_v55, %v1045_v46  ;;  %3040 = vmatprep.mubr.msk.f32.mxu0 %vm1186_vm4, %v1164_v49  ;;  %v1700_v49 = vld [vmem:[%s5460_s1 + $0x78] sm:$0xff]  ;;  %v1701_v46 = vld [vmem:[%s5460_s1 + $0x80] sm:$0xff] }
 0x1a5   : > { %3041 = vmatmul.mubr.msk.f32.gmra.mrb[14].mxu0 %vm1186_vm4, %v1165_v22  ;;  %v1702_v22 = vld [vmem:[%s5460_s1 + $0x88] sm:$0xff] }
 0x1a6   : > { %v846_v63 = vpop.permute.xlu0 %845 }
 0x1a7   : > { %v848_v0 = vpop.permute.xlu1 %847  ;;  %v1097_v38 = vsel %vm1080_vm0, %v4272_v7, %v846_v63 }
 0x1a8   : > { %v1098_v14 = vsel %vm1080_vm0, %v4285_v6, %v848_v0  ;;  %v3150_v0 = vpack.c.bf16 %v1701_v46, %v1700_v49 }
 0x1aa   : > { %v913_v30 = vpop.permute.xlu0 %912 }
 0x1ab   : > { %v915_v37 = vpop.permute.xlu1 %914  ;;  %v1120_v48 = vsel %vm1103_vm1, %v1097_v38, %v913_v30  ;;  %v1703_v30 = vld [vmem:[%s5460_s1 + $0x90] sm:$0xff]  ;;  %v1705_v38 = vld [vmem:[%s5460_s1 + $0xa0] sm:$0xff] }
 0x1ac   : > { %v1121_v58 = vsel %vm1103_vm1, %v1098_v14, %v915_v37 }
 0x1ae   : > { %v980_v62 = vpop.permute.xlu0 %979 }
 0x1af   : > { %v982_v1 = vpop.permute.xlu1 %981  ;;  %v1143_v9 = vsel %vm1126_vm2, %v1120_v48, %v980_v62  ;;  %v3153_v62 = vpack.c.bf16 %v1703_v30, %v1702_v22  ;;  %v1706_v48 = vld [vmem:[%s5460_s1 + $0xa8] sm:$0xff] }
 0x1b0   : > { %v1144_v24 = vsel %vm1126_vm2, %v1121_v58, %v982_v1  ;;  %v1704_v1 = vld [vmem:[%s5460_s1 + $0x98] sm:$0xff]  ;;  %v1707_v58 = vld [vmem:[%s5460_s1 + $0xb0] sm:$0xff] }
 0x1b1   : > { %v3156_v14 = vpack.c.bf16 %v1705_v38, %v1704_v1 }
 0x1b2   : > { %v1047_v16 = vpop.permute.xlu0 %1046 }
 0x1b3   : > { %v1166_v61 = vsel %vm1149_vm3, %v1143_v9, %v1047_v16  ;;  %v1049_v36 = vpop.permute.xlu1 %1048  ;;  %v3159_v9 = vpack.c.bf16 %v1707_v58, %v1706_v48 }
 0x1b4   : > { %v1167_v42 = vsel %vm1149_vm3, %v1144_v24, %v1049_v36  ;;  %3043 = vmatprep.mubr.msk.f32.mxu0 %vm1186_vm4, %v1166_v61 }
 0x1b5   : > { %3044 = vmatmul.mubr.msk.f32.gmra.mrb[16].mxu0 %vm1186_vm4, %v1167_v42 }
 0x1b6   : > { %v850_v7 = vpop.permute.xlu0 %849 }
 0x1b7   : > { %v852_v6 = vpop.permute.xlu1 %851  ;;  %v1099_v47 = vsel %vm1080_vm0, %v4311_v35, %v850_v7  ;;  %v1708_v7 = vld [vmem:[%s5460_s1 + $0xb8] sm:$0xff] }
 0x1b8   : > { %v1100_v3 = vsel %vm1080_vm0, %v4327_v43, %v852_v6  ;;  %v1709_v6 = vld [vmem:[%s5460_s1 + $0xc0] sm:$0xff] }
 0x1ba   : > { %v917_v5 = vpop.permute.xlu0 %916 }
 0x1bb   : > { %v919_v40 = vpop.permute.xlu1 %918  ;;  %v1122_v45 = vsel %vm1103_vm1, %v1099_v47, %v917_v5  ;;  %v1710_v5 = vld [vmem:[%s5460_s1 + $0xc8] sm:$0xff] }
 0x1bc   : > { %v1123_v34 = vsel %vm1103_vm1, %v1100_v3, %v919_v40 }
 0x1be   : > { %v984_v56 = vpop.permute.xlu0 %983 }
 0x1bf   : > { %v986_v8 = vpop.permute.xlu1 %985  ;;  %v1145_v57 = vsel %vm1126_vm2, %v1122_v45, %v984_v56  ;;  %v3162_v56 = vpack.c.bf16 %v1709_v6, %v1708_v7 }
 0x1c0   : > { %v1146_v2 = vsel %vm1126_vm2, %v1123_v34, %v986_v8  ;;  %v1711_v8 = vld [vmem:[%s5460_s1 + $0xd0] sm:$0xff]  ;;  %v1712_v34 = vld [vmem:[%s5460_s1 + $0xd8] sm:$0xff] }
 0x1c1   : > { %v3165_v45 = vpack.c.bf16 %v1711_v8, %v1710_v5 }
 0x1c2   : > { %v1051_v60 = vpop.permute.xlu0 %1050 }
 0x1c3   : > { %v1168_v51 = vsel %vm1149_vm3, %v1145_v57, %v1051_v60  ;;  %v1053_v52 = vpop.permute.xlu1 %1052  ;;  %v1713_v57 = vld [vmem:[%s5460_s1 + $0xe0] sm:$0xff] }
 0x1c4   : > { %v1169_v39 = vsel %vm1149_vm3, %v1146_v2, %v1053_v52  ;;  %3046 = vmatprep.mubr.msk.f32.mxu0 %vm1186_vm4, %v1168_v51  ;;  %v3168_v2 = vpack.c.bf16 %v1713_v57, %v1712_v34  ;;  %v1714_v51 = vld [vmem:[%s5460_s1 + $0xe8] sm:$0xff]  ;;  %v1715_v52 = vld [vmem:[%s5460_s1 + $0xf0] sm:$0xff] }
 0x1c5   : > { %3047 = vmatmul.mubr.msk.f32.gmra.mrb[18].mxu0 %vm1186_vm4, %v1169_v39 }
 0x1c6   : > { %v854_v35 = vpop.permute.xlu0 %853 }
 0x1c7   : > { %v856_v43 = vpop.permute.xlu1 %855  ;;  %v1101_v19 = vsel %vm1080_vm0, %v4353_v10, %v854_v35  ;;  %v1696_v10 = vld [vmem:[%s5460_s1 + $0x58] sm:$0xff] }
 0x1c8   : > { %v1102_v18 = vsel %vm1080_vm0, %v4366_v26, %v856_v43  ;;  %v1697_v26 = vld [vmem:[%s5460_s1 + $0x60] sm:$0xff] }
 0x1c9   : > { %v3144_v25 = vpack.c.bf16 %v1697_v26, %v1696_v10 }
 0x1ca   : > { %v921_v33 = vpop.permute.xlu0 %920 }
 0x1cb   : > { %v923_v23 = vpop.permute.xlu1 %922  ;;  %v1124_v44 = vsel %vm1103_vm1, %v1101_v19, %v921_v33  ;;  %3145 = vmatpush1.bf16.msra.mxu1 %v3144_v25  ;;  %v3171_v33 = vpack.c.bf16 %v1715_v52, %v1714_v51 }
 0x1cc   : > { %v1125_v32 = vsel %vm1103_vm1, %v1102_v18, %v923_v23  ;;  %3146 = vmatprep.subr.bf16.mxu1 %v3502_v20 }
 0x1ce   : > { %v988_v41 = vpop.permute.xlu0 %987 }
 0x1cf   : > { %v990_v54 = vpop.permute.xlu1 %989  ;;  %v1147_v27 = vsel %vm1126_vm2, %v1124_v44, %v988_v41  ;;  %3148 = vmatpush1.bf16.msra.mxu1 %v3147_v4 }
 0x1d0   : > { %v1148_v17 = vsel %vm1126_vm2, %v1125_v32, %v990_v54  ;;  %3149 = vmatprep.subr.bf16.mxu1 %v3502_v20 }
 0x1d2   : > { %v1055_v28 = vpop.permute.xlu0 %1054 }
 0x1d3   : > { %v1170_v12 = vsel %vm1149_vm3, %v1147_v27, %v1055_v28  ;;  %v1057_v13 = vpop.permute.xlu1 %1056  ;;  %3151 = vmatpush1.bf16.msra.mxu1 %v3150_v0 }
 0x1d4   : > { %v1171_v59 = vsel %vm1149_vm3, %v1148_v17, %v1057_v13  ;;  %3049 = vmatprep.mubr.msk.f32.mxu0 %vm1186_vm4, %v1170_v12  ;;  %3152 = vmatprep.subr.bf16.mxu1 %v3502_v20 }
 0x1d5   : > { %3050 = vmatmul.mubr.msk.f32.gmra.mrb[20].mxu0 %vm1186_vm4, %v1171_v59 }
 0x1d7   : > { %3154 = vmatpush1.bf16.msra.mxu1 %v3153_v62 }
 0x1d8   : > { %3155 = vmatprep.subr.bf16.mxu1 %v3502_v20 }
 0x1db   : > { %3157 = vmatpush1.bf16.msra.mxu1 %v3156_v14 }
 0x1dc   : > { %3158 = vmatprep.subr.bf16.mxu1 %v3502_v20 }
 0x1df   : > { %3160 = vmatpush1.bf16.msra.mxu1 %v3159_v9 }
 0x1e0   : > { %3161 = vmatprep.subr.bf16.mxu1 %v3502_v20 }
 0x1e3   : > { %3163 = vmatpush1.bf16.msra.mxu1 %v3162_v56 }
 0x1e4   : > { %3164 = vmatprep.subr.bf16.mxu1 %v3502_v20 }
 0x1e7   : > { %3166 = vmatpush1.bf16.msra.mxu1 %v3165_v45 }
 0x1e8   : > { %3167 = vmatprep.subr.bf16.mxu1 %v3502_v20 }
 0x1eb   : > { %3169 = vmatpush1.bf16.msra.mxu1 %v3168_v2 }
 0x1ec   : > { %3170 = vmatprep.subr.bf16.mxu1 %v3502_v20 }
 0x1ef   : > { %3172 = vmatpush1.bf16.msra.mxu1 %v3171_v33 }
 0x1f0   : > { %3197 = vmatprep.subr.bf16.mxu1 %v3502_v20 }
 0x20a   : > { %v3021_v15 = vpop.f32.mrb[0].mxu0 }
 0x20b   : > { %v1325_v29 = vadd.f32 %v3021_v15, %v4551_v50  ;;  %v1319_v11 = vpop.f32.mrb[1].mxu0 }
 0x20c   : > { %v1320_v53 = vadd.f32 %v4551_v50, %v1319_v11 }
 0x20d   : > { %v1429_v55 = vmax.f32 %v1325_v29, 0.0 }
 0x20e   : > { %v1428_v63 = vmax.f32 %v1320_v53, 0.0 }
 0x210   : > { %v4567_v37 = vmax.f32 %v1428_v63, %v1429_v55 }
 0x21b   : > { %v3024_v16 = vpop.f32.mrb[2].mxu0 }
 0x21c   : > { %v1335_v24 = vadd.f32 %v3024_v16, %v4551_v50  ;;  %v1329_v61 = vpop.f32.mrb[3].mxu0 }
 0x21d   : > { %v1330_v36 = vadd.f32 %v4551_v50, %v1329_v61 }
 0x21e   : > { %v1431_v42 = vmax.f32 %v1335_v24, 0.0 }
 0x21f   : > { %v1430_v40 = vmax.f32 %v1330_v36, 0.0 }
 0x221   : > { %v4599_v47 = vmax.f32 %v1429_v55, %v1430_v40  ;;  %v4601_v3 = vmax.f32 %v1430_v40, %v1431_v42 }
 0x223   : > { %v3288_v60 = vpack.i.bf16 %v4601_v3, %v4599_v47 }
 0x225   : > { %3289 = vrot.lane.b32.xlu0 %v3288_v60, %s3499_s24 }
 0x228   : > { %v3027_v39 = vpop.f32.mrb[4].mxu0 }
 0x229   : > { %v1345_v35 = vadd.f32 %v3027_v39, %v4551_v50  ;;  %v1339_v43 = vpop.f32.mrb[5].mxu0 }
 0x22a   : > { %v1340_v23 = vadd.f32 %v4551_v50, %v1339_v43 }
 0x22b   : > { %v1433_v41 = vmax.f32 %v1345_v35, 0.0 }
 0x22c   : > { %v1432_v54 = vmax.f32 %v1340_v23, 0.0 }
 0x22e   : > { %v4623_v19 = vmax.f32 %v1431_v42, %v1432_v54  ;;  %v4625_v18 = vmax.f32 %v1432_v54, %v1433_v41 }
 0x230   : > { %2896 = vmatprep.mubr.msk.f32.mxu1 %vm1103_vm1, %v4625_v18  ;;  %v3298_v44 = vpack.i.bf16 %v4625_v18, %v4623_v19  ;;  %v3293_v32 = vpack.i.bf16 %v4623_v19, %v4601_v3 }
 0x232   : > { %3299 = vrot.lane.b32.xlu0 %v3298_v44, %s3503_s20  ;;  %3294 = vrot.lane.b32.xlu1 %v3293_v32, %s3501_s26 }
 0x236   : > { %3304 = vrot.lane.b32.xlu1 %v3298_v44, %s3499_s24 }
 0x238   : > { %v3030_v27 = vpop.f32.mrb[6].mxu0 }
 0x239   : > { %v1355_v28 = vadd.f32 %v3030_v27, %v4551_v50  ;;  %v1349_v17 = vpop.f32.mrb[7].mxu0 }
 0x23a   : > { %v1350_v12 = vadd.f32 %v4551_v50, %v1349_v17 }
 0x23b   : > { %v1435_v13 = vmax.f32 %v1355_v28, 0.0 }
 0x23c   : > { %v1434_v59 = vmax.f32 %v1350_v12, 0.0 }
 0x23e   : > { %v4639_v10 = vmax.f32 %v1433_v41, %v1434_v59  ;;  %v4641_v26 = vmax.f32 %v1434_v59, %v1435_v13 }
 0x240   : > { %v3313_v25 = vpack.i.bf16 %v4641_v26, %v4639_v10  ;;  %v3308_v31 = vpack.i.bf16 %v4639_v10, %v4625_v18 }
 0x242   : > { %3314 = vrot.lane.b32.xlu1 %v3313_v25, %s3503_s20  ;;  %3309 = vrot.lane.b32.xlu0 %v3308_v31, %s3501_s26 }
 0x246   : > { %3319 = vrot.lane.b32.xlu0 %v3313_v25, %s3499_s24 }
 0x248   : > { %v3033_v21 = vpop.f32.mrb[8].mxu0 }
 0x249   : > { %v1365_v4 = vadd.f32 %v3033_v21, %v4551_v50  ;;  %v1359_v15 = vpop.f32.mrb[9].mxu0 }
 0x24a   : > { %v1360_v29 = vadd.f32 %v4551_v50, %v1359_v15 }
 0x24b   : > { %v1437_v11 = vmax.f32 %v1365_v4, 0.0 }
 0x24c   : > { %v1436_v53 = vmax.f32 %v1360_v29, 0.0 }
 0x24e   : > { %v4652_v55 = vmax.f32 %v1435_v13, %v1436_v53  ;;  %v4654_v49 = vmax.f32 %v1436_v53, %v1437_v11 }
 0x250   : > { %v3328_v46 = vpack.i.bf16 %v4654_v49, %v4652_v55  ;;  %v3323_v22 = vpack.i.bf16 %v4652_v55, %v4641_v26 }
 0x252   : > { %3329 = vrot.lane.b32.xlu0 %v3328_v46, %s3503_s20  ;;  %3324 = vrot.lane.b32.xlu1 %v3323_v22, %s3501_s26 }
 0x256   : > { %3334 = vrot.lane.b32.xlu1 %v3328_v46, %s3499_s24 }
 0x258   : > { %v3036_v63 = vpop.f32.mrb[10].mxu0 }
 0x259   : > { %v1375_v0 = vadd.f32 %v3036_v63, %v4551_v50  ;;  %v1369_v30 = vpop.f32.mrb[11].mxu0 }
 0x25a   : > { %v1370_v62 = vadd.f32 %v4551_v50, %v1369_v30 }
 0x25b   : > { %v1439_v1 = vmax.f32 %v1375_v0, 0.0 }
 0x25c   : > { %v1438_v38 = vmax.f32 %v1370_v62, 0.0 }
 0x25e   : > { %v4665_v14 = vmax.f32 %v1437_v11, %v1438_v38  ;;  %v4667_v48 = vmax.f32 %v1438_v38, %v1439_v1 }
 0x260   : > { %v3343_v58 = vpack.i.bf16 %v4667_v48, %v4665_v14  ;;  %v3338_v9 = vpack.i.bf16 %v4665_v14, %v4654_v49 }
 0x262   : > { %3344 = vrot.lane.b32.xlu1 %v3343_v58, %s3503_s20  ;;  %3339 = vrot.lane.b32.xlu0 %v3338_v9, %s3501_s26 }
 0x266   : > { %3349 = vrot.lane.b32.xlu0 %v3343_v58, %s3499_s24 }
 0x268   : > { %v3039_v16 = vpop.f32.mrb[12].mxu0 }
 0x269   : > { %v1385_v24 = vadd.f32 %v3039_v16, %v4551_v50  ;;  %v1379_v61 = vpop.f32.mrb[13].mxu0 }
 0x26a   : > { %v1380_v36 = vadd.f32 %v4551_v50, %v1379_v61 }
 0x26b   : > { %v1441_v42 = vmax.f32 %v1385_v24, 0.0 }
 0x26c   : > { %v1440_v7 = vmax.f32 %v1380_v36, 0.0 }
 0x26e   : > { %v4678_v6 = vmax.f32 %v1439_v1, %v1440_v7  ;;  %v4680_v5 = vmax.f32 %v1440_v7, %v1441_v42 }
 0x270   : > { %v3358_v40 = vpack.i.bf16 %v4680_v5, %v4678_v6  ;;  %v3353_v56 = vpack.i.bf16 %v4678_v6, %v4667_v48 }
 0x272   : > { %3359 = vrot.lane.b32.xlu0 %v3358_v40, %s3503_s20  ;;  %3354 = vrot.lane.b32.xlu1 %v3353_v56, %s3501_s26 }
 0x276   : > { %3364 = vrot.lane.b32.xlu1 %v3358_v40, %s3499_s24 }
 0x278   : > { %v3042_v8 = vpop.f32.mrb[14].mxu0 }
 0x279   : > { %v1395_v45 = vadd.f32 %v3042_v8, %v4551_v50  ;;  %v1389_v34 = vpop.f32.mrb[15].mxu0 }
 0x27a   : > { %v1390_v57 = vadd.f32 %v4551_v50, %v1389_v34 }
 0x27b   : > { %v1443_v60 = vmax.f32 %v1395_v45, 0.0 }
 0x27c   : > { %v1442_v2 = vmax.f32 %v1390_v57, 0.0 }
 0x27e   : > { %v4691_v51 = vmax.f32 %v1441_v42, %v1442_v2  ;;  %v4693_v52 = vmax.f32 %v1442_v2, %v1443_v60 }
 0x280   : > { %v3373_v39 = vpack.i.bf16 %v4693_v52, %v4691_v51  ;;  %v3368_v35 = vpack.i.bf16 %v4691_v51, %v4680_v5 }
 0x282   : > { %3374 = vrot.lane.b32.xlu1 %v3373_v39, %s3503_s20  ;;  %3369 = vrot.lane.b32.xlu0 %v3368_v35, %s3501_s26 }
 0x286   : > { %3379 = vrot.lane.b32.xlu0 %v3373_v39, %s3499_s24 }
 0x288   : > { %v3045_v43 = vpop.f32.mrb[16].mxu0 }
 0x289   : > { %v1405_v33 = vadd.f32 %v3045_v43, %v4551_v50  ;;  %v1399_v23 = vpop.f32.mrb[17].mxu0 }
 0x28a   : > { %v1400_v41 = vadd.f32 %v4551_v50, %v1399_v23 }
 0x28b   : > { %v1445_v54 = vmax.f32 %v1405_v33, 0.0 }
 0x28c   : > { %v1444_v44 = vmax.f32 %v1400_v41, 0.0 }
 0x28e   : > { %v4704_v32 = vmax.f32 %v1443_v60, %v1444_v44  ;;  %v4706_v27 = vmax.f32 %v1444_v44, %v1445_v54 }
 0x290   : > { %v3388_v28 = vpack.i.bf16 %v4706_v27, %v4704_v32  ;;  %v3383_v17 = vpack.i.bf16 %v4704_v32, %v4693_v52 }
 0x292   : > { %3389 = vrot.lane.b32.xlu0 %v3388_v28, %s3503_s20  ;;  %3384 = vrot.lane.b32.xlu1 %v3383_v17, %s3501_s26 }
 0x296   : > { %3394 = vrot.lane.b32.xlu1 %v3388_v28, %s3499_s24 }
 0x297   : > { %v3290_v29 = vpop.permute.xlu0 %3289 }
 0x298   : > { %v3048_v12 = vpop.f32.mrb[18].mxu0  ;;  %v3291_v53 = vunpack.i.l.bf16 %v3290_v29  ;;  %v3292_v46 = vunpack.i.h.bf16 %v3290_v29 }
 0x299   : > { %v1415_v13 = vadd.f32 %v3048_v12, %v4551_v50  ;;  %v1409_v59 = vpop.f32.mrb[19].mxu0 }
 0x29a   : > { %v1410_v25 = vadd.f32 %v4551_v50, %v1409_v59  ;;  %v1644_v1 = vsel %vm1103_vm1, %v4567_v37, %v3291_v53  ;;  %v1645_v24 = vsel %vm1103_vm1, %v4599_v47, %v3292_v46 }
 0x29b   : > { %v1447_v31 = vmax.f32 %v1415_v13, 0.0 }
 0x29c   : > { %v1446_v21 = vmax.f32 %v1410_v25, 0.0 }
 0x29e   : > { %v4717_v4 = vmax.f32 %v1445_v54, %v1446_v21  ;;  %v4719_v15 = vmax.f32 %v1446_v21, %v1447_v31 }
 0x2a0   : > { %1621 = vrot.lane.b32.xlu1 %v4717_v4, %s3503_s20  ;;  %v3398_v11 = vpack.i.bf16 %v4717_v4, %v4706_v27 }
 0x2a2   : > { %3399 = vrot.lane.b32.xlu0 %v3398_v11, %s3501_s26 }
 0x2a4   : > { %v3300_v22 = vpop.permute.xlu0 %3299  ;;  %1521 = vrot.lane.b32.xlu1 %v4717_v4, %s3499_s24  ;;  %v3295_v63 = vpop.permute.xlu1 %3294 }
 0x2a5   : > { %v3301_v0 = vunpack.i.l.bf16 %v3300_v22  ;;  %v3297_v30 = vunpack.i.h.bf16 %v3295_v63  ;;  %v3296_v62 = vunpack.i.l.bf16 %v3295_v63  ;;  %v3302_v58 = vunpack.i.h.bf16 %v3300_v22 }
 0x2a6   : > { %1623 = vrot.lane.b32.xlu0 %v4719_v15, %s3503_s20 }
 0x2a7   : > { %v1661_v38 = vsel %vm1149_vm3, %v1644_v1, %v3296_v62  ;;  %v1662_v42 = vsel %vm1149_vm3, %v1645_v24, %v3297_v30 }
 0x2a8   : > { %v3051_v9 = vpop.f32.mrb[20].mxu0  ;;  %v1679_v16 = vsel %vm1678_vm5, %v1661_v38, %v3301_v0  ;;  %v1680_v56 = vsel %vm1678_vm5, %v1662_v42, %v3302_v58  ;;  %v3305_v45 = vpop.permute.xlu1 %3304 }
 0x2a9   : > { %v1425_v61 = vadd.f32 %v3051_v9, %v4551_v50  ;;  %v1419_v36 = vpop.f32.mrb[21].mxu0  ;;  %1820 = vmatmul.mubr.f32.vlgmr.msra.gmra.mrb[0].mxu1 %v1679_v16  ;;  %v3307_v34 = vunpack.i.h.bf16 %v3305_v45 }
 0x2aa   : > { %v1420_v7 = vadd.f32 %v4551_v50, %v1419_v36  ;;  %1573 = vrot.lane.b32.xlu0 %v4719_v15, %s3501_s26  ;;  %2897 = vmatprep.mubr.msk.f32.mxu1 %vm1103_vm1, %v4639_v10  ;;  %v3306_v50 = vunpack.i.l.bf16 %v3305_v45 }
 0x2ab   : > { %v1449_v37 = vmax.f32 %v1425_v61, 0.0  ;;  %v1647_v54 = vsel %vm1103_vm1, %v4623_v19, %v3307_v34 }
 0x2ac   : > { %v1448_v40 = vmax.f32 %v1420_v7, 0.0  ;;  %v1646_v43 = vsel %vm1103_vm1, %v4601_v3, %v3306_v50 }
 0x2ad   : > { %1825 = vmatmul.mubr.f32.gmra.mrb[2].mxu1 %v1680_v56 }
 0x2ae   : > { %v4744_v47 = vmax.f32 %v1447_v31, %v1448_v40  ;;  %v4746_v8 = vmax.f32 %v1448_v40, %v1449_v37  ;;  %2898 = vmatprep.mubr.msk.f32.mxu1 %vm1103_vm1, %v4641_v26 }
 0x2b0   : > { %1625 = vrot.lane.b32.xlu1 %v4744_v47, %s3503_s20 }
 0x2b4   : > { %v3310_v57 = vpop.permute.xlu0 %3309  ;;  %v3315_v60 = vpop.permute.xlu1 %3314 }
 0x2b5   : > { %v3312_v2 = vunpack.i.h.bf16 %v3310_v57  ;;  %v3311_v39 = vunpack.i.l.bf16 %v3310_v57  ;;  %v3316_v35 = vunpack.i.l.bf16 %v3315_v60  ;;  %v3317_v23 = vunpack.i.h.bf16 %v3315_v60 }
 0x2b7   : > { %v1663_v33 = vsel %vm1149_vm3, %v1646_v43, %v3311_v39  ;;  %v1664_v44 = vsel %vm1149_vm3, %v1647_v54, %v3312_v2 }
 0x2b8   : > { %v1681_v41 = vsel %vm1678_vm5, %v1663_v33, %v3316_v35  ;;  %v1682_v28 = vsel %vm1678_vm5, %v1664_v44, %v3317_v23  ;;  %v3320_v3 = vpop.permute.xlu0 %3319 }
 0x2b9   : > { %1830 = vmatmul.mubr.f32.gmra.mrb[4].mxu1 %v1681_v41  ;;  %v3321_v17 = vunpack.i.l.bf16 %v3320_v3  ;;  %v3322_v12 = vunpack.i.h.bf16 %v3320_v3 }
 0x2ba   : > { %2899 = vmatprep.mubr.msk.f32.mxu1 %vm1103_vm1, %v4652_v55 }
 0x2bb   : > { %v1648_v21 = vsel %vm1103_vm1, %v4625_v18, %v3321_v17  ;;  %v1649_v46 = vsel %vm1103_vm1, %v4639_v10, %v3322_v12 }
 0x2bd   : > { %1835 = vmatmul.mubr.f32.gmra.mrb[6].mxu1 %v1682_v28 }
 0x2be   : > { %2900 = vmatprep.mubr.msk.f32.mxu1 %vm1103_vm1, %v4654_v49 }
 0x2c4   : > { %v3330_v13 = vpop.permute.xlu0 %3329  ;;  %v3325_v59 = vpop.permute.xlu1 %3324 }
 0x2c5   : > { %v3331_v25 = vunpack.i.l.bf16 %v3330_v13  ;;  %v3327_v31 = vunpack.i.h.bf16 %v3325_v59  ;;  %v3326_v19 = vunpack.i.l.bf16 %v3325_v59  ;;  %v3332_v11 = vunpack.i.h.bf16 %v3330_v13 }
 0x2c7   : > { %v1665_v29 = vsel %vm1149_vm3, %v1648_v21, %v3326_v19  ;;  %v1666_v22 = vsel %vm1149_vm3, %v1649_v46, %v3327_v31 }
 0x2c8   : > { %v1683_v53 = vsel %vm1678_vm5, %v1665_v29, %v3331_v25  ;;  %v1684_v63 = vsel %vm1678_vm5, %v1666_v22, %v3332_v11  ;;  %v3335_v18 = vpop.permute.xlu1 %3334 }
 0x2c9   : > { %1840 = vmatmul.mubr.f32.gmra.mrb[8].mxu1 %v1683_v53  ;;  %v3336_v0 = vunpack.i.l.bf16 %v3335_v18  ;;  %v3337_v30 = vunpack.i.h.bf16 %v3335_v18 }
 0x2ca   : > { %2901 = vmatprep.mubr.msk.f32.mxu1 %vm1103_vm1, %v4665_v14 }
 0x2cb   : > { %v1650_v9 = vsel %vm1103_vm1, %v4641_v26, %v3336_v0  ;;  %v1651_v36 = vsel %vm1103_vm1, %v4652_v55, %v3337_v30 }
 0x2cd   : > { %1845 = vmatmul.mubr.f32.gmra.mrb[10].mxu1 %v1684_v63 }
 0x2ce   : > { %2902 = vmatprep.mubr.msk.f32.mxu1 %vm1103_vm1, %v4667_v48 }
 0x2d4   : > { %v3340_v62 = vpop.permute.xlu0 %3339  ;;  %v3345_v1 = vpop.permute.xlu1 %3344 }
 0x2d5   : > { %v3342_v38 = vunpack.i.h.bf16 %v3340_v62  ;;  %v3341_v58 = vunpack.i.l.bf16 %v3340_v62  ;;  %v3346_v10 = vunpack.i.l.bf16 %v3345_v1  ;;  %v3347_v24 = vunpack.i.h.bf16 %v3345_v1 }
 0x2d7   : > { %v1667_v16 = vsel %vm1149_vm3, %v1650_v9, %v3341_v58  ;;  %v1668_v42 = vsel %vm1149_vm3, %v1651_v36, %v3342_v38 }
 0x2d8   : > { %v1685_v61 = vsel %vm1678_vm5, %v1667_v16, %v3346_v10  ;;  %v1686_v7 = vsel %vm1678_vm5, %v1668_v42, %v3347_v24  ;;  %v3350_v26 = vpop.permute.xlu0 %3349 }
 0x2d9   : > { %1850 = vmatmul.mubr.f32.gmra.mrb[12].mxu1 %v1685_v61  ;;  %v3351_v37 = vunpack.i.l.bf16 %v3350_v26  ;;  %v3352_v40 = vunpack.i.h.bf16 %v3350_v26 }
 0x2da   : > { %2903 = vmatprep.mubr.msk.f32.mxu1 %vm1103_vm1, %v4678_v6 }
 0x2db   : > { %v1652_v57 = vsel %vm1103_vm1, %v4654_v49, %v3351_v37  ;;  %v1653_v35 = vsel %vm1103_vm1, %v4665_v14, %v3352_v40 }
 0x2dd   : > { %1855 = vmatmul.mubr.f32.gmra.mrb[14].mxu1 %v1686_v7 }
 0x2de   : > { %2904 = vmatprep.mubr.msk.f32.mxu1 %vm1103_vm1, %v4680_v5 }
 0x2e4   : > { %v3360_v56 = vpop.permute.xlu0 %3359  ;;  %v3355_v45 = vpop.permute.xlu1 %3354 }
 0x2e5   : > { %v3361_v50 = vunpack.i.l.bf16 %v3360_v56  ;;  %v3357_v34 = vunpack.i.h.bf16 %v3355_v45  ;;  %v3356_v55 = vunpack.i.l.bf16 %v3355_v45  ;;  %v3362_v2 = vunpack.i.h.bf16 %v3360_v56 }
 0x2e7   : > { %v1669_v60 = vsel %vm1149_vm3, %v1652_v57, %v3356_v55  ;;  %v1670_v43 = vsel %vm1149_vm3, %v1653_v35, %v3357_v34  ;;  %v2112_v55 = vld [vmem:[%s5460_s1 + $0x108] sm:$0xff] }
 0x2e8   : > { %v1687_v39 = vsel %vm1678_vm5, %v1669_v60, %v3361_v50  ;;  %v1688_v33 = vsel %vm1678_vm5, %v1670_v43, %v3362_v2  ;;  %v3365_v49 = vpop.permute.xlu1 %3364  ;;  %v2113_v2 = vld [vmem:[%s5460_s1 + $0x110] sm:$0xff] }
 0x2e9   : > { %1860 = vmatmul.mubr.f32.gmra.mrb[16].mxu1 %v1687_v39  ;;  %v3366_v23 = vunpack.i.l.bf16 %v3365_v49  ;;  %v3367_v41 = vunpack.i.h.bf16 %v3365_v49  ;;  %v2114_v49 = vld [vmem:[%s5460_s1 + $0x118] sm:$0xff] }
 0x2ea   : > { %2905 = vmatprep.mubr.msk.f32.mxu1 %vm1103_vm1, %v4691_v51 }
 0x2eb   : > { %v1654_v17 = vsel %vm1103_vm1, %v4667_v48, %v3366_v23  ;;  %v1655_v25 = vsel %vm1103_vm1, %v4678_v6, %v3367_v41  ;;  %v2115_v23 = vld [vmem:[%s5460_s1 + $0x120] sm:$0xff] }
 0x2ed   : > { %1865 = vmatmul.mubr.f32.gmra.mrb[18].mxu1 %v1688_v33  ;;  %v3177_v33 = vpack.c.bf16 %v2113_v2, %v2112_v55 }
 0x2ee   : > { %2906 = vmatprep.mubr.msk.f32.mxu1 %vm1103_vm1, %v4693_v52 }
 0x2f4   : > { %v3370_v54 = vpop.permute.xlu0 %3369  ;;  %v3375_v44 = vpop.permute.xlu1 %3374 }
 0x2f5   : > { %v3372_v28 = vunpack.i.h.bf16 %v3370_v54  ;;  %v3371_v3 = vunpack.i.l.bf16 %v3370_v54  ;;  %v3376_v14 = vunpack.i.l.bf16 %v3375_v44  ;;  %v3377_v13 = vunpack.i.h.bf16 %v3375_v44 }
 0x2f7   : > { %v1671_v12 = vsel %vm1149_vm3, %v1654_v17, %v3371_v3  ;;  %v1672_v31 = vsel %vm1149_vm3, %v1655_v25, %v3372_v28  ;;  %v3180_v28 = vpack.c.bf16 %v2115_v23, %v2114_v49 }
 0x2f8   : > { %v1689_v59 = vsel %vm1678_vm5, %v1671_v12, %v3376_v14  ;;  %v1690_v19 = vsel %vm1678_vm5, %v1672_v31, %v3377_v13  ;;  %v3380_v48 = vpop.permute.xlu0 %3379  ;;  %v2116_v12 = vld [vmem:[%s5460_s1 + $0x128] sm:$0xff]  ;;  %v2117_v13 = vld [vmem:[%s5460_s1 + $0x130] sm:$0xff] }
 0x2f9   : > { %1870 = vmatmul.mubr.f32.gmra.mrb[20].mxu1 %v1689_v59  ;;  %v3381_v21 = vunpack.i.l.bf16 %v3380_v48  ;;  %v3382_v29 = vunpack.i.h.bf16 %v3380_v48  ;;  %v2118_v59 = vld [vmem:[%s5460_s1 + $0x138] sm:$0xff]  ;;  %v3183_v31 = vpack.c.bf16 %v2117_v13, %v2116_v12 }
 0x2fa   : > { %2907 = vmatprep.mubr.msk.f32.mxu1 %vm1103_vm1, %v4704_v32 }
 0x2fb   : > { %v1656_v63 = vsel %vm1103_vm1, %v4680_v5, %v3381_v21  ;;  %v1657_v62 = vsel %vm1103_vm1, %v4691_v51, %v3382_v29 }
 0x2fd   : > { %1875 = vmatmul.mubr.f32.gmra.mrb[22].mxu1 %v1690_v19  ;;  %v2119_v19 = vld [vmem:[%s5460_s1 + $0x140] sm:$0xff] }
 0x2fe   : > { %2908 = vmatprep.mubr.msk.f32.mxu1 %vm1103_vm1, %v4706_v27 }
 0x304   : > { %v3390_v11 = vpop.permute.xlu0 %3389  ;;  %v3385_v53 = vpop.permute.xlu1 %3384 }
 0x305   : > { %v3391_v46 = vunpack.i.l.bf16 %v3390_v11  ;;  %v3387_v22 = vunpack.i.h.bf16 %v3385_v53  ;;  %v3386_v6 = vunpack.i.l.bf16 %v3385_v53  ;;  %v3392_v0 = vunpack.i.h.bf16 %v3390_v11 }
 0x306   : > { %v3186_v53 = vpack.c.bf16 %v2119_v19, %v2118_v59 }
 0x307   : > { %v1673_v18 = vsel %vm1149_vm3, %v1656_v63, %v3386_v6  ;;  %v1674_v1 = vsel %vm1149_vm3, %v1657_v62, %v3387_v22  ;;  %v2121_v22 = vld [vmem:[%s5460_s1 + $0x150] sm:$0xff]  ;;  %v2123_v62 = vld [vmem:[%s5460_s1 + $0x160] sm:$0xff] }
 0x308   : > { %v1691_v30 = vsel %vm1678_vm5, %v1673_v18, %v3391_v46  ;;  %v1692_v38 = vsel %vm1678_vm5, %v1674_v1, %v3392_v0  ;;  %v3395_v5 = vpop.permute.xlu1 %3394  ;;  %v2120_v46 = vld [vmem:[%s5460_s1 + $0x148] sm:$0xff] }
 0x309   : > { %1880 = vmatmul.mubr.f32.gmra.mrb[24].mxu1 %v1691_v30  ;;  %v3396_v58 = vunpack.i.l.bf16 %v3395_v5  ;;  %v3397_v10 = vunpack.i.h.bf16 %v3395_v5  ;;  %v3189_v18 = vpack.c.bf16 %v2121_v22, %v2120_v46  ;;  %v2122_v30 = vld [vmem:[%s5460_s1 + $0x158] sm:$0xff]  ;;  %v2124_v5 = vld [vmem:[%s5460_s1 + $0x168] sm:$0xff] }
 0x30a   : > { %2909 = vmatprep.mubr.msk.f32.mxu1 %vm1103_vm1, %v4717_v4  ;;  %v3192_v1 = vpack.c.bf16 %v2123_v62, %v2122_v30 }
 0x30b   : > { %v1658_v51 = vsel %vm1103_vm1, %v4693_v52, %v3396_v58  ;;  %v1659_v42 = vsel %vm1103_vm1, %v4704_v32, %v3397_v10  ;;  %v2125_v58 = vld [vmem:[%s5460_s1 + $0x170] sm:$0xff] }
 0x30d   : > { %1885 = vmatmul.mubr.f32.gmra.mrb[26].mxu1 %v1692_v38 }
 0x30e   : > { %2910 = vmatprep.mubr.msk.f32.mxu1 %vm1103_vm1, %v4719_v15 }
 0x312   : > { %v1622_v61 = vpop.permute.xlu1 %1621 }
 0x314   : > { %v3400_v9 = vpop.permute.xlu0 %3399 }
 0x315   : > { %v3402_v16 = vunpack.i.h.bf16 %v3400_v9  ;;  %v3401_v24 = vunpack.i.l.bf16 %v3400_v9 }
 0x316   : > { %v1522_v37 = vpop.permute.xlu1 %1521 }
 0x317   : > { %v1675_v36 = vsel %vm1149_vm3, %v1658_v51, %v3401_v24  ;;  %v1676_v15 = vsel %vm1149_vm3, %v1659_v42, %v3402_v16  ;;  %v1660_v40 = vsel %vm1103_vm1, %v4706_v27, %v1522_v37  ;;  %v2111_v27 = vld [vmem:[%s5460_s1 + $0x100] sm:$0xff]  ;;  %v3195_v16 = vpack.c.bf16 %v2125_v58, %v2124_v5 }
 0x318   : > { %v1693_v4 = vsel %vm1678_vm5, %v1675_v36, %v1622_v61  ;;  %v1624_v7 = vpop.permute.xlu0 %1623  ;;  %v3505_v24 = vmov 0.0  }
 0x319   : > { %1890 = vmatmul.mubr.f32.gmra.mrb[28].mxu1 %v1693_v4  ;;  %v1694_v26 = vsel %vm1678_vm5, %v1676_v15, %v1624_v7  ;;  %3084 = vmatprep.mubr.msk.f32.mxu0 %vm3504_vm6, %v3505_v24 }
 0x31a   : > { %2911 = vmatprep.mubr.msk.f32.mxu1 %vm1103_vm1, %v4744_v47  ;;  %v4843_v47 = vld [vmem:[%s5461_s2 + $0x2] ss:$0 sm:$0xff] }
 0x31c   : > { %v1574_v52 = vpop.permute.xlu0 %1573 }
 0x31d   : > { %1895 = vmatmul.mubr.f32.gmra.mrb[30].mxu1 %v1694_v26  ;;  %v1677_v32 = vsel %vm1149_vm3, %v1660_v40, %v1574_v52 }
 0x31e   : > { %2912 = vmatprep.mubr.msk.f32.mxu1 %vm1103_vm1, %v4746_v8  ;;  %v2110_v8 = vld [vmem:[%s5460_s1 + $0xf8] sm:$0xff] }
 0x31f   : > { %v3174_v60 = vpack.c.bf16 %v2111_v27, %v2110_v8 }
 0x321   : > { %3175 = vmatpush3.bf16.msra.mxu0 %v3174_v60 }
 0x322   : > { %v1626_v56 = vpop.permute.xlu1 %1625  ;;  %3176 = vmatprep.subr.bf16.mxu0 %v3502_v20 }
 0x323   : > { %v1695_v45 = vsel %vm1678_vm5, %v1677_v32, %v1626_v56 }
 0x324   : > { %1900 = vmatmul.mubr.f32.gmra.mrb[32].mxu1 %v1695_v45 }
 0x325   : > { %3178 = vmatpush3.bf16.msra.mxu0 %v3177_v33 }
 0x326   : > { %3179 = vmatprep.subr.bf16.mxu0 %v3502_v20 }
 0x329   : > { %3181 = vmatpush3.bf16.msra.mxu0 %v3180_v28 }
 0x32a   : > { %3182 = vmatprep.subr.bf16.mxu0 %v3502_v20 }
 0x32d   : > { %3184 = vmatpush3.bf16.msra.mxu0 %v3183_v31 }
 0x32e   : > { %3185 = vmatprep.subr.bf16.mxu0 %v3502_v20 }
 0x331   : > { %3187 = vmatpush3.bf16.msra.mxu0 %v3186_v53 }
 0x332   : > { %3188 = vmatprep.subr.bf16.mxu0 %v3502_v20 }
 0x335   : > { %3190 = vmatpush3.bf16.msra.mxu0 %v3189_v18 }
 0x336   : > { %3191 = vmatprep.subr.bf16.mxu0 %v3502_v20 }
 0x339   : > { %3193 = vmatpush3.bf16.msra.mxu0 %v3192_v1 }
 0x33a   : > { %3194 = vmatprep.subr.bf16.mxu0 %v3502_v20 }
 0x33d   : > { %3196 = vmatpush3.bf16.msra.mxu0 %v3195_v16 }
 0x33e   : > { %3233 = vmatprep.subr.bf16.mxu0 %v3502_v20 }
 0x37c   : > { %v1821_v50 = vpop.f32.mrb[0].mxu1 }
 0x37d   : > { %v1823_v34 = vpop.f32.mrb[1].mxu1  ;;  %v1822_v57 = vadd.f32 %v4843_v47, %v1821_v50 }
 0x37f   : > { %v1905_v41 = vmax.f32 %v1822_v57, 0.0 }
 0x380   : > { %v1826_v39 = vpop.f32.mrb[2].mxu1 }
 0x381   : > { %v1827_v35 = vadd.f32 %v4843_v47, %v1826_v39  ;;  %v1828_v43 = vpop.f32.mrb[3].mxu1 }
 0x383   : > { %v1906_v54 = vmax.f32 %v1827_v35, 0.0 }
 0x385   : > { %v4866_v44 = vmax.f32 %v1905_v41, %v1906_v54 }
 0x38c   : > { %v1831_v3 = vpop.f32.mrb[4].mxu1 }
 0x38d   : > { %v1832_v14 = vadd.f32 %v4843_v47, %v1831_v3  ;;  %v1833_v17 = vpop.f32.mrb[5].mxu1 }
 0x38f   : > { %v1907_v25 = vmax.f32 %v1832_v14, 0.0 }
 0x390   : > { %v1836_v48 = vpop.f32.mrb[6].mxu1 }
 0x391   : > { %v4883_v21 = vmax.f32 %v1906_v54, %v1907_v25  ;;  %v1837_v29 = vadd.f32 %v4843_v47, %v1836_v48  ;;  %v1838_v11 = vpop.f32.mrb[7].mxu1 }
 0x393   : > { %v1908_v6 = vmax.f32 %v1837_v29, 0.0 }
 0x395   : > { %v4893_v63 = vmax.f32 %v1907_v25, %v1908_v6 }
 0x397   : > { %v3403_v0 = vpack.i.bf16 %v4893_v63, %v4883_v21 }
 0x399   : > { %3404 = vrot.lane.b32.xlu0 %v3403_v0, %s3499_s24 }
 0x39c   : > { %v1841_v38 = vpop.f32.mrb[8].mxu1 }
 0x39d   : > { %v1842_v10 = vadd.f32 %v4843_v47, %v1841_v38  ;;  %v1843_v9 = vpop.f32.mrb[9].mxu1 }
 0x39f   : > { %v1909_v51 = vmax.f32 %v1842_v10, 0.0 }
 0x3a0   : > { %v1846_v61 = vpop.f32.mrb[10].mxu1 }
 0x3a1   : > { %v4916_v36 = vmax.f32 %v1908_v6, %v1909_v51  ;;  %v1847_v4 = vadd.f32 %v4843_v47, %v1846_v61  ;;  %v1848_v42 = vpop.f32.mrb[11].mxu1 }
 0x3a3   : > { %v1910_v7 = vmax.f32 %v1847_v4, 0.0  ;;  %v3408_v15 = vpack.i.bf16 %v4916_v36, %v4893_v63 }
 0x3a5   : > { %v4922_v26 = vmax.f32 %v1909_v51, %v1910_v7  ;;  %3409 = vrot.lane.b32.xlu1 %v3408_v15, %s3501_s26 }
 0x3a7   : > { %v3418_v37 = vpack.i.bf16 %v4922_v26, %v4916_v36 }
 0x3a9   : > { %3419 = vrot.lane.b32.xlu1 %v3418_v37, %s3499_s24  ;;  %3414 = vrot.lane.b32.xlu0 %v3418_v37, %s3503_s20 }
 0x3ac   : > { %v1851_v52 = vpop.f32.mrb[12].mxu1 }
 0x3ad   : > { %v1852_v40 = vadd.f32 %v4843_v47, %v1851_v52  ;;  %v1853_v32 = vpop.f32.mrb[13].mxu1 }
 0x3af   : > { %v1911_v56 = vmax.f32 %v1852_v40, 0.0 }
 0x3b0   : > { %v1856_v45 = vpop.f32.mrb[14].mxu1 }
 0x3b1   : > { %v4930_v50 = vmax.f32 %v1910_v7, %v1911_v56  ;;  %v1857_v34 = vadd.f32 %v4843_v47, %v1856_v45  ;;  %v1858_v8 = vpop.f32.mrb[15].mxu1 }
 0x3b3   : > { %v1912_v27 = vmax.f32 %v1857_v34, 0.0  ;;  %v3423_v55 = vpack.i.bf16 %v4930_v50, %v4922_v26 }
 0x3b5   : > { %v4935_v57 = vmax.f32 %v1911_v56, %v1912_v27  ;;  %3424 = vrot.lane.b32.xlu0 %v3423_v55, %s3501_s26 }
 0x3b7   : > { %v3428_v60 = vpack.i.bf16 %v4935_v57, %v4930_v50 }
 0x3b9   : > { %3429 = vrot.lane.b32.xlu1 %v3428_v60, %s3503_s20  ;;  %3434 = vrot.lane.b32.xlu0 %v3428_v60, %s3499_s24 }
 0x3bc   : > { %v1861_v2 = vpop.f32.mrb[16].mxu1 }
 0x3bd   : > { %v1862_v39 = vadd.f32 %v4843_v47, %v1861_v2  ;;  %v1863_v35 = vpop.f32.mrb[17].mxu1 }
 0x3bf   : > { %v1913_v43 = vmax.f32 %v1862_v39, 0.0 }
 0x3c0   : > { %v1866_v33 = vpop.f32.mrb[18].mxu1 }
 0x3c1   : > { %v4943_v49 = vmax.f32 %v1912_v27, %v1913_v43  ;;  %v1867_v23 = vadd.f32 %v4843_v47, %v1866_v33  ;;  %v1868_v41 = vpop.f32.mrb[19].mxu1 }
 0x3c3   : > { %v1914_v54 = vmax.f32 %v1867_v23, 0.0  ;;  %v3438_v28 = vpack.i.bf16 %v4943_v49, %v4935_v57 }
 0x3c5   : > { %v4948_v3 = vmax.f32 %v1913_v43, %v1914_v54  ;;  %3439 = vrot.lane.b32.xlu1 %v3438_v28, %s3501_s26 }
 0x3c7   : > { %v3448_v14 = vpack.i.bf16 %v4948_v3, %v4943_v49 }
 0x3c9   : > { %3449 = vrot.lane.b32.xlu1 %v3448_v14, %s3499_s24  ;;  %3444 = vrot.lane.b32.xlu0 %v3448_v14, %s3503_s20 }
 0x3cc   : > { %v1871_v17 = vpop.f32.mrb[20].mxu1 }
 0x3cd   : > { %v1872_v12 = vadd.f32 %v4843_v47, %v1871_v17  ;;  %v1873_v13 = vpop.f32.mrb[21].mxu1 }
 0x3cf   : > { %v1915_v59 = vmax.f32 %v1872_v12, 0.0 }
 0x3d0   : > { %v1876_v25 = vpop.f32.mrb[22].mxu1 }
 0x3d1   : > { %v4956_v31 = vmax.f32 %v1914_v54, %v1915_v59  ;;  %v1877_v19 = vadd.f32 %v4843_v47, %v1876_v25  ;;  %v1878_v48 = vpop.f32.mrb[23].mxu1 }
 0x3d3   : > { %v1916_v29 = vmax.f32 %v1877_v19, 0.0  ;;  %v3453_v11 = vpack.i.bf16 %v4956_v31, %v4948_v3 }
 0x3d5   : > { %v4961_v53 = vmax.f32 %v1915_v59, %v1916_v29  ;;  %3454 = vrot.lane.b32.xlu0 %v3453_v11, %s3501_s26 }
 0x3d7   : > { %v3458_v46 = vpack.i.bf16 %v4961_v53, %v4956_v31 }
 0x3d9   : > { %3459 = vrot.lane.b32.xlu1 %v3458_v46, %s3503_s20  ;;  %3464 = vrot.lane.b32.xlu0 %v3458_v46, %s3499_s24 }
 0x3dc   : > { %v1881_v22 = vpop.f32.mrb[24].mxu1 }
 0x3dd   : > { %v1882_v6 = vadd.f32 %v4843_v47, %v1881_v22  ;;  %v1883_v18 = vpop.f32.mrb[25].mxu1 }
 0x3df   : > { %v1917_v0 = vmax.f32 %v1882_v6, 0.0 }
 0x3e0   : > { %v1886_v30 = vpop.f32.mrb[26].mxu1 }
 0x3e1   : > { %v4969_v62 = vmax.f32 %v1916_v29, %v1917_v0  ;;  %v1887_v1 = vadd.f32 %v4843_v47, %v1886_v30  ;;  %v1888_v38 = vpop.f32.mrb[27].mxu1 }
 0x3e3   : > { %v1918_v5 = vmax.f32 %v1887_v1, 0.0  ;;  %v3468_v58 = vpack.i.bf16 %v4969_v62, %v4961_v53 }
 0x3e5   : > { %v4974_v10 = vmax.f32 %v1917_v0, %v1918_v5  ;;  %3469 = vrot.lane.b32.xlu1 %v3468_v58, %s3501_s26 }
 0x3e7   : > { %v3478_v9 = vpack.i.bf16 %v4974_v10, %v4969_v62 }
 0x3e9   : > { %3479 = vrot.lane.b32.xlu1 %v3478_v9, %s3499_s24  ;;  %3474 = vrot.lane.b32.xlu0 %v3478_v9, %s3503_s20 }
 0x3ec   : > { %v1891_v16 = vpop.f32.mrb[28].mxu1 }
 0x3ed   : > { %v1892_v51 = vadd.f32 %v4843_v47, %v1891_v16  ;;  %v1893_v61 = vpop.f32.mrb[29].mxu1 }
 0x3ef   : > { %v1919_v4 = vmax.f32 %v1892_v51, 0.0 }
 0x3f0   : > { %v1896_v42 = vpop.f32.mrb[30].mxu1 }
 0x3f1   : > { %v1935_v7 = vmax.f32 %v1918_v5, %v1919_v4  ;;  %v1897_v15 = vadd.f32 %v4843_v47, %v1896_v42  ;;  %v1898_v37 = vpop.f32.mrb[31].mxu1 }
 0x3f3   : > { %v1920_v52 = vmax.f32 %v1897_v15, 0.0  ;;  %2052 = vrot.lane.b32.xlu1 %v1935_v7, %s3503_s20  ;;  %v3483_v40 = vpack.i.bf16 %v1935_v7, %v4974_v10 }
 0x3f5   : > { %v1936_v32 = vmax.f32 %v1919_v4, %v1920_v52  ;;  %3484 = vrot.lane.b32.xlu0 %v3483_v40, %s3501_s26 }
 0x3f7   : > { %v1901_v56 = vpop.f32.mrb[32].mxu1  ;;  %1976 = vrot.lane.b32.xlu1 %v1935_v7, %s3499_s24 }
 0x3f8   : > { %v1902_v45 = vadd.f32 %v4843_v47, %v1901_v56  ;;  %v1903_v34 = vpop.f32.mrb[33].mxu1 }
 0x3f9   : > { %2054 = vrot.lane.b32.xlu0 %v1936_v32, %s3503_s20 }
 0x3fa   : > { %v1921_v8 = vmax.f32 %v1902_v45, 0.0 }
 0x3fc   : > { %v1937_v27 = vmax.f32 %v1920_v52, %v1921_v8 }
 0x3fd   : > { %2016 = vrot.lane.b32.xlu0 %v1936_v32, %s3501_s26 }
 0x3fe   : > { %2056 = vrot.lane.b32.xlu1 %v1937_v27, %s3503_s20 }
 0x40b   : > { %v3405_v55 = vpop.permute.xlu0 %3404 }
 0x40c   : > { %v3406_v2 = vunpack.i.l.bf16 %v3405_v55  ;;  %v3407_v43 = vunpack.i.h.bf16 %v3405_v55 }
 0x40e   : > { %v2071_v33 = vsel %vm1103_vm1, %v4866_v44, %v3406_v2  ;;  %v2072_v14 = vsel %vm1103_vm1, %v4883_v21, %v3407_v43 }
 0x417   : > { %v3410_v60 = vpop.permute.xlu1 %3409 }
 0x418   : > { %v3411_v39 = vunpack.i.l.bf16 %v3410_v60  ;;  %v3412_v47 = vunpack.i.h.bf16 %v3410_v60 }
 0x41a   : > { %v2084_v41 = vsel %vm1149_vm3, %v2071_v33, %v3411_v39  ;;  %v2085_v17 = vsel %vm1149_vm3, %v2072_v14, %v3412_v47 }
 0x41b   : > { %v3415_v35 = vpop.permute.xlu0 %3414  ;;  %v3420_v44 = vpop.permute.xlu1 %3419 }
 0x41c   : > { %v3416_v23 = vunpack.i.l.bf16 %v3415_v35  ;;  %v3417_v54 = vunpack.i.h.bf16 %v3415_v35  ;;  %v3421_v59 = vunpack.i.l.bf16 %v3420_v44  ;;  %v3422_v48 = vunpack.i.h.bf16 %v3420_v44 }
 0x41e   : > { %v2097_v28 = vsel %vm1678_vm5, %v2084_v41, %v3416_v23  ;;  %v2098_v12 = vsel %vm1678_vm5, %v2085_v17, %v3417_v54  ;;  %v2073_v11 = vsel %vm1103_vm1, %v4893_v63, %v3421_v59  ;;  %v2074_v18 = vsel %vm1103_vm1, %v4916_v36, %v3422_v48 }
 0x41f   : > { %3085 = vmatmul.mubr.f32.vlgmr.msra.gmra.mrb[22].mxu0 %v2097_v28 }
 0x420   : > { %3087 = vmatprep.mubr.msk.f32.mxu0 %vm3504_vm6, %v3505_v24 }
 0x423   : > { %3088 = vmatmul.mubr.f32.gmra.mrb[24].mxu0 %v2098_v12 }
 0x424   : > { %3090 = vmatprep.mubr.msk.f32.mxu0 %vm3504_vm6, %v3505_v24 }
 0x427   : > { %v3425_v13 = vpop.permute.xlu0 %3424 }
 0x428   : > { %v3426_v25 = vunpack.i.l.bf16 %v3425_v13  ;;  %v3427_v46 = vunpack.i.h.bf16 %v3425_v13 }
 0x42a   : > { %v2086_v21 = vsel %vm1149_vm3, %v2073_v11, %v3426_v25  ;;  %v2087_v0 = vsel %vm1149_vm3, %v2074_v18, %v3427_v46 }
 0x42b   : > { %v3430_v19 = vpop.permute.xlu1 %3429  ;;  %v3435_v63 = vpop.permute.xlu0 %3434 }
 0x42c   : > { %v3431_v29 = vunpack.i.l.bf16 %v3430_v19  ;;  %v3432_v22 = vunpack.i.h.bf16 %v3430_v19  ;;  %v3436_v38 = vunpack.i.l.bf16 %v3435_v63  ;;  %v3437_v9 = vunpack.i.h.bf16 %v3435_v63 }
 0x42e   : > { %v2099_v6 = vsel %vm1678_vm5, %v2086_v21, %v3431_v29  ;;  %v2100_v30 = vsel %vm1678_vm5, %v2087_v0, %v3432_v22  ;;  %v2075_v51 = vsel %vm1103_vm1, %v4922_v26, %v3436_v38  ;;  %v2076_v7 = vsel %vm1103_vm1, %v4930_v50, %v3437_v9 }
 0x42f   : > { %3091 = vmatmul.mubr.f32.gmra.mrb[26].mxu0 %v2099_v6 }
 0x430   : > { %3093 = vmatprep.mubr.msk.f32.mxu0 %vm3504_vm6, %v3505_v24 }
 0x433   : > { %3094 = vmatmul.mubr.f32.gmra.mrb[28].mxu0 %v2100_v30 }
 0x434   : > { %3096 = vmatprep.mubr.msk.f32.mxu0 %vm3504_vm6, %v3505_v24 }
 0x437   : > { %v3440_v1 = vpop.permute.xlu1 %3439 }
 0x438   : > { %v3441_v5 = vunpack.i.l.bf16 %v3440_v1  ;;  %v3442_v61 = vunpack.i.h.bf16 %v3440_v1 }
 0x43a   : > { %v2088_v36 = vsel %vm1149_vm3, %v2075_v51, %v3441_v5  ;;  %v2089_v15 = vsel %vm1149_vm3, %v2076_v7, %v3442_v61  ;;  %v2375_v61 = vld [vmem:[%s5460_s1 + $0x198] sm:$0xff]  ;;  %v2378_v7 = vld [vmem:[%s5460_s1 + $0x1b0] sm:$0xff] }
 0x43b   : > { %v3445_v58 = vpop.permute.xlu0 %3444  ;;  %v3450_v26 = vpop.permute.xlu1 %3449 }
 0x43c   : > { %v3446_v16 = vunpack.i.l.bf16 %v3445_v58  ;;  %v3447_v4 = vunpack.i.h.bf16 %v3445_v58  ;;  %v3451_v40 = vunpack.i.l.bf16 %v3450_v26  ;;  %v3452_v45 = vunpack.i.h.bf16 %v3450_v26  ;;  %v2371_v58 = vld [vmem:[%s5460_s1 + $0x178] sm:$0xff]  ;;  %v2380_v26 = vld [vmem:[%s5460_s1 + $0x1c0] sm:$0xff] }
 0x43e   : > { %v2101_v42 = vsel %vm1678_vm5, %v2088_v36, %v3446_v16  ;;  %v2102_v37 = vsel %vm1678_vm5, %v2089_v15, %v3447_v4  ;;  %v2077_v8 = vsel %vm1103_vm1, %v4935_v57, %v3451_v40  ;;  %v2078_v2 = vsel %vm1103_vm1, %v4943_v49, %v3452_v45  ;;  %v2373_v16 = vld [vmem:[%s5460_s1 + $0x188] sm:$0xff]  ;;  %v2376_v36 = vld [vmem:[%s5460_s1 + $0x1a0] sm:$0xff]  ;;  %v2383_v45 = vld [vmem:[%s5460_s1 + $0x1d8] sm:$0xff] }
 0x43f   : > { %3097 = vmatmul.mubr.f32.gmra.mrb[30].mxu0 %v2101_v42  ;;  %v3204_v4 = vpack.c.bf16 %v2376_v36, %v2375_v61  ;;  %v2377_v42 = vld [vmem:[%s5460_s1 + $0x1a8] sm:$0xff] }
 0x440   : > { %3099 = vmatprep.mubr.msk.f32.mxu0 %vm3504_vm6, %v3505_v24  ;;  %v3207_v15 = vpack.c.bf16 %v2378_v7, %v2377_v42  ;;  %v2381_v40 = vld [vmem:[%s5460_s1 + $0x1c8] sm:$0xff] }
 0x443   : > { %3100 = vmatmul.mubr.f32.gmra.mrb[32].mxu0 %v2102_v37  ;;  %v2379_v37 = vld [vmem:[%s5460_s1 + $0x1b8] sm:$0xff] }
 0x444   : > { %3102 = vmatprep.mubr.msk.f32.mxu0 %vm3504_vm6, %v3505_v24 }
 0x447   : > { %v3455_v52 = vpop.permute.xlu0 %3454 }
 0x448   : > { %v3456_v32 = vunpack.i.l.bf16 %v3455_v52  ;;  %v3457_v27 = vunpack.i.h.bf16 %v3455_v52  ;;  %v3210_v52 = vpack.c.bf16 %v2380_v26, %v2379_v37 }
 0x44a   : > { %v2090_v50 = vsel %vm1149_vm3, %v2077_v8, %v3456_v32  ;;  %v2091_v39 = vsel %vm1149_vm3, %v2078_v2, %v3457_v27  ;;  %v2382_v32 = vld [vmem:[%s5460_s1 + $0x1d0] sm:$0xff]  ;;  %v2385_v27 = vld [vmem:[%s5460_s1 + $0x1e8] sm:$0xff]  ;;  %v2388_v2 = vld [vmem:[%s5460_s1 + $0x200] sm:$0xff] }
 0x44b   : > { %v3460_v56 = vpop.permute.xlu1 %3459  ;;  %v3465_v57 = vpop.permute.xlu0 %3464 }
 0x44c   : > { %v3461_v34 = vunpack.i.l.bf16 %v3460_v56  ;;  %v3462_v55 = vunpack.i.h.bf16 %v3460_v56  ;;  %v3466_v33 = vunpack.i.l.bf16 %v3465_v57  ;;  %v3467_v41 = vunpack.i.h.bf16 %v3465_v57  ;;  %v2390_v57 = vld [vmem:[%s5460_s1 + $0x210] sm:$0xff] }
 0x44d   : > { %v3213_v56 = vpack.c.bf16 %v2382_v32, %v2381_v40 }
 0x44e   : > { %v2103_v60 = vsel %vm1678_vm5, %v2090_v50, %v3461_v34  ;;  %v2104_v35 = vsel %vm1678_vm5, %v2091_v39, %v3462_v55  ;;  %v2079_v28 = vsel %vm1103_vm1, %v4948_v3, %v3466_v33  ;;  %v2080_v44 = vsel %vm1103_vm1, %v4956_v31, %v3467_v41  ;;  %v2384_v34 = vld [vmem:[%s5460_s1 + $0x1e0] sm:$0xff]  ;;  %v2386_v50 = vld [vmem:[%s5460_s1 + $0x1f0] sm:$0xff] }
 0x44f   : > { %3103 = vmatmul.mubr.f32.gmra.mrb[34].mxu0 %v2103_v60  ;;  %v3216_v8 = vpack.c.bf16 %v2384_v34, %v2383_v45  ;;  %v3219_v55 = vpack.c.bf16 %v2386_v50, %v2385_v27  ;;  %v2387_v60 = vld [vmem:[%s5460_s1 + $0x1f8] sm:$0xff] }
 0x450   : > { %3105 = vmatprep.mubr.msk.f32.mxu0 %vm3504_vm6, %v3505_v24  ;;  %v3222_v39 = vpack.c.bf16 %v2388_v2, %v2387_v60 }
 0x453   : > { %3106 = vmatmul.mubr.f32.gmra.mrb[36].mxu0 %v2104_v35  ;;  %v2389_v35 = vld [vmem:[%s5460_s1 + $0x208] sm:$0xff] }
 0x454   : > { %3108 = vmatprep.mubr.msk.f32.mxu0 %vm3504_vm6, %v3505_v24 }
 0x457   : > { %v3470_v43 = vpop.permute.xlu1 %3469 }
 0x458   : > { %v3471_v23 = vunpack.i.l.bf16 %v3470_v43  ;;  %v3472_v14 = vunpack.i.h.bf16 %v3470_v43  ;;  %v5138_v43 = vld [vmem:[%s5461_s2 + $0x3] ss:$0 sm:$0xff] }
 0x45a   : > { %v2092_v49 = vsel %vm1149_vm3, %v2079_v28, %v3471_v23  ;;  %v2093_v13 = vsel %vm1149_vm3, %v2080_v44, %v3472_v14  ;;  %v3225_v23 = vpack.c.bf16 %v2390_v57, %v2389_v35  ;;  %v2392_v28 = vld [vmem:[%s5460_s1 + $0x220] sm:$0xff] }
 0x45b   : > { %v3475_v47 = vpop.permute.xlu0 %3474  ;;  %v3480_v59 = vpop.permute.xlu1 %3479 }
 0x45c   : > { %v3476_v54 = vunpack.i.l.bf16 %v3475_v47  ;;  %v3477_v17 = vunpack.i.h.bf16 %v3475_v47  ;;  %v3481_v3 = vunpack.i.l.bf16 %v3480_v59  ;;  %v3482_v48 = vunpack.i.h.bf16 %v3480_v59  ;;  %v2394_v59 = vld [vmem:[%s5460_s1 + $0x230] sm:$0xff] }
 0x45e   : > { %v2105_v12 = vsel %vm1678_vm5, %v2092_v49, %v3476_v54  ;;  %v2106_v25 = vsel %vm1678_vm5, %v2093_v13, %v3477_v17  ;;  %v2081_v21 = vsel %vm1103_vm1, %v4961_v53, %v3481_v3  ;;  %v2082_v18 = vsel %vm1103_vm1, %v4969_v62, %v3482_v48  ;;  %v2391_v54 = vld [vmem:[%s5460_s1 + $0x218] sm:$0xff]  ;;  %v2393_v13 = vld [vmem:[%s5460_s1 + $0x228] sm:$0xff]  ;;  %v5516_v3 = vld [vmem:[#allocation2_spill] sm:$0xff] }
 0x45f   : > { %3109 = vmatmul.mubr.f32.gmra.mrb[38].mxu0 %v2105_v12  ;;  %v3228_v49 = vpack.c.bf16 %v2392_v28, %v2391_v54  ;;  %vm2288_vm7 = vcmp.lt.s32.totalorder %v5516_v3, 7 }
 0x460   : > { %3111 = vmatprep.mubr.msk.f32.mxu0 %vm3504_vm6, %v3505_v24 }
 0x463   : > { %3112 = vmatmul.mubr.f32.gmra.mrb[40].mxu0 %v2106_v25 }
 0x464   : > { %3114 = vmatprep.mubr.msk.f32.mxu0 %vm3504_vm6, %v3505_v24 }
 0x465   : > { %v2053_v19 = vpop.permute.xlu1 %2052 }
 0x467   : > { %v3485_v29 = vpop.permute.xlu0 %3484 }
 0x468   : > { %v3487_v11 = vunpack.i.h.bf16 %v3485_v29  ;;  %v3486_v46 = vunpack.i.l.bf16 %v3485_v29 }
 0x469   : > { %v1977_v0 = vpop.permute.xlu1 %1976 }
 0x46a   : > { %v2094_v31 = vsel %vm1149_vm3, %v2081_v21, %v3486_v46  ;;  %v2095_v30 = vsel %vm1149_vm3, %v2082_v18, %v3487_v11  ;;  %v2083_v63 = vsel %vm1103_vm1, %v4974_v10, %v1977_v0  ;;  %v2372_v10 = vld [vmem:[%s5460_s1 + $0x180] sm:$0xff] }
 0x46b   : > { %v2055_v22 = vpop.permute.xlu0 %2054  ;;  %v2107_v6 = vsel %vm1678_vm5, %v2094_v31, %v2053_v19  ;;  %v3198_v9 = vpack.c.bf16 %v2372_v10, %v2371_v58  ;;  %v3231_v19 = vpack.c.bf16 %v2394_v59, %v2393_v13 }
 0x46c   : > { %3115 = vmatmul.mubr.f32.gmra.mrb[42].mxu0 %v2107_v6  ;;  %v2108_v53 = vsel %vm1678_vm5, %v2095_v30, %v2055_v22 }
 0x46d   : > { %3117 = vmatprep.mubr.msk.f32.mxu0 %vm3504_vm6, %v3505_v24  ;;  %3199 = vmatpush1.bf16.msra.mxu1 %v3198_v9 }
 0x46e   : > { %3200 = vmatprep.subr.bf16.mxu1 %v3502_v20 }
 0x46f   : > { %v2017_v1 = vpop.permute.xlu0 %2016 }
 0x470   : > { %v2096_v38 = vsel %vm1149_vm3, %v2083_v63, %v2017_v1  ;;  %v2057_v5 = vpop.permute.xlu1 %2056  ;;  %3118 = vmatmul.mubr.f32.gmra.mrb[44].mxu0 %v2108_v53 }
 0x471   : > { %3120 = vmatprep.mubr.msk.f32.mxu0 %vm3504_vm6, %v3505_v24  ;;  %v2109_v62 = vsel %vm1678_vm5, %v2096_v38, %v2057_v5  ;;  %v2374_v24 = vld [vmem:[%s5460_s1 + $0x190] sm:$0xff] }
 0x472   : > { %v3201_v51 = vpack.c.bf16 %v2374_v24, %v2373_v16 }
 0x474   : > { %3121 = vmatmul.mubr.f32.gmra.mrb[46].mxu0 %v2109_v62  ;;  %3202 = vmatpush1.bf16.msra.mxu1 %v3201_v51 }
 0x475   : > { %3203 = vmatprep.subr.bf16.mxu1 %v3502_v20 }
 0x478   : > { %3205 = vmatpush1.bf16.msra.mxu1 %v3204_v4 }
 0x479   : > { %3206 = vmatprep.subr.bf16.mxu1 %v3502_v20 }
 0x47c   : > { %3208 = vmatpush1.bf16.msra.mxu1 %v3207_v15 }
 0x47d   : > { %3209 = vmatprep.subr.bf16.mxu1 %v3502_v20 }
 0x480   : > { %3211 = vmatpush1.bf16.msra.mxu1 %v3210_v52 }
 0x481   : > { %3212 = vmatprep.subr.bf16.mxu1 %v3502_v20 }
 0x484   : > { %3214 = vmatpush1.bf16.msra.mxu1 %v3213_v56 }
 0x485   : > { %3215 = vmatprep.subr.bf16.mxu1 %v3502_v20 }
 0x488   : > { %3217 = vmatpush1.bf16.msra.mxu1 %v3216_v8 }
 0x489   : > { %3218 = vmatprep.subr.bf16.mxu1 %v3502_v20 }
 0x48c   : > { %3220 = vmatpush1.bf16.msra.mxu1 %v3219_v55 }
 0x48d   : > { %3221 = vmatprep.subr.bf16.mxu1 %v3502_v20 }
 0x490   : > { %3223 = vmatpush1.bf16.msra.mxu1 %v3222_v39 }
 0x491   : > { %3224 = vmatprep.subr.bf16.mxu1 %v3502_v20 }
 0x494   : > { %3226 = vmatpush1.bf16.msra.mxu1 %v3225_v23 }
 0x495   : > { %3227 = vmatprep.subr.bf16.mxu1 %v3502_v20 }
 0x498   : > { %3229 = vmatpush1.bf16.msra.mxu1 %v3228_v49 }
 0x499   : > { %3230 = vmatprep.subr.bf16.mxu1 %v3502_v20 }
 0x49c   : > { %3232 = vmatpush1.bf16.msra.mxu1 %v3231_v19 }
 0x4f2   : > { %v2196_v33 = vpop.f32.mrb[22].mxu0 }
 0x4f3   : > { %v2197_v47 = vadd.f32 %v5138_v43, %v2196_v33  ;;  %v3086_v41 = vpop.f32.mrb[23].mxu0 }
 0x4f5   : > { %v2260_v17 = vmax.f32 %v2197_v47, 0.0 }
 0x4f6   : > { %v2201_v14 = vpop.f32.mrb[24].mxu0 }
 0x4f7   : > { %v2202_v12 = vadd.f32 %v5138_v43, %v2201_v14  ;;  %v3089_v44 = vpop.f32.mrb[25].mxu0  ;;  %v5157_v48 = vrot.slane %v2260_v17, 1 }
 0x4f9   : > { %v2261_v25 = vmax.f32 %v2202_v12, 0.0 }
 0x4fb   : > { %v2274_v29 = vrot.slane %v2261_v25, 1 }
 0x4fd   : > { %v2300_v11 = vsel %vm2288_vm7, %v5157_v48, %v2274_v29 }
 0x4fe   : > { %v5163_v46 = vmax.f32 %v2260_v17, %v2300_v11 }
 0x502   : > { %v2206_v21 = vpop.f32.mrb[26].mxu0 }
 0x503   : > { %v2207_v31 = vadd.f32 %v5138_v43, %v2206_v21  ;;  %v3092_v22 = vpop.f32.mrb[27].mxu0 }
 0x505   : > { %v2262_v6 = vmax.f32 %v2207_v31, 0.0 }
 0x506   : > { %v2211_v18 = vpop.f32.mrb[28].mxu0 }
 0x507   : > { %v2275_v0 = vrot.slane %v2262_v6, 1  ;;  %v2212_v30 = vadd.f32 %v5138_v43, %v2211_v18  ;;  %v3095_v63 = vpop.f32.mrb[29].mxu0 }
 0x509   : > { %v2299_v1 = vsel %vm2288_vm7, %v2274_v29, %v2275_v0  ;;  %v2263_v53 = vmax.f32 %v2212_v30, 0.0 }
 0x50a   : > { %v5169_v38 = vmax.f32 %v2261_v25, %v2299_v1 }
 0x50b   : > { %v2276_v5 = vrot.slane %v2263_v53, 1 }
 0x50c   : > { %2327 = vrot.lane.b32.xlu0 %v5169_v38, %s3501_s26 }
 0x50d   : > { %v2298_v62 = vsel %vm2288_vm7, %v2275_v0, %v2276_v5 }
 0x50e   : > { %v5175_v58 = vmax.f32 %v2262_v6, %v2298_v62 }
 0x510   : > { %2329 = vrot.lane.b32.xlu1 %v5175_v58, %s3501_s26  ;;  %2915 = vmatprep.mubr.msk.f32.mxu1 %vm1149_vm3, %v5175_v58 }
 0x512   : > { %v2216_v10 = vpop.f32.mrb[30].mxu0 }
 0x513   : > { %v2217_v9 = vadd.f32 %v5138_v43, %v2216_v10  ;;  %v3098_v16 = vpop.f32.mrb[31].mxu0 }
 0x515   : > { %v2264_v24 = vmax.f32 %v2217_v9, 0.0 }
 0x516   : > { %v2221_v51 = vpop.f32.mrb[32].mxu0 }
 0x517   : > { %v2277_v61 = vrot.slane %v2264_v24, 1  ;;  %v2222_v36 = vadd.f32 %v5138_v43, %v2221_v51  ;;  %v3101_v4 = vpop.f32.mrb[33].mxu0 }
 0x519   : > { %v2297_v42 = vsel %vm2288_vm7, %v2276_v5, %v2277_v61  ;;  %v2265_v7 = vmax.f32 %v2222_v36, 0.0 }
 0x51a   : > { %v5185_v15 = vmax.f32 %v2263_v53, %v2297_v42 }
 0x51b   : > { %v2278_v37 = vrot.slane %v2265_v7, 1 }
 0x51c   : > { %2331 = vrot.lane.b32.xlu0 %v5185_v15, %s3501_s26 }
 0x51d   : > { %v2296_v26 = vsel %vm2288_vm7, %v2277_v61, %v2278_v37 }
 0x51e   : > { %v5191_v52 = vmax.f32 %v2264_v24, %v2296_v26 }
 0x520   : > { %2333 = vrot.lane.b32.xlu1 %v5191_v52, %s3501_s26 }
 0x522   : > { %v2226_v40 = vpop.f32.mrb[34].mxu0 }
 0x523   : > { %v2227_v32 = vadd.f32 %v5138_v43, %v2226_v40  ;;  %v3104_v56 = vpop.f32.mrb[35].mxu0 }
 0x525   : > { %v2266_v45 = vmax.f32 %v2227_v32, 0.0 }
 0x526   : > { %v2231_v34 = vpop.f32.mrb[36].mxu0 }
 0x527   : > { %v2279_v8 = vrot.slane %v2266_v45, 1  ;;  %v2232_v27 = vadd.f32 %v5138_v43, %v2231_v34  ;;  %v3107_v50 = vpop.f32.mrb[37].mxu0 }
 0x529   : > { %v2295_v55 = vsel %vm2288_vm7, %v2278_v37, %v2279_v8  ;;  %v2267_v60 = vmax.f32 %v2232_v27, 0.0 }
 0x52a   : > { %v5199_v2 = vmax.f32 %v2265_v7, %v2295_v55 }
 0x52b   : > { %v2280_v39 = vrot.slane %v2267_v60, 1 }
 0x52c   : > { %2335 = vrot.lane.b32.xlu0 %v5199_v2, %s3501_s26 }
 0x52d   : > { %v2294_v35 = vsel %vm2288_vm7, %v2279_v8, %v2280_v39 }
 0x52e   : > { %v5205_v57 = vmax.f32 %v2266_v45, %v2294_v35  ;;  %v2633_v35 = vld [vmem:[%s5460_s1 + $0x240] sm:$0xff] }
 0x530   : > { %2337 = vrot.lane.b32.xlu1 %v5205_v57, %s3501_s26 }
 0x532   : > { %v2236_v33 = vpop.f32.mrb[38].mxu0 }
 0x533   : > { %v2237_v23 = vadd.f32 %v5138_v43, %v2236_v33  ;;  %v3110_v47 = vpop.f32.mrb[39].mxu0 }
 0x535   : > { %v2268_v41 = vmax.f32 %v2237_v23, 0.0  ;;  %v2635_v23 = vld [vmem:[%s5460_s1 + $0x250] sm:$0xff] }
 0x536   : > { %v2241_v54 = vpop.f32.mrb[40].mxu0 }
 0x537   : > { %v2281_v28 = vrot.slane %v2268_v41, 1  ;;  %v2242_v14 = vadd.f32 %v5138_v43, %v2241_v54  ;;  %v3113_v49 = vpop.f32.mrb[41].mxu0  ;;  %v2637_v54 = vld [vmem:[%s5460_s1 + $0x260] sm:$0xff] }
 0x538   : > { %v2639_v49 = vld [vmem:[%s5460_s1 + $0x270] sm:$0xff] }
 0x539   : > { %v2293_v17 = vsel %vm2288_vm7, %v2280_v39, %v2281_v28  ;;  %v2269_v12 = vmax.f32 %v2242_v14, 0.0  ;;  %v2632_v39 = vld [vmem:[%s5460_s1 + $0x238] sm:$0xff]  ;;  %v2638_v14 = vld [vmem:[%s5460_s1 + $0x268] sm:$0xff] }
 0x53a   : > { %v2309_v44 = vmax.f32 %v2267_v60, %v2293_v17  ;;  %v3234_v33 = vpack.c.bf16 %v2633_v35, %v2632_v39  ;;  %v3243_v17 = vpack.c.bf16 %v2639_v49, %v2638_v14 }
 0x53b   : > { %v2282_v13 = vrot.slane %v2269_v12, 1 }
 0x53c   : > { %2339 = vrot.lane.b32.xlu0 %v2309_v44, %s3501_s26  ;;  %3235 = vmatpush1.bf16.msra.mxu0 %v3234_v33 }
 0x53d   : > { %v2292_v59 = vsel %vm2288_vm7, %v2281_v28, %v2282_v13  ;;  %3236 = vmatprep.subr.bf16.mxu0 %v3502_v20 }
 0x53e   : > { %v2310_v25 = vmax.f32 %v2268_v41, %v2292_v59  ;;  %v2636_v41 = vld [vmem:[%s5460_s1 + $0x258] sm:$0xff]  ;;  %v2642_v59 = vld [vmem:[%s5460_s1 + $0x288] sm:$0xff] }
 0x53f   : > { %v2246_v19 = vpop.f32.mrb[42].mxu0  ;;  %v3240_v28 = vpack.c.bf16 %v2637_v54, %v2636_v41 }
 0x540   : > { %v2247_v29 = vadd.f32 %v5138_v43, %v2246_v19  ;;  %2341 = vrot.lane.b32.xlu1 %v2310_v25, %s3501_s26  ;;  %v3116_v11 = vpop.f32.mrb[43].mxu0 }
 0x541   : > { %v2645_v11 = vld [vmem:[%s5460_s1 + $0x2a0] sm:$0xff] }
 0x542   : > { %v2270_v21 = vmax.f32 %v2247_v29, 0.0  ;;  %v2644_v29 = vld [vmem:[%s5460_s1 + $0x298] sm:$0xff] }
 0x543   : > { %v2251_v31 = vpop.f32.mrb[44].mxu0 }
 0x544   : > { %v2283_v22 = vrot.slane %v2270_v21, 1  ;;  %v2252_v6 = vadd.f32 %v5138_v43, %v2251_v31  ;;  %v3119_v18 = vpop.f32.mrb[45].mxu0  ;;  %v2646_v31 = vld [vmem:[%s5460_s1 + $0x2a8] sm:$0xff] }
 0x545   : > { %v2648_v18 = vld [vmem:[%s5460_s1 + $0x2b8] sm:$0xff] }
 0x546   : > { %v2291_v0 = vsel %vm2288_vm7, %v2282_v13, %v2283_v22  ;;  %v2271_v30 = vmax.f32 %v2252_v6, 0.0 }
 0x547   : > { %v2256_v63 = vpop.f32.mrb[46].mxu0  ;;  %v2311_v1 = vmax.f32 %v2269_v12, %v2291_v0  ;;  %v2640_v12 = vld [vmem:[%s5460_s1 + $0x278] sm:$0xff]  ;;  %v2649_v0 = vld [vmem:[%s5460_s1 + $0x2c0] sm:$0xff] }
 0x548   : > { %v2284_v53 = vrot.slane %v2271_v30, 1  ;;  %v2257_v5 = vadd.f32 %v5138_v43, %v2256_v63  ;;  %v3122_v62 = vpop.f32.mrb[47].mxu0  ;;  %v2650_v63 = vld [vmem:[%s5460_s1 + $0x2c8] sm:$0xff] }
 0x549   : > { %2343 = vrot.lane.b32.xlu0 %v2311_v1, %s3501_s26  ;;  %v2653_v62 = vld [vmem:[%s5460_s1 + $0x2e0] sm:$0xff] }
 0x54a   : > { %v2290_v10 = vsel %vm2288_vm7, %v2283_v22, %v2284_v53  ;;  %v2272_v9 = vmax.f32 %v2257_v5, 0.0  ;;  %v2647_v22 = vld [vmem:[%s5460_s1 + $0x2b0] sm:$0xff]  ;;  %v2652_v5 = vld [vmem:[%s5460_s1 + $0x2d8] sm:$0xff] }
 0x54b   : > { %v2312_v16 = vmax.f32 %v2270_v21, %v2290_v10  ;;  %v3252_v21 = vpack.c.bf16 %v2645_v11, %v2644_v29  ;;  %v3255_v6 = vpack.c.bf16 %v2647_v22, %v2646_v31  ;;  %v3264_v10 = vpack.c.bf16 %v2653_v62, %v2652_v5 }
 0x54c   : > { %v2285_v24 = vrot.slane %v2272_v9, 1 }
 0x54d   : > { %2345 = vrot.lane.b32.xlu1 %v2312_v16, %s3501_s26 }
 0x54e   : > { %v2289_v51 = vsel %vm2288_vm7, %v2284_v53, %v2285_v24  ;;  %v2301_v61 = vsel %vm2288_vm7, %v2285_v24, %v5157_v48 }
 0x54f   : > { %v2314_v36 = vmax.f32 %v2272_v9, %v2301_v61  ;;  %v2313_v43 = vmax.f32 %v2271_v30, %v2289_v51  ;;  %v3258_v30 = vpack.c.bf16 %v2649_v0, %v2648_v18  ;;  %v2654_v9 = vld [vmem:[%s5460_s1 + $0x2e8] sm:$0xff]  ;;  %v5350_v51 = vld [vmem:[%s5461_s2 + $0x4] ss:$0 sm:$0xff] }
 0x551   : > { %2347 = vrot.lane.b32.xlu0 %v2313_v43, %s3501_s26 }
 0x57e   : > { %v2328_v4 = vpop.permute.xlu0 %2327 }
 0x57f   : > { %v2360_v42 = vsel %vm1149_vm3, %v5163_v46, %v2328_v4 }
 0x580   : > { %2487 = vmatmul.mubr.f32.vlgmr.msra.gmra.mrb[34].mxu1 %v2360_v42 }
 0x581   : > { %2916 = vmatprep.mubr.msk.f32.mxu1 %vm1149_vm3, %v5185_v15 }
 0x582   : > { %v2330_v7 = vpop.permute.xlu1 %2329 }
 0x583   : > { %v2361_v37 = vsel %vm1149_vm3, %v5169_v38, %v2330_v7 }
 0x584   : > { %2492 = vmatmul.mubr.f32.gmra.mrb[36].mxu1 %v2361_v37 }
 0x585   : > { %2917 = vmatprep.mubr.msk.f32.mxu1 %vm1149_vm3, %v5191_v52 }
 0x58e   : > { %v2332_v48 = vpop.permute.xlu0 %2331 }
 0x58f   : > { %v2362_v26 = vsel %vm1149_vm3, %v5175_v58, %v2332_v48 }
 0x590   : > { %2497 = vmatmul.mubr.f32.gmra.mrb[38].mxu1 %v2362_v26 }
 0x591   : > { %2918 = vmatprep.mubr.msk.f32.mxu1 %vm1149_vm3, %v5199_v2 }
 0x592   : > { %v2334_v46 = vpop.permute.xlu1 %2333 }
 0x593   : > { %v2363_v40 = vsel %vm1149_vm3, %v5185_v15, %v2334_v46 }
 0x594   : > { %2502 = vmatmul.mubr.f32.gmra.mrb[40].mxu1 %v2363_v40 }
 0x595   : > { %2919 = vmatprep.mubr.msk.f32.mxu1 %vm1149_vm3, %v5205_v57 }
 0x59e   : > { %v2336_v38 = vpop.permute.xlu0 %2335 }
 0x59f   : > { %v2364_v32 = vsel %vm1149_vm3, %v5191_v52, %v2336_v38 }
 0x5a0   : > { %2507 = vmatmul.mubr.f32.gmra.mrb[42].mxu1 %v2364_v32 }
 0x5a1   : > { %2920 = vmatprep.mubr.msk.f32.mxu1 %vm1149_vm3, %v2309_v44 }
 0x5a2   : > { %v2338_v58 = vpop.permute.xlu1 %2337 }
 0x5a3   : > { %v2365_v56 = vsel %vm1149_vm3, %v5199_v2, %v2338_v58 }
 0x5a4   : > { %2512 = vmatmul.mubr.f32.gmra.mrb[44].mxu1 %v2365_v56 }
 0x5a5   : > { %2921 = vmatprep.mubr.msk.f32.mxu1 %vm1149_vm3, %v2310_v25 }
 0x5ae   : > { %v2340_v45 = vpop.permute.xlu0 %2339 }
 0x5af   : > { %v2366_v15 = vsel %vm1149_vm3, %v5205_v57, %v2340_v45  ;;  %v2634_v57 = vld [vmem:[%s5460_s1 + $0x248] sm:$0xff] }
 0x5b0   : > { %2517 = vmatmul.mubr.f32.gmra.mrb[46].mxu1 %v2366_v15  ;;  %v3237_v47 = vpack.c.bf16 %v2635_v23, %v2634_v57 }
 0x5b1   : > { %2922 = vmatprep.mubr.msk.f32.mxu1 %vm1149_vm3, %v2311_v1 }
 0x5b2   : > { %v2342_v34 = vpop.permute.xlu1 %2341  ;;  %3238 = vmatpush1.bf16.msra.mxu0 %v3237_v47 }
 0x5b3   : > { %v2367_v52 = vsel %vm1149_vm3, %v2309_v44, %v2342_v34  ;;  %3239 = vmatprep.subr.bf16.mxu0 %v3502_v20  ;;  %v2641_v44 = vld [vmem:[%s5460_s1 + $0x280] sm:$0xff] }
 0x5b4   : > { %2522 = vmatmul.mubr.f32.gmra.mrb[48].mxu1 %v2367_v52  ;;  %v3246_v13 = vpack.c.bf16 %v2641_v44, %v2640_v12 }
 0x5b5   : > { %2923 = vmatprep.mubr.msk.f32.mxu1 %vm1149_vm3, %v2312_v16 }
 0x5b6   : > { %3241 = vmatpush1.bf16.msra.mxu0 %v3240_v28 }
 0x5b7   : > { %3242 = vmatprep.subr.bf16.mxu0 %v3502_v20 }
 0x5ba   : > { %3244 = vmatpush1.bf16.msra.mxu0 %v3243_v17 }
 0x5bb   : > { %v2344_v8 = vpop.permute.xlu0 %2343  ;;  %3245 = vmatprep.subr.bf16.mxu0 %v3502_v20 }
 0x5bc   : > { %v2368_v27 = vsel %vm1149_vm3, %v2310_v25, %v2344_v8  ;;  %v2643_v25 = vld [vmem:[%s5460_s1 + $0x290] sm:$0xff] }
 0x5bd   : > { %2527 = vmatmul.mubr.f32.gmra.mrb[50].mxu1 %v2368_v27  ;;  %v3249_v19 = vpack.c.bf16 %v2643_v25, %v2642_v59 }
 0x5be   : > { %2924 = vmatprep.mubr.msk.f32.mxu1 %vm1149_vm3, %v2313_v43  ;;  %3247 = vmatpush1.bf16.msra.mxu0 %v3246_v13 }
 0x5bf   : > { %v2346_v50 = vpop.permute.xlu1 %2345  ;;  %3248 = vmatprep.subr.bf16.mxu0 %v3502_v20 }
 0x5c0   : > { %v2369_v55 = vsel %vm1149_vm3, %v2311_v1, %v2346_v50  ;;  %v2651_v1 = vld [vmem:[%s5460_s1 + $0x2d0] sm:$0xff] }
 0x5c1   : > { %2532 = vmatmul.mubr.f32.gmra.mrb[52].mxu1 %v2369_v55  ;;  %v3261_v53 = vpack.c.bf16 %v2651_v1, %v2650_v63 }
 0x5c2   : > { %2925 = vmatprep.mubr.msk.f32.mxu1 %vm1149_vm3, %v2314_v36  ;;  %3250 = vmatpush1.bf16.msra.mxu0 %v3249_v19 }
 0x5c3   : > { %v2348_v60 = vpop.permute.xlu0 %2347  ;;  %3251 = vmatprep.subr.bf16.mxu0 %v3502_v20 }
 0x5c4   : > { %v2370_v2 = vsel %vm1149_vm3, %v2312_v16, %v2348_v60  ;;  %v2655_v16 = vld [vmem:[%s5460_s1 + $0x2f0] sm:$0xff] }
 0x5c5   : > { %2537 = vmatmul.mubr.f32.gmra.mrb[54].mxu1 %v2370_v2  ;;  %v3267_v24 = vpack.c.bf16 %v2655_v16, %v2654_v9 }
 0x5c6   : > { %3253 = vmatpush1.bf16.msra.mxu0 %v3252_v21 }
 0x5c7   : > { %3254 = vmatprep.subr.bf16.mxu0 %v3502_v20 }
 0x5ca   : > { %3256 = vmatpush1.bf16.msra.mxu0 %v3255_v6 }
 0x5cb   : > { %3257 = vmatprep.subr.bf16.mxu0 %v3502_v20 }
 0x5ce   : > { %3259 = vmatpush1.bf16.msra.mxu0 %v3258_v30 }
 0x5cf   : > { %3260 = vmatprep.subr.bf16.mxu0 %v3502_v20 }
 0x5d2   : > { %3262 = vmatpush1.bf16.msra.mxu0 %v3261_v53 }
 0x5d3   : > { %3263 = vmatprep.subr.bf16.mxu0 %v3502_v20 }
 0x5d6   : > { %3265 = vmatpush1.bf16.msra.mxu0 %v3264_v10 }
 0x5d7   : > { %3266 = vmatprep.subr.bf16.mxu0 %v3502_v20 }
 0x5da   : > { %3268 = vmatpush1.bf16.msra.mxu0 %v3267_v24 }
 0x653   : > { %v2488_v61 = vpop.f32.mrb[34].mxu1 }
 0x654   : > { %v2489_v36 = vadd.f32 %v5350_v51, %v2488_v61  ;;  %v2490_v43 = vpop.f32.mrb[35].mxu1 }
 0x656   : > { %v2542_v42 = vmax.f32 %v2489_v36, 0.0 }
 0x657   : > { %v2493_v4 = vpop.f32.mrb[36].mxu1 }
 0x658   : > { %v2494_v7 = vadd.f32 %v5350_v51, %v2493_v4  ;;  %v2495_v37 = vpop.f32.mrb[37].mxu1  ;;  %v5354_v26 = vrot.slane %v2542_v42, 1 }
 0x65a   : > { %v2543_v48 = vmax.f32 %v2494_v7, 0.0 }
 0x65c   : > { %v2554_v46 = vrot.slane %v2543_v48, 1 }
 0x65e   : > { %v2573_v20 = vsel %vm2288_vm7, %v5354_v26, %v2554_v46 }
 0x65f   : > { %v5359_v40 = vmax.f32 %v2542_v42, %v2573_v20 }
 0x663   : > { %v2498_v38 = vpop.f32.mrb[38].mxu1 }
 0x664   : > { %v2499_v32 = vadd.f32 %v5350_v51, %v2498_v38  ;;  %v2500_v58 = vpop.f32.mrb[39].mxu1 }
 0x666   : > { %v2544_v56 = vmax.f32 %v2499_v32, 0.0 }
 0x667   : > { %v2503_v45 = vpop.f32.mrb[40].mxu1 }
 0x668   : > { %v2555_v15 = vrot.slane %v2544_v56, 1  ;;  %v2504_v34 = vadd.f32 %v5350_v51, %v2503_v45  ;;  %v2505_v52 = vpop.f32.mrb[41].mxu1 }
 0x66a   : > { %v2572_v8 = vsel %vm2288_vm7, %v2554_v46, %v2555_v15  ;;  %v2545_v27 = vmax.f32 %v2504_v34, 0.0 }
 0x66b   : > { %v5365_v50 = vmax.f32 %v2543_v48, %v2572_v8 }
 0x66c   : > { %v2556_v55 = vrot.slane %v2545_v27, 1 }
 0x66d   : > { %2596 = vrot.lane.b32.xlu1 %v5365_v50, %s3501_s26 }
 0x66e   : > { %v2571_v60 = vsel %vm2288_vm7, %v2555_v15, %v2556_v55 }
 0x66f   : > { %v5371_v2 = vmax.f32 %v2544_v56, %v2571_v60 }
 0x671   : > { %2927 = vmatprep.mubr.msk.f32.mxu0 %vm1149_vm3, %v5371_v2  ;;  %2598 = vrot.lane.b32.xlu0 %v5371_v2, %s3501_s26 }
 0x673   : > { %v2508_v39 = vpop.f32.mrb[42].mxu1 }
 0x674   : > { %v2509_v35 = vadd.f32 %v5350_v51, %v2508_v39  ;;  %v2510_v57 = vpop.f32.mrb[43].mxu1 }
 0x676   : > { %v2546_v33 = vmax.f32 %v2509_v35, 0.0 }
 0x677   : > { %v2513_v23 = vpop.f32.mrb[44].mxu1 }
 0x678   : > { %v2557_v47 = vrot.slane %v2546_v33, 1  ;;  %v2514_v41 = vadd.f32 %v5350_v51, %v2513_v23  ;;  %v2515_v54 = vpop.f32.mrb[45].mxu1 }
 0x67a   : > { %v2570_v28 = vsel %vm2288_vm7, %v2556_v55, %v2557_v47  ;;  %v2547_v14 = vmax.f32 %v2514_v41, 0.0 }
 0x67b   : > { %v2578_v49 = vmax.f32 %v2545_v27, %v2570_v28 }
 0x67c   : > { %v2558_v17 = vrot.slane %v2547_v14, 1 }
 0x67d   : > { %2600 = vrot.lane.b32.xlu1 %v2578_v49, %s3501_s26 }
 0x67e   : > { %v2569_v12 = vsel %vm2288_vm7, %v2557_v47, %v2558_v17  ;;  %v2926_v47 = vld [vmem:[%s5461_s2 + $0x5] ss:$0 sm:$0xff] }
 0x67f   : > { %v2579_v44 = vmax.f32 %v2546_v33, %v2569_v12 }
 0x681   : > { %2602 = vrot.lane.b32.xlu0 %v2579_v44, %s3501_s26 }
 0x683   : > { %v2518_v13 = vpop.f32.mrb[46].mxu1 }
 0x684   : > { %v2519_v59 = vadd.f32 %v5350_v51, %v2518_v13  ;;  %v2520_v25 = vpop.f32.mrb[47].mxu1 }
 0x686   : > { %v2548_v19 = vmax.f32 %v2519_v59, 0.0 }
 0x687   : > { %v2523_v29 = vpop.f32.mrb[48].mxu1 }
 0x688   : > { %v2559_v11 = vrot.slane %v2548_v19, 1  ;;  %v2524_v21 = vadd.f32 %v5350_v51, %v2523_v29  ;;  %v2525_v31 = vpop.f32.mrb[49].mxu1 }
 0x68a   : > { %v2568_v22 = vsel %vm2288_vm7, %v2558_v17, %v2559_v11  ;;  %v2549_v6 = vmax.f32 %v2524_v21, 0.0 }
 0x68b   : > { %v2580_v18 = vmax.f32 %v2547_v14, %v2568_v22 }
 0x68c   : > { %v2560_v0 = vrot.slane %v2549_v6, 1 }
 0x68d   : > { %2604 = vrot.lane.b32.xlu1 %v2580_v18, %s3501_s26 }
 0x68e   : > { %v2567_v30 = vsel %vm2288_vm7, %v2559_v11, %v2560_v0 }
 0x68f   : > { %v2581_v63 = vmax.f32 %v2548_v19, %v2567_v30 }
 0x690   : > { %v2528_v1 = vpop.f32.mrb[50].mxu1 }
 0x691   : > { %v2529_v53 = vadd.f32 %v5350_v51, %v2528_v1  ;;  %v2530_v5 = vpop.f32.mrb[51].mxu1  ;;  %2606 = vrot.lane.b32.xlu0 %v2581_v63, %s3501_s26 }
 0x693   : > { %v2550_v62 = vmax.f32 %v2529_v53, 0.0 }
 0x694   : > { %v2533_v10 = vpop.f32.mrb[52].mxu1 }
 0x695   : > { %v2561_v9 = vrot.slane %v2550_v62, 1  ;;  %v2534_v16 = vadd.f32 %v5350_v51, %v2533_v10  ;;  %v2535_v24 = vpop.f32.mrb[53].mxu1 }
 0x697   : > { %v2566_v61 = vsel %vm2288_vm7, %v2560_v0, %v2561_v9  ;;  %v2551_v36 = vmax.f32 %v2534_v16, 0.0 }
 0x698   : > { %v2538_v43 = vpop.f32.mrb[54].mxu1  ;;  %v2582_v4 = vmax.f32 %v2549_v6, %v2566_v61 }
 0x699   : > { %v2562_v42 = vrot.slane %v2551_v36, 1  ;;  %v2539_v7 = vadd.f32 %v5350_v51, %v2538_v43  ;;  %v2540_v37 = vpop.f32.mrb[55].mxu1 }
 0x69a   : > { %2608 = vrot.lane.b32.xlu1 %v2582_v4, %s3501_s26 }
 0x69b   : > { %v2565_v48 = vsel %vm2288_vm7, %v2561_v9, %v2562_v42  ;;  %v2552_v46 = vmax.f32 %v2539_v7, 0.0 }
 0x69c   : > { %v2583_v20 = vmax.f32 %v2550_v62, %v2565_v48 }
 0x69d   : > { %v2563_v38 = vrot.slane %v2552_v46, 1 }
 0x69e   : > { %2610 = vrot.lane.b32.xlu0 %v2583_v20, %s3501_s26 }
 0x69f   : > { %v2564_v32 = vsel %vm2288_vm7, %v2562_v42, %v2563_v38  ;;  %v2574_v58 = vsel %vm2288_vm7, %v2563_v38, %v5354_v26 }
 0x6a0   : > { %v2585_v56 = vmax.f32 %v2552_v46, %v2574_v58  ;;  %v2584_v51 = vmax.f32 %v2551_v36, %v2564_v32 }
 0x6a2   : > { %2612 = vrot.lane.b32.xlu1 %v2584_v51, %s3501_s26  ;;  %s168_s26 = smul.u32 9, %s2863_s13 }
 0x6a4   : > { %p169_p4 = scmp.lt.s32.totalorder %s168_s26, 17 }
 0x6a6   : > { %s5520_s26 = smov (!%p169_p4, %s168_s26), 17 }
 0x6a7   : > { %s2870_s14 = sshll.u32 %s5520_s26, 3 }
 0x6a8   : > { %s5436_s17 = scalar_lea.vmem %s5462_s3, %s2870_s14 }
 0x6df   : > { %v2597_v45 = vpop.permute.xlu1 %2596 }
 0x6e0   : > { %v2623_v15 = vsel %vm1149_vm3, %v5359_v40, %v2597_v45 }
 0x6e1   : > { %2744 = vmatmul.mubr.f32.vlgmr.msra.gmra.mrb[48].mxu0 %v2623_v15 }
 0x6e2   : > { %2928 = vmatprep.mubr.msk.f32.mxu0 %vm1149_vm3, %v2578_v49 }
 0x6e3   : > { %v2599_v34 = vpop.permute.xlu0 %2598 }
 0x6e4   : > { %v2624_v52 = vsel %vm1149_vm3, %v5365_v50, %v2599_v34 }
 0x6e5   : > { %2749 = vmatmul.mubr.f32.gmra.mrb[50].mxu0 %v2624_v52 }
 0x6e6   : > { %2929 = vmatprep.mubr.msk.f32.mxu0 %vm1149_vm3, %v2579_v44 }
 0x6ef   : > { %v2601_v3 = vpop.permute.xlu1 %2600 }
 0x6f0   : > { %v2625_v26 = vsel %vm1149_vm3, %v5371_v2, %v2601_v3 }
 0x6f1   : > { %2754 = vmatmul.mubr.f32.gmra.mrb[52].mxu0 %v2625_v26 }
 0x6f2   : > { %2930 = vmatprep.mubr.msk.f32.mxu0 %vm1149_vm3, %v2580_v18 }
 0x6f3   : > { %v2603_v8 = vpop.permute.xlu0 %2602 }
 0x6f4   : > { %v2626_v40 = vsel %vm1149_vm3, %v2578_v49, %v2603_v8 }
 0x6f5   : > { %2759 = vmatmul.mubr.f32.gmra.mrb[54].mxu0 %v2626_v40 }
 0x6f6   : > { %2931 = vmatprep.mubr.msk.f32.mxu0 %vm1149_vm3, %v2581_v63 }
 0x6ff   : > { %v2605_v27 = vpop.permute.xlu1 %2604 }
 0x700   : > { %v2627_v55 = vsel %vm1149_vm3, %v2579_v44, %v2605_v27 }
 0x701   : > { %2764 = vmatmul.mubr.f32.gmra.mrb[56].mxu0 %v2627_v55 }
 0x702   : > { %2932 = vmatprep.mubr.msk.f32.mxu0 %vm1149_vm3, %v2582_v4 }
 0x703   : > { %v2607_v50 = vpop.permute.xlu0 %2606 }
 0x704   : > { %v2628_v60 = vsel %vm1149_vm3, %v2580_v18, %v2607_v50 }
 0x705   : > { %2769 = vmatmul.mubr.f32.gmra.mrb[58].mxu0 %v2628_v60 }
 0x706   : > { %2933 = vmatprep.mubr.msk.f32.mxu0 %vm1149_vm3, %v2583_v20 }
 0x70c   : > { %v2609_v2 = vpop.permute.xlu1 %2608 }
 0x70d   : > { %v2629_v39 = vsel %vm1149_vm3, %v2581_v63, %v2609_v2 }
 0x70e   : > { %2774 = vmatmul.mubr.f32.gmra.mrb[60].mxu0 %v2629_v39 }
 0x70f   : > { %2934 = vmatprep.mubr.msk.f32.mxu0 %vm1149_vm3, %v2584_v51 }
 0x710   : > { %v2611_v35 = vpop.permute.xlu0 %2610 }
 0x711   : > { %v2630_v57 = vsel %vm1149_vm3, %v2582_v4, %v2611_v35 }
 0x712   : > { %2779 = vmatmul.mubr.f32.gmra.mrb[62].mxu0 %v2630_v57 }
 0x713   : > { %2935 = vmatprep.mubr.msk.f32.mxu0 %vm1149_vm3, %v2585_v56 }
 0x714   : > { %v2613_v33 = vpop.permute.xlu1 %2612 }
 0x715   : > { %v2631_v23 = vsel %vm1149_vm3, %v2583_v20, %v2613_v33 }
 0x716   : > { %2784 = vmatmul.mubr.f32.gmra.mrb[64].mxu0 %v2631_v23 }
 0x7b4   : > { %v2745_v41 = vpop.f32.mrb[48].mxu0 }
 0x7b5   : > { %v2746_v54 = vadd.f32 %v2926_v47, %v2745_v41  ;;  %v2747_v28 = vpop.f32.mrb[49].mxu0 }
 0x7b7   : > { %v2789_v14 = vmax.f32 %v2746_v54, 0.0 }
 0x7b8   : > { %v2750_v49 = vpop.f32.mrb[50].mxu0 }
 0x7b9   : > { %2798 = vst.msk [vmem:[%s5436_s17] sm:$0xff] %vm1149_vm3, %v2789_v14  ;;  %v2751_v17 = vadd.f32 %v2926_v47, %v2750_v49  ;;  %v2752_v12 = vpop.f32.mrb[51].mxu0 }
 0x7bb   : > { %v2790_v44 = vmax.f32 %v2751_v17, 0.0 }
 0x7bd   : > { %2799 = vst.msk [vmem:[%s5436_s17 + $0x8] sm:$0xff] %vm1149_vm3, %v2790_v44 }
 0x7c4   : > { %v2755_v13 = vpop.f32.mrb[52].mxu0 }
 0x7c5   : > { %v2756_v59 = vadd.f32 %v2926_v47, %v2755_v13  ;;  %v2757_v25 = vpop.f32.mrb[53].mxu0 }
 0x7c7   : > { %v2791_v19 = vmax.f32 %v2756_v59, 0.0 }
 0x7c8   : > { %v2760_v29 = vpop.f32.mrb[54].mxu0 }
 0x7c9   : > { %2800 = vst.msk [vmem:[%s5436_s17 + $0x10] sm:$0xff] %vm1149_vm3, %v2791_v19  ;;  %v2761_v11 = vadd.f32 %v2926_v47, %v2760_v29  ;;  %v2762_v21 = vpop.f32.mrb[55].mxu0 }
 0x7cb   : > { %v2792_v31 = vmax.f32 %v2761_v11, 0.0 }
 0x7cd   : > { %2801 = vst.msk [vmem:[%s5436_s17 + $0x18] sm:$0xff] %vm1149_vm3, %v2792_v31 }
 0x7d4   : > { %v2765_v22 = vpop.f32.mrb[56].mxu0 }
 0x7d5   : > { %v2766_v6 = vadd.f32 %v2926_v47, %v2765_v22  ;;  %v2767_v18 = vpop.f32.mrb[57].mxu0 }
 0x7d7   : > { %v2793_v0 = vmax.f32 %v2766_v6, 0.0 }
 0x7d8   : > { %v2770_v30 = vpop.f32.mrb[58].mxu0 }
 0x7d9   : > { %2802 = vst.msk [vmem:[%s5436_s17 + $0x20] sm:$0xff] %vm1149_vm3, %v2793_v0  ;;  %v2771_v63 = vadd.f32 %v2926_v47, %v2770_v30  ;;  %v2772_v1 = vpop.f32.mrb[59].mxu0 }
 0x7db   : > { %v2794_v53 = vmax.f32 %v2771_v63, 0.0 }
 0x7dd   : > { %2803 = vst.msk [vmem:[%s5436_s17 + $0x28] sm:$0xff] %vm1149_vm3, %v2794_v53 }
 0x7e1   : > { %v2775_v5 = vpop.f32.mrb[60].mxu0 }
 0x7e2   : > { %v2776_v62 = vadd.f32 %v2926_v47, %v2775_v5  ;;  %v2777_v10 = vpop.f32.mrb[61].mxu0 }
 0x7e4   : > { %v2795_v9 = vmax.f32 %v2776_v62, 0.0 }
 0x7e5   : > { %v2780_v16 = vpop.f32.mrb[62].mxu0 }
 0x7e6   : > { %2804 = vst.msk [vmem:[%s5436_s17 + $0x30] sm:$0xff] %vm1149_vm3, %v2795_v9  ;;  %v2781_v24 = vadd.f32 %v2926_v47, %v2780_v16  ;;  %v2782_v61 = vpop.f32.mrb[63].mxu0 }
 0x7e8   : > { %v2796_v36 = vmax.f32 %v2781_v24, 0.0 }
 0x7e9   : > { %v2785_v43 = vpop.f32.mrb[64].mxu0 }
 0x7ea   : > { %2805 = vst.msk [vmem:[%s5436_s17 + $0x38] sm:$0xff] %vm1149_vm3, %v2796_v36  ;;  %v2786_v4 = vadd.f32 %v2926_v47, %v2785_v43  ;;  %v2787_v42 = vpop.f32.mrb[65].mxu0 }
 0x7ec   : > { %v2797_v7 = vmax.f32 %v2786_v4, 0.0 }
 0x7ee   : > { %2806 = vst.msk [vmem:[%s5436_s17 + $0x40] sm:$0xff] %vm1149_vm3, %v2797_v7 }
 0x7ef PF: > { %s13_s12 = sadd.s32 1, %s3495_s12  }
 0x7f0   : > { %p10_p5 = scmp.ge.s32.totalorder %s13_s12, 4  }
 0x7f2   :  { %12 = sbr.rel (!%p10_p5) target bundleno = 1 (0x1), region = 62 }

// kernel: tpu_custom_call.1
= control target key start
LH: loop header
LB: loop body
LE: loop exit
PB: predicated region body
PF: predicated region fallthrough
CT: control target
= control target key end

     0   :  { %s3574_s12 = smov 0   ;;  %s5473_s0 = inlined_call_operand.vmem [shape: f32[512,1], index: 0, kind: input, shape index: {}]   ;;  %s5474_s1 = inlined_call_operand.vmem [shape: f32[760,64], index: 1, kind: input, shape index: {}]   ;;  %s5475_s2 = inlined_call_operand.vmem [shape: f32[8,64], index: 2, kind: input, shape index: {}]   ;;  %s5476_s3 = inlined_call_operand.vmem [shape: f32[144,64], index: 3, kind: output, shape index: {}]  }
   0x1 LB: > { %s2911_s13 = sadd.s32 4294967295, %s3543_s12   ;;  %p2915_p0 = scmp.ge.s32.totalorder %s3543_s12, 1  ;;  %s3543_s12 = sphi %s3574_s12, %s13_s12  }
   0x2   : > { %p138_p1 = scmp.lt.s32.totalorder %s3543_s12, 3 }
   0x4   : > { %p139_p2 = pnand %p2915_p0, %p138_p1 }
   0x6   : > { %142 = sbr.rel (%p139_p2) target bundleno = 2031 (0x7ef), region = 32 }
   0xd   : > { %s2916_s14 = sshll.u32 %s2911_s13, 5  ;;  %v3545_v0 = vmov 0   ;;  %v338_v33 = vlaneseq  ;;  %v207_v37 = vld [vmem:[%s5474_s1] sm:$0x7f]  ;;  %s3546_s23 = smov 16   ;;  %vm1080_vm0 = vcmask 130048  }
   0xe   : > { %3335 = vset.pattern.permute.xlu1 %v3545_v0  ;;  %3334 = vset.pattern.permute.xlu0 %v3545_v0  ;;  %p163_p3 = scmp.lt.s32.totalorder %s2916_s14, 63  ;;  %s3547_s24 = smov 32   ;;  %vm1103_vm1 = vcmask 261120   ;;  %vm1126_vm2 = vcmask 392192   ;;  %vm1149_vm3 = vcmask 523264   ;;  %vm1186_vm4 = vcmask 654336  }
   0xf   : > { %v339_v34 = vshrl.u32 %v338_v33, 7  ;;  %s3548_s25 = smov 48   ;;  %s3549_s26 = smov 64   ;;  %vm1678_vm5 = vcmask 785408   ;;  %vm3552_vm6 = vmmov 0   ;;  %vm2286_vm7 = vcmask 1046528  }
  0x10   : > { %s5528_s14 = smov (!%p163_p3, %s2916_s14), 63  ;;  %s3551_s20 = smov 96  }
  0x11   : > { %s2917_s15 = sshll.u32 %s5528_s14, 3  ;;  %v340_v35 = vsub.s32 0, %v339_v34  ;;  %v375_v36 = vsub.s32 1, %v339_v34  ;;  %v436_v38 = vsub.s32 2, %v339_v34  ;;  %v497_v43 = vsub.s32 3, %v339_v34 }
  0x12   : > { %s3587_s18 = scalar_lea.vmem %s5473_s0, %s2917_s15  ;;  %v558_v52 = vsub.s32 4, %v339_v34  ;;  %v619_v58 = vsub.s32 5, %v339_v34 }
  0x13   : > { %v177_v1 = vld [vmem:[%s3587_s18 + $0x18] sm:$0xff]  ;;  %v175_v2 = vld [vmem:[%s3587_s18 + $0x8] sm:$0xff]  ;;  %v178_v3 = vld [vmem:[%s3587_s18 + $0x20] sm:$0xff]  ;;  %v3628_v41 = vrot.slane %v207_v37, %v340_v35  ;;  %v3630_v42 = vrot.slane %v207_v37, %v375_v36  ;;  %v3632_v44 = vrot.slane %v207_v37, %v436_v38  ;;  %v3640_v48 = vrot.slane %v207_v37, %v497_v43 }
  0x14   : > { %225 = vperm.xlu1 %3335, %v177_v1   ;;  %215 = vperm.xlu0 %3334, %v175_v2   ;;  %v176_v4 = vld [vmem:[%s3587_s18 + $0x10] sm:$0xff]  ;;  %v179_v6 = vld [vmem:[%s3587_s18 + $0x28] sm:$0xff]  ;;  %v182_v7 = vld [vmem:[%s3587_s18 + $0x40] sm:$0xff]  ;;  %v3658_v62 = vrot.slane %v207_v37, %v558_v52 }
  0x15   : > { %v180_v5 = vld [vmem:[%s3587_s18 + $0x30] sm:$0xff]  ;;  %v181_v8 = vld [vmem:[%s3587_s18 + $0x38] sm:$0xff]  ;;  %v183_v10 = vld [vmem:[%s3587_s18 + $0x48] sm:$0xff]  ;;  %5494 = vst [vmem:[#allocation2_spill] sm:$0xff] %v3628_v41 }
  0x16   : > { %v184_v9 = vld [vmem:[%s3587_s18 + $0x50] sm:$0xff]  ;;  %v186_v11 = vld [vmem:[%s3587_s18 + $0x60] sm:$0xff]  ;;  %v185_v12 = vld [vmem:[%s3587_s18 + $0x58] sm:$0xff]  ;;  %5495 = vst [vmem:[#allocation3_spill] sm:$0xff] %v3630_v42 }
  0x17   : > { %v188_v13 = vld [vmem:[%s3587_s18 + $0x70] sm:$0xff]  ;;  %v187_v14 = vld [vmem:[%s3587_s18 + $0x68] sm:$0xff]  ;;  %v190_v15 = vld [vmem:[%s3587_s18 + $0x80] sm:$0xff] }
  0x18   : > { %230 = vperm.xlu1 %3335, %v178_v3   ;;  %220 = vperm.xlu0 %3334, %v176_v4   ;;  %v189_v16 = vld [vmem:[%s3587_s18 + $0x78] sm:$0xff]  ;;  %v192_v17 = vld [vmem:[%s3587_s18 + $0x90] sm:$0xff]  ;;  %v191_v18 = vld [vmem:[%s3587_s18 + $0x88] sm:$0xff] }
  0x19   : > { %v194_v19 = vld [vmem:[%s3587_s18 + $0xa0] sm:$0xff]  ;;  %v193_v20 = vld [vmem:[%s3587_s18 + $0x98] sm:$0xff]  ;;  %v196_v21 = vld [vmem:[%s3587_s18 + $0xb0] sm:$0xff] }
  0x1a   : > { %v195_v22 = vld [vmem:[%s3587_s18 + $0xa8] sm:$0xff]  ;;  %v197_v23 = vld [vmem:[%s3587_s18 + $0xb8] sm:$0xff]  ;;  %v174_v24 = vld [vmem:[%s3587_s18] sm:$0xff] }
  0x1b   : > { %v198_v25 = vld [vmem:[%s3587_s18 + $0xc0] sm:$0xff]  ;;  %v199_v26 = vld [vmem:[%s3587_s18 + $0xc8] sm:$0xff]  ;;  %v200_v27 = vld [vmem:[%s3587_s18 + $0xd0] sm:$0xff] }
  0x1c   : > { %240 = vperm.xlu1 %3335, %v180_v5   ;;  %235 = vperm.xlu0 %3334, %v179_v6   ;;  %v201_v28 = vld [vmem:[%s3587_s18 + $0xd8] sm:$0xff]  ;;  %v202_v29 = vld [vmem:[%s3587_s18 + $0xe0] sm:$0xff]  ;;  %v203_v30 = vld [vmem:[%s3587_s18 + $0xe8] sm:$0xff]  ;;  %v3668_v5 = vrot.slane %v207_v37, %v619_v58 }
  0x1d   : > { %v205_v31 = vld [vmem:[%s3587_s18 + $0xf8] sm:$0xff]  ;;  %v204_v32 = vld [vmem:[%s3587_s18 + $0xf0] sm:$0xff] }
  0x20   : > { %250 = vperm.xlu1 %3335, %v182_v7   ;;  %245 = vperm.xlu0 %3334, %v181_v8   ;;  %v680_v7 = vsub.s32 6, %v339_v34 }
  0x24   : > { %260 = vperm.xlu1 %3335, %v184_v9   ;;  %255 = vperm.xlu0 %3334, %v183_v10  }
  0x28   : > { %270 = vperm.xlu1 %3335, %v186_v11   ;;  %265 = vperm.xlu0 %3334, %v185_v12  }
  0x2c   : > { %280 = vperm.xlu1 %3335, %v188_v13   ;;  %275 = vperm.xlu0 %3334, %v187_v14  }
  0x30   : > { %290 = vperm.xlu1 %3335, %v190_v15   ;;  %285 = vperm.xlu0 %3334, %v189_v16  }
  0x34   : > { %300 = vperm.xlu1 %3335, %v192_v17   ;;  %295 = vperm.xlu0 %3334, %v191_v18   ;;  %v3686_v18 = vrot.slane %v207_v37, %v680_v7 }
  0x38   : > { %310 = vperm.xlu1 %3335, %v194_v19   ;;  %305 = vperm.xlu0 %3334, %v193_v20  }
  0x3c   : > { %320 = vperm.xlu1 %3335, %v196_v21   ;;  %315 = vperm.xlu0 %3334, %v195_v22  }
  0x40   : > { %325 = vperm.xlu0 %3334, %v197_v23   ;;  %210 = vperm.xlu1 %3335, %v174_v24  }
  0x44   : > { %330 = vperm.xlu0 %3334, %v198_v25   ;;  %335 = vperm.xlu1 %3335, %v199_v26  }
  0x48   : > { %370 = vperm.xlu0 %3334, %v200_v27   ;;  %431 = vperm.xlu1 %3335, %v201_v28  }
  0x4c   : > { %492 = vperm.xlu0 %3334, %v202_v29   ;;  %553 = vperm.xlu1 %3335, %v203_v30   ;;  %v3709_v30 = vld [vmem:[%s5475_s2] ss:$0 sm:$0xff] }
  0x50   : > { %675 = vperm.xlu0 %3334, %v205_v31   ;;  %614 = vperm.xlu1 %3335, %v204_v32  }
  0x93   : > { %v3624_v39 = vpop.permute.xlu1 %225  ;;  %v3626_v40 = vpop.permute.xlu0 %215 }
  0x94   : > { %v379_v45 = vmul.f32 %v3630_v42, %v3624_v39  ;;  %v343_v49 = vmul.f32 %v3628_v41, %v3626_v40  ;;  %v439_v53 = vmul.f32 %v3632_v44, %v3624_v39  ;;  %v345_v11 = vmul.f32 %v3628_v41, %v3624_v39 }
  0x97   : > { %v3636_v46 = vpop.permute.xlu1 %230  ;;  %v3638_v47 = vpop.permute.xlu0 %220 }
  0x98   : > { %v344_v50 = vmul.f32 %v3628_v41, %v3638_v47  ;;  %v378_v51 = vmul.f32 %v3630_v42, %v3638_v47  ;;  %v500_v59 = vmul.f32 %v3640_v48, %v3636_v46  ;;  %v440_v60 = vmul.f32 %v3632_v44, %v3636_v46 }
  0x99   : > { %v380_v12 = vmul.f32 %v3630_v42, %v3636_v46  ;;  %v346_v23 = vmul.f32 %v3628_v41, %v3636_v46 }
  0x9a   : > { %v404_v54 = vadd.f32 %v378_v51, %v343_v49  ;;  %v405_v55 = vadd.f32 %v379_v45, %v344_v50  ;;  %v3721_v45 = vmul.f32 %v3640_v48, %v3624_v39 }
  0x9b   : > { %v3650_v56 = vpop.permute.xlu1 %240  ;;  %v3652_v57 = vpop.permute.xlu0 %235  ;;  %v406_v24 = vadd.f32 %v380_v12, %v345_v11  ;;  %v3759_v12 = vmul.f32 %v3630_v42, %v3626_v40 }
  0x9c   : > { %5496 = vst [vmem:[#allocation4_spill] sm:$0xff] %v3650_v56  ;;  %5497 = vst [vmem:[#allocation5_spill] sm:$0xff] %v3652_v57  ;;  %v465_v61 = vadd.f32 %v439_v53, %v404_v54  ;;  %v466_v63 = vadd.f32 %v440_v60, %v405_v55  ;;  %v501_v3 = vmul.f32 %v3640_v48, %v3652_v57 }
  0x9d   : > { %v561_v4 = vmul.f32 %v3658_v62, %v3652_v57  ;;  %v622_v13 = vmul.f32 %v3668_v5, %v3650_v56  ;;  %v562_v14 = vmul.f32 %v3658_v62, %v3650_v56  ;;  %v381_v15 = vmul.f32 %v3630_v42, %v3652_v57 }
  0x9e   : > { %v526_v0 = vadd.f32 %v500_v59, %v465_v61  ;;  %v527_v10 = vadd.f32 %v501_v3, %v466_v63  ;;  %v441_v16 = vmul.f32 %v3632_v44, %v3652_v57  ;;  %v442_v51 = vmul.f32 %v3632_v44, %v3650_v56 }
  0x9f   : > { %v3660_v1 = vpop.permute.xlu1 %250  ;;  %v3662_v2 = vpop.permute.xlu0 %245  ;;  %v407_v31 = vadd.f32 %v381_v15, %v346_v23  ;;  %v502_v54 = vmul.f32 %v3640_v48, %v3650_v56 }
  0xa0   : > { %v587_v6 = vadd.f32 %v561_v4, %v526_v0  ;;  %v588_v21 = vadd.f32 %v562_v14, %v527_v10  ;;  %v623_v22 = vmul.f32 %v3668_v5, %v3662_v2  ;;  %v683_v26 = vmul.f32 %v3686_v18, %v3662_v2 }
  0xa1   : > { %v467_v32 = vadd.f32 %v441_v16, %v406_v24  ;;  %v684_v37 = vmul.f32 %v3686_v18, %v3660_v1  ;;  %v468_v60 = vadd.f32 %v442_v51, %v407_v31  ;;  %v503_v61 = vmul.f32 %v3640_v48, %v3662_v2 }
  0xa2   : > { %v648_v17 = vadd.f32 %v622_v13, %v587_v6  ;;  %v649_v36 = vadd.f32 %v623_v22, %v588_v21  ;;  %v563_v11 = vmul.f32 %v3658_v62, %v3662_v2  ;;  %v382_v13 = vmul.f32 %v3630_v42, %v3650_v56 }
  0xa3   : > { %v3670_v8 = vpop.permute.xlu1 %260  ;;  %v3672_v9 = vpop.permute.xlu0 %255  ;;  %v528_v0 = vadd.f32 %v502_v54, %v467_v32  ;;  %v347_v14 = vmul.f32 %v3628_v41, %v3652_v57  ;;  %v529_v32 = vadd.f32 %v503_v61, %v468_v60 }
  0xa4   : > { %v352_v27 = vmul.f32 %v3628_v41, %v3670_v8  ;;  %v709_v33 = vadd.f32 %v683_v26, %v648_v17  ;;  %v710_v53 = vadd.f32 %v684_v37, %v649_v36  ;;  %v624_v17 = vmul.f32 %v3668_v5, %v3660_v1 }
  0xa5   : > { %v589_v16 = vadd.f32 %v563_v11, %v528_v0  ;;  %v685_v21 = vmul.f32 %v3686_v18, %v3672_v9  ;;  %v625_v37 = vmul.f32 %v3668_v5, %v3672_v9  ;;  %v408_v54 = vadd.f32 %v382_v13, %v347_v14 }
  0xa6   : > { %v3724_v49 = vadd.f32 %v3709_v30, %v709_v33  ;;  %v740_v63 = vadd.f32 %v3709_v30, %v710_v53  ;;  %v3805_v53 = vmul.f32 %v3658_v62, %v3636_v46  ;;  %v3826_v11 = vmul.f32 %v3628_v41, %v3660_v1 }
  0xa7   : > { %v3688_v19 = vpop.permute.xlu1 %270  ;;  %v3690_v20 = vpop.permute.xlu0 %265  ;;  %v650_v31 = vadd.f32 %v624_v17, %v589_v16 }
  0xa8   : > { %v388_v25 = vmul.f32 %v3630_v42, %v3688_v19  ;;  %v353_v28 = vmul.f32 %v3628_v41, %v3690_v20  ;;  %v387_v29 = vmul.f32 %v3630_v42, %v3690_v20  ;;  %5498 = vst [vmem:[#allocation6_spill] sm:$0xff] %v3724_v49  ;;  %v354_v52 = vmul.f32 %v3628_v41, %v3688_v19 }
  0xa9   : > { %v5477_v55 = vmax.f32 %v3724_v49, 0.0  ;;  %v3765_v15 = vmax.f32 %v740_v63, 0.0  ;;  %v711_v51 = vadd.f32 %v685_v21, %v650_v31  ;;  %v565_v31 = vmul.f32 %v3658_v62, %v3672_v9 }
  0xaa   : > { %v3711_v34 = vadd.f32 %v387_v29, %v352_v27  ;;  %v414_v35 = vadd.f32 %v388_v25, %v353_v28  ;;  %v564_v28 = vmul.f32 %v3658_v62, %v3660_v1  ;;  %v443_v29 = vmul.f32 %v3632_v44, %v3662_v2 }
  0xab   : > { %v3715_v38 = vpop.permute.xlu1 %280  ;;  %v3717_v43 = vpop.permute.xlu0 %275  ;;  %813 = vrot.lane.b32.xlu0 %v5477_v55, %s3546_s23  ;;  %5499 = vst [vmem:[#allocation7_spill] sm:$0xff] %v3765_v15  ;;  %880 = vrot.lane.b32.xlu1 %v3765_v15, %s3547_s24  ;;  %v741_v61 = vadd.f32 %v3709_v30, %v711_v51  ;;  %v566_v49 = vmul.f32 %v3658_v62, %v3670_v8 }
  0xac   : > { %v390_v50 = vmul.f32 %v3630_v42, %v3715_v38  ;;  %v355_v39 = vmul.f32 %v3628_v41, %v3717_v43  ;;  %v389_v58 = vmul.f32 %v3630_v42, %v3717_v43  ;;  %v449_v59 = vmul.f32 %v3632_v44, %v3717_v43 }
  0xad   : > { %v356_v40 = vmul.f32 %v3628_v41, %v3715_v38  ;;  %v469_v13 = vadd.f32 %v443_v29, %v408_v54  ;;  %v3830_v16 = vmax.f32 %v741_v61, 0.0 }
  0xae   : > { %v3751_v6 = vadd.f32 %v389_v58, %v354_v52  ;;  %v416_v7 = vadd.f32 %v390_v50, %v355_v39  ;;  %v3753_v10 = vadd.f32 %v449_v59, %v414_v35  ;;  %v3801_v50 = vmul.f32 %v3632_v44, %v3638_v47 }
  0xaf   : > { %v3744_v3 = vpop.permute.xlu1 %290  ;;  %v3746_v4 = vpop.permute.xlu0 %285  ;;  %815 = vrot.lane.b32.xlu0 %v3765_v15, %s3546_s23  ;;  %v590_v52 = vadd.f32 %v564_v28, %v529_v32  ;;  %v686_v58 = vmul.f32 %v3686_v18, %v3670_v8  ;;  %5500 = vst [vmem:[#allocation8_spill] sm:$0xff] %v3830_v16  ;;  %947 = vrot.lane.b32.xlu1 %v3830_v16, %s3548_s25 }
  0xb0   : > { %v392_v22 = vmul.f32 %v3630_v42, %v3744_v3  ;;  %v357_v23 = vmul.f32 %v3628_v41, %v3746_v4  ;;  %v391_v24 = vmul.f32 %v3630_v42, %v3746_v4  ;;  %v451_v25 = vmul.f32 %v3632_v44, %v3746_v4 }
  0xb1   : > { %v358_v39 = vmul.f32 %v3628_v41, %v3744_v3  ;;  %v651_v63 = vadd.f32 %v625_v37, %v590_v52  ;;  %v383_v37 = vmul.f32 %v3630_v42, %v3662_v2 }
  0xb2   : > { %v3793_v33 = vadd.f32 %v391_v24, %v356_v40  ;;  %v418_v35 = vadd.f32 %v392_v22, %v357_v23  ;;  %v3795_v36 = vadd.f32 %v451_v25, %v416_v7  ;;  %v348_v7 = vmul.f32 %v3628_v41, %v3650_v56 }
  0xb3   : > { %v3783_v26 = vpop.permute.xlu1 %300  ;;  %v3785_v27 = vpop.permute.xlu0 %295  ;;  %v712_v17 = vadd.f32 %v686_v58, %v651_v63  ;;  %v384_v40 = vmul.f32 %v3630_v42, %v3660_v1  ;;  %v504_v23 = vmul.f32 %v3640_v48, %v3660_v1  ;;  %882 = vrot.lane.b32.xlu0 %v3830_v16, %s3547_s24  ;;  %v444_v63 = vmul.f32 %v3632_v44, %v3660_v1 }
  0xb4   : > { %v394_v59 = vmul.f32 %v3630_v42, %v3783_v26  ;;  %v359_v46 = vmul.f32 %v3628_v41, %v3785_v27  ;;  %v393_v0 = vmul.f32 %v3630_v42, %v3785_v27  ;;  %v453_v14 = vmul.f32 %v3632_v44, %v3785_v27 }
  0xb5   : > { %v742_v32 = vadd.f32 %v3709_v30, %v712_v17  ;;  %v360_v51 = vmul.f32 %v3628_v41, %v3783_v26  ;;  %v530_v61 = vadd.f32 %v504_v23, %v469_v13  ;;  %v687_v1 = vmul.f32 %v3686_v18, %v3690_v20 }
  0xb6   : > { %v3832_v21 = vadd.f32 %v393_v0, %v358_v39  ;;  %v420_v22 = vadd.f32 %v394_v59, %v359_v46  ;;  %v3838_v24 = vadd.f32 %v453_v14, %v418_v35  ;;  %v349_v39 = vmul.f32 %v3628_v41, %v3662_v2 }
  0xb7   : > { %v3813_v60 = vpop.permute.xlu1 %310  ;;  %v3815_v47 = vpop.permute.xlu0 %305  ;;  %v3865_v58 = vmax.f32 %v742_v32, 0.0  ;;  %v626_v14 = vmul.f32 %v3668_v5, %v3670_v8  ;;  %v591_v2 = vadd.f32 %v565_v31, %v530_v61  ;;  %v409_v23 = vadd.f32 %v383_v37, %v348_v7 }
  0xb8   : > { %v396_v25 = vmul.f32 %v3630_v42, %v3813_v60  ;;  %v361_v35 = vmul.f32 %v3628_v41, %v3815_v47  ;;  %v395_v52 = vmul.f32 %v3630_v42, %v3815_v47  ;;  %v455_v54 = vmul.f32 %v3632_v44, %v3815_v47 }
  0xb9   : > { %5501 = vst [vmem:[#allocation9_spill] sm:$0xff] %v3865_v58  ;;  %949 = vrot.lane.b32.xlu1 %v3865_v58, %s3548_s25  ;;  %1014 = vrot.lane.b32.xlu0 %v3865_v58, %s3549_s26  ;;  %v386_v31 = vmul.f32 %v3630_v42, %v3670_v8  ;;  %v505_v7 = vmul.f32 %v3640_v48, %v3672_v9 }
  0xba   : > { %v422_v59 = vadd.f32 %v396_v25, %v361_v35  ;;  %v3869_v46 = vadd.f32 %v395_v52, %v360_v51  ;;  %v3871_v0 = vadd.f32 %v455_v54, %v420_v22  ;;  %v362_v25 = vmul.f32 %v3628_v41, %v3813_v60 }
  0xbb   : > { %v3842_v28 = vpop.permute.xlu1 %320  ;;  %v3844_v29 = vpop.permute.xlu0 %315  ;;  %v410_v51 = vadd.f32 %v384_v40, %v349_v39  ;;  %v652_v52 = vadd.f32 %v626_v14, %v591_v2  ;;  %v385_v40 = vmul.f32 %v3630_v42, %v3672_v9  ;;  %v445_v39 = vmul.f32 %v3632_v44, %v3672_v9 }
  0xbc   : > { %v398_v13 = vmul.f32 %v3630_v42, %v3842_v28  ;;  %v363_v32 = vmul.f32 %v3628_v41, %v3844_v29  ;;  %v397_v35 = vmul.f32 %v3630_v42, %v3844_v29  ;;  %v457_v54 = vmul.f32 %v3632_v44, %v3844_v29 }
  0xbd   : > { %817 = vrot.lane.b32.xlu1 %v3830_v16, %s3546_s23  ;;  %v713_v14 = vadd.f32 %v687_v1, %v652_v52  ;;  %v351_v56 = vmul.f32 %v3628_v41, %v3672_v9  ;;  %v447_v9 = vmul.f32 %v3632_v44, %v3690_v20 }
  0xbe   : > { %v3897_v37 = vadd.f32 %v397_v35, %v362_v25  ;;  %v424_v61 = vadd.f32 %v398_v13, %v363_v32  ;;  %v3909_v2 = vadd.f32 %v457_v54, %v422_v59  ;;  %v3913_v13 = vmul.f32 %v3632_v44, %v3670_v8 }
  0xbf   : > { %v3875_v17 = vpop.permute.xlu0 %325  ;;  %v211_v22 = vpop.permute.xlu1 %210  ;;  %v506_v25 = vmul.f32 %v3640_v48, %v3670_v8  ;;  %v470_v35 = vadd.f32 %v444_v63, %v409_v23  ;;  %v743_v1 = vadd.f32 %v3709_v30, %v713_v14  ;;  %v411_v23 = vadd.f32 %v385_v40, %v3826_v11 }
  0xc0   : > { %5502 = vst [vmem:[#allocation10_spill] sm:$0xff] %v3897_v37  ;;  %v459_v55 = vmul.f32 %v3632_v44, %v3875_v17  ;;  %5504 = vst [vmem:[#allocation12_spill] sm:$0xff] %v3909_v2  ;;  %v342_v32 = vmul.f32 %v3628_v41, %v211_v22  ;;  %v627_v22 = vmul.f32 %v3668_v5, %v3690_v20 }
  0xc1   : > { %v531_v16 = vadd.f32 %v505_v7, %v470_v35  ;;  %v471_v8 = vadd.f32 %v445_v39, %v410_v51  ;;  %v3933_v57 = vmax.f32 %v743_v1, 0.0  ;;  %819 = vrot.lane.b32.xlu1 %v3865_v58, %s3546_s23  ;;  %v508_v11 = vmul.f32 %v3640_v48, %v3688_v19 }
  0xc2   : > { %v403_v54 = vadd.f32 %v3759_v12, %v342_v32  ;;  %v485_v63 = vadd.f32 %v459_v55, %v424_v61  ;;  %v412_v32 = vadd.f32 %v386_v31, %v351_v56  ;;  %v3942_v55 = vmul.f32 %v3632_v44, %v3688_v19 }
  0xc3   : > { %v3901_v15 = vpop.permute.xlu0 %330  ;;  %v3925_v52 = vpop.permute.xlu1 %335  ;;  %v592_v37 = vadd.f32 %v566_v49, %v531_v16  ;;  %v567_v51 = vmul.f32 %v3658_v62, %v3690_v20  ;;  %1016 = vrot.lane.b32.xlu0 %v3933_v57, %s3549_s26  ;;  %v688_v56 = vmul.f32 %v3686_v18, %v3688_v19  ;;  %v568_v61 = vmul.f32 %v3658_v62, %v3688_v19 }
  0xc4   : > { %5503 = vst [vmem:[#allocation11_spill] sm:$0xff] %v3901_v15  ;;  %v520_v59 = vmul.f32 %v3640_v48, %v3901_v15  ;;  %5505 = vst [vmem:[#allocation13_spill] sm:$0xff] %v3925_v52  ;;  %v464_v14 = vadd.f32 %v3801_v50, %v403_v54  ;;  %v581_v7 = vmul.f32 %v3658_v62, %v3925_v52 }
  0xc5   : > { %v653_v16 = vadd.f32 %v627_v22, %v592_v37  ;;  %v473_v40 = vadd.f32 %v447_v9, %v412_v32  ;;  %v507_v39 = vmul.f32 %v3640_v48, %v3690_v20  ;;  %886 = vrot.lane.b32.xlu1 %v3933_v57, %s3547_s24  ;;  %v532_v1 = vadd.f32 %v506_v25, %v471_v8 }
  0xc6   : > { %v546_v12 = vadd.f32 %v520_v59, %v485_v63  ;;  %v525_v49 = vadd.f32 %v3721_v45, %v464_v14  ;;  %v3967_v45 = vmul.f32 %v3640_v48, %v3715_v38  ;;  %v3971_v37 = vmul.f32 %v3658_v62, %v3715_v38 }
  0xc7   : > { %v3950_v50 = vpop.permute.xlu0 %370  ;;  %v3963_v35 = vpop.permute.xlu1 %431  ;;  %v714_v54 = vadd.f32 %v688_v56, %v653_v16  ;;  %v509_v20 = vmul.f32 %v3640_v48, %v3717_v43  ;;  %884 = vrot.lane.b32.xlu0 %v3865_v58, %s3547_s24  ;;  %v593_v22 = vadd.f32 %v567_v51, %v532_v1  ;;  %v628_v25 = vmul.f32 %v3668_v5, %v3688_v19 }
  0xc8   : > { %5506 = vst [vmem:[#allocation14_spill] sm:$0xff] %v3950_v50  ;;  %v3955_v31 = vadd.f32 %v581_v7, %v546_v12  ;;  %5508 = vst [vmem:[#allocation16_spill] sm:$0xff] %v3963_v35  ;;  %v3974_v59 = vadd.f32 %v3805_v53, %v525_v49  ;;  %v689_v63 = vmul.f32 %v3686_v18, %v3717_v43 }
  0xc9   : > { %v569_v8 = vmul.f32 %v3658_v62, %v3717_v43  ;;  %v744_v53 = vadd.f32 %v3709_v30, %v714_v54  ;;  %v365_v9 = vmul.f32 %v3628_v41, %v3875_v17  ;;  %v400_v14 = vmul.f32 %v3630_v42, %v3901_v15 }
  0xca   : > { %5507 = vst [vmem:[#allocation15_spill] sm:$0xff] %v3955_v31  ;;  %5509 = vst [vmem:[#allocation17_spill] sm:$0xff] %v3974_v59  ;;  %v522_v12 = vmul.f32 %v3640_v48, %v3950_v50  ;;  %v463_v19 = vmul.f32 %v3632_v44, %v3963_v35  ;;  %v523_v7 = vmul.f32 %v3640_v48, %v3963_v35 }
  0xcb   : > { %v654_v32 = vadd.f32 %v628_v25, %v593_v22  ;;  %v3997_v51 = vpop.permute.xlu0 %492  ;;  %v3999_v49 = vmax.f32 %v744_v53, 0.0  ;;  %v426_v16 = vadd.f32 %v400_v14, %v365_v9  ;;  %v461_v56 = vmul.f32 %v3632_v44, %v3925_v52  ;;  %951 = vrot.lane.b32.xlu0 %v3933_v57, %s3548_s25  ;;  %v4007_v58 = vpop.permute.xlu1 %553 }
  0xcc   : > { %v366_v1 = vmul.f32 %v3628_v41, %v3901_v15  ;;  %v367_v22 = vmul.f32 %v3628_v41, %v3925_v52  ;;  %v401_v25 = vmul.f32 %v3630_v42, %v3925_v52  ;;  %v402_v53 = vmul.f32 %v3630_v42, %v3950_v50 }
  0xcd   : > { %v715_v54 = vadd.f32 %v689_v63, %v654_v32  ;;  %953 = vrot.lane.b32.xlu1 %v3999_v49, %s3548_s25  ;;  %v583_v9 = vmul.f32 %v3658_v62, %v3963_v35  ;;  %v524_v63 = vmul.f32 %v3640_v48, %v3997_v51  ;;  %v487_v14 = vadd.f32 %v461_v56, %v426_v16 }
  0xce   : > { %v462_v32 = vmul.f32 %v3632_v44, %v3950_v50  ;;  %v427_v59 = vadd.f32 %v401_v25, %v366_v1  ;;  %v428_v52 = vadd.f32 %v402_v53, %v367_v22  ;;  %v472_v15 = vadd.f32 %v3913_v13, %v411_v23 }
  0xcf   : > { %v745_v31 = vadd.f32 %v3709_v30, %v715_v54  ;;  %v584_v41 = vmul.f32 %v3658_v62, %v3997_v51  ;;  %v548_v2 = vadd.f32 %v522_v12, %v487_v14  ;;  %v585_v35 = vmul.f32 %v3658_v62, %v4007_v58  ;;  %1018 = vrot.lane.b32.xlu0 %v3999_v49, %s3549_s26 }
  0xd0   : > { %v534_v42 = vadd.f32 %v508_v11, %v473_v40  ;;  %v488_v16 = vadd.f32 %v462_v32, %v427_v59  ;;  %v489_v56 = vadd.f32 %v463_v19, %v428_v52  ;;  %v533_v50 = vadd.f32 %v507_v39, %v472_v15 }
  0xd1   : > { %v629_v1 = vmul.f32 %v3668_v5, %v3717_v43  ;;  %821 = vrot.lane.b32.xlu1 %v3933_v57, %s3546_s23  ;;  %v4035_v13 = vmax.f32 %v745_v31, 0.0  ;;  %v4037_v23 = vadd.f32 %v583_v9, %v548_v2  ;;  %v630_v11 = vmul.f32 %v3668_v5, %v3715_v38 }
  0xd2   : > { %v595_v12 = vadd.f32 %v569_v8, %v534_v42  ;;  %v549_v40 = vadd.f32 %v523_v7, %v488_v16  ;;  %v550_v54 = vadd.f32 %v524_v63, %v489_v56  ;;  %v594_v22 = vadd.f32 %v568_v61, %v533_v50 }
  0xd3   : > { %v474_v15 = vadd.f32 %v3942_v55, %v3711_v34  ;;  %v571_v43 = vmul.f32 %v3658_v62, %v3746_v4  ;;  %v690_v52 = vmul.f32 %v3686_v18, %v3715_v38  ;;  %v691_v2 = vmul.f32 %v3686_v18, %v3746_v4  ;;  %1020 = vrot.lane.b32.xlu0 %v4035_v13, %s3549_s26 }
  0xd4   : > { %v656_v31 = vadd.f32 %v630_v11, %v595_v12  ;;  %v4051_v42 = vadd.f32 %v584_v41, %v549_v40  ;;  %v4053_v39 = vadd.f32 %v585_v35, %v550_v54  ;;  %v655_v50 = vadd.f32 %v629_v1, %v594_v22 }
  0xd5   : > { %v535_v61 = vadd.f32 %v509_v20, %v474_v15  ;;  %v450_v34 = vmul.f32 %v3632_v44, %v3715_v38  ;;  %v511_v55 = vmul.f32 %v3640_v48, %v3746_v4  ;;  %823 = vrot.lane.b32.xlu1 %v3999_v49, %s3546_s23  ;;  %v536_v59 = vadd.f32 %v3967_v45, %v3753_v10 }
  0xd6   : > { %v716_v8 = vadd.f32 %v690_v52, %v655_v50  ;;  %v717_v19 = vadd.f32 %v691_v2, %v656_v31  ;;  %v512_v20 = vmul.f32 %v3640_v48, %v3744_v3  ;;  %v572_v25 = vmul.f32 %v3658_v62, %v3744_v3 }
  0xd7   : > { %v596_v41 = vadd.f32 %v3971_v37, %v535_v61  ;;  %v597_v35 = vadd.f32 %v571_v43, %v536_v59  ;;  %v476_v7 = vadd.f32 %v450_v34, %v3751_v6  ;;  %888 = vrot.lane.b32.xlu0 %v3999_v49, %s3547_s24  ;;  %v573_v10 = vmul.f32 %v3658_v62, %v3785_v27  ;;  %v1172_v34 = vld [vmem:[%s5474_s1 + $0x8] sm:$0xff] }
  0xd8   : > { %v746_v38 = vadd.f32 %v3709_v30, %v716_v8  ;;  %v452_v6 = vmul.f32 %v3632_v44, %v3744_v3  ;;  %v513_v37 = vmul.f32 %v3640_v48, %v3785_v27  ;;  %v631_v53 = vmul.f32 %v3668_v5, %v3746_v4 }
  0xd9   : > { %890 = vrot.lane.b32.xlu1 %v4035_v13, %s3547_s24  ;;  %v537_v45 = vadd.f32 %v511_v55, %v476_v7  ;;  %v747_v63 = vadd.f32 %v3709_v30, %v717_v19  ;;  %v538_v32 = vadd.f32 %v512_v20, %v3795_v36  ;;  %v514_v16 = vmul.f32 %v3640_v48, %v3783_v26  ;;  %v1173_v55 = vld [vmem:[%s5474_s1 + $0x10] sm:$0xff]  ;;  %v1175_v7 = vld [vmem:[%s5474_s1 + $0x20] sm:$0xff] }
  0xda   : > { %v4082_v9 = vmax.f32 %v746_v38, 0.0  ;;  %v575_v56 = vmul.f32 %v3658_v62, %v3815_v47  ;;  %v478_v1 = vadd.f32 %v452_v6, %v3793_v33  ;;  %v454_v4 = vmul.f32 %v3632_v44, %v3783_v26 }
  0xdb   : > { %v4085_v14 = vadd.f32 %v572_v25, %v537_v45  ;;  %955 = vrot.lane.b32.xlu0 %v4035_v13, %s3548_s25  ;;  %v4099_v12 = vadd.f32 %v573_v10, %v538_v32  ;;  %v574_v36 = vmul.f32 %v3658_v62, %v3783_v26  ;;  %v515_v11 = vmul.f32 %v3640_v48, %v3815_v47  ;;  %v1177_v25 = vld [vmem:[%s5474_s1 + $0x30] sm:$0xff] }
  0xdc   : > { %v539_v40 = vadd.f32 %v513_v37, %v478_v1  ;;  %v540_v54 = vadd.f32 %v514_v16, %v3838_v24  ;;  %v516_v33 = vmul.f32 %v3640_v48, %v3813_v60  ;;  %v577_v22 = vmul.f32 %v3658_v62, %v3844_v29 }
  0xdd   : > { %957 = vrot.lane.b32.xlu1 %v4082_v9, %s3548_s25  ;;  %v4110_v15 = vmax.f32 %v747_v63, 0.0  ;;  %v657_v43 = vadd.f32 %v631_v53, %v596_v41  ;;  %v480_v2 = vadd.f32 %v454_v4, %v3832_v21  ;;  %v692_v24 = vmul.f32 %v3686_v18, %v3744_v3  ;;  %v1178_v4 = vld [vmem:[%s5474_s1 + $0x38] sm:$0xff] }
  0xde   : > { %v4114_v52 = vadd.f32 %v574_v36, %v539_v40  ;;  %v4116_v31 = vadd.f32 %v575_v56, %v540_v54  ;;  %v632_v50 = vmul.f32 %v3668_v5, %v3744_v3  ;;  %v542_v61 = vadd.f32 %v516_v33, %v3871_v0  ;;  %v1174_v0 = vld [vmem:[%s5474_s1 + $0x18] sm:$0xff]  ;;  %v1179_v36 = vld [vmem:[%s5474_s1 + $0x40] sm:$0xff]  ;;  %v5510_v40 = vld [vmem:[#allocation3_spill] sm:$0xff] }
  0xdf   : > { %1022 = vrot.lane.b32.xlu0 %v4082_v9, %s3549_s26  ;;  %v576_v21 = vmul.f32 %v3658_v62, %v3813_v60  ;;  %v541_v59 = vadd.f32 %v515_v11, %v480_v2  ;;  %v718_v8 = vadd.f32 %v692_v24, %v657_v43  ;;  %v693_v19 = vmul.f32 %v3686_v18, %v3785_v27  ;;  %v5511_v33 = vld [vmem:[#allocation12_spill] sm:$0xff] }
  0xe0   : > { %v658_v41 = vadd.f32 %v632_v50, %v597_v35  ;;  %v4136_v3 = vadd.f32 %v577_v22, %v542_v61  ;;  %v3171_v20 = vpack.c.bf16 %v1173_v55, %v1172_v34  ;;  %v1176_v35 = vld [vmem:[%s5474_s1 + $0x28] sm:$0xff]  ;;  %v456_v10 = vmul.f32 %v3632_v44, %v3813_v60 }
  0xe1   : > { %1024 = vrot.lane.b32.xlu1 %v4110_v15, %s3549_s26  ;;  %v4146_v38 = vadd.f32 %v576_v21, %v541_v59  ;;  %v517_v45 = vmul.f32 %v3640_v48, %v3844_v29  ;;  %v3175_v6 = vpack.c.bf16 %v1175_v7, %v1174_v0  ;;  %v518_v37 = vmul.f32 %v3640_v48, %v3842_v28  ;;  %v5512_v21 = vld [vmem:[#allocation2_spill] sm:$0xff]  ;;  %v1181_v0 = vld [vmem:[%s5474_s1 + $0x50] sm:$0xff] }
  0xe2   : > { %3172 = vmatprep.subr.bf16.mxu0 %v3171_v20  ;;  %v748_v53 = vadd.f32 %v3709_v30, %v718_v8  ;;  %v719_v63 = vadd.f32 %v693_v19, %v658_v41  ;;  %v579_v32 = vmul.f32 %v3658_v62, %v3875_v17  ;;  %v3179_v16 = vpack.c.bf16 %v1177_v25, %v1176_v35  ;;  %v5513_v8 = vld [vmem:[#allocation11_spill] sm:$0xff]  ;;  %v5514_v7 = vld [vmem:[#allocation10_spill] sm:$0xff] }
  0xe3   : > { %825 = vrot.lane.b32.xlu0 %v4035_v13, %s3546_s23  ;;  %3174 = vmatpush3.bf16.msra.mxu0 %v3171_v20  ;;  %v482_v56 = vadd.f32 %v456_v10, %v3869_v46  ;;  %v458_v1 = vmul.f32 %v3632_v44, %v3842_v28  ;;  %v578_v11 = vmul.f32 %v3658_v62, %v3842_v28 }
  0xe4   : > { %3176 = vmatprep.subr.bf16.mxu0 %v3175_v6  ;;  %v399_v46 = vmul.f32 %v5510_v40, %v3875_v17  ;;  %v544_v22 = vadd.f32 %v518_v37, %v5511_v33  ;;  %v519_v43 = vmul.f32 %v3640_v48, %v3875_v17  ;;  %v4185_v2 = vmax.f32 %v748_v53, 0.0 }
  0xe5   : > { %827 = vrot.lane.b32.xlu1 %v4082_v9, %s3546_s23  ;;  %v543_v54 = vadd.f32 %v517_v45, %v482_v56  ;;  %v749_v24 = vadd.f32 %v3709_v30, %v719_v63  ;;  %v633_v50 = vmul.f32 %v3668_v5, %v3785_v27  ;;  %v3183_v34 = vpack.c.bf16 %v1179_v36, %v1178_v4  ;;  %v1180_v27 = vld [vmem:[%s5474_s1 + $0x48] sm:$0xff]  ;;  %v5515_v45 = vld [vmem:[#allocation14_spill] sm:$0xff] }
  0xe6   : > { %v4194_v55 = vadd.f32 %v579_v32, %v544_v22  ;;  %v364_v59 = vmul.f32 %v5512_v21, %v3842_v28  ;;  %v460_v41 = vmul.f32 %v3632_v44, %v5513_v8  ;;  %v580_v19 = vmul.f32 %v3658_v62, %v5513_v8 }
  0xe7   : > { %892 = vrot.lane.b32.xlu0 %v4082_v9, %s3547_s24  ;;  %3178 = vmatpush3.bf16.msra.mxu0 %v3175_v6  ;;  %v4192_v61 = vadd.f32 %v578_v11, %v543_v54  ;;  %v484_v20 = vadd.f32 %v458_v1, %v5514_v7  ;;  %v4211_v35 = vmax.f32 %v749_v24, 0.0  ;;  %v659_v44 = vadd.f32 %v633_v50, %v4085_v14 }
  0xe8   : > { %3180 = vmatprep.subr.bf16.mxu0 %v3179_v16  ;;  %v425_v10 = vadd.f32 %v399_v46, %v364_v59  ;;  %v582_v6 = vmul.f32 %v3658_v62, %v5515_v45  ;;  %v694_v37 = vmul.f32 %v3686_v18, %v3783_v26  ;;  %v3187_v53 = vpack.c.bf16 %v1181_v0, %v1180_v27 }
  0xe9   : > { %894 = vrot.lane.b32.xlu1 %v4110_v15, %s3547_s24  ;;  %v545_v25 = vadd.f32 %v519_v43, %v484_v20  ;;  %v634_v14 = vmul.f32 %v3668_v5, %v3783_v26  ;;  %v695_v4 = vmul.f32 %v3686_v18, %v3815_v47  ;;  %v635_v46 = vmul.f32 %v3668_v5, %v3815_v47 }
  0xea   : > { %v486_v32 = vadd.f32 %v460_v41, %v425_v10  ;;  %v720_v56 = vadd.f32 %v694_v37, %v659_v44  ;;  %v696_v22 = vmul.f32 %v3686_v18, %v3813_v60  ;;  %v636_v47 = vmul.f32 %v3668_v5, %v3813_v60  ;;  %v4302_v44 = vpop.permute.xlu0 %675 }
  0xeb   : > { %959 = vrot.lane.b32.xlu0 %v4110_v15, %s3548_s25  ;;  %3182 = vmatpush3.bf16.msra.mxu0 %v3179_v16  ;;  %v4224_v63 = vadd.f32 %v580_v19, %v545_v25  ;;  %v5516_v16 = vld [vmem:[#allocation13_spill] sm:$0xff]  ;;  %v660_v1 = vadd.f32 %v634_v14, %v4099_v12  ;;  %v661_v33 = vadd.f32 %v635_v46, %v4114_v52 }
  0xec   : > { %3184 = vmatprep.subr.bf16.mxu0 %v3183_v34  ;;  %v521_v62 = vmul.f32 %v3640_v48, %v5516_v16  ;;  %v750_v11 = vadd.f32 %v3709_v30, %v720_v56  ;;  %v662_v24 = vadd.f32 %v636_v47, %v4116_v31  ;;  %v697_v50 = vmul.f32 %v3686_v18, %v3844_v29  ;;  %v5518_v25 = vld [vmem:[#allocation17_spill] sm:$0xff]  ;;  %v4322_v56 = vpop.permute.xlu1 %614 }
  0xed   : > { %961 = vrot.lane.b32.xlu1 %v4185_v2, %s3548_s25  ;;  %v721_v48 = vadd.f32 %v695_v4, %v660_v1  ;;  %v722_v43 = vadd.f32 %v696_v22, %v661_v33  ;;  %v637_v21 = vmul.f32 %v3668_v5, %v3844_v29  ;;  %v698_v19 = vmul.f32 %v3686_v18, %v3842_v28 }
  0xee   : > { %v547_v36 = vadd.f32 %v521_v62, %v486_v32  ;;  %v4242_v12 = vmax.f32 %v750_v11, 0.0  ;;  %v638_v29 = vmul.f32 %v3668_v5, %v3842_v28  ;;  %v699_v7 = vmul.f32 %v3686_v18, %v3875_v17  ;;  %v5517_v28 = vld [vmem:[#allocation5_spill] sm:$0xff] }
  0xef   : > { %1026 = vrot.lane.b32.xlu0 %v4185_v2, %s3549_s26  ;;  %3186 = vmatpush3.bf16.msra.mxu0 %v3183_v34  ;;  %v751_v40 = vadd.f32 %v3709_v30, %v721_v48  ;;  %v752_v52 = vadd.f32 %v3709_v30, %v722_v43  ;;  %v723_v34 = vadd.f32 %v697_v50, %v662_v24 }
  0xf0   : > { %3188 = vmatprep.subr.bf16.mxu0 %v3187_v53  ;;  %v4235_v26 = vadd.f32 %v582_v6, %v547_v36  ;;  %v663_v41 = vadd.f32 %v637_v21, %v4146_v38  ;;  %v664_v0 = vadd.f32 %v638_v29, %v4136_v3  ;;  %v621_v3 = vmul.f32 %v3668_v5, %v5517_v28 }
  0xf1   : > { %1028 = vrot.lane.b32.xlu1 %v4211_v35, %s3549_s26  ;;  %v4251_v54 = vmax.f32 %v751_v40, 0.0  ;;  %v4274_v60 = vmax.f32 %v752_v52, 0.0  ;;  %v753_v31 = vadd.f32 %v3709_v30, %v723_v34  ;;  %v639_v62 = vmul.f32 %v3668_v5, %v3875_v17 }
  0xf2   : > { %v724_v27 = vadd.f32 %v698_v19, %v663_v41  ;;  %v725_v20 = vadd.f32 %v699_v7, %v664_v0  ;;  %v647_v10 = vadd.f32 %v621_v3, %v5518_v25  ;;  %v700_v36 = vmul.f32 %v3686_v18, %v5513_v8 }
  0xf3   : > { %829 = vrot.lane.b32.xlu0 %v4110_v15, %s3546_s23  ;;  %3190 = vmatpush3.bf16.msra.mxu0 %v3187_v53  ;;  %v4283_v59 = vmax.f32 %v753_v31, 0.0  ;;  %v5519_v53 = vld [vmem:[#allocation4_spill] sm:$0xff]  ;;  %v640_v11 = vmul.f32 %v3668_v5, %v5513_v8  ;;  %v665_v48 = vadd.f32 %v639_v62, %v4192_v61  ;;  %v701_v8 = vmul.f32 %v3686_v18, %v5516_v16 }
  0xf4   : > { %v754_v38 = vadd.f32 %v3709_v30, %v724_v27  ;;  %v755_v37 = vadd.f32 %v3709_v30, %v725_v20  ;;  %v682_v14 = vmul.f32 %v3686_v18, %v5519_v53  ;;  %v641_v27 = vmul.f32 %v3668_v5, %v5516_v16  ;;  %v5520_v16 = vld [vmem:[#allocation6_spill] sm:$0xff] }
  0xf5   : > { %831 = vrot.lane.b32.xlu1 %v4185_v2, %s3546_s23  ;;  %v726_v33 = vadd.f32 %v700_v36, %v665_v48  ;;  %v666_v22 = vadd.f32 %v640_v11, %v4194_v55  ;;  %v642_v0 = vmul.f32 %v3668_v5, %v5515_v45  ;;  %v702_v7 = vmul.f32 %v3686_v18, %v5515_v45 }
  0xf6   : > { %v4311_v6 = vmax.f32 %v754_v38, 0.0  ;;  %v708_v1 = vadd.f32 %v682_v14, %v647_v10  ;;  %v4324_v4 = vmax.f32 %v755_v37, 0.0  ;;  %v667_v20 = vadd.f32 %v641_v27, %v4224_v63  ;;  %v5522_v10 = vld [vmem:[#allocation15_spill] sm:$0xff]  ;;  %v5523_v14 = vld [vmem:[#allocation16_spill] sm:$0xff] }
  0xf7   : > { %896 = vrot.lane.b32.xlu0 %v4185_v2, %s3547_s24  ;;  %v756_v61 = vadd.f32 %v3709_v30, %v726_v33  ;;  %v727_v43 = vadd.f32 %v701_v8, %v666_v22  ;;  %v5521_v3 = vmax.f32 %v5520_v16, 0.0  ;;  %v668_v37 = vadd.f32 %v642_v0, %v5522_v10  ;;  %v5525_v27 = vld [vmem:[#allocation8_spill] sm:$0xff] }
  0xf8   : > { %v738_v17 = vadd.f32 %v3709_v30, %v708_v1  ;;  %v728_v45 = vadd.f32 %v702_v7, %v667_v20  ;;  %v643_v22 = vmul.f32 %v3668_v5, %v5523_v14  ;;  %v705_v7 = vmul.f32 %v3686_v18, %v4007_v58 }
  0xf9   : > { %898 = vrot.lane.b32.xlu1 %v4211_v35, %s3547_s24  ;;  %v4350_v34 = vmax.f32 %v756_v61, 0.0  ;;  %v757_v31 = vadd.f32 %v3709_v30, %v727_v43  ;;  %v704_v61 = vmul.f32 %v3686_v18, %v3997_v51 }
  0xfa   : > { %v764_v47 = vmax.f32 %v738_v17, 0.0  ;;  %v758_v48 = vadd.f32 %v3709_v30, %v728_v45 }
  0xfb   : > { %963 = vrot.lane.b32.xlu0 %v4211_v35, %s3548_s25  ;;  %v4366_v38 = vmax.f32 %v757_v31, 0.0 }
  0xfd   : > { %965 = vrot.lane.b32.xlu1 %v4242_v12, %s3548_s25 }
  0xff   : > { %1030 = vrot.lane.b32.xlu0 %v4242_v12, %s3549_s26 }
 0x101   : > { %1032 = vrot.lane.b32.xlu1 %v4251_v54, %s3549_s26 }
 0x103   : > { %833 = vrot.lane.b32.xlu0 %v4211_v35, %s3546_s23 }
 0x105   : > { %835 = vrot.lane.b32.xlu1 %v4242_v12, %s3546_s23 }
 0x107   : > { %900 = vrot.lane.b32.xlu0 %v4242_v12, %s3547_s24 }
 0x109   : > { %902 = vrot.lane.b32.xlu1 %v4251_v54, %s3547_s24 }
 0x10b   : > { %967 = vrot.lane.b32.xlu0 %v4251_v54, %s3548_s25 }
 0x10d   : > { %969 = vrot.lane.b32.xlu1 %v4274_v60, %s3548_s25 }
 0x10f   : > { %1034 = vrot.lane.b32.xlu0 %v4274_v60, %s3549_s26 }
 0x111   : > { %1036 = vrot.lane.b32.xlu1 %v4283_v59, %s3549_s26 }
 0x113   : > { %837 = vrot.lane.b32.xlu0 %v4251_v54, %s3546_s23 }
 0x115   : > { %839 = vrot.lane.b32.xlu1 %v4274_v60, %s3546_s23 }
 0x117   : > { %904 = vrot.lane.b32.xlu0 %v4274_v60, %s3547_s24 }
 0x119   : > { %906 = vrot.lane.b32.xlu1 %v4283_v59, %s3547_s24 }
 0x11b   : > { %971 = vrot.lane.b32.xlu0 %v4283_v59, %s3548_s25 }
 0x11d   : > { %v814_v32 = vpop.permute.xlu0 %813  ;;  %973 = vrot.lane.b32.xlu1 %v4311_v6, %s3548_s25  ;;  %v881_v40 = vpop.permute.xlu1 %880 }
 0x11e   : > { %v1081_v24 = vsel %vm1080_vm0, %v764_v47, %v814_v32  ;;  %v703_v32 = vmul.f32 %v3686_v18, %v5523_v14  ;;  %v644_v47 = vmul.f32 %v3668_v5, %v3997_v51 }
 0x11f   : > { %1038 = vrot.lane.b32.xlu0 %v4311_v6, %s3549_s26  ;;  %v1104_v52 = vsel %vm1103_vm1, %v1081_v24, %v881_v40 }
 0x120   : > { %v729_v36 = vadd.f32 %v703_v32, %v668_v37  ;;  %v670_v51 = vadd.f32 %v644_v47, %v4037_v23 }
 0x121   : > { %1040 = vrot.lane.b32.xlu1 %v4324_v4, %s3549_s26  ;;  %v816_v46 = vpop.permute.xlu0 %815  ;;  %v948_v55 = vpop.permute.xlu1 %947 }
 0x122   : > { %v1127_v21 = vsel %vm1126_vm2, %v1104_v52, %v948_v55  ;;  %v1082_v25 = vsel %vm1080_vm0, %v5521_v3, %v816_v46  ;;  %v4392_v46 = vmax.f32 %v758_v48, 0.0  ;;  %v759_v33 = vadd.f32 %v3709_v30, %v729_v36 }
 0x123   : > { %841 = vrot.lane.b32.xlu0 %v4283_v59, %s3546_s23  ;;  %v669_v55 = vadd.f32 %v643_v22, %v4235_v26  ;;  %v731_v16 = vadd.f32 %v705_v7, %v670_v51  ;;  %v706_v36 = vmul.f32 %v3686_v18, %v4322_v56 }
 0x124   : > { %v4405_v24 = vmax.f32 %v759_v33, 0.0 }
 0x125   : > { %843 = vrot.lane.b32.xlu1 %v4311_v6, %s3546_s23  ;;  %v883_v50 = vpop.permute.xlu0 %882  ;;  %v730_v26 = vadd.f32 %v704_v61, %v669_v55 }
 0x126   : > { %v1105_v53 = vsel %vm1103_vm1, %v1082_v25, %v883_v50  ;;  %v5524_v50 = vld [vmem:[#allocation7_spill] sm:$0xff] }
 0x127   : > { %908 = vrot.lane.b32.xlu0 %v4311_v6, %s3547_s24  ;;  %v760_v10 = vadd.f32 %v3709_v30, %v730_v26  ;;  %v645_v30 = vmul.f32 %v3668_v5, %v4007_v58 }
 0x129   : > { %910 = vrot.lane.b32.xlu1 %v4324_v4, %s3547_s24  ;;  %v786_v45 = vmax.f32 %v760_v10, 0.0 }
 0x12b   : > { %975 = vrot.lane.b32.xlu0 %v4324_v4, %s3548_s25  ;;  %v950_v41 = vpop.permute.xlu1 %949  ;;  %v1015_v19 = vpop.permute.xlu0 %1014 }
 0x12c   : > { %v1150_v29 = vsel %vm1149_vm3, %v1127_v21, %v1015_v19  ;;  %v1128_v62 = vsel %vm1126_vm2, %v1105_v53, %v950_v41 }
 0x12d   : > { %977 = vrot.lane.b32.xlu1 %v4350_v34, %s3548_s25  ;;  %3067 = vmatprep.mubr.msk.f32.mxu0 %vm1186_vm4, %v1150_v29 }
 0x12f   : > { %1042 = vrot.lane.b32.xlu0 %v4350_v34, %s3549_s26  ;;  %v818_v28 = vpop.permute.xlu1 %817 }
 0x130   : > { %v1083_v52 = vsel %vm1080_vm0, %v5524_v50, %v818_v28 }
 0x131   : > { %1044 = vrot.lane.b32.xlu1 %v4366_v38, %s3549_s26 }
 0x133   : > { %845 = vrot.lane.b32.xlu0 %v4324_v4, %s3546_s23  ;;  %v820_v63 = vpop.permute.xlu1 %819 }
 0x134   : > { %v1084_v0 = vsel %vm1080_vm0, %v5525_v27, %v820_v63  ;;  %v3536_v63 = vld [vmem:[%s5475_s2] ss:$0 sm:$0xff] }
 0x135   : > { %847 = vrot.lane.b32.xlu1 %v4350_v34, %s3546_s23  ;;  %v1017_v1 = vpop.permute.xlu0 %1016  ;;  %v761_v14 = vadd.f32 %v3536_v63, %v731_v16 }
 0x136   : > { %v1151_v11 = vsel %vm1149_vm3, %v1128_v62, %v1017_v1  ;;  %v671_v62 = vadd.f32 %v645_v30, %v4051_v42  ;;  %v646_v1 = vmul.f32 %v3668_v5, %v4322_v56 }
 0x137   : > { %912 = vrot.lane.b32.xlu0 %v4350_v34, %s3547_s24  ;;  %3068 = vmatmul.mubr.msk.f32.vlgmr.msra.gmra.mrb[0].mxu0 %vm1186_vm4, %v1151_v11  ;;  %v887_v17 = vpop.permute.xlu1 %886  ;;  %v787_v48 = vmax.f32 %v761_v14, 0.0 }
 0x138   : > { %v1107_v20 = vsel %vm1103_vm1, %v1084_v0, %v887_v17  ;;  %v5526_v17 = vld [vmem:[#allocation9_spill] sm:$0xff]  ;;  %v672_v56 = vadd.f32 %v646_v1, %v4053_v39 }
 0x139   : > { %914 = vrot.lane.b32.xlu1 %v4366_v38, %s3547_s24  ;;  %v885_v40 = vpop.permute.xlu0 %884 }
 0x13a   : > { %v1106_v31 = vsel %vm1103_vm1, %v1083_v52, %v885_v40 }
 0x13b   : > { %979 = vrot.lane.b32.xlu0 %v4366_v38, %s3548_s25 }
 0x13d   : > { %981 = vrot.lane.b32.xlu1 %v4392_v46, %s3548_s25  ;;  %v952_v8 = vpop.permute.xlu0 %951 }
 0x13e   : > { %v1129_v21 = vsel %vm1126_vm2, %v1106_v31, %v952_v8  ;;  %v732_v8 = vadd.f32 %v706_v36, %v671_v62 }
 0x13f   : > { %v954_v43 = vpop.permute.xlu1 %953  ;;  %1046 = vrot.lane.b32.xlu0 %v4392_v46, %s3549_s26 }
 0x140   : > { %v1130_v23 = vsel %vm1126_vm2, %v1107_v20, %v954_v43  ;;  %v762_v52 = vadd.f32 %v3536_v63, %v732_v8 }
 0x141   : > { %1048 = vrot.lane.b32.xlu1 %v4405_v24, %s3549_s26  ;;  %v1019_v41 = vpop.permute.xlu0 %1018 }
 0x142   : > { %v1152_v19 = vsel %vm1149_vm3, %v1129_v21, %v1019_v41  ;;  %v788_v51 = vmax.f32 %v762_v52, 0.0 }
 0x143   : > { %v822_v29 = vpop.permute.xlu1 %821  ;;  %849 = vrot.lane.b32.xlu0 %v4366_v38, %s3546_s23  ;;  %3070 = vmatprep.mubr.msk.f32.mxu0 %vm1186_vm4, %v1152_v19 }
 0x144   : > { %v1085_v40 = vsel %vm1080_vm0, %v5526_v17, %v822_v29 }
 0x145   : > { %851 = vrot.lane.b32.xlu1 %v4392_v46, %s3546_s23  ;;  %v1021_v28 = vpop.permute.xlu0 %1020 }
 0x146   : > { %v1153_v3 = vsel %vm1149_vm3, %v1130_v23, %v1021_v28 }
 0x147   : > { %v824_v25 = vpop.permute.xlu1 %823  ;;  %916 = vrot.lane.b32.xlu0 %v4392_v46, %s3547_s24  ;;  %3071 = vmatmul.mubr.msk.f32.gmra.mrb[2].mxu0 %vm1186_vm4, %v1153_v3 }
 0x148   : > { %v1086_v58 = vsel %vm1080_vm0, %v3933_v57, %v824_v25  ;;  %v707_v57 = vmul.f32 %v3686_v18, %v4302_v44 }
 0x149   : > { %918 = vrot.lane.b32.xlu1 %v4405_v24, %s3547_s24  ;;  %v889_v37 = vpop.permute.xlu0 %888 }
 0x14a   : > { %v1108_v33 = vsel %vm1103_vm1, %v1085_v40, %v889_v37  ;;  %v733_v50 = vadd.f32 %v707_v57, %v672_v56 }
 0x14b   : > { %v891_v53 = vpop.permute.xlu1 %890  ;;  %983 = vrot.lane.b32.xlu0 %v4405_v24, %s3548_s25 }
 0x14c   : > { %v1109_v42 = vsel %vm1103_vm1, %v1086_v58, %v891_v53  ;;  %v763_v19 = vadd.f32 %v3536_v63, %v733_v50 }
 0x14d   : > { %985 = vrot.lane.b32.xlu1 %v786_v45, %s3548_s25  ;;  %v956_v32 = vpop.permute.xlu0 %955 }
 0x14e   : > { %v1131_v5 = vsel %vm1126_vm2, %v1108_v33, %v956_v32  ;;  %v789_v29 = vmax.f32 %v763_v19, 0.0 }
 0x14f   : > { %v958_v11 = vpop.permute.xlu1 %957  ;;  %1050 = vrot.lane.b32.xlu0 %v786_v45, %s3549_s26 }
 0x150   : > { %v1132_v47 = vsel %vm1126_vm2, %v1109_v42, %v958_v11 }
 0x151   : > { %1052 = vrot.lane.b32.xlu1 %v787_v48, %s3549_s26  ;;  %v1023_v22 = vpop.permute.xlu0 %1022 }
 0x152   : > { %v1154_v61 = vsel %vm1149_vm3, %v1131_v5, %v1023_v22 }
 0x153   : > { %v1025_v43 = vpop.permute.xlu1 %1024  ;;  %853 = vrot.lane.b32.xlu0 %v4405_v24, %s3546_s23  ;;  %3073 = vmatprep.mubr.msk.f32.mxu0 %vm1186_vm4, %v1154_v61 }
 0x154   : > { %v1155_v55 = vsel %vm1149_vm3, %v1132_v47, %v1025_v43 }
 0x155   : > { %855 = vrot.lane.b32.xlu1 %v786_v45, %s3546_s23  ;;  %3074 = vmatmul.mubr.msk.f32.gmra.mrb[4].mxu0 %vm1186_vm4, %v1155_v55  ;;  %v826_v39 = vpop.permute.xlu0 %825 }
 0x156   : > { %v1087_v26 = vsel %vm1080_vm0, %v3999_v49, %v826_v39 }
 0x157   : > { %v828_v31 = vpop.permute.xlu1 %827  ;;  %920 = vrot.lane.b32.xlu0 %v786_v45, %s3547_s24 }
 0x158   : > { %v1088_v27 = vsel %vm1080_vm0, %v4035_v13, %v828_v31 }
 0x159   : > { %922 = vrot.lane.b32.xlu1 %v787_v48, %s3547_s24  ;;  %v893_v21 = vpop.permute.xlu0 %892 }
 0x15a   : > { %v1110_v0 = vsel %vm1103_vm1, %v1087_v26, %v893_v21 }
 0x15b   : > { %v895_v41 = vpop.permute.xlu1 %894  ;;  %987 = vrot.lane.b32.xlu0 %v787_v48, %s3548_s25 }
 0x15c   : > { %v1111_v7 = vsel %vm1103_vm1, %v1088_v27, %v895_v41 }
 0x15d   : > { %989 = vrot.lane.b32.xlu1 %v788_v51, %s3548_s25  ;;  %v960_v18 = vpop.permute.xlu0 %959 }
 0x15e   : > { %v1133_v20 = vsel %vm1126_vm2, %v1110_v0, %v960_v18 }
 0x15f   : > { %v962_v44 = vpop.permute.xlu1 %961  ;;  %1054 = vrot.lane.b32.xlu0 %v788_v51, %s3549_s26 }
 0x160   : > { %v1134_v28 = vsel %vm1126_vm2, %v1111_v7, %v962_v44 }
 0x161   : > { %1056 = vrot.lane.b32.xlu1 %v789_v29, %s3549_s26  ;;  %v1027_v23 = vpop.permute.xlu0 %1026 }
 0x162   : > { %v1156_v16 = vsel %vm1149_vm3, %v1133_v20, %v1027_v23 }
 0x163   : > { %v1029_v3 = vpop.permute.xlu1 %1028  ;;  %3076 = vmatprep.mubr.msk.f32.mxu0 %vm1186_vm4, %v1156_v16 }
 0x164   : > { %v1157_v49 = vsel %vm1149_vm3, %v1134_v28, %v1029_v3 }
 0x165   : > { %3077 = vmatmul.mubr.msk.f32.gmra.mrb[6].mxu0 %vm1186_vm4, %v1157_v49  ;;  %v830_v13 = vpop.permute.xlu0 %829 }
 0x166   : > { %v1089_v63 = vsel %vm1080_vm0, %v4082_v9, %v830_v13 }
 0x167   : > { %v832_v25 = vpop.permute.xlu1 %831 }
 0x168   : > { %v1090_v14 = vsel %vm1080_vm0, %v4110_v15, %v832_v25 }
 0x169   : > { %v897_v10 = vpop.permute.xlu0 %896 }
 0x16a   : > { %v1112_v30 = vsel %vm1103_vm1, %v1089_v63, %v897_v10 }
 0x16b   : > { %v899_v37 = vpop.permute.xlu1 %898 }
 0x16c   : > { %v1113_v32 = vsel %vm1103_vm1, %v1090_v14, %v899_v37 }
 0x16d   : > { %v964_v53 = vpop.permute.xlu0 %963 }
 0x16e   : > { %v1135_v62 = vsel %vm1126_vm2, %v1112_v30, %v964_v53 }
 0x16f   : > { %v966_v45 = vpop.permute.xlu1 %965 }
 0x170   : > { %v1136_v36 = vsel %vm1126_vm2, %v1113_v32, %v966_v45 }
 0x171   : > { %v1031_v1 = vpop.permute.xlu0 %1030 }
 0x172   : > { %v1158_v11 = vsel %vm1149_vm3, %v1135_v62, %v1031_v1 }
 0x173   : > { %v1033_v48 = vpop.permute.xlu1 %1032  ;;  %3079 = vmatprep.mubr.msk.f32.mxu0 %vm1186_vm4, %v1158_v11 }
 0x174   : > { %v1159_v17 = vsel %vm1149_vm3, %v1136_v36, %v1033_v48 }
 0x175   : > { %3080 = vmatmul.mubr.msk.f32.gmra.mrb[8].mxu0 %vm1186_vm4, %v1159_v17  ;;  %v834_v9 = vpop.permute.xlu0 %833 }
 0x176   : > { %v1091_v5 = vsel %vm1080_vm0, %v4185_v2, %v834_v9 }
 0x177   : > { %v836_v15 = vpop.permute.xlu1 %835 }
 0x178   : > { %v1092_v22 = vsel %vm1080_vm0, %v4211_v35, %v836_v15 }
 0x179   : > { %v901_v40 = vpop.permute.xlu0 %900 }
 0x17a   : > { %v1114_v56 = vsel %vm1103_vm1, %v1091_v5, %v901_v40 }
 0x17b   : > { %v903_v58 = vpop.permute.xlu1 %902 }
 0x17c   : > { %v1115_v8 = vsel %vm1103_vm1, %v1092_v22, %v903_v58 }
 0x17d   : > { %v968_v33 = vpop.permute.xlu0 %967 }
 0x17e   : > { %v1137_v47 = vsel %vm1126_vm2, %v1114_v56, %v968_v33 }
 0x17f   : > { %v970_v42 = vpop.permute.xlu1 %969 }
 0x180   : > { %v1138_v43 = vsel %vm1126_vm2, %v1115_v8, %v970_v42 }
 0x181   : > { %v1035_v61 = vpop.permute.xlu0 %1034 }
 0x182   : > { %v1160_v55 = vsel %vm1149_vm3, %v1137_v47, %v1035_v61 }
 0x183   : > { %v1037_v57 = vpop.permute.xlu1 %1036  ;;  %3082 = vmatprep.mubr.msk.f32.mxu0 %vm1186_vm4, %v1160_v55 }
 0x184   : > { %v1161_v39 = vsel %vm1149_vm3, %v1138_v43, %v1037_v57 }
 0x185   : > { %3083 = vmatmul.mubr.msk.f32.gmra.mrb[10].mxu0 %vm1186_vm4, %v1161_v39  ;;  %v838_v2 = vpop.permute.xlu0 %837 }
 0x186   : > { %v1093_v41 = vsel %vm1080_vm0, %v4242_v12, %v838_v2 }
 0x187   : > { %v840_v35 = vpop.permute.xlu1 %839 }
 0x188   : > { %v1094_v51 = vsel %vm1080_vm0, %v4251_v54, %v840_v35 }
 0x189   : > { %v905_v50 = vpop.permute.xlu0 %904 }
 0x18a   : > { %v1116_v19 = vsel %vm1103_vm1, %v1093_v41, %v905_v50 }
 0x18b   : > { %v907_v52 = vpop.permute.xlu1 %906 }
 0x18c   : > { %v1117_v18 = vsel %vm1103_vm1, %v1094_v51, %v907_v52 }
 0x18d   : > { %v972_v31 = vpop.permute.xlu0 %971 }
 0x18e   : > { %v1139_v44 = vsel %vm1126_vm2, %v1116_v19, %v972_v31 }
 0x18f   : > { %v974_v21 = vpop.permute.xlu1 %973 }
 0x190   : > { %v1140_v26 = vsel %vm1126_vm2, %v1117_v18, %v974_v21 }
 0x191   : > { %v1039_v29 = vpop.permute.xlu0 %1038 }
 0x192   : > { %v1162_v27 = vsel %vm1149_vm3, %v1139_v44, %v1039_v29 }
 0x193   : > { %v1041_v0 = vpop.permute.xlu1 %1040  ;;  %3085 = vmatprep.mubr.msk.f32.mxu0 %vm1186_vm4, %v1162_v27 }
 0x194   : > { %v1163_v7 = vsel %vm1149_vm3, %v1140_v26, %v1041_v0 }
 0x195   : > { %3086 = vmatmul.mubr.msk.f32.gmra.mrb[12].mxu0 %vm1186_vm4, %v1163_v7  ;;  %v842_v12 = vpop.permute.xlu0 %841 }
 0x196   : > { %v1095_v3 = vsel %vm1080_vm0, %v4274_v60, %v842_v12 }
 0x197   : > { %v844_v54 = vpop.permute.xlu1 %843 }
 0x198   : > { %v1096_v49 = vsel %vm1080_vm0, %v4283_v59, %v844_v54 }
 0x199   : > { %v909_v20 = vpop.permute.xlu0 %908 }
 0x19a   : > { %v1118_v13 = vsel %vm1103_vm1, %v1095_v3, %v909_v20  ;;  %v3550_v20 = vmov 0.0|0.0  }
 0x19b   : > { %v911_v23 = vpop.permute.xlu1 %910  ;;  %3191 = vmatprep.subr.bf16.mxu1 %v3550_v20  ;;  %3221 = vmatprep.subr.bf16.mxu0 %v3550_v20 }
 0x19c   : > { %v1119_v25 = vsel %vm1103_vm1, %v1096_v49, %v911_v23  ;;  %v4590_v49 = vld [vmem:[%s5475_s2 + $0x1] ss:$0 sm:$0xff] }
 0x19d   : > { %v976_v28 = vpop.permute.xlu0 %975 }
 0x19e   : > { %v1141_v10 = vsel %vm1126_vm2, %v1118_v13, %v976_v28  ;;  %v1698_v28 = vld [vmem:[%s5474_s1 + $0x68] sm:$0xff] }
 0x19f   : > { %v978_v16 = vpop.permute.xlu1 %977 }
 0x1a0   : > { %v1142_v53 = vsel %vm1126_vm2, %v1119_v25, %v978_v16  ;;  %v1699_v16 = vld [vmem:[%s5474_s1 + $0x70] sm:$0xff] }
 0x1a1   : > { %v1043_v37 = vpop.permute.xlu0 %1042  ;;  %v3195_v3 = vpack.c.bf16 %v1699_v16, %v1698_v28 }
 0x1a2   : > { %v1164_v45 = vsel %vm1149_vm3, %v1141_v10, %v1043_v37 }
 0x1a3   : > { %v1045_v63 = vpop.permute.xlu1 %1044  ;;  %3088 = vmatprep.mubr.msk.f32.mxu0 %vm1186_vm4, %v1164_v45  ;;  %v1700_v45 = vld [vmem:[%s5474_s1 + $0x78] sm:$0xff] }
 0x1a4   : > { %v1165_v14 = vsel %vm1149_vm3, %v1142_v53, %v1045_v63  ;;  %v1701_v63 = vld [vmem:[%s5474_s1 + $0x80] sm:$0xff] }
 0x1a5   : > { %3089 = vmatmul.mubr.msk.f32.gmra.mrb[14].mxu0 %vm1186_vm4, %v1165_v14  ;;  %v846_v60 = vpop.permute.xlu0 %845  ;;  %v1702_v14 = vld [vmem:[%s5474_s1 + $0x88] sm:$0xff] }
 0x1a6   : > { %v1097_v36 = vsel %vm1080_vm0, %v4311_v6, %v846_v60 }
 0x1a7   : > { %v848_v59 = vpop.permute.xlu1 %847 }
 0x1a8   : > { %v1098_v11 = vsel %vm1080_vm0, %v4324_v4, %v848_v59  ;;  %v3198_v59 = vpack.c.bf16 %v1701_v63, %v1700_v45 }
 0x1a9   : > { %v913_v30 = vpop.permute.xlu0 %912 }
 0x1aa   : > { %v1120_v48 = vsel %vm1103_vm1, %v1097_v36, %v913_v30  ;;  %v1703_v30 = vld [vmem:[%s5474_s1 + $0x90] sm:$0xff]  ;;  %v1705_v36 = vld [vmem:[%s5474_s1 + $0xa0] sm:$0xff] }
 0x1ab   : > { %v915_v32 = vpop.permute.xlu1 %914 }
 0x1ac   : > { %v1121_v17 = vsel %vm1103_vm1, %v1098_v11, %v915_v32 }
 0x1ad   : > { %v980_v62 = vpop.permute.xlu0 %979 }
 0x1ae   : > { %v1143_v9 = vsel %vm1126_vm2, %v1120_v48, %v980_v62  ;;  %v3201_v62 = vpack.c.bf16 %v1703_v30, %v1702_v14  ;;  %v1706_v48 = vld [vmem:[%s5474_s1 + $0xa8] sm:$0xff] }
 0x1af   : > { %v982_v1 = vpop.permute.xlu1 %981 }
 0x1b0   : > { %v1144_v40 = vsel %vm1126_vm2, %v1121_v17, %v982_v1  ;;  %v1704_v1 = vld [vmem:[%s5474_s1 + $0x98] sm:$0xff]  ;;  %v1707_v17 = vld [vmem:[%s5474_s1 + $0xb0] sm:$0xff] }
 0x1b1   : > { %v1047_v15 = vpop.permute.xlu0 %1046  ;;  %v3204_v11 = vpack.c.bf16 %v1705_v36, %v1704_v1 }
 0x1b2   : > { %v1166_v58 = vsel %vm1149_vm3, %v1143_v9, %v1047_v15  ;;  %v3207_v9 = vpack.c.bf16 %v1707_v17, %v1706_v48 }
 0x1b3   : > { %v1049_v33 = vpop.permute.xlu1 %1048  ;;  %3091 = vmatprep.mubr.msk.f32.mxu0 %vm1186_vm4, %v1166_v58 }
 0x1b4   : > { %v1167_v42 = vsel %vm1149_vm3, %v1144_v40, %v1049_v33 }
 0x1b5   : > { %3092 = vmatmul.mubr.msk.f32.gmra.mrb[16].mxu0 %vm1186_vm4, %v1167_v42  ;;  %v850_v6 = vpop.permute.xlu0 %849 }
 0x1b6   : > { %v1099_v47 = vsel %vm1080_vm0, %v4350_v34, %v850_v6  ;;  %v1708_v6 = vld [vmem:[%s5474_s1 + $0xb8] sm:$0xff] }
 0x1b7   : > { %v852_v4 = vpop.permute.xlu1 %851 }
 0x1b8   : > { %v1100_v61 = vsel %vm1080_vm0, %v4366_v38, %v852_v4  ;;  %v1709_v4 = vld [vmem:[%s5474_s1 + $0xc0] sm:$0xff] }
 0x1b9   : > { %v917_v5 = vpop.permute.xlu0 %916 }
 0x1ba   : > { %v1122_v43 = vsel %vm1103_vm1, %v1099_v47, %v917_v5  ;;  %v1710_v5 = vld [vmem:[%s5474_s1 + $0xc8] sm:$0xff] }
 0x1bb   : > { %v919_v22 = vpop.permute.xlu1 %918 }
 0x1bc   : > { %v1123_v55 = vsel %vm1103_vm1, %v1100_v61, %v919_v22 }
 0x1bd   : > { %v984_v56 = vpop.permute.xlu0 %983 }
 0x1be   : > { %v1145_v57 = vsel %vm1126_vm2, %v1122_v43, %v984_v56  ;;  %v3210_v56 = vpack.c.bf16 %v1709_v4, %v1708_v6 }
 0x1bf   : > { %v986_v8 = vpop.permute.xlu1 %985 }
 0x1c0   : > { %v1146_v2 = vsel %vm1126_vm2, %v1123_v55, %v986_v8  ;;  %v1711_v8 = vld [vmem:[%s5474_s1 + $0xd0] sm:$0xff]  ;;  %v1712_v55 = vld [vmem:[%s5474_s1 + $0xd8] sm:$0xff] }
 0x1c1   : > { %v1051_v39 = vpop.permute.xlu0 %1050  ;;  %v3213_v43 = vpack.c.bf16 %v1711_v8, %v1710_v5 }
 0x1c2   : > { %v1168_v35 = vsel %vm1149_vm3, %v1145_v57, %v1051_v39  ;;  %v1713_v57 = vld [vmem:[%s5474_s1 + $0xe0] sm:$0xff] }
 0x1c3   : > { %v1053_v50 = vpop.permute.xlu1 %1052  ;;  %3094 = vmatprep.mubr.msk.f32.mxu0 %vm1186_vm4, %v1168_v35  ;;  %v1714_v35 = vld [vmem:[%s5474_s1 + $0xe8] sm:$0xff] }
 0x1c4   : > { %v1169_v52 = vsel %vm1149_vm3, %v1146_v2, %v1053_v50  ;;  %v3216_v2 = vpack.c.bf16 %v1713_v57, %v1712_v55  ;;  %v1715_v50 = vld [vmem:[%s5474_s1 + $0xf0] sm:$0xff] }
 0x1c5   : > { %3095 = vmatmul.mubr.msk.f32.gmra.mrb[18].mxu0 %vm1186_vm4, %v1169_v52  ;;  %v854_v34 = vpop.permute.xlu0 %853 }
 0x1c6   : > { %v1101_v19 = vsel %vm1080_vm0, %v4392_v46, %v854_v34  ;;  %v1696_v46 = vld [vmem:[%s5474_s1 + $0x58] sm:$0xff] }
 0x1c7   : > { %v856_v38 = vpop.permute.xlu1 %855 }
 0x1c8   : > { %v1102_v18 = vsel %vm1080_vm0, %v4405_v24, %v856_v38  ;;  %v1697_v24 = vld [vmem:[%s5474_s1 + $0x60] sm:$0xff] }
 0x1c9   : > { %v921_v31 = vpop.permute.xlu0 %920  ;;  %v3192_v23 = vpack.c.bf16 %v1697_v24, %v1696_v46 }
 0x1ca   : > { %v1124_v44 = vsel %vm1103_vm1, %v1101_v19, %v921_v31  ;;  %v3219_v31 = vpack.c.bf16 %v1715_v50, %v1714_v35 }
 0x1cb   : > { %v923_v21 = vpop.permute.xlu1 %922  ;;  %3193 = vmatpush1.bf16.msra.mxu1 %v3192_v23 }
 0x1cc   : > { %v1125_v29 = vsel %vm1103_vm1, %v1102_v18, %v923_v21  ;;  %3194 = vmatprep.subr.bf16.mxu1 %v3550_v20 }
 0x1cd   : > { %v988_v41 = vpop.permute.xlu0 %987 }
 0x1ce   : > { %v1147_v26 = vsel %vm1126_vm2, %v1124_v44, %v988_v41 }
 0x1cf   : > { %v990_v51 = vpop.permute.xlu1 %989  ;;  %3196 = vmatpush1.bf16.msra.mxu1 %v3195_v3 }
 0x1d0   : > { %v1148_v0 = vsel %vm1126_vm2, %v1125_v29, %v990_v51  ;;  %3197 = vmatprep.subr.bf16.mxu1 %v3550_v20 }
 0x1d1   : > { %v1055_v27 = vpop.permute.xlu0 %1054 }
 0x1d2   : > { %v1170_v7 = vsel %vm1149_vm3, %v1147_v26, %v1055_v27 }
 0x1d3   : > { %v1057_v12 = vpop.permute.xlu1 %1056  ;;  %3097 = vmatprep.mubr.msk.f32.mxu0 %vm1186_vm4, %v1170_v7  ;;  %3199 = vmatpush1.bf16.msra.mxu1 %v3198_v59 }
 0x1d4   : > { %v1171_v54 = vsel %vm1149_vm3, %v1148_v0, %v1057_v12  ;;  %3200 = vmatprep.subr.bf16.mxu1 %v3550_v20 }
 0x1d5   : > { %3098 = vmatmul.mubr.msk.f32.gmra.mrb[20].mxu0 %vm1186_vm4, %v1171_v54 }
 0x1d7   : > { %3202 = vmatpush1.bf16.msra.mxu1 %v3201_v62 }
 0x1d8   : > { %3203 = vmatprep.subr.bf16.mxu1 %v3550_v20 }
 0x1db   : > { %3205 = vmatpush1.bf16.msra.mxu1 %v3204_v11 }
 0x1dc   : > { %3206 = vmatprep.subr.bf16.mxu1 %v3550_v20 }
 0x1df   : > { %3208 = vmatpush1.bf16.msra.mxu1 %v3207_v9 }
 0x1e0   : > { %3209 = vmatprep.subr.bf16.mxu1 %v3550_v20 }
 0x1e3   : > { %3211 = vmatpush1.bf16.msra.mxu1 %v3210_v56 }
 0x1e4   : > { %3212 = vmatprep.subr.bf16.mxu1 %v3550_v20 }
 0x1e7   : > { %3214 = vmatpush1.bf16.msra.mxu1 %v3213_v43 }
 0x1e8   : > { %3215 = vmatprep.subr.bf16.mxu1 %v3550_v20 }
 0x1eb   : > { %3217 = vmatpush1.bf16.msra.mxu1 %v3216_v2 }
 0x1ec   : > { %3218 = vmatprep.subr.bf16.mxu1 %v3550_v20 }
 0x1ef   : > { %3220 = vmatpush1.bf16.msra.mxu1 %v3219_v31 }
 0x1f0   : > { %3245 = vmatprep.subr.bf16.mxu1 %v3550_v20 }
 0x20a   : > { %v3069_v13 = vpop.f32.mrb[0].mxu0 }
 0x20b   : > { %v1325_v25 = vadd.f32 %v3069_v13, %v4590_v49  ;;  %v1319_v10 = vpop.f32.mrb[1].mxu0 }
 0x20c   : > { %v1320_v37 = vadd.f32 %v4590_v49, %v1319_v10 }
 0x20d   : > { %v1429_v53 = vmax.f32 %v1325_v25, 0.0 }
 0x20e   : > { %v1428_v60 = vmax.f32 %v1320_v37, 0.0 }
 0x210   : > { %v4606_v32 = vmax.f32 %v1428_v60, %v1429_v53 }
 0x21a   : > { %v3072_v15 = vpop.f32.mrb[2].mxu0 }
 0x21b   : > { %v1335_v40 = vadd.f32 %v3072_v15, %v4590_v49  ;;  %v1329_v58 = vpop.f32.mrb[3].mxu0 }
 0x21c   : > { %v1330_v33 = vadd.f32 %v4590_v49, %v1329_v58 }
 0x21d   : > { %v1431_v42 = vmax.f32 %v1335_v40, 0.0 }
 0x21e   : > { %v1430_v22 = vmax.f32 %v1330_v33, 0.0 }
 0x220   : > { %v4638_v47 = vmax.f32 %v1429_v53, %v1430_v22  ;;  %v4640_v61 = vmax.f32 %v1430_v22, %v1431_v42 }
 0x222   : > { %v3336_v39 = vpack.i.bf16 %v4640_v61, %v4638_v47 }
 0x224   : > { %3337 = vrot.lane.b32.xlu0 %v3336_v39, %s3547_s24 }
 0x228   : > { %v3075_v52 = vpop.f32.mrb[4].mxu0 }
 0x229   : > { %v1345_v34 = vadd.f32 %v3075_v52, %v4590_v49  ;;  %v1339_v38 = vpop.f32.mrb[5].mxu0 }
 0x22a   : > { %v1340_v21 = vadd.f32 %v4590_v49, %v1339_v38 }
 0x22b   : > { %v1433_v41 = vmax.f32 %v1345_v34, 0.0 }
 0x22c   : > { %v1432_v51 = vmax.f32 %v1340_v21, 0.0 }
 0x22e   : > { %v4662_v19 = vmax.f32 %v1431_v42, %v1432_v51  ;;  %v4664_v18 = vmax.f32 %v1432_v51, %v1433_v41 }
 0x230   : > { %2944 = vmatprep.mubr.msk.f32.mxu1 %vm1103_vm1, %v4664_v18  ;;  %v3346_v44 = vpack.i.bf16 %v4664_v18, %v4662_v19  ;;  %v3341_v29 = vpack.i.bf16 %v4662_v19, %v4640_v61 }
 0x232   : > { %3347 = vrot.lane.b32.xlu0 %v3346_v44, %s3551_s20  ;;  %3342 = vrot.lane.b32.xlu1 %v3341_v29, %s3549_s26 }
 0x236   : > { %3352 = vrot.lane.b32.xlu1 %v3346_v44, %s3547_s24 }
 0x238   : > { %v3078_v26 = vpop.f32.mrb[6].mxu0 }
 0x239   : > { %v1355_v27 = vadd.f32 %v3078_v26, %v4590_v49  ;;  %v1349_v0 = vpop.f32.mrb[7].mxu0 }
 0x23a   : > { %v1350_v7 = vadd.f32 %v4590_v49, %v1349_v0 }
 0x23b   : > { %v1435_v12 = vmax.f32 %v1355_v27, 0.0 }
 0x23c   : > { %v1434_v54 = vmax.f32 %v1350_v7, 0.0 }
 0x23e   : > { %v4678_v46 = vmax.f32 %v1433_v41, %v1434_v54  ;;  %v4680_v24 = vmax.f32 %v1434_v54, %v1435_v12 }
 0x240   : > { %v3361_v23 = vpack.i.bf16 %v4680_v24, %v4678_v46  ;;  %v3356_v28 = vpack.i.bf16 %v4678_v46, %v4664_v18 }
 0x242   : > { %3362 = vrot.lane.b32.xlu1 %v3361_v23, %s3551_s20  ;;  %3357 = vrot.lane.b32.xlu0 %v3356_v28, %s3549_s26 }
 0x246   : > { %3367 = vrot.lane.b32.xlu0 %v3361_v23, %s3547_s24 }
 0x248   : > { %v3081_v16 = vpop.f32.mrb[8].mxu0 }
 0x249   : > { %v1365_v3 = vadd.f32 %v3081_v16, %v4590_v49  ;;  %v1359_v13 = vpop.f32.mrb[9].mxu0 }
 0x24a   : > { %v1360_v25 = vadd.f32 %v4590_v49, %v1359_v13 }
 0x24b   : > { %v1437_v10 = vmax.f32 %v1365_v3, 0.0 }
 0x24c   : > { %v1436_v37 = vmax.f32 %v1360_v25, 0.0 }
 0x24e   : > { %v4691_v53 = vmax.f32 %v1435_v12, %v1436_v37  ;;  %v4693_v45 = vmax.f32 %v1436_v37, %v1437_v10 }
 0x250   : > { %v3376_v63 = vpack.i.bf16 %v4693_v45, %v4691_v53  ;;  %v3371_v14 = vpack.i.bf16 %v4691_v53, %v4680_v24 }
 0x252   : > { %3377 = vrot.lane.b32.xlu0 %v3376_v63, %s3551_s20  ;;  %3372 = vrot.lane.b32.xlu1 %v3371_v14, %s3549_s26 }
 0x256   : > { %3382 = vrot.lane.b32.xlu1 %v3376_v63, %s3547_s24 }
 0x258   : > { %v3084_v60 = vpop.f32.mrb[10].mxu0 }
 0x259   : > { %v1375_v59 = vadd.f32 %v3084_v60, %v4590_v49  ;;  %v1369_v30 = vpop.f32.mrb[11].mxu0 }
 0x25a   : > { %v1370_v62 = vadd.f32 %v4590_v49, %v1369_v30 }
 0x25b   : > { %v1439_v1 = vmax.f32 %v1375_v59, 0.0 }
 0x25c   : > { %v1438_v36 = vmax.f32 %v1370_v62, 0.0 }
 0x25e   : > { %v4704_v11 = vmax.f32 %v1437_v10, %v1438_v36  ;;  %v4706_v48 = vmax.f32 %v1438_v36, %v1439_v1 }
 0x260   : > { %v3391_v17 = vpack.i.bf16 %v4706_v48, %v4704_v11  ;;  %v3386_v9 = vpack.i.bf16 %v4704_v11, %v4693_v45 }
 0x262   : > { %3392 = vrot.lane.b32.xlu1 %v3391_v17, %s3551_s20  ;;  %3387 = vrot.lane.b32.xlu0 %v3386_v9, %s3549_s26 }
 0x266   : > { %3397 = vrot.lane.b32.xlu0 %v3391_v17, %s3547_s24 }
 0x268   : > { %v3087_v15 = vpop.f32.mrb[12].mxu0 }
 0x269   : > { %v1385_v40 = vadd.f32 %v3087_v15, %v4590_v49  ;;  %v1379_v58 = vpop.f32.mrb[13].mxu0 }
 0x26a   : > { %v1380_v33 = vadd.f32 %v4590_v49, %v1379_v58 }
 0x26b   : > { %v1441_v42 = vmax.f32 %v1385_v40, 0.0 }
 0x26c   : > { %v1440_v6 = vmax.f32 %v1380_v33, 0.0 }
 0x26e   : > { %v4717_v4 = vmax.f32 %v1439_v1, %v1440_v6  ;;  %v4719_v5 = vmax.f32 %v1440_v6, %v1441_v42 }
 0x270   : > { %v3406_v22 = vpack.i.bf16 %v4719_v5, %v4717_v4  ;;  %v3401_v56 = vpack.i.bf16 %v4717_v4, %v4706_v48 }
 0x272   : > { %3407 = vrot.lane.b32.xlu0 %v3406_v22, %s3551_s20  ;;  %3402 = vrot.lane.b32.xlu1 %v3401_v56, %s3549_s26 }
 0x276   : > { %3412 = vrot.lane.b32.xlu1 %v3406_v22, %s3547_s24 }
 0x278   : > { %v3090_v8 = vpop.f32.mrb[14].mxu0 }
 0x279   : > { %v1395_v43 = vadd.f32 %v3090_v8, %v4590_v49  ;;  %v1389_v55 = vpop.f32.mrb[15].mxu0 }
 0x27a   : > { %v1390_v57 = vadd.f32 %v4590_v49, %v1389_v55 }
 0x27b   : > { %v1443_v39 = vmax.f32 %v1395_v43, 0.0 }
 0x27c   : > { %v1442_v2 = vmax.f32 %v1390_v57, 0.0 }
 0x27e   : > { %v4730_v35 = vmax.f32 %v1441_v42, %v1442_v2  ;;  %v4732_v50 = vmax.f32 %v1442_v2, %v1443_v39 }
 0x280   : > { %v3421_v52 = vpack.i.bf16 %v4732_v50, %v4730_v35  ;;  %v3416_v34 = vpack.i.bf16 %v4730_v35, %v4719_v5 }
 0x282   : > { %3422 = vrot.lane.b32.xlu1 %v3421_v52, %s3551_s20  ;;  %3417 = vrot.lane.b32.xlu0 %v3416_v34, %s3549_s26 }
 0x286   : > { %3427 = vrot.lane.b32.xlu0 %v3421_v52, %s3547_s24 }
 0x288   : > { %v3093_v38 = vpop.f32.mrb[16].mxu0 }
 0x289   : > { %v1405_v31 = vadd.f32 %v3093_v38, %v4590_v49  ;;  %v1399_v21 = vpop.f32.mrb[17].mxu0 }
 0x28a   : > { %v1400_v41 = vadd.f32 %v4590_v49, %v1399_v21 }
 0x28b   : > { %v1445_v51 = vmax.f32 %v1405_v31, 0.0 }
 0x28c   : > { %v1444_v44 = vmax.f32 %v1400_v41, 0.0 }
 0x28e   : > { %v4743_v29 = vmax.f32 %v1443_v39, %v1444_v44  ;;  %v4745_v26 = vmax.f32 %v1444_v44, %v1445_v51 }
 0x290   : > { %v3436_v27 = vpack.i.bf16 %v4745_v26, %v4743_v29  ;;  %v3431_v0 = vpack.i.bf16 %v4743_v29, %v4732_v50 }
 0x292   : > { %3437 = vrot.lane.b32.xlu0 %v3436_v27, %s3551_s20  ;;  %3432 = vrot.lane.b32.xlu1 %v3431_v0, %s3549_s26 }
 0x296   : > { %3442 = vrot.lane.b32.xlu1 %v3436_v27, %s3547_s24  ;;  %v3338_v25 = vpop.permute.xlu0 %3337 }
 0x297   : > { %v3339_v37 = vunpack.i.l.bf16 %v3338_v25  ;;  %v3340_v63 = vunpack.i.h.bf16 %v3338_v25 }
 0x298   : > { %v3096_v7 = vpop.f32.mrb[18].mxu0 }
 0x299   : > { %v1415_v12 = vadd.f32 %v3096_v7, %v4590_v49  ;;  %v1409_v54 = vpop.f32.mrb[19].mxu0  ;;  %v1644_v1 = vsel %vm1103_vm1, %v4606_v32, %v3339_v37  ;;  %v1645_v40 = vsel %vm1103_vm1, %v4638_v47, %v3340_v63 }
 0x29a   : > { %v1410_v23 = vadd.f32 %v4590_v49, %v1409_v54 }
 0x29b   : > { %v1447_v28 = vmax.f32 %v1415_v12, 0.0 }
 0x29c   : > { %v1446_v16 = vmax.f32 %v1410_v23, 0.0 }
 0x29e   : > { %v4756_v3 = vmax.f32 %v1445_v51, %v1446_v16  ;;  %v4758_v13 = vmax.f32 %v1446_v16, %v1447_v28 }
 0x2a0   : > { %1621 = vrot.lane.b32.xlu1 %v4756_v3, %s3551_s20  ;;  %v3446_v10 = vpack.i.bf16 %v4756_v3, %v4745_v26 }
 0x2a2   : > { %3447 = vrot.lane.b32.xlu0 %v3446_v10, %s3549_s26 }
 0x2a4   : > { %v3348_v14 = vpop.permute.xlu0 %3347  ;;  %1521 = vrot.lane.b32.xlu1 %v4756_v3, %s3547_s24  ;;  %v3343_v60 = vpop.permute.xlu1 %3342 }
 0x2a5   : > { %v3349_v59 = vunpack.i.l.bf16 %v3348_v14  ;;  %v3345_v30 = vunpack.i.h.bf16 %v3343_v60  ;;  %v3344_v62 = vunpack.i.l.bf16 %v3343_v60  ;;  %v3350_v17 = vunpack.i.h.bf16 %v3348_v14 }
 0x2a6   : > { %1623 = vrot.lane.b32.xlu0 %v4758_v13, %s3551_s20 }
 0x2a7   : > { %v1661_v36 = vsel %vm1149_vm3, %v1644_v1, %v3344_v62  ;;  %v1662_v42 = vsel %vm1149_vm3, %v1645_v40, %v3345_v30 }
 0x2a8   : > { %v3099_v9 = vpop.f32.mrb[20].mxu0  ;;  %v1679_v15 = vsel %vm1678_vm5, %v1661_v36, %v3349_v59  ;;  %v1680_v56 = vsel %vm1678_vm5, %v1662_v42, %v3350_v17  ;;  %v3353_v43 = vpop.permute.xlu1 %3352 }
 0x2a9   : > { %v1425_v58 = vadd.f32 %v3099_v9, %v4590_v49  ;;  %v1419_v33 = vpop.f32.mrb[21].mxu0  ;;  %1820 = vmatmul.mubr.f32.vlgmr.msra.gmra.mrb[0].mxu1 %v1679_v15  ;;  %v3355_v55 = vunpack.i.h.bf16 %v3353_v43 }
 0x2aa   : > { %v1420_v6 = vadd.f32 %v4590_v49, %v1419_v33  ;;  %1573 = vrot.lane.b32.xlu0 %v4758_v13, %s3549_s26  ;;  %2945 = vmatprep.mubr.msk.f32.mxu1 %vm1103_vm1, %v4678_v46  ;;  %v3354_v49 = vunpack.i.l.bf16 %v3353_v43 }
 0x2ab   : > { %v1449_v32 = vmax.f32 %v1425_v58, 0.0  ;;  %v1647_v51 = vsel %vm1103_vm1, %v4662_v19, %v3355_v55 }
 0x2ac   : > { %v1448_v22 = vmax.f32 %v1420_v6, 0.0  ;;  %v1646_v38 = vsel %vm1103_vm1, %v4640_v61, %v3354_v49 }
 0x2ad   : > { %1825 = vmatmul.mubr.f32.gmra.mrb[2].mxu1 %v1680_v56 }
 0x2ae   : > { %v4783_v47 = vmax.f32 %v1447_v28, %v1448_v22  ;;  %v4785_v8 = vmax.f32 %v1448_v22, %v1449_v32  ;;  %2946 = vmatprep.mubr.msk.f32.mxu1 %vm1103_vm1, %v4680_v24 }
 0x2b0   : > { %1625 = vrot.lane.b32.xlu1 %v4783_v47, %s3551_s20 }
 0x2b4   : > { %v3358_v57 = vpop.permute.xlu0 %3357  ;;  %v3363_v39 = vpop.permute.xlu1 %3362 }
 0x2b5   : > { %v3360_v2 = vunpack.i.h.bf16 %v3358_v57  ;;  %v3359_v52 = vunpack.i.l.bf16 %v3358_v57  ;;  %v3364_v34 = vunpack.i.l.bf16 %v3363_v39  ;;  %v3365_v21 = vunpack.i.h.bf16 %v3363_v39 }
 0x2b7   : > { %v1663_v31 = vsel %vm1149_vm3, %v1646_v38, %v3359_v52  ;;  %v1664_v44 = vsel %vm1149_vm3, %v1647_v51, %v3360_v2 }
 0x2b8   : > { %v1681_v41 = vsel %vm1678_vm5, %v1663_v31, %v3364_v34  ;;  %v1682_v27 = vsel %vm1678_vm5, %v1664_v44, %v3365_v21  ;;  %v3368_v61 = vpop.permute.xlu0 %3367 }
 0x2b9   : > { %1830 = vmatmul.mubr.f32.gmra.mrb[4].mxu1 %v1681_v41  ;;  %v3369_v0 = vunpack.i.l.bf16 %v3368_v61  ;;  %v3370_v7 = vunpack.i.h.bf16 %v3368_v61 }
 0x2ba   : > { %2947 = vmatprep.mubr.msk.f32.mxu1 %vm1103_vm1, %v4691_v53 }
 0x2bb   : > { %v1648_v16 = vsel %vm1103_vm1, %v4664_v18, %v3369_v0  ;;  %v1649_v63 = vsel %vm1103_vm1, %v4678_v46, %v3370_v7 }
 0x2bd   : > { %1835 = vmatmul.mubr.f32.gmra.mrb[6].mxu1 %v1682_v27 }
 0x2be   : > { %2948 = vmatprep.mubr.msk.f32.mxu1 %vm1103_vm1, %v4693_v45 }
 0x2c4   : > { %v3378_v12 = vpop.permute.xlu0 %3377  ;;  %v3373_v54 = vpop.permute.xlu1 %3372 }
 0x2c5   : > { %v3379_v23 = vunpack.i.l.bf16 %v3378_v12  ;;  %v3375_v28 = vunpack.i.h.bf16 %v3373_v54  ;;  %v3374_v19 = vunpack.i.l.bf16 %v3373_v54  ;;  %v3380_v10 = vunpack.i.h.bf16 %v3378_v12 }
 0x2c7   : > { %v1665_v25 = vsel %vm1149_vm3, %v1648_v16, %v3374_v19  ;;  %v1666_v14 = vsel %vm1149_vm3, %v1649_v63, %v3375_v28 }
 0x2c8   : > { %v1683_v37 = vsel %vm1678_vm5, %v1665_v25, %v3379_v23  ;;  %v1684_v60 = vsel %vm1678_vm5, %v1666_v14, %v3380_v10  ;;  %v3383_v18 = vpop.permute.xlu1 %3382 }
 0x2c9   : > { %1840 = vmatmul.mubr.f32.gmra.mrb[8].mxu1 %v1683_v37  ;;  %v3384_v59 = vunpack.i.l.bf16 %v3383_v18  ;;  %v3385_v30 = vunpack.i.h.bf16 %v3383_v18 }
 0x2ca   : > { %2949 = vmatprep.mubr.msk.f32.mxu1 %vm1103_vm1, %v4704_v11 }
 0x2cb   : > { %v1650_v9 = vsel %vm1103_vm1, %v4680_v24, %v3384_v59  ;;  %v1651_v33 = vsel %vm1103_vm1, %v4691_v53, %v3385_v30 }
 0x2cd   : > { %1845 = vmatmul.mubr.f32.gmra.mrb[10].mxu1 %v1684_v60 }
 0x2ce   : > { %2950 = vmatprep.mubr.msk.f32.mxu1 %vm1103_vm1, %v4706_v48 }
 0x2d4   : > { %v3388_v62 = vpop.permute.xlu0 %3387  ;;  %v3393_v1 = vpop.permute.xlu1 %3392 }
 0x2d5   : > { %v3390_v36 = vunpack.i.h.bf16 %v3388_v62  ;;  %v3389_v17 = vunpack.i.l.bf16 %v3388_v62  ;;  %v3394_v46 = vunpack.i.l.bf16 %v3393_v1  ;;  %v3395_v40 = vunpack.i.h.bf16 %v3393_v1 }
 0x2d7   : > { %v1667_v15 = vsel %vm1149_vm3, %v1650_v9, %v3389_v17  ;;  %v1668_v42 = vsel %vm1149_vm3, %v1651_v33, %v3390_v36 }
 0x2d8   : > { %v1685_v58 = vsel %vm1678_vm5, %v1667_v15, %v3394_v46  ;;  %v1686_v6 = vsel %vm1678_vm5, %v1668_v42, %v3395_v40  ;;  %v3398_v24 = vpop.permute.xlu0 %3397 }
 0x2d9   : > { %1850 = vmatmul.mubr.f32.gmra.mrb[12].mxu1 %v1685_v58  ;;  %v3399_v32 = vunpack.i.l.bf16 %v3398_v24  ;;  %v3400_v22 = vunpack.i.h.bf16 %v3398_v24 }
 0x2da   : > { %2951 = vmatprep.mubr.msk.f32.mxu1 %vm1103_vm1, %v4717_v4 }
 0x2db   : > { %v1652_v57 = vsel %vm1103_vm1, %v4693_v45, %v3399_v32  ;;  %v1653_v34 = vsel %vm1103_vm1, %v4704_v11, %v3400_v22 }
 0x2dd   : > { %1855 = vmatmul.mubr.f32.gmra.mrb[14].mxu1 %v1686_v6 }
 0x2de   : > { %2952 = vmatprep.mubr.msk.f32.mxu1 %vm1103_vm1, %v4719_v5 }
 0x2e4   : > { %v3408_v56 = vpop.permute.xlu0 %3407  ;;  %v3403_v43 = vpop.permute.xlu1 %3402 }
 0x2e5   : > { %v3409_v49 = vunpack.i.l.bf16 %v3408_v56  ;;  %v3405_v55 = vunpack.i.h.bf16 %v3403_v43  ;;  %v3404_v53 = vunpack.i.l.bf16 %v3403_v43  ;;  %v3410_v2 = vunpack.i.h.bf16 %v3408_v56 }
 0x2e7   : > { %v1669_v39 = vsel %vm1149_vm3, %v1652_v57, %v3404_v53  ;;  %v1670_v38 = vsel %vm1149_vm3, %v1653_v34, %v3405_v55  ;;  %v2112_v53 = vld [vmem:[%s5474_s1 + $0x108] sm:$0xff] }
 0x2e8   : > { %v1687_v52 = vsel %vm1678_vm5, %v1669_v39, %v3409_v49  ;;  %v1688_v31 = vsel %vm1678_vm5, %v1670_v38, %v3410_v2  ;;  %v3413_v45 = vpop.permute.xlu1 %3412  ;;  %v2113_v2 = vld [vmem:[%s5474_s1 + $0x110] sm:$0xff] }
 0x2e9   : > { %1860 = vmatmul.mubr.f32.gmra.mrb[16].mxu1 %v1687_v52  ;;  %v3414_v21 = vunpack.i.l.bf16 %v3413_v45  ;;  %v3415_v41 = vunpack.i.h.bf16 %v3413_v45  ;;  %v2114_v45 = vld [vmem:[%s5474_s1 + $0x118] sm:$0xff] }
 0x2ea   : > { %2953 = vmatprep.mubr.msk.f32.mxu1 %vm1103_vm1, %v4730_v35 }
 0x2eb   : > { %v1654_v0 = vsel %vm1103_vm1, %v4706_v48, %v3414_v21  ;;  %v1655_v23 = vsel %vm1103_vm1, %v4717_v4, %v3415_v41  ;;  %v2115_v21 = vld [vmem:[%s5474_s1 + $0x120] sm:$0xff] }
 0x2ed   : > { %1865 = vmatmul.mubr.f32.gmra.mrb[18].mxu1 %v1688_v31  ;;  %v3225_v31 = vpack.c.bf16 %v2113_v2, %v2112_v53 }
 0x2ee   : > { %2954 = vmatprep.mubr.msk.f32.mxu1 %vm1103_vm1, %v4732_v50 }
 0x2f4   : > { %v3418_v51 = vpop.permute.xlu0 %3417  ;;  %v3423_v44 = vpop.permute.xlu1 %3422 }
 0x2f5   : > { %v3420_v27 = vunpack.i.h.bf16 %v3418_v51  ;;  %v3419_v61 = vunpack.i.l.bf16 %v3418_v51  ;;  %v3424_v11 = vunpack.i.l.bf16 %v3423_v44  ;;  %v3425_v12 = vunpack.i.h.bf16 %v3423_v44 }
 0x2f7   : > { %v1671_v7 = vsel %vm1149_vm3, %v1654_v0, %v3419_v61  ;;  %v1672_v28 = vsel %vm1149_vm3, %v1655_v23, %v3420_v27  ;;  %v3228_v27 = vpack.c.bf16 %v2115_v21, %v2114_v45 }
 0x2f8   : > { %v1689_v54 = vsel %vm1678_vm5, %v1671_v7, %v3424_v11  ;;  %v1690_v19 = vsel %vm1678_vm5, %v1672_v28, %v3425_v12  ;;  %v3428_v48 = vpop.permute.xlu0 %3427  ;;  %v2116_v7 = vld [vmem:[%s5474_s1 + $0x128] sm:$0xff]  ;;  %v2117_v12 = vld [vmem:[%s5474_s1 + $0x130] sm:$0xff] }
 0x2f9   : > { %1870 = vmatmul.mubr.f32.gmra.mrb[20].mxu1 %v1689_v54  ;;  %v3429_v16 = vunpack.i.l.bf16 %v3428_v48  ;;  %v3430_v25 = vunpack.i.h.bf16 %v3428_v48  ;;  %v2118_v54 = vld [vmem:[%s5474_s1 + $0x138] sm:$0xff]  ;;  %v3231_v28 = vpack.c.bf16 %v2117_v12, %v2116_v7 }
 0x2fa   : > { %2955 = vmatprep.mubr.msk.f32.mxu1 %vm1103_vm1, %v4743_v29 }
 0x2fb   : > { %v1656_v60 = vsel %vm1103_vm1, %v4719_v5, %v3429_v16  ;;  %v1657_v62 = vsel %vm1103_vm1, %v4730_v35, %v3430_v25 }
 0x2fd   : > { %1875 = vmatmul.mubr.f32.gmra.mrb[22].mxu1 %v1690_v19  ;;  %v2119_v19 = vld [vmem:[%s5474_s1 + $0x140] sm:$0xff] }
 0x2fe   : > { %2956 = vmatprep.mubr.msk.f32.mxu1 %vm1103_vm1, %v4745_v26 }
 0x304   : > { %v3438_v10 = vpop.permute.xlu0 %3437  ;;  %v3433_v37 = vpop.permute.xlu1 %3432 }
 0x305   : > { %v3439_v63 = vunpack.i.l.bf16 %v3438_v10  ;;  %v3435_v14 = vunpack.i.h.bf16 %v3433_v37  ;;  %v3434_v4 = vunpack.i.l.bf16 %v3433_v37  ;;  %v3440_v59 = vunpack.i.h.bf16 %v3438_v10 }
 0x306   : > { %v3234_v37 = vpack.c.bf16 %v2119_v19, %v2118_v54 }
 0x307   : > { %v1673_v18 = vsel %vm1149_vm3, %v1656_v60, %v3434_v4  ;;  %v1674_v1 = vsel %vm1149_vm3, %v1657_v62, %v3435_v14  ;;  %v2121_v14 = vld [vmem:[%s5474_s1 + $0x150] sm:$0xff]  ;;  %v2123_v62 = vld [vmem:[%s5474_s1 + $0x160] sm:$0xff] }
 0x308   : > { %v1691_v30 = vsel %vm1678_vm5, %v1673_v18, %v3439_v63  ;;  %v1692_v36 = vsel %vm1678_vm5, %v1674_v1, %v3440_v59  ;;  %v3443_v5 = vpop.permute.xlu1 %3442  ;;  %v2120_v63 = vld [vmem:[%s5474_s1 + $0x148] sm:$0xff] }
 0x309   : > { %1880 = vmatmul.mubr.f32.gmra.mrb[24].mxu1 %v1691_v30  ;;  %v3444_v17 = vunpack.i.l.bf16 %v3443_v5  ;;  %v3445_v46 = vunpack.i.h.bf16 %v3443_v5  ;;  %v3237_v18 = vpack.c.bf16 %v2121_v14, %v2120_v63  ;;  %v2122_v30 = vld [vmem:[%s5474_s1 + $0x158] sm:$0xff]  ;;  %v2124_v5 = vld [vmem:[%s5474_s1 + $0x168] sm:$0xff] }
 0x30a   : > { %2957 = vmatprep.mubr.msk.f32.mxu1 %vm1103_vm1, %v4756_v3  ;;  %v3240_v1 = vpack.c.bf16 %v2123_v62, %v2122_v30 }
 0x30b   : > { %v1658_v35 = vsel %vm1103_vm1, %v4732_v50, %v3444_v17  ;;  %v1659_v42 = vsel %vm1103_vm1, %v4743_v29, %v3445_v46  ;;  %v2125_v17 = vld [vmem:[%s5474_s1 + $0x170] sm:$0xff] }
 0x30d   : > { %1885 = vmatmul.mubr.f32.gmra.mrb[26].mxu1 %v1692_v36 }
 0x30e   : > { %2958 = vmatprep.mubr.msk.f32.mxu1 %vm1103_vm1, %v4758_v13 }
 0x312   : > { %v1622_v58 = vpop.permute.xlu1 %1621 }
 0x314   : > { %v3448_v9 = vpop.permute.xlu0 %3447 }
 0x315   : > { %v3450_v15 = vunpack.i.h.bf16 %v3448_v9  ;;  %v3449_v40 = vunpack.i.l.bf16 %v3448_v9 }
 0x316   : > { %v1522_v32 = vpop.permute.xlu1 %1521 }
 0x317   : > { %v1675_v33 = vsel %vm1149_vm3, %v1658_v35, %v3449_v40  ;;  %v1676_v13 = vsel %vm1149_vm3, %v1659_v42, %v3450_v15  ;;  %v1660_v22 = vsel %vm1103_vm1, %v4745_v26, %v1522_v32  ;;  %v2111_v26 = vld [vmem:[%s5474_s1 + $0x100] sm:$0xff]  ;;  %v3243_v15 = vpack.c.bf16 %v2125_v17, %v2124_v5 }
 0x318   : > { %v1693_v3 = vsel %vm1678_vm5, %v1675_v33, %v1622_v58  ;;  %v1624_v6 = vpop.permute.xlu0 %1623  ;;  %v3553_v40 = vmov 0.0  }
 0x319   : > { %1890 = vmatmul.mubr.f32.gmra.mrb[28].mxu1 %v1693_v3  ;;  %v1694_v24 = vsel %vm1678_vm5, %v1676_v13, %v1624_v6  ;;  %3132 = vmatprep.mubr.msk.f32.mxu0 %vm3552_vm6, %v3553_v40 }
 0x31a   : > { %2959 = vmatprep.mubr.msk.f32.mxu1 %vm1103_vm1, %v4783_v47  ;;  %v4882_v47 = vld [vmem:[%s5475_s2 + $0x2] ss:$0 sm:$0xff] }
 0x31c   : > { %v1574_v50 = vpop.permute.xlu0 %1573 }
 0x31d   : > { %1895 = vmatmul.mubr.f32.gmra.mrb[30].mxu1 %v1694_v24  ;;  %v1677_v29 = vsel %vm1149_vm3, %v1660_v22, %v1574_v50 }
 0x31e   : > { %2960 = vmatprep.mubr.msk.f32.mxu1 %vm1103_vm1, %v4785_v8  ;;  %v2110_v8 = vld [vmem:[%s5474_s1 + $0xf8] sm:$0xff] }
 0x31f   : > { %v3222_v39 = vpack.c.bf16 %v2111_v26, %v2110_v8 }
 0x321   : > { %3223 = vmatpush3.bf16.msra.mxu0 %v3222_v39 }
 0x322   : > { %v1626_v56 = vpop.permute.xlu1 %1625  ;;  %3224 = vmatprep.subr.bf16.mxu0 %v3550_v20 }
 0x323   : > { %v1695_v43 = vsel %vm1678_vm5, %v1677_v29, %v1626_v56 }
 0x324   : > { %1900 = vmatmul.mubr.f32.gmra.mrb[32].mxu1 %v1695_v43 }
 0x325   : > { %3226 = vmatpush3.bf16.msra.mxu0 %v3225_v31 }
 0x326   : > { %3227 = vmatprep.subr.bf16.mxu0 %v3550_v20 }
 0x329   : > { %3229 = vmatpush3.bf16.msra.mxu0 %v3228_v27 }
 0x32a   : > { %3230 = vmatprep.subr.bf16.mxu0 %v3550_v20 }
 0x32d   : > { %3232 = vmatpush3.bf16.msra.mxu0 %v3231_v28 }
 0x32e   : > { %3233 = vmatprep.subr.bf16.mxu0 %v3550_v20 }
 0x331   : > { %3235 = vmatpush3.bf16.msra.mxu0 %v3234_v37 }
 0x332   : > { %3236 = vmatprep.subr.bf16.mxu0 %v3550_v20 }
 0x335   : > { %3238 = vmatpush3.bf16.msra.mxu0 %v3237_v18 }
 0x336   : > { %3239 = vmatprep.subr.bf16.mxu0 %v3550_v20 }
 0x339   : > { %3241 = vmatpush3.bf16.msra.mxu0 %v3240_v1 }
 0x33a   : > { %3242 = vmatprep.subr.bf16.mxu0 %v3550_v20 }
 0x33d   : > { %3244 = vmatpush3.bf16.msra.mxu0 %v3243_v15 }
 0x33e   : > { %3281 = vmatprep.subr.bf16.mxu0 %v3550_v20 }
 0x37c   : > { %v1821_v49 = vpop.f32.mrb[0].mxu1 }
 0x37d   : > { %v1823_v55 = vpop.f32.mrb[1].mxu1  ;;  %v1822_v57 = vadd.f32 %v4882_v47, %v1821_v49 }
 0x37f   : > { %v1905_v41 = vmax.f32 %v1822_v57, 0.0 }
 0x380   : > { %v1826_v52 = vpop.f32.mrb[2].mxu1 }
 0x381   : > { %v1827_v34 = vadd.f32 %v4882_v47, %v1826_v52  ;;  %v1828_v38 = vpop.f32.mrb[3].mxu1 }
 0x383   : > { %v1906_v51 = vmax.f32 %v1827_v34, 0.0 }
 0x385   : > { %v4905_v44 = vmax.f32 %v1905_v41, %v1906_v51 }
 0x38c   : > { %v1831_v61 = vpop.f32.mrb[4].mxu1 }
 0x38d   : > { %v1832_v11 = vadd.f32 %v4882_v47, %v1831_v61  ;;  %v1833_v0 = vpop.f32.mrb[5].mxu1 }
 0x38f   : > { %v1907_v23 = vmax.f32 %v1832_v11, 0.0 }
 0x390   : > { %v1836_v48 = vpop.f32.mrb[6].mxu1 }
 0x391   : > { %v4922_v16 = vmax.f32 %v1906_v51, %v1907_v23  ;;  %v1837_v25 = vadd.f32 %v4882_v47, %v1836_v48  ;;  %v1838_v10 = vpop.f32.mrb[7].mxu1 }
 0x393   : > { %v1908_v4 = vmax.f32 %v1837_v25, 0.0 }
 0x395   : > { %v4932_v60 = vmax.f32 %v1907_v23, %v1908_v4 }
 0x397   : > { %v3451_v59 = vpack.i.bf16 %v4932_v60, %v4922_v16 }
 0x399   : > { %3452 = vrot.lane.b32.xlu0 %v3451_v59, %s3547_s24 }
 0x39c   : > { %v1841_v36 = vpop.f32.mrb[8].mxu1 }
 0x39d   : > { %v1842_v46 = vadd.f32 %v4882_v47, %v1841_v36  ;;  %v1843_v9 = vpop.f32.mrb[9].mxu1 }
 0x39f   : > { %v1909_v35 = vmax.f32 %v1842_v46, 0.0 }
 0x3a0   : > { %v1846_v58 = vpop.f32.mrb[10].mxu1 }
 0x3a1   : > { %v4955_v33 = vmax.f32 %v1908_v4, %v1909_v35  ;;  %v1847_v3 = vadd.f32 %v4882_v47, %v1846_v58  ;;  %v1848_v42 = vpop.f32.mrb[11].mxu1 }
 0x3a3   : > { %v1910_v6 = vmax.f32 %v1847_v3, 0.0  ;;  %v3456_v13 = vpack.i.bf16 %v4955_v33, %v4932_v60 }
 0x3a5   : > { %v4961_v24 = vmax.f32 %v1909_v35, %v1910_v6  ;;  %3457 = vrot.lane.b32.xlu1 %v3456_v13, %s3549_s26 }
 0x3a7   : > { %v3466_v32 = vpack.i.bf16 %v4961_v24, %v4955_v33 }
 0x3a9   : > { %3467 = vrot.lane.b32.xlu1 %v3466_v32, %s3547_s24  ;;  %3462 = vrot.lane.b32.xlu0 %v3466_v32, %s3551_s20 }
 0x3ac   : > { %v1851_v50 = vpop.f32.mrb[12].mxu1 }
 0x3ad   : > { %v1852_v22 = vadd.f32 %v4882_v47, %v1851_v50  ;;  %v1853_v29 = vpop.f32.mrb[13].mxu1 }
 0x3af   : > { %v1911_v56 = vmax.f32 %v1852_v22, 0.0 }
 0x3b0   : > { %v1856_v43 = vpop.f32.mrb[14].mxu1 }
 0x3b1   : > { %v4969_v49 = vmax.f32 %v1910_v6, %v1911_v56  ;;  %v1857_v55 = vadd.f32 %v4882_v47, %v1856_v43  ;;  %v1858_v8 = vpop.f32.mrb[15].mxu1 }
 0x3b3   : > { %v1912_v26 = vmax.f32 %v1857_v55, 0.0  ;;  %v3471_v53 = vpack.i.bf16 %v4969_v49, %v4961_v24 }
 0x3b5   : > { %v4974_v57 = vmax.f32 %v1911_v56, %v1912_v26  ;;  %3472 = vrot.lane.b32.xlu0 %v3471_v53, %s3549_s26 }
 0x3b7   : > { %v3476_v39 = vpack.i.bf16 %v4974_v57, %v4969_v49 }
 0x3b9   : > { %3477 = vrot.lane.b32.xlu1 %v3476_v39, %s3551_s20  ;;  %3482 = vrot.lane.b32.xlu0 %v3476_v39, %s3547_s24 }
 0x3bc   : > { %v1861_v2 = vpop.f32.mrb[16].mxu1 }
 0x3bd   : > { %v1862_v52 = vadd.f32 %v4882_v47, %v1861_v2  ;;  %v1863_v34 = vpop.f32.mrb[17].mxu1 }
 0x3bf   : > { %v1913_v38 = vmax.f32 %v1862_v52, 0.0 }
 0x3c0   : > { %v1866_v31 = vpop.f32.mrb[18].mxu1 }
 0x3c1   : > { %v4982_v45 = vmax.f32 %v1912_v26, %v1913_v38  ;;  %v1867_v21 = vadd.f32 %v4882_v47, %v1866_v31  ;;  %v1868_v41 = vpop.f32.mrb[19].mxu1 }
 0x3c3   : > { %v1914_v51 = vmax.f32 %v1867_v21, 0.0  ;;  %v3486_v27 = vpack.i.bf16 %v4982_v45, %v4974_v57 }
 0x3c5   : > { %v4987_v61 = vmax.f32 %v1913_v38, %v1914_v51  ;;  %3487 = vrot.lane.b32.xlu1 %v3486_v27, %s3549_s26 }
 0x3c7   : > { %v3496_v11 = vpack.i.bf16 %v4987_v61, %v4982_v45 }
 0x3c9   : > { %3497 = vrot.lane.b32.xlu1 %v3496_v11, %s3547_s24  ;;  %3492 = vrot.lane.b32.xlu0 %v3496_v11, %s3551_s20 }
 0x3cc   : > { %v1871_v0 = vpop.f32.mrb[20].mxu1 }
 0x3cd   : > { %v1872_v7 = vadd.f32 %v4882_v47, %v1871_v0  ;;  %v1873_v12 = vpop.f32.mrb[21].mxu1 }
 0x3cf   : > { %v1915_v54 = vmax.f32 %v1872_v7, 0.0 }
 0x3d0   : > { %v1876_v23 = vpop.f32.mrb[22].mxu1 }
 0x3d1   : > { %v4995_v28 = vmax.f32 %v1914_v51, %v1915_v54  ;;  %v1877_v19 = vadd.f32 %v4882_v47, %v1876_v23  ;;  %v1878_v48 = vpop.f32.mrb[23].mxu1 }
 0x3d3   : > { %v1916_v25 = vmax.f32 %v1877_v19, 0.0  ;;  %v3501_v10 = vpack.i.bf16 %v4995_v28, %v4987_v61 }
 0x3d5   : > { %v5000_v37 = vmax.f32 %v1915_v54, %v1916_v25  ;;  %3502 = vrot.lane.b32.xlu0 %v3501_v10, %s3549_s26 }
 0x3d7   : > { %v3506_v63 = vpack.i.bf16 %v5000_v37, %v4995_v28 }
 0x3d9   : > { %3507 = vrot.lane.b32.xlu1 %v3506_v63, %s3551_s20  ;;  %3512 = vrot.lane.b32.xlu0 %v3506_v63, %s3547_s24 }
 0x3dc   : > { %v1881_v14 = vpop.f32.mrb[24].mxu1 }
 0x3dd   : > { %v1882_v4 = vadd.f32 %v4882_v47, %v1881_v14  ;;  %v1883_v18 = vpop.f32.mrb[25].mxu1 }
 0x3df   : > { %v1917_v59 = vmax.f32 %v1882_v4, 0.0 }
 0x3e0   : > { %v1886_v30 = vpop.f32.mrb[26].mxu1 }
 0x3e1   : > { %v5008_v62 = vmax.f32 %v1916_v25, %v1917_v59  ;;  %v1887_v1 = vadd.f32 %v4882_v47, %v1886_v30  ;;  %v1888_v36 = vpop.f32.mrb[27].mxu1 }
 0x3e3   : > { %v1918_v5 = vmax.f32 %v1887_v1, 0.0  ;;  %v3516_v17 = vpack.i.bf16 %v5008_v62, %v5000_v37 }
 0x3e5   : > { %v5013_v46 = vmax.f32 %v1917_v59, %v1918_v5  ;;  %3517 = vrot.lane.b32.xlu1 %v3516_v17, %s3549_s26 }
 0x3e7   : > { %v3526_v9 = vpack.i.bf16 %v5013_v46, %v5008_v62 }
 0x3e9   : > { %3527 = vrot.lane.b32.xlu1 %v3526_v9, %s3547_s24  ;;  %3522 = vrot.lane.b32.xlu0 %v3526_v9, %s3551_s20 }
 0x3ec   : > { %v1891_v15 = vpop.f32.mrb[28].mxu1 }
 0x3ed   : > { %v1892_v35 = vadd.f32 %v4882_v47, %v1891_v15  ;;  %v1893_v58 = vpop.f32.mrb[29].mxu1 }
 0x3ef   : > { %v1919_v3 = vmax.f32 %v1892_v35, 0.0 }
 0x3f0   : > { %v1896_v42 = vpop.f32.mrb[30].mxu1 }
 0x3f1   : > { %v1935_v6 = vmax.f32 %v1918_v5, %v1919_v3  ;;  %v1897_v13 = vadd.f32 %v4882_v47, %v1896_v42  ;;  %v1898_v32 = vpop.f32.mrb[31].mxu1 }
 0x3f3   : > { %v1920_v50 = vmax.f32 %v1897_v13, 0.0  ;;  %2052 = vrot.lane.b32.xlu1 %v1935_v6, %s3551_s20  ;;  %v3531_v22 = vpack.i.bf16 %v1935_v6, %v5013_v46 }
 0x3f5   : > { %v1936_v29 = vmax.f32 %v1919_v3, %v1920_v50  ;;  %3532 = vrot.lane.b32.xlu0 %v3531_v22, %s3549_s26 }
 0x3f7   : > { %v1901_v56 = vpop.f32.mrb[32].mxu1  ;;  %1976 = vrot.lane.b32.xlu1 %v1935_v6, %s3547_s24 }
 0x3f8   : > { %v1902_v43 = vadd.f32 %v4882_v47, %v1901_v56  ;;  %v1903_v55 = vpop.f32.mrb[33].mxu1 }
 0x3f9   : > { %2054 = vrot.lane.b32.xlu0 %v1936_v29, %s3551_s20 }
 0x3fa   : > { %v1921_v8 = vmax.f32 %v1902_v43, 0.0 }
 0x3fc   : > { %v1937_v26 = vmax.f32 %v1920_v50, %v1921_v8 }
 0x3fd   : > { %2016 = vrot.lane.b32.xlu0 %v1936_v29, %s3549_s26 }
 0x3fe   : > { %2056 = vrot.lane.b32.xlu1 %v1937_v26, %s3551_s20 }
 0x40b   : > { %v3453_v53 = vpop.permute.xlu0 %3452 }
 0x40c   : > { %v3454_v2 = vunpack.i.l.bf16 %v3453_v53  ;;  %v3455_v38 = vunpack.i.h.bf16 %v3453_v53 }
 0x40e   : > { %v2071_v31 = vsel %vm1103_vm1, %v4905_v44, %v3454_v2  ;;  %v2072_v11 = vsel %vm1103_vm1, %v4922_v16, %v3455_v38 }
 0x417   : > { %v3458_v39 = vpop.permute.xlu1 %3457 }
 0x418   : > { %v3459_v52 = vunpack.i.l.bf16 %v3458_v39  ;;  %v3460_v47 = vunpack.i.h.bf16 %v3458_v39 }
 0x41a   : > { %v2084_v41 = vsel %vm1149_vm3, %v2071_v31, %v3459_v52  ;;  %v2085_v0 = vsel %vm1149_vm3, %v2072_v11, %v3460_v47 }
 0x41b   : > { %v3463_v34 = vpop.permute.xlu0 %3462  ;;  %v3468_v44 = vpop.permute.xlu1 %3467 }
 0x41c   : > { %v3464_v21 = vunpack.i.l.bf16 %v3463_v34  ;;  %v3465_v51 = vunpack.i.h.bf16 %v3463_v34  ;;  %v3469_v54 = vunpack.i.l.bf16 %v3468_v44  ;;  %v3470_v48 = vunpack.i.h.bf16 %v3468_v44 }
 0x41e   : > { %v2097_v27 = vsel %vm1678_vm5, %v2084_v41, %v3464_v21  ;;  %v2098_v7 = vsel %vm1678_vm5, %v2085_v0, %v3465_v51  ;;  %v2073_v10 = vsel %vm1103_vm1, %v4932_v60, %v3469_v54  ;;  %v2074_v18 = vsel %vm1103_vm1, %v4955_v33, %v3470_v48 }
 0x41f   : > { %3133 = vmatmul.mubr.f32.vlgmr.msra.gmra.mrb[22].mxu0 %v2097_v27 }
 0x420   : > { %3135 = vmatprep.mubr.msk.f32.mxu0 %vm3552_vm6, %v3553_v40 }
 0x423   : > { %3136 = vmatmul.mubr.f32.gmra.mrb[24].mxu0 %v2098_v7 }
 0x424   : > { %3138 = vmatprep.mubr.msk.f32.mxu0 %vm3552_vm6, %v3553_v40 }
 0x427   : > { %v3473_v12 = vpop.permute.xlu0 %3472 }
 0x428   : > { %v3474_v23 = vunpack.i.l.bf16 %v3473_v12  ;;  %v3475_v63 = vunpack.i.h.bf16 %v3473_v12 }
 0x42a   : > { %v2086_v16 = vsel %vm1149_vm3, %v2073_v10, %v3474_v23  ;;  %v2087_v59 = vsel %vm1149_vm3, %v2074_v18, %v3475_v63 }
 0x42b   : > { %v3478_v19 = vpop.permute.xlu1 %3477  ;;  %v3483_v60 = vpop.permute.xlu0 %3482 }
 0x42c   : > { %v3479_v25 = vunpack.i.l.bf16 %v3478_v19  ;;  %v3480_v14 = vunpack.i.h.bf16 %v3478_v19  ;;  %v3484_v36 = vunpack.i.l.bf16 %v3483_v60  ;;  %v3485_v9 = vunpack.i.h.bf16 %v3483_v60 }
 0x42e   : > { %v2099_v4 = vsel %vm1678_vm5, %v2086_v16, %v3479_v25  ;;  %v2100_v30 = vsel %vm1678_vm5, %v2087_v59, %v3480_v14  ;;  %v2075_v35 = vsel %vm1103_vm1, %v4961_v24, %v3484_v36  ;;  %v2076_v6 = vsel %vm1103_vm1, %v4969_v49, %v3485_v9 }
 0x42f   : > { %3139 = vmatmul.mubr.f32.gmra.mrb[26].mxu0 %v2099_v4 }
 0x430   : > { %3141 = vmatprep.mubr.msk.f32.mxu0 %vm3552_vm6, %v3553_v40 }
 0x433   : > { %3142 = vmatmul.mubr.f32.gmra.mrb[28].mxu0 %v2100_v30 }
 0x434   : > { %3144 = vmatprep.mubr.msk.f32.mxu0 %vm3552_vm6, %v3553_v40 }
 0x437   : > { %v3488_v1 = vpop.permute.xlu1 %3487 }
 0x438   : > { %v3489_v5 = vunpack.i.l.bf16 %v3488_v1  ;;  %v3490_v58 = vunpack.i.h.bf16 %v3488_v1 }
 0x43a   : > { %v2088_v33 = vsel %vm1149_vm3, %v2075_v35, %v3489_v5  ;;  %v2089_v13 = vsel %vm1149_vm3, %v2076_v6, %v3490_v58  ;;  %v2400_v58 = vld [vmem:[%s5474_s1 + $0x198] sm:$0xff]  ;;  %v2403_v6 = vld [vmem:[%s5474_s1 + $0x1b0] sm:$0xff] }
 0x43b   : > { %v3493_v17 = vpop.permute.xlu0 %3492  ;;  %v3498_v24 = vpop.permute.xlu1 %3497 }
 0x43c   : > { %v3494_v15 = vunpack.i.l.bf16 %v3493_v17  ;;  %v3495_v3 = vunpack.i.h.bf16 %v3493_v17  ;;  %v3499_v22 = vunpack.i.l.bf16 %v3498_v24  ;;  %v3500_v43 = vunpack.i.h.bf16 %v3498_v24  ;;  %v2396_v17 = vld [vmem:[%s5474_s1 + $0x178] sm:$0xff]  ;;  %v2405_v24 = vld [vmem:[%s5474_s1 + $0x1c0] sm:$0xff] }
 0x43e   : > { %v2101_v42 = vsel %vm1678_vm5, %v2088_v33, %v3494_v15  ;;  %v2102_v32 = vsel %vm1678_vm5, %v2089_v13, %v3495_v3  ;;  %v2077_v8 = vsel %vm1103_vm1, %v4974_v57, %v3499_v22  ;;  %v2078_v2 = vsel %vm1103_vm1, %v4982_v45, %v3500_v43  ;;  %v2398_v15 = vld [vmem:[%s5474_s1 + $0x188] sm:$0xff]  ;;  %v2401_v33 = vld [vmem:[%s5474_s1 + $0x1a0] sm:$0xff]  ;;  %v2408_v43 = vld [vmem:[%s5474_s1 + $0x1d8] sm:$0xff] }
 0x43f   : > { %3145 = vmatmul.mubr.f32.gmra.mrb[30].mxu0 %v2101_v42  ;;  %v3252_v3 = vpack.c.bf16 %v2401_v33, %v2400_v58  ;;  %v2402_v42 = vld [vmem:[%s5474_s1 + $0x1a8] sm:$0xff] }
 0x440   : > { %3147 = vmatprep.mubr.msk.f32.mxu0 %vm3552_vm6, %v3553_v40  ;;  %v3255_v13 = vpack.c.bf16 %v2403_v6, %v2402_v42  ;;  %v2406_v22 = vld [vmem:[%s5474_s1 + $0x1c8] sm:$0xff] }
 0x443   : > { %3148 = vmatmul.mubr.f32.gmra.mrb[32].mxu0 %v2102_v32  ;;  %v2404_v32 = vld [vmem:[%s5474_s1 + $0x1b8] sm:$0xff] }
 0x444   : > { %3150 = vmatprep.mubr.msk.f32.mxu0 %vm3552_vm6, %v3553_v40 }
 0x447   : > { %v3503_v50 = vpop.permute.xlu0 %3502 }
 0x448   : > { %v3504_v29 = vunpack.i.l.bf16 %v3503_v50  ;;  %v3505_v26 = vunpack.i.h.bf16 %v3503_v50  ;;  %v3258_v50 = vpack.c.bf16 %v2405_v24, %v2404_v32 }
 0x44a   : > { %v2090_v49 = vsel %vm1149_vm3, %v2077_v8, %v3504_v29  ;;  %v2091_v52 = vsel %vm1149_vm3, %v2078_v2, %v3505_v26  ;;  %v2407_v29 = vld [vmem:[%s5474_s1 + $0x1d0] sm:$0xff]  ;;  %v2410_v26 = vld [vmem:[%s5474_s1 + $0x1e8] sm:$0xff]  ;;  %v2413_v2 = vld [vmem:[%s5474_s1 + $0x200] sm:$0xff] }
 0x44b   : > { %v3508_v56 = vpop.permute.xlu1 %3507  ;;  %v3513_v57 = vpop.permute.xlu0 %3512 }
 0x44c   : > { %v3509_v55 = vunpack.i.l.bf16 %v3508_v56  ;;  %v3510_v53 = vunpack.i.h.bf16 %v3508_v56  ;;  %v3514_v31 = vunpack.i.l.bf16 %v3513_v57  ;;  %v3515_v41 = vunpack.i.h.bf16 %v3513_v57  ;;  %v2415_v57 = vld [vmem:[%s5474_s1 + $0x210] sm:$0xff] }
 0x44d   : > { %v3261_v56 = vpack.c.bf16 %v2407_v29, %v2406_v22 }
 0x44e   : > { %v2103_v39 = vsel %vm1678_vm5, %v2090_v49, %v3509_v55  ;;  %v2104_v34 = vsel %vm1678_vm5, %v2091_v52, %v3510_v53  ;;  %v2079_v27 = vsel %vm1103_vm1, %v4987_v61, %v3514_v31  ;;  %v2080_v44 = vsel %vm1103_vm1, %v4995_v28, %v3515_v41  ;;  %v2409_v55 = vld [vmem:[%s5474_s1 + $0x1e0] sm:$0xff]  ;;  %v2411_v49 = vld [vmem:[%s5474_s1 + $0x1f0] sm:$0xff] }
 0x44f   : > { %3151 = vmatmul.mubr.f32.gmra.mrb[34].mxu0 %v2103_v39  ;;  %v3264_v8 = vpack.c.bf16 %v2409_v55, %v2408_v43  ;;  %v3267_v53 = vpack.c.bf16 %v2411_v49, %v2410_v26  ;;  %v2412_v39 = vld [vmem:[%s5474_s1 + $0x1f8] sm:$0xff] }
 0x450   : > { %3153 = vmatprep.mubr.msk.f32.mxu0 %vm3552_vm6, %v3553_v40  ;;  %v3270_v52 = vpack.c.bf16 %v2413_v2, %v2412_v39 }
 0x453   : > { %3154 = vmatmul.mubr.f32.gmra.mrb[36].mxu0 %v2104_v34  ;;  %v2414_v34 = vld [vmem:[%s5474_s1 + $0x208] sm:$0xff] }
 0x454   : > { %3156 = vmatprep.mubr.msk.f32.mxu0 %vm3552_vm6, %v3553_v40 }
 0x457   : > { %v3518_v38 = vpop.permute.xlu1 %3517 }
 0x458   : > { %v3519_v21 = vunpack.i.l.bf16 %v3518_v38  ;;  %v3520_v11 = vunpack.i.h.bf16 %v3518_v38  ;;  %v5177_v38 = vld [vmem:[%s5475_s2 + $0x3] ss:$0 sm:$0xff] }
 0x45a   : > { %v2092_v45 = vsel %vm1149_vm3, %v2079_v27, %v3519_v21  ;;  %v2093_v12 = vsel %vm1149_vm3, %v2080_v44, %v3520_v11  ;;  %v3273_v21 = vpack.c.bf16 %v2415_v57, %v2414_v34  ;;  %v2417_v27 = vld [vmem:[%s5474_s1 + $0x220] sm:$0xff] }
 0x45b   : > { %v3523_v47 = vpop.permute.xlu0 %3522  ;;  %v3528_v54 = vpop.permute.xlu1 %3527 }
 0x45c   : > { %v3524_v51 = vunpack.i.l.bf16 %v3523_v47  ;;  %v3525_v0 = vunpack.i.h.bf16 %v3523_v47  ;;  %v3529_v61 = vunpack.i.l.bf16 %v3528_v54  ;;  %v3530_v48 = vunpack.i.h.bf16 %v3528_v54  ;;  %v2419_v54 = vld [vmem:[%s5474_s1 + $0x230] sm:$0xff] }
 0x45e   : > { %v2105_v7 = vsel %vm1678_vm5, %v2092_v45, %v3524_v51  ;;  %v2106_v23 = vsel %vm1678_vm5, %v2093_v12, %v3525_v0  ;;  %v2081_v16 = vsel %vm1103_vm1, %v5000_v37, %v3529_v61  ;;  %v2082_v18 = vsel %vm1103_vm1, %v5008_v62, %v3530_v48  ;;  %v2416_v51 = vld [vmem:[%s5474_s1 + $0x218] sm:$0xff]  ;;  %v2418_v12 = vld [vmem:[%s5474_s1 + $0x228] sm:$0xff] }
 0x45f   : > { %3157 = vmatmul.mubr.f32.gmra.mrb[38].mxu0 %v2105_v7  ;;  %v3276_v45 = vpack.c.bf16 %v2417_v27, %v2416_v51  ;;  %v3279_v61 = vpack.c.bf16 %v2419_v54, %v2418_v12 }
 0x460   : > { %3159 = vmatprep.mubr.msk.f32.mxu0 %vm3552_vm6, %v3553_v40 }
 0x463   : > { %3160 = vmatmul.mubr.f32.gmra.mrb[40].mxu0 %v2106_v23 }
 0x464   : > { %3162 = vmatprep.mubr.msk.f32.mxu0 %vm3552_vm6, %v3553_v40 }
 0x465   : > { %v2053_v19 = vpop.permute.xlu1 %2052 }
 0x467   : > { %v3533_v25 = vpop.permute.xlu0 %3532 }
 0x468   : > { %v3535_v10 = vunpack.i.h.bf16 %v3533_v25  ;;  %v3534_v63 = vunpack.i.l.bf16 %v3533_v25 }
 0x469   : > { %v1977_v59 = vpop.permute.xlu1 %1976 }
 0x46a   : > { %v2094_v28 = vsel %vm1149_vm3, %v2081_v16, %v3534_v63  ;;  %v2095_v30 = vsel %vm1149_vm3, %v2082_v18, %v3535_v10  ;;  %v2083_v60 = vsel %vm1103_vm1, %v5013_v46, %v1977_v59  ;;  %v2397_v46 = vld [vmem:[%s5474_s1 + $0x180] sm:$0xff] }
 0x46b   : > { %v2055_v14 = vpop.permute.xlu0 %2054  ;;  %v2107_v4 = vsel %vm1678_vm5, %v2094_v28, %v2053_v19  ;;  %v3246_v9 = vpack.c.bf16 %v2397_v46, %v2396_v17 }
 0x46c   : > { %3163 = vmatmul.mubr.f32.gmra.mrb[42].mxu0 %v2107_v4  ;;  %v2108_v37 = vsel %vm1678_vm5, %v2095_v30, %v2055_v14 }
 0x46d   : > { %3165 = vmatprep.mubr.msk.f32.mxu0 %vm3552_vm6, %v3553_v40  ;;  %3247 = vmatpush1.bf16.msra.mxu1 %v3246_v9 }
 0x46e   : > { %3248 = vmatprep.subr.bf16.mxu1 %v3550_v20 }
 0x46f   : > { %v2017_v1 = vpop.permute.xlu0 %2016 }
 0x470   : > { %v2096_v36 = vsel %vm1149_vm3, %v2083_v60, %v2017_v1  ;;  %v2057_v5 = vpop.permute.xlu1 %2056  ;;  %3166 = vmatmul.mubr.f32.gmra.mrb[44].mxu0 %v2108_v37 }
 0x471   : > { %3168 = vmatprep.mubr.msk.f32.mxu0 %vm3552_vm6, %v3553_v40  ;;  %v2109_v62 = vsel %vm1678_vm5, %v2096_v36, %v2057_v5  ;;  %v2399_v40 = vld [vmem:[%s5474_s1 + $0x190] sm:$0xff] }
 0x472   : > { %v3249_v35 = vpack.c.bf16 %v2399_v40, %v2398_v15 }
 0x474   : > { %3169 = vmatmul.mubr.f32.gmra.mrb[46].mxu0 %v2109_v62  ;;  %3250 = vmatpush1.bf16.msra.mxu1 %v3249_v35 }
 0x475   : > { %3251 = vmatprep.subr.bf16.mxu1 %v3550_v20 }
 0x478   : > { %3253 = vmatpush1.bf16.msra.mxu1 %v3252_v3 }
 0x479   : > { %3254 = vmatprep.subr.bf16.mxu1 %v3550_v20 }
 0x47c   : > { %3256 = vmatpush1.bf16.msra.mxu1 %v3255_v13 }
 0x47d   : > { %3257 = vmatprep.subr.bf16.mxu1 %v3550_v20 }
 0x480   : > { %3259 = vmatpush1.bf16.msra.mxu1 %v3258_v50 }
 0x481   : > { %3260 = vmatprep.subr.bf16.mxu1 %v3550_v20 }
 0x484   : > { %3262 = vmatpush1.bf16.msra.mxu1 %v3261_v56 }
 0x485   : > { %3263 = vmatprep.subr.bf16.mxu1 %v3550_v20 }
 0x488   : > { %3265 = vmatpush1.bf16.msra.mxu1 %v3264_v8 }
 0x489   : > { %3266 = vmatprep.subr.bf16.mxu1 %v3550_v20 }
 0x48c   : > { %3268 = vmatpush1.bf16.msra.mxu1 %v3267_v53 }
 0x48d   : > { %3269 = vmatprep.subr.bf16.mxu1 %v3550_v20 }
 0x490   : > { %3271 = vmatpush1.bf16.msra.mxu1 %v3270_v52 }
 0x491   : > { %3272 = vmatprep.subr.bf16.mxu1 %v3550_v20 }
 0x494   : > { %3274 = vmatpush1.bf16.msra.mxu1 %v3273_v21 }
 0x495   : > { %3275 = vmatprep.subr.bf16.mxu1 %v3550_v20 }
 0x498   : > { %3277 = vmatpush1.bf16.msra.mxu1 %v3276_v45 }
 0x499   : > { %3278 = vmatprep.subr.bf16.mxu1 %v3550_v20 }
 0x49c   : > { %3280 = vmatpush1.bf16.msra.mxu1 %v3279_v61 }
 0x4f2   : > { %v2196_v31 = vpop.f32.mrb[22].mxu0 }
 0x4f3   : > { %v2197_v47 = vadd.f32 %v5177_v38, %v2196_v31  ;;  %v3134_v41 = vpop.f32.mrb[23].mxu0 }
 0x4f5   : > { %v2260_v0 = vmax.f32 %v2197_v47, 0.0 }
 0x4f6   : > { %v2201_v11 = vpop.f32.mrb[24].mxu0 }
 0x4f7   : > { %v2202_v7 = vadd.f32 %v5177_v38, %v2201_v11  ;;  %v3137_v44 = vpop.f32.mrb[25].mxu0  ;;  %v5195_v19 = vrot.slane %v2260_v0, 1 }
 0x4f9   : > { %v2261_v23 = vmax.f32 %v2202_v7, 0.0 }
 0x4fb   : > { %v2288_v48 = vrot.slane %v2261_v23, 1 }
 0x4fd   : > { %v2289_v25 = vsel %vm2286_vm7, %v5195_v19, %v2288_v48 }
 0x4fe   : > { %v5200_v10 = vmax.f32 %v2260_v0, %v2289_v25 }
 0x502   : > { %v2206_v63 = vpop.f32.mrb[26].mxu0 }
 0x503   : > { %v2207_v16 = vadd.f32 %v5177_v38, %v2206_v63  ;;  %v3140_v28 = vpop.f32.mrb[27].mxu0 }
 0x505   : > { %v2262_v14 = vmax.f32 %v2207_v16, 0.0 }
 0x506   : > { %v2211_v4 = vpop.f32.mrb[28].mxu0 }
 0x507   : > { %v2290_v18 = vrot.slane %v2262_v14, 1  ;;  %v2212_v59 = vadd.f32 %v5177_v38, %v2211_v4  ;;  %v3143_v30 = vpop.f32.mrb[29].mxu0 }
 0x509   : > { %v2291_v60 = vsel %vm2286_vm7, %v2288_v48, %v2290_v18  ;;  %v2263_v1 = vmax.f32 %v2212_v59, 0.0 }
 0x50a   : > { %v5205_v37 = vmax.f32 %v2261_v23, %v2291_v60 }
 0x50b   : > { %v2292_v36 = vrot.slane %v2263_v1, 1 }
 0x50c   : > { %2352 = vrot.lane.b32.xlu0 %v5205_v37, %s3549_s26 }
 0x50d   : > { %v2293_v5 = vsel %vm2286_vm7, %v2290_v18, %v2292_v36 }
 0x50e   : > { %v5210_v62 = vmax.f32 %v2262_v14, %v2293_v5 }
 0x510   : > { %2354 = vrot.lane.b32.xlu1 %v5210_v62, %s3549_s26  ;;  %2963 = vmatprep.mubr.msk.f32.mxu1 %vm1149_vm3, %v5210_v62 }
 0x512   : > { %v2216_v17 = vpop.f32.mrb[30].mxu0 }
 0x513   : > { %v2217_v46 = vadd.f32 %v5177_v38, %v2216_v17  ;;  %v3146_v9 = vpop.f32.mrb[31].mxu0 }
 0x515   : > { %v2264_v15 = vmax.f32 %v2217_v46, 0.0 }
 0x516   : > { %v2221_v40 = vpop.f32.mrb[32].mxu0 }
 0x517   : > { %v2294_v35 = vrot.slane %v2264_v15, 1  ;;  %v2222_v58 = vadd.f32 %v5177_v38, %v2221_v40  ;;  %v3149_v33 = vpop.f32.mrb[33].mxu0 }
 0x519   : > { %v2295_v3 = vsel %vm2286_vm7, %v2292_v36, %v2294_v35  ;;  %v2265_v42 = vmax.f32 %v2222_v58, 0.0 }
 0x51a   : > { %v5219_v6 = vmax.f32 %v2263_v1, %v2295_v3 }
 0x51b   : > { %v2296_v13 = vrot.slane %v2265_v42, 1 }
 0x51c   : > { %2356 = vrot.lane.b32.xlu0 %v5219_v6, %s3549_s26 }
 0x51d   : > { %v2297_v32 = vsel %vm2286_vm7, %v2294_v35, %v2296_v13 }
 0x51e   : > { %v5224_v24 = vmax.f32 %v2264_v15, %v2297_v32 }
 0x520   : > { %2358 = vrot.lane.b32.xlu1 %v5224_v24, %s3549_s26 }
 0x522   : > { %v2226_v50 = vpop.f32.mrb[34].mxu0 }
 0x523   : > { %v2227_v22 = vadd.f32 %v5177_v38, %v2226_v50  ;;  %v3152_v29 = vpop.f32.mrb[35].mxu0 }
 0x525   : > { %v2266_v56 = vmax.f32 %v2227_v22, 0.0 }
 0x526   : > { %v2231_v43 = vpop.f32.mrb[36].mxu0 }
 0x527   : > { %v2298_v55 = vrot.slane %v2266_v56, 1  ;;  %v2232_v8 = vadd.f32 %v5177_v38, %v2231_v43  ;;  %v3155_v26 = vpop.f32.mrb[37].mxu0 }
 0x529   : > { %v2299_v49 = vsel %vm2286_vm7, %v2296_v13, %v2298_v55  ;;  %v2267_v53 = vmax.f32 %v2232_v8, 0.0 }
 0x52a   : > { %v5231_v39 = vmax.f32 %v2265_v42, %v2299_v49 }
 0x52b   : > { %v2300_v2 = vrot.slane %v2267_v53, 1 }
 0x52c   : > { %2360 = vrot.lane.b32.xlu0 %v5231_v39, %s3549_s26 }
 0x52d   : > { %v2301_v52 = vsel %vm2286_vm7, %v2298_v55, %v2300_v2 }
 0x52e   : > { %v5236_v34 = vmax.f32 %v2266_v56, %v2301_v52  ;;  %v2682_v52 = vld [vmem:[%s5474_s1 + $0x248] sm:$0xff] }
 0x530   : > { %2362 = vrot.lane.b32.xlu1 %v5236_v34, %s3549_s26 }
 0x532   : > { %v2236_v57 = vpop.f32.mrb[38].mxu0 }
 0x533   : > { %v2237_v31 = vadd.f32 %v5177_v38, %v2236_v57  ;;  %v3158_v21 = vpop.f32.mrb[39].mxu0  ;;  %v2683_v57 = vld [vmem:[%s5474_s1 + $0x250] sm:$0xff] }
 0x534   : > { %v2684_v21 = vld [vmem:[%s5474_s1 + $0x258] sm:$0xff] }
 0x535   : > { %v2268_v47 = vmax.f32 %v2237_v31, 0.0  ;;  %v3285_v31 = vpack.c.bf16 %v2683_v57, %v2682_v52 }
 0x536   : > { %v2241_v41 = vpop.f32.mrb[40].mxu0 }
 0x537   : > { %v2302_v51 = vrot.slane %v2268_v47, 1  ;;  %v2242_v27 = vadd.f32 %v5177_v38, %v2241_v41  ;;  %v3161_v11 = vpop.f32.mrb[41].mxu0 }
 0x539   : > { %v2303_v45 = vsel %vm2286_vm7, %v2300_v2, %v2302_v51  ;;  %v2269_v0 = vmax.f32 %v2242_v27, 0.0  ;;  %v2681_v2 = vld [vmem:[%s5474_s1 + $0x240] sm:$0xff]  ;;  %v2687_v27 = vld [vmem:[%s5474_s1 + $0x270] sm:$0xff] }
 0x53a   : > { %v2334_v7 = vmax.f32 %v2267_v53, %v2303_v45  ;;  %v2688_v45 = vld [vmem:[%s5474_s1 + $0x278] sm:$0xff] }
 0x53b   : > { %v2304_v44 = vrot.slane %v2269_v0, 1 }
 0x53c   : > { %2364 = vrot.lane.b32.xlu0 %v2334_v7, %s3549_s26 }
 0x53d   : > { %v2305_v12 = vsel %vm2286_vm7, %v2302_v51, %v2304_v44  ;;  %v2686_v51 = vld [vmem:[%s5474_s1 + $0x268] sm:$0xff] }
 0x53e   : > { %v2335_v54 = vmax.f32 %v2268_v47, %v2305_v12  ;;  %v2685_v47 = vld [vmem:[%s5474_s1 + $0x260] sm:$0xff]  ;;  %v3291_v11 = vpack.c.bf16 %v2687_v27, %v2686_v51  ;;  %v2691_v12 = vld [vmem:[%s5474_s1 + $0x290] sm:$0xff] }
 0x53f   : > { %v2246_v23 = vpop.f32.mrb[42].mxu0  ;;  %v3288_v41 = vpack.c.bf16 %v2685_v47, %v2684_v21 }
 0x540   : > { %v2247_v61 = vadd.f32 %v5177_v38, %v2246_v23  ;;  %2366 = vrot.lane.b32.xlu1 %v2335_v54, %s3549_s26  ;;  %v3164_v48 = vpop.f32.mrb[43].mxu0  ;;  %v2692_v23 = vld [vmem:[%s5474_s1 + $0x298] sm:$0xff] }
 0x542   : > { %v2270_v25 = vmax.f32 %v2247_v61, 0.0  ;;  %v2693_v61 = vld [vmem:[%s5474_s1 + $0x2a0] sm:$0xff] }
 0x543   : > { %v2251_v63 = vpop.f32.mrb[44].mxu0  ;;  %v3300_v48 = vpack.c.bf16 %v2693_v61, %v2692_v23 }
 0x544   : > { %v2306_v16 = vrot.slane %v2270_v25, 1  ;;  %v2252_v28 = vadd.f32 %v5177_v38, %v2251_v63  ;;  %v3167_v14 = vpop.f32.mrb[45].mxu0  ;;  %v2695_v63 = vld [vmem:[%s5474_s1 + $0x2b0] sm:$0xff] }
 0x545   : > { %v2697_v14 = vld [vmem:[%s5474_s1 + $0x2c0] sm:$0xff] }
 0x546   : > { %v2307_v4 = vsel %vm2286_vm7, %v2304_v44, %v2306_v16  ;;  %v2271_v18 = vmax.f32 %v2252_v28, 0.0  ;;  %v2690_v44 = vld [vmem:[%s5474_s1 + $0x288] sm:$0xff]  ;;  %v2696_v28 = vld [vmem:[%s5474_s1 + $0x2b8] sm:$0xff] }
 0x547   : > { %v2256_v59 = vpop.f32.mrb[46].mxu0  ;;  %v2336_v30 = vmax.f32 %v2269_v0, %v2307_v4  ;;  %v2689_v0 = vld [vmem:[%s5474_s1 + $0x280] sm:$0xff]  ;;  %v3306_v4 = vpack.c.bf16 %v2697_v14, %v2696_v28 }
 0x548   : > { %v2308_v60 = vrot.slane %v2271_v18, 1  ;;  %v2257_v1 = vadd.f32 %v5177_v38, %v2256_v59  ;;  %v3170_v36 = vpop.f32.mrb[47].mxu0  ;;  %v2699_v59 = vld [vmem:[%s5474_s1 + $0x2d0] sm:$0xff] }
 0x549   : > { %2368 = vrot.lane.b32.xlu0 %v2336_v30, %s3549_s26 }
 0x54a   : > { %v2309_v5 = vsel %vm2286_vm7, %v2306_v16, %v2308_v60  ;;  %v2272_v17 = vmax.f32 %v2257_v1, 0.0  ;;  %v2701_v1 = vld [vmem:[%s5474_s1 + $0x2e0] sm:$0xff] }
 0x54b   : > { %v2337_v46 = vmax.f32 %v2270_v25, %v2309_v5  ;;  %v2694_v25 = vld [vmem:[%s5474_s1 + $0x2a8] sm:$0xff] }
 0x54c   : > { %v2310_v9 = vrot.slane %v2272_v17, 1  ;;  %v3303_v16 = vpack.c.bf16 %v2695_v63, %v2694_v25  ;;  %v2702_v5 = vld [vmem:[%s5474_s1 + $0x2e8] sm:$0xff] }
 0x54d   : > { %2370 = vrot.lane.b32.xlu1 %v2337_v46, %s3549_s26 }
 0x54e   : > { %v2311_v15 = vsel %vm2286_vm7, %v2308_v60, %v2310_v9  ;;  %v2326_v40 = vsel %vm2286_vm7, %v2310_v9, %v5195_v19  ;;  %v2700_v60 = vld [vmem:[%s5474_s1 + $0x2d8] sm:$0xff]  ;;  %v5375_v9 = vld [vmem:[%s5475_s2 + $0x4] ss:$0 sm:$0xff] }
 0x54f   : > { %v2339_v35 = vmax.f32 %v2272_v17, %v2326_v40  ;;  %v2338_v58 = vmax.f32 %v2271_v18, %v2311_v15  ;;  %v2698_v18 = vld [vmem:[%s5474_s1 + $0x2c8] sm:$0xff]  ;;  %v3312_v36 = vpack.c.bf16 %v2701_v1, %v2700_v60  ;;  %v2703_v17 = vld [vmem:[%s5474_s1 + $0x2f0] sm:$0xff] }
 0x551   : > { %2372 = vrot.lane.b32.xlu0 %v2338_v58, %s3549_s26 }
 0x57e   : > { %v2353_v38 = vpop.permute.xlu0 %2352 }
 0x57f   : > { %v2385_v33 = vsel %vm1149_vm3, %v5200_v10, %v2353_v38 }
 0x580   : > { %2512 = vmatmul.mubr.f32.vlgmr.msra.gmra.mrb[34].mxu1 %v2385_v33 }
 0x581   : > { %2964 = vmatprep.mubr.msk.f32.mxu1 %vm1149_vm3, %v5219_v6 }
 0x582   : > { %v2355_v3 = vpop.permute.xlu1 %2354 }
 0x583   : > { %v2386_v42 = vsel %vm1149_vm3, %v5205_v37, %v2355_v3 }
 0x584   : > { %2517 = vmatmul.mubr.f32.gmra.mrb[36].mxu1 %v2386_v42 }
 0x585   : > { %2965 = vmatprep.mubr.msk.f32.mxu1 %vm1149_vm3, %v5224_v24 }
 0x58e   : > { %v2357_v19 = vpop.permute.xlu0 %2356 }
 0x58f   : > { %v2387_v13 = vsel %vm1149_vm3, %v5210_v62, %v2357_v19 }
 0x590   : > { %2522 = vmatmul.mubr.f32.gmra.mrb[38].mxu1 %v2387_v13 }
 0x591   : > { %2966 = vmatprep.mubr.msk.f32.mxu1 %vm1149_vm3, %v5231_v39 }
 0x592   : > { %v2359_v10 = vpop.permute.xlu1 %2358 }
 0x593   : > { %v2388_v32 = vsel %vm1149_vm3, %v5219_v6, %v2359_v10 }
 0x594   : > { %2527 = vmatmul.mubr.f32.gmra.mrb[40].mxu1 %v2388_v32 }
 0x595   : > { %2967 = vmatprep.mubr.msk.f32.mxu1 %vm1149_vm3, %v5236_v34 }
 0x59e   : > { %v2361_v37 = vpop.permute.xlu0 %2360 }
 0x59f   : > { %v2389_v50 = vsel %vm1149_vm3, %v5224_v24, %v2361_v37 }
 0x5a0   : > { %2532 = vmatmul.mubr.f32.gmra.mrb[42].mxu1 %v2389_v50 }
 0x5a1   : > { %2968 = vmatprep.mubr.msk.f32.mxu1 %vm1149_vm3, %v2334_v7 }
 0x5a2   : > { %v2363_v62 = vpop.permute.xlu1 %2362 }
 0x5a3   : > { %v2390_v22 = vsel %vm1149_vm3, %v5231_v39, %v2363_v62  ;;  %v2680_v39 = vld [vmem:[%s5474_s1 + $0x238] sm:$0xff] }
 0x5a4   : > { %2537 = vmatmul.mubr.f32.gmra.mrb[44].mxu1 %v2390_v22 }
 0x5a5   : > { %2969 = vmatprep.mubr.msk.f32.mxu1 %vm1149_vm3, %v2335_v54 }
 0x5ae   : > { %v2365_v29 = vpop.permute.xlu0 %2364 }
 0x5af   : > { %v2391_v6 = vsel %vm1149_vm3, %v5236_v34, %v2365_v29  ;;  %v3282_v34 = vpack.c.bf16 %v2681_v2, %v2680_v39 }
 0x5b0   : > { %2542 = vmatmul.mubr.f32.gmra.mrb[46].mxu1 %v2391_v6 }
 0x5b1   : > { %2970 = vmatprep.mubr.msk.f32.mxu1 %vm1149_vm3, %v2336_v30  ;;  %3283 = vmatpush1.bf16.msra.mxu0 %v3282_v34 }
 0x5b2   : > { %v2367_v56 = vpop.permute.xlu1 %2366  ;;  %3284 = vmatprep.subr.bf16.mxu0 %v3550_v20 }
 0x5b3   : > { %v2392_v24 = vsel %vm1149_vm3, %v2334_v7, %v2367_v56  ;;  %v3294_v7 = vpack.c.bf16 %v2689_v0, %v2688_v45 }
 0x5b4   : > { %2547 = vmatmul.mubr.f32.gmra.mrb[48].mxu1 %v2392_v24 }
 0x5b5   : > { %2971 = vmatprep.mubr.msk.f32.mxu1 %vm1149_vm3, %v2337_v46  ;;  %3286 = vmatpush1.bf16.msra.mxu0 %v3285_v31 }
 0x5b6   : > { %3287 = vmatprep.subr.bf16.mxu0 %v3550_v20 }
 0x5b9   : > { %3289 = vmatpush1.bf16.msra.mxu0 %v3288_v41 }
 0x5ba   : > { %3290 = vmatprep.subr.bf16.mxu0 %v3550_v20 }
 0x5bb   : > { %v2369_v43 = vpop.permute.xlu0 %2368 }
 0x5bc   : > { %v2393_v55 = vsel %vm1149_vm3, %v2335_v54, %v2369_v43  ;;  %v3297_v54 = vpack.c.bf16 %v2691_v12, %v2690_v44 }
 0x5bd   : > { %2552 = vmatmul.mubr.f32.gmra.mrb[50].mxu1 %v2393_v55  ;;  %3292 = vmatpush1.bf16.msra.mxu0 %v3291_v11 }
 0x5be   : > { %2972 = vmatprep.mubr.msk.f32.mxu1 %vm1149_vm3, %v2338_v58  ;;  %3293 = vmatprep.subr.bf16.mxu0 %v3550_v20 }
 0x5bf   : > { %v2371_v8 = vpop.permute.xlu1 %2370 }
 0x5c0   : > { %v2394_v26 = vsel %vm1149_vm3, %v2336_v30, %v2371_v8  ;;  %v3309_v30 = vpack.c.bf16 %v2699_v59, %v2698_v18 }
 0x5c1   : > { %2557 = vmatmul.mubr.f32.gmra.mrb[52].mxu1 %v2394_v26  ;;  %3295 = vmatpush1.bf16.msra.mxu0 %v3294_v7 }
 0x5c2   : > { %2973 = vmatprep.mubr.msk.f32.mxu1 %vm1149_vm3, %v2339_v35  ;;  %3296 = vmatprep.subr.bf16.mxu0 %v3550_v20 }
 0x5c3   : > { %v2373_v49 = vpop.permute.xlu0 %2372 }
 0x5c4   : > { %v2395_v53 = vsel %vm1149_vm3, %v2337_v46, %v2373_v49  ;;  %v3315_v46 = vpack.c.bf16 %v2703_v17, %v2702_v5 }
 0x5c5   : > { %2562 = vmatmul.mubr.f32.gmra.mrb[54].mxu1 %v2395_v53  ;;  %3298 = vmatpush1.bf16.msra.mxu0 %v3297_v54 }
 0x5c6   : > { %3299 = vmatprep.subr.bf16.mxu0 %v3550_v20 }
 0x5c9   : > { %3301 = vmatpush1.bf16.msra.mxu0 %v3300_v48 }
 0x5ca   : > { %3302 = vmatprep.subr.bf16.mxu0 %v3550_v20 }
 0x5cd   : > { %3304 = vmatpush1.bf16.msra.mxu0 %v3303_v16 }
 0x5ce   : > { %3305 = vmatprep.subr.bf16.mxu0 %v3550_v20 }
 0x5d1   : > { %3307 = vmatpush1.bf16.msra.mxu0 %v3306_v4 }
 0x5d2   : > { %3308 = vmatprep.subr.bf16.mxu0 %v3550_v20 }
 0x5d5   : > { %3310 = vmatpush1.bf16.msra.mxu0 %v3309_v30 }
 0x5d6   : > { %3311 = vmatprep.subr.bf16.mxu0 %v3550_v20 }
 0x5d9   : > { %3313 = vmatpush1.bf16.msra.mxu0 %v3312_v36 }
 0x5da   : > { %3314 = vmatprep.subr.bf16.mxu0 %v3550_v20 }
 0x5dd   : > { %3316 = vmatpush1.bf16.msra.mxu0 %v3315_v46 }
 0x653   : > { %v2513_v15 = vpop.f32.mrb[34].mxu1 }
 0x654   : > { %v2514_v40 = vadd.f32 %v5375_v9, %v2513_v15  ;;  %v2515_v35 = vpop.f32.mrb[35].mxu1 }
 0x656   : > { %v2567_v38 = vmax.f32 %v2514_v40, 0.0 }
 0x657   : > { %v2518_v58 = vpop.f32.mrb[36].mxu1 }
 0x658   : > { %v2519_v33 = vadd.f32 %v5375_v9, %v2518_v58  ;;  %v2520_v3 = vpop.f32.mrb[37].mxu1  ;;  %v5379_v19 = vrot.slane %v2567_v38, 1 }
 0x65a   : > { %v2568_v42 = vmax.f32 %v2519_v33, 0.0 }
 0x65c   : > { %v2590_v13 = vrot.slane %v2568_v42, 1 }
 0x65e   : > { %v2591_v20 = vsel %vm2286_vm7, %v5379_v19, %v2590_v13 }
 0x65f   : > { %v5383_v10 = vmax.f32 %v2567_v38, %v2591_v20 }
 0x663   : > { %v2523_v32 = vpop.f32.mrb[38].mxu1 }
 0x664   : > { %v2524_v37 = vadd.f32 %v5375_v9, %v2523_v32  ;;  %v2525_v50 = vpop.f32.mrb[39].mxu1 }
 0x666   : > { %v2569_v62 = vmax.f32 %v2524_v37, 0.0 }
 0x667   : > { %v2528_v22 = vpop.f32.mrb[40].mxu1 }
 0x668   : > { %v2592_v29 = vrot.slane %v2569_v62, 1  ;;  %v2529_v6 = vadd.f32 %v5375_v9, %v2528_v22  ;;  %v2530_v56 = vpop.f32.mrb[41].mxu1 }
 0x66a   : > { %v2593_v24 = vsel %vm2286_vm7, %v2590_v13, %v2592_v29  ;;  %v2570_v43 = vmax.f32 %v2529_v6, 0.0 }
 0x66b   : > { %v5388_v55 = vmax.f32 %v2568_v42, %v2593_v24 }
 0x66c   : > { %v2594_v8 = vrot.slane %v2570_v43, 1 }
 0x66d   : > { %2644 = vrot.lane.b32.xlu1 %v5388_v55, %s3549_s26 }
 0x66e   : > { %v2595_v26 = vsel %vm2286_vm7, %v2592_v29, %v2594_v8 }
 0x66f   : > { %v5393_v49 = vmax.f32 %v2569_v62, %v2595_v26 }
 0x671   : > { %2975 = vmatprep.mubr.msk.f32.mxu0 %vm1149_vm3, %v5393_v49  ;;  %2646 = vrot.lane.b32.xlu0 %v5393_v49, %s3549_s26 }
 0x673   : > { %v2533_v53 = vpop.f32.mrb[42].mxu1 }
 0x674   : > { %v2534_v39 = vadd.f32 %v5375_v9, %v2533_v53  ;;  %v2535_v2 = vpop.f32.mrb[43].mxu1 }
 0x676   : > { %v2571_v52 = vmax.f32 %v2534_v39, 0.0 }
 0x677   : > { %v2538_v34 = vpop.f32.mrb[44].mxu1 }
 0x678   : > { %v2596_v57 = vrot.slane %v2571_v52, 1  ;;  %v2539_v31 = vadd.f32 %v5375_v9, %v2538_v34  ;;  %v2540_v21 = vpop.f32.mrb[45].mxu1 }
 0x67a   : > { %v2597_v47 = vsel %vm2286_vm7, %v2594_v8, %v2596_v57  ;;  %v2572_v41 = vmax.f32 %v2539_v31, 0.0 }
 0x67b   : > { %v2626_v51 = vmax.f32 %v2570_v43, %v2597_v47 }
 0x67c   : > { %v2598_v27 = vrot.slane %v2572_v41, 1 }
 0x67d   : > { %2648 = vrot.lane.b32.xlu1 %v2626_v51, %s3549_s26 }
 0x67e   : > { %v2599_v11 = vsel %vm2286_vm7, %v2596_v57, %v2598_v27  ;;  %v2974_v57 = vld [vmem:[%s5475_s2 + $0x5] ss:$0 sm:$0xff] }
 0x67f   : > { %v2627_v45 = vmax.f32 %v2571_v52, %v2599_v11 }
 0x681   : > { %2650 = vrot.lane.b32.xlu0 %v2627_v45, %s3549_s26 }
 0x683   : > { %v2543_v0 = vpop.f32.mrb[46].mxu1 }
 0x684   : > { %v2544_v7 = vadd.f32 %v5375_v9, %v2543_v0  ;;  %v2545_v44 = vpop.f32.mrb[47].mxu1 }
 0x686   : > { %v2573_v12 = vmax.f32 %v2544_v7, 0.0 }
 0x687   : > { %v2548_v54 = vpop.f32.mrb[48].mxu1 }
 0x688   : > { %v2600_v23 = vrot.slane %v2573_v12, 1  ;;  %v2549_v61 = vadd.f32 %v5375_v9, %v2548_v54  ;;  %v2550_v48 = vpop.f32.mrb[49].mxu1 }
 0x68a   : > { %v2601_v25 = vsel %vm2286_vm7, %v2598_v27, %v2600_v23  ;;  %v2574_v63 = vmax.f32 %v2549_v61, 0.0 }
 0x68b   : > { %v2628_v16 = vmax.f32 %v2572_v41, %v2601_v25 }
 0x68c   : > { %v2602_v28 = vrot.slane %v2574_v63, 1 }
 0x68d   : > { %2652 = vrot.lane.b32.xlu1 %v2628_v16, %s3549_s26 }
 0x68e   : > { %v2603_v14 = vsel %vm2286_vm7, %v2600_v23, %v2602_v28 }
 0x68f   : > { %v2629_v4 = vmax.f32 %v2573_v12, %v2603_v14 }
 0x690   : > { %v2553_v18 = vpop.f32.mrb[50].mxu1 }
 0x691   : > { %v2554_v59 = vadd.f32 %v5375_v9, %v2553_v18  ;;  %v2555_v30 = vpop.f32.mrb[51].mxu1  ;;  %2654 = vrot.lane.b32.xlu0 %v2629_v4, %s3549_s26 }
 0x693   : > { %v2575_v60 = vmax.f32 %v2554_v59, 0.0 }
 0x694   : > { %v2558_v1 = vpop.f32.mrb[52].mxu1 }
 0x695   : > { %v2604_v36 = vrot.slane %v2575_v60, 1  ;;  %v2559_v5 = vadd.f32 %v5375_v9, %v2558_v1  ;;  %v2560_v17 = vpop.f32.mrb[53].mxu1 }
 0x697   : > { %v2605_v46 = vsel %vm2286_vm7, %v2602_v28, %v2604_v36  ;;  %v2576_v15 = vmax.f32 %v2559_v5, 0.0 }
 0x698   : > { %v2563_v40 = vpop.f32.mrb[54].mxu1  ;;  %v2630_v35 = vmax.f32 %v2574_v63, %v2605_v46 }
 0x699   : > { %v2606_v58 = vrot.slane %v2576_v15, 1  ;;  %v2564_v38 = vadd.f32 %v5375_v9, %v2563_v40  ;;  %v2565_v33 = vpop.f32.mrb[55].mxu1 }
 0x69a   : > { %2656 = vrot.lane.b32.xlu1 %v2630_v35, %s3549_s26 }
 0x69b   : > { %v2607_v3 = vsel %vm2286_vm7, %v2604_v36, %v2606_v58  ;;  %v2577_v42 = vmax.f32 %v2564_v38, 0.0 }
 0x69c   : > { %v2631_v13 = vmax.f32 %v2575_v60, %v2607_v3 }
 0x69d   : > { %v2608_v20 = vrot.slane %v2577_v42, 1 }
 0x69e   : > { %2658 = vrot.lane.b32.xlu0 %v2631_v13, %s3549_s26 }
 0x69f   : > { %v2609_v32 = vsel %vm2286_vm7, %v2606_v58, %v2608_v20  ;;  %v2622_v37 = vsel %vm2286_vm7, %v2608_v20, %v5379_v19 }
 0x6a0   : > { %v2633_v50 = vmax.f32 %v2577_v42, %v2622_v37  ;;  %v2632_v62 = vmax.f32 %v2576_v15, %v2609_v32 }
 0x6a2   : > { %2660 = vrot.lane.b32.xlu1 %v2632_v62, %s3549_s26  ;;  %s168_s26 = smul.u32 9, %s2911_s13 }
 0x6a4   : > { %p169_p4 = scmp.lt.s32.totalorder %s168_s26, 17 }
 0x6a6   : > { %s5530_s26 = smov (!%p169_p4, %s168_s26), 17 }
 0x6a7   : > { %s2918_s14 = sshll.u32 %s5530_s26, 3 }
 0x6a8   : > { %s5450_s17 = scalar_lea.vmem %s5476_s3, %s2918_s14 }
 0x6df   : > { %v2645_v9 = vpop.permute.xlu1 %2644 }
 0x6e0   : > { %v2671_v22 = vsel %vm1149_vm3, %v5383_v10, %v2645_v9 }
 0x6e1   : > { %2792 = vmatmul.mubr.f32.vlgmr.msra.gmra.mrb[48].mxu0 %v2671_v22 }
 0x6e2   : > { %2976 = vmatprep.mubr.msk.f32.mxu0 %vm1149_vm3, %v2626_v51 }
 0x6e3   : > { %v2647_v29 = vpop.permute.xlu0 %2646 }
 0x6e4   : > { %v2672_v6 = vsel %vm1149_vm3, %v5388_v55, %v2647_v29 }
 0x6e5   : > { %2797 = vmatmul.mubr.f32.gmra.mrb[50].mxu0 %v2672_v6 }
 0x6e6   : > { %2977 = vmatprep.mubr.msk.f32.mxu0 %vm1149_vm3, %v2627_v45 }
 0x6ef   : > { %v2649_v56 = vpop.permute.xlu1 %2648 }
 0x6f0   : > { %v2673_v19 = vsel %vm1149_vm3, %v5393_v49, %v2649_v56 }
 0x6f1   : > { %2802 = vmatmul.mubr.f32.gmra.mrb[52].mxu0 %v2673_v19 }
 0x6f2   : > { %2978 = vmatprep.mubr.msk.f32.mxu0 %vm1149_vm3, %v2628_v16 }
 0x6f3   : > { %v2651_v24 = vpop.permute.xlu0 %2650 }
 0x6f4   : > { %v2674_v10 = vsel %vm1149_vm3, %v2626_v51, %v2651_v24 }
 0x6f5   : > { %2807 = vmatmul.mubr.f32.gmra.mrb[54].mxu0 %v2674_v10 }
 0x6f6   : > { %2979 = vmatprep.mubr.msk.f32.mxu0 %vm1149_vm3, %v2629_v4 }
 0x6ff   : > { %v2653_v43 = vpop.permute.xlu1 %2652 }
 0x700   : > { %v2675_v8 = vsel %vm1149_vm3, %v2627_v45, %v2653_v43 }
 0x701   : > { %2812 = vmatmul.mubr.f32.gmra.mrb[56].mxu0 %v2675_v8 }
 0x702   : > { %2980 = vmatprep.mubr.msk.f32.mxu0 %vm1149_vm3, %v2630_v35 }
 0x703   : > { %v2655_v55 = vpop.permute.xlu0 %2654 }
 0x704   : > { %v2676_v26 = vsel %vm1149_vm3, %v2628_v16, %v2655_v55 }
 0x705   : > { %2817 = vmatmul.mubr.f32.gmra.mrb[58].mxu0 %v2676_v26 }
 0x706   : > { %2981 = vmatprep.mubr.msk.f32.mxu0 %vm1149_vm3, %v2631_v13 }
 0x70c   : > { %v2657_v49 = vpop.permute.xlu1 %2656 }
 0x70d   : > { %v2677_v53 = vsel %vm1149_vm3, %v2629_v4, %v2657_v49 }
 0x70e   : > { %2822 = vmatmul.mubr.f32.gmra.mrb[60].mxu0 %v2677_v53 }
 0x70f   : > { %2982 = vmatprep.mubr.msk.f32.mxu0 %vm1149_vm3, %v2632_v62 }
 0x710   : > { %v2659_v39 = vpop.permute.xlu0 %2658 }
 0x711   : > { %v2678_v2 = vsel %vm1149_vm3, %v2630_v35, %v2659_v39 }
 0x712   : > { %2827 = vmatmul.mubr.f32.gmra.mrb[62].mxu0 %v2678_v2 }
 0x713   : > { %2983 = vmatprep.mubr.msk.f32.mxu0 %vm1149_vm3, %v2633_v50 }
 0x714   : > { %v2661_v52 = vpop.permute.xlu1 %2660 }
 0x715   : > { %v2679_v34 = vsel %vm1149_vm3, %v2631_v13, %v2661_v52 }
 0x716   : > { %2832 = vmatmul.mubr.f32.gmra.mrb[64].mxu0 %v2679_v34 }
 0x7b4   : > { %v2793_v31 = vpop.f32.mrb[48].mxu0 }
 0x7b5   : > { %v2794_v21 = vadd.f32 %v2974_v57, %v2793_v31  ;;  %v2795_v47 = vpop.f32.mrb[49].mxu0 }
 0x7b7   : > { %v2837_v41 = vmax.f32 %v2794_v21, 0.0 }
 0x7b8   : > { %v2798_v51 = vpop.f32.mrb[50].mxu0 }
 0x7b9   : > { %2846 = vst.msk [vmem:[%s5450_s17] sm:$0xff] %vm1149_vm3, %v2837_v41  ;;  %v2799_v27 = vadd.f32 %v2974_v57, %v2798_v51  ;;  %v2800_v11 = vpop.f32.mrb[51].mxu0 }
 0x7bb   : > { %v2838_v45 = vmax.f32 %v2799_v27, 0.0 }
 0x7bd   : > { %2847 = vst.msk [vmem:[%s5450_s17 + $0x8] sm:$0xff] %vm1149_vm3, %v2838_v45 }
 0x7c4   : > { %v2803_v0 = vpop.f32.mrb[52].mxu0 }
 0x7c5   : > { %v2804_v7 = vadd.f32 %v2974_v57, %v2803_v0  ;;  %v2805_v44 = vpop.f32.mrb[53].mxu0 }
 0x7c7   : > { %v2839_v12 = vmax.f32 %v2804_v7, 0.0 }
 0x7c8   : > { %v2808_v54 = vpop.f32.mrb[54].mxu0 }
 0x7c9   : > { %2848 = vst.msk [vmem:[%s5450_s17 + $0x10] sm:$0xff] %vm1149_vm3, %v2839_v12  ;;  %v2809_v23 = vadd.f32 %v2974_v57, %v2808_v54  ;;  %v2810_v61 = vpop.f32.mrb[55].mxu0 }
 0x7cb   : > { %v2840_v48 = vmax.f32 %v2809_v23, 0.0 }
 0x7cd   : > { %2849 = vst.msk [vmem:[%s5450_s17 + $0x18] sm:$0xff] %vm1149_vm3, %v2840_v48 }
 0x7d4   : > { %v2813_v25 = vpop.f32.mrb[56].mxu0 }
 0x7d5   : > { %v2814_v63 = vadd.f32 %v2974_v57, %v2813_v25  ;;  %v2815_v16 = vpop.f32.mrb[57].mxu0 }
 0x7d7   : > { %v2841_v28 = vmax.f32 %v2814_v63, 0.0 }
 0x7d8   : > { %v2818_v14 = vpop.f32.mrb[58].mxu0 }
 0x7d9   : > { %2850 = vst.msk [vmem:[%s5450_s17 + $0x20] sm:$0xff] %vm1149_vm3, %v2841_v28  ;;  %v2819_v4 = vadd.f32 %v2974_v57, %v2818_v14  ;;  %v2820_v18 = vpop.f32.mrb[59].mxu0 }
 0x7db   : > { %v2842_v59 = vmax.f32 %v2819_v4, 0.0 }
 0x7dd   : > { %2851 = vst.msk [vmem:[%s5450_s17 + $0x28] sm:$0xff] %vm1149_vm3, %v2842_v59 }
 0x7e1   : > { %v2823_v30 = vpop.f32.mrb[60].mxu0 }
 0x7e2   : > { %v2824_v60 = vadd.f32 %v2974_v57, %v2823_v30  ;;  %v2825_v1 = vpop.f32.mrb[61].mxu0 }
 0x7e4   : > { %v2843_v36 = vmax.f32 %v2824_v60, 0.0 }
 0x7e5   : > { %v2828_v5 = vpop.f32.mrb[62].mxu0 }
 0x7e6   : > { %2852 = vst.msk [vmem:[%s5450_s17 + $0x30] sm:$0xff] %vm1149_vm3, %v2843_v36  ;;  %v2829_v17 = vadd.f32 %v2974_v57, %v2828_v5  ;;  %v2830_v46 = vpop.f32.mrb[63].mxu0 }
 0x7e8   : > { %v2844_v15 = vmax.f32 %v2829_v17, 0.0 }
 0x7e9   : > { %v2833_v40 = vpop.f32.mrb[64].mxu0 }
 0x7ea   : > { %2853 = vst.msk [vmem:[%s5450_s17 + $0x38] sm:$0xff] %vm1149_vm3, %v2844_v15  ;;  %v2834_v35 = vadd.f32 %v2974_v57, %v2833_v40  ;;  %v2835_v58 = vpop.f32.mrb[65].mxu0 }
 0x7ec   : > { %v2845_v38 = vmax.f32 %v2834_v35, 0.0 }
 0x7ee   : > { %2854 = vst.msk [vmem:[%s5450_s17 + $0x40] sm:$0xff] %vm1149_vm3, %v2845_v38 }
 0x7ef PF: > { %s13_s12 = sadd.s32 1, %s3543_s12  }
 0x7f0   : > { %p10_p5 = scmp.ge.s32.totalorder %s13_s12, 4  }
 0x7f2   :  { %12 = sbr.rel (!%p10_p5) target bundleno = 1 (0x1), region = 62 }

</bundles_post_ra>
